<compile_context>
chip_gen: v7x
topology: tpu7x:2x2x1
jax: 0.10.0
libtpu: 0.0.40
codegen_flags: <defaults>
</compile_context>

<pallas_src>
import jax
import jax.numpy as jnp
import numpy as np
from jax.experimental import pallas as pl
from jax.experimental.pallas import tpu as pltpu

NEG_SLOPE = 0.01   # torch.nn.LeakyReLU default
LANE = 128
LATENT = 10        # true latent width; padded to LANE inside the kernel


def _round_up(n, m):
    return -(-n // m) * m


def _leaky(v):
    # max(v, a*v) == LeakyReLU(v) for 0 < a < 1; saves one VALU op per element.
    return jnp.maximum(v, NEG_SLOPE * v)


def autoencoder_kernel(
    x_ref,
    w1, b1, w2, b2, w3, b3, w4, b4,      # encoder params (lane-padded)
    w5, b5, w6, b6, w7, b7, w8, b8,      # decoder params (lane-padded)
    x1_ref, x2_ref,
):
    def dense(h, w, b):
        # bf16 operands on the MXU, f32 accumulation, f32 bias add.
        return jnp.dot(h.astype(jnp.bfloat16), w[...],
                       preferred_element_type=jnp.float32) + b[...]

    h = x_ref[...]                        # already bf16 (cast in the wrapper)

    # ---- encoder: (Linear + LeakyReLU) x4 ----
    h = _leaky(dense(h, w1, b1))
    h = _leaky(dense(h, w2, b2))
    h = _leaky(dense(h, w3, b3))          # cols 32.. are exact zeros
    h = _leaky(dense(h, w4, b4))          # cols 10.. are exact zeros
    x1_ref[...] = h.astype(x1_ref.dtype)  # lane-dense, unmasked store

    # ---- decoder: (Linear + LeakyReLU) x3, then final Linear (no activation) ----
    h = _leaky(dense(h, w5, b5))          # padded w5 rows are zero -> exact
    h = _leaky(dense(h, w6, b6))
    h = _leaky(dense(h, w7, b7))
    h = dense(h, w8, b8)                  # padded output cols are exact zeros
    x2_ref[...] = h.astype(x2_ref.dtype)  # lane-dense, unmasked store


# --------------------------------------------------------------------------
# generation-aware policy helpers
# --------------------------------------------------------------------------

def _chip_kind():
    try:
        return jax.devices()[0].device_kind.lower()
    except Exception:
        return ""


def _has_two_tensorcores(kind):
    # v7x: 2 independent TCs/chip; v4/v5p: 2 TCs exposed as a megacore.
    return any(tag in kind for tag in ("v7", "7x", "v4", "v5p"))


def _vmem_cap_bytes(kind):
    if any(tag in kind for tag in ("v7", "7x")):
        return 48 * 1024 * 1024    # 64 MiB physical per TC -> leave headroom
    return 100 * 1024 * 1024       # v5e/v6e: 128 MiB physical


def _pick_tile_b(batch_pad, two_tc, max_tile=512):
    """Single-TC: one big grid step (grid is a serial loop -> extra steps only
    cost pipeline overhead). Two-TC: >= 2 grid steps so both cores get work,
    capped at 256 rows (MXU M dimension)."""
    if two_tc:
        desired = min(max(8, _round_up(pl.cdiv(batch_pad, 2), 8)), 256)
    else:
        desired = min(batch_pad, max_tile)
    return _round_up(desired, 8)


# --------------------------------------------------------------------------
# wrapper
# --------------------------------------------------------------------------

def autoencoder_forward(x, params, *, tile_b=None):
    """x: (B, D) float array. params: 8 (W_(in,out), b_(1,out)) pairs, pre-padded
    by pad_params_for_kernel (all dims multiples of 128, weights bf16)."""
    B, D = x.shape
    d_pad = params[0][0].shape[0]              # padded rover_state_size
    assert params[-1][0].shape[1] == d_pad

    kind = _chip_kind()
    if tile_b is None:
        tile_b = _pick_tile_b(_round_up(B, 8), _has_two_tensorcores(kind))
    tile_b = _round_up(tile_b, 8)              # sublane alignment (8,128) constraint
    b_pad = _round_up(B, tile_b)
    grid = (b_pad // tile_b,)

    # Lane-dense, sublane-aligned bf16 input tile (padding rows/cols are zeros).
    x_pad = jnp.zeros((b_pad, d_pad), jnp.bfloat16).at[:B, :D].set(
        x.astype(jnp.bfloat16))

    flat_params = [a for wb in params for a in wb]

    # Input block tiles over the batch; every weight/bias is a single full-array
    # block with a constant index_map -> fetched once, VMEM-resident.
    # TODO(synk): for very large rover_state_size (v7x: d_pad*1024*2B >= ~8-12 MiB,
    # i.e. D >= ~4k-6k) add a K-reduction grid axis for w1 and tile w8's output
    # instead of monolithic VMEM blocks.
    # TODO(synk): on v7x, w1/w8 (and w2/w7) could be stored fp8 for the MXU path
    # (f32 accumulation) to halve their DMA/VMEM -- needs accuracy validation.
    def make_in_specs(single_buffer_params):
        specs = [pl.BlockSpec((tile_b, d_pad), lambda i: (i, 0))]
        for a in flat_params:
            if single_buffer_params:
                # Constant-index blocks never change -> no need to double-buffer.
                specs.append(pl.BlockSpec(a.shape, lambda i: (0, 0),
                                          pipeline_mode=pl.Buffered(1)))
            else:
                specs.append(pl.BlockSpec(a.shape, lambda i: (0, 0)))
        return specs

    out_specs = [
        pl.BlockSpec((tile_b, LANE), lambda i: (i, 0)),    # padded latent (128 lanes)
        pl.BlockSpec((tile_b, d_pad), lambda i: (i, 0)),   # padded reconstruction
    ]
    out_shapes = (
        jax.ShapeDtypeStruct((b_pad, LANE), jnp.float32),
        jax.ShapeDtypeStruct((b_pad, d_pad), jnp.float32),
    )

    param_bytes = sum(int(np.prod(a.shape)) * a.dtype.itemsize for a in flat_params)
    io_bytes = 2 * tile_b * (d_pad * 2 + LANE * 4 + d_pad * 4)   # pipelined x/x1/x2 tiles
    act_bytes = 6 * tile_b * 1024 * 4                            # f32 intermediates headroom

    flops = 2 * b_pad * sum(int(w.shape[0]) * int(w.shape[1]) for w, _ in params)
    bytes_accessed = (int(x_pad.size) * 2 + param_bytes
                      + b_pad * LANE * 4 + b_pad * d_pad * 4)
    cost = pl.CostEstimate(flops=flops, transcendentals=0,
                           bytes_accessed=bytes_accessed)

    def run(single_buffer_params):
        pbytes = param_bytes if single_buffer_params else 2 * param_bytes
        budget = pbytes + io_bytes + act_bytes
        vmem_limit = None
        if budget > 12 * 1024 * 1024:    # default scoped-VMEM window is 16 MiB on v5e
            vmem_limit = min(int(1.25 * budget), _vmem_cap_bytes(kind))
        return pl.pallas_call(
            autoencoder_kernel,
            out_shape=out_shapes,
            grid_spec=pltpu.PrefetchScalarGridSpec(
                num_scalar_prefetch=0,
                grid=grid,
                in_specs=make_in_specs(single_buffer_params),
                out_specs=out_specs,
            ),
            compiler_params=pltpu.CompilerParams(
                dimension_semantics=("parallel",),
                vmem_limit_bytes=vmem_limit,
            ),
            cost_estimate=cost,
        )(x_pad, *flat_params)

    try:
        x1_pad, x2_pad = run(True)       # single-buffered weight/bias blocks
    except Exception:
        # pipeline_mode=pl.Buffered(1) not supported on this jax build ->
        # fall back to default (double-buffered) weight blocks.
        x1_pad, x2_pad = run(False)

    return x1_pad[:B, :LATENT], x2_pad[:B, :D]


# --------------------------------------------------------------------------
# params
# --------------------------------------------------------------------------

def init_params(key, rover_state_size):
    """Deterministic f32 params matching nn.Linear shapes (W stored as (in, out))."""
    dims = [
        (rover_state_size, 1024), (1024, 256), (256, 32), (32, LATENT),   # encoder
        (LATENT, 32), (32, 256), (256, 1024), (1024, rover_state_size),   # decoder
    ]
    params = []
    for (fan_in, fan_out) in dims:
        key, kw, kb = jax.random.split(key, 3)
        bound = 1.0 / np.sqrt(fan_in)   # same scale as torch Linear default init
        w = jax.random.uniform(kw, (fan_in, fan_out), jnp.float32, -bound, bound)
        b = jax.random.uniform(kb, (1, fan_out), jnp.float32, -bound, bound)
        params.append((w, b))
    return params


def pad_params_for_kernel(params):
    """Zero-pad every narrow boundary dim (D, 32, 10) to a multiple of 128 lanes.
    Padding is exact: padded weight rows/cols and bias cols are zero, and
    leaky(0)=0, so padded activations stay exactly zero. Weights -> bf16
    (MXU operands), biases stay f32."""
    def pad_to(a, rows, cols):
        return jnp.pad(a, ((0, rows - a.shape[0]), (0, cols - a.shape[1])))

    (w1, b1), (w2, b2), (w3, b3), (w4, b4), \
        (w5, b5), (w6, b6), (w7, b7), (w8, b8) = params
    D = w1.shape[0]
    d_pad = _round_up(D, LANE)

    padded = [
        (pad_to(w1, d_pad, 1024), b1),                      # D_pad -> 1024
        (w2, b2),                                           # 1024  -> 256
        (pad_to(w3, 256, LANE), pad_to(b3, 1, LANE)),       # 256   -> 32  (cols->128)
        (pad_to(w4, LANE, LANE), pad_to(b4, 1, LANE)),      # 32    -> 10  (rows,cols->128)
        (pad_to(w5, LANE, LANE), pad_to(b5, 1, LANE)),      # 10    -> 32  (rows,cols->128)
        (pad_to(w6, LANE, 256), b6),                        # 32    -> 256 (rows->128)
        (w7, b7),                                           # 256   -> 1024
        (pad_to(w8, 1024, d_pad), pad_to(b8, 1, d_pad)),    # 1024  -> D_pad
    ]
    return [(w.astype(jnp.bfloat16), b.astype(jnp.float32)) for w, b in padded]


def reference_forward(x, params):
    """Pure-JAX reference with the same bf16-operand / f32-accumulate precision."""
    h = x
    x1 = None
    for i, (w, b) in enumerate(params):
        h = jnp.dot(h.astype(jnp.bfloat16), w.astype(jnp.bfloat16),
                    preferred_element_type=jnp.float32) + b
        if i != len(params) - 1:   # LeakyReLU after every layer except the last
            h = _leaky(h)
        if i == 3:
            x1 = h
    return x1, h


if __name__ == "__main__":
    rover_state_size = 64
    batch = 128

    key = jax.random.PRNGKey(0)
    key, kx = jax.random.split(key)
    x = jax.random.normal(kx, (batch, rover_state_size), jnp.float32)

    params_f32 = init_params(key, rover_state_size)
    params_kernel = pad_params_for_kernel(params_f32)

    x1, x2 = autoencoder_forward(x, params_kernel)
    x1 = jax.block_until_ready(x1)
    x2 = jax.block_until_ready(x2)

    x1_ref, x2_ref = reference_forward(x, params_f32)
    np.testing.assert_allclose(np.asarray(x1), np.asarray(x1_ref), rtol=5e-3, atol=5e-3)
    np.testing.assert_allclose(np.asarray(x2), np.asarray(x2_ref), rtol=5e-3, atol=5e-3)

    print("KERNEL_OK")
</pallas_src>

<mosaic_0001>
module attributes {stable_mosaic.version = 11 : i64} {
  func.func @autoencoder_kernel(%arg0: i32, %arg1: memref<128x128xbf16, #tpu.memory_space<vmem>>, %arg2: memref<128x1024xbf16, #tpu.memory_space<vmem>>, %arg3: memref<1x1024xf32, #tpu.memory_space<vmem>>, %arg4: memref<1024x256xbf16, #tpu.memory_space<vmem>>, %arg5: memref<1x256xf32, #tpu.memory_space<vmem>>, %arg6: memref<256x128xbf16, #tpu.memory_space<vmem>>, %arg7: memref<1x128xf32, #tpu.memory_space<vmem>>, %arg8: memref<128x128xbf16, #tpu.memory_space<vmem>>, %arg9: memref<1x128xf32, #tpu.memory_space<vmem>>, %arg10: memref<128x128xbf16, #tpu.memory_space<vmem>>, %arg11: memref<1x128xf32, #tpu.memory_space<vmem>>, %arg12: memref<128x256xbf16, #tpu.memory_space<vmem>>, %arg13: memref<1x256xf32, #tpu.memory_space<vmem>>, %arg14: memref<256x1024xbf16, #tpu.memory_space<vmem>>, %arg15: memref<1x1024xf32, #tpu.memory_space<vmem>>, %arg16: memref<1024x128xbf16, #tpu.memory_space<vmem>>, %arg17: memref<1x128xf32, #tpu.memory_space<vmem>>, %arg18: memref<128x128xf32, #tpu.memory_space<vmem>>, %arg19: memref<128x128xf32, #tpu.memory_space<vmem>>) attributes {dimension_semantics = [#tpu.dimension_semantics<parallel>], iteration_bounds = array<i64: 1>, scalar_prefetch = 0 : i64, scratch_operands = 0 : i64, tpu.core_type = #tpu.core_type<tc>, window_params = [{transform_indices = @transform_0, window_bounds = array<i64: 128, 128>}, {pipeline_mode = #tpu.pipeline_mode<synchronous>, transform_indices = @transform_1, window_bounds = array<i64: 128, 1024>}, {pipeline_mode = #tpu.pipeline_mode<synchronous>, transform_indices = @transform_2, window_bounds = array<i64: 1, 1024>}, {pipeline_mode = #tpu.pipeline_mode<synchronous>, transform_indices = @transform_3, window_bounds = array<i64: 1024, 256>}, {pipeline_mode = #tpu.pipeline_mode<synchronous>, transform_indices = @transform_4, window_bounds = array<i64: 1, 256>}, {pipeline_mode = #tpu.pipeline_mode<synchronous>, transform_indices = @transform_5, window_bounds = array<i64: 256, 128>}, {pipeline_mode = #tpu.pipeline_mode<synchronous>, transform_indices = @transform_6, window_bounds = array<i64: 1, 128>}, {pipeline_mode = #tpu.pipeline_mode<synchronous>, transform_indices = @transform_7, window_bounds = array<i64: 128, 128>}, {pipeline_mode = #tpu.pipeline_mode<synchronous>, transform_indices = @transform_8, window_bounds = array<i64: 1, 128>}, {pipeline_mode = #tpu.pipeline_mode<synchronous>, transform_indices = @transform_9, window_bounds = array<i64: 128, 128>}, {pipeline_mode = #tpu.pipeline_mode<synchronous>, transform_indices = @transform_10, window_bounds = array<i64: 1, 128>}, {pipeline_mode = #tpu.pipeline_mode<synchronous>, transform_indices = @transform_11, window_bounds = array<i64: 128, 256>}, {pipeline_mode = #tpu.pipeline_mode<synchronous>, transform_indices = @transform_12, window_bounds = array<i64: 1, 256>}, {pipeline_mode = #tpu.pipeline_mode<synchronous>, transform_indices = @transform_13, window_bounds = array<i64: 256, 1024>}, {pipeline_mode = #tpu.pipeline_mode<synchronous>, transform_indices = @transform_14, window_bounds = array<i64: 1, 1024>}, {pipeline_mode = #tpu.pipeline_mode<synchronous>, transform_indices = @transform_15, window_bounds = array<i64: 1024, 128>}, {pipeline_mode = #tpu.pipeline_mode<synchronous>, transform_indices = @transform_16, window_bounds = array<i64: 1, 128>}, {transform_indices = @transform_17, window_bounds = array<i64: 128, 128>}, {transform_indices = @transform_18, window_bounds = array<i64: 128, 128>}]} {
    %c0 = arith.constant 0 : index
    %c0_0 = arith.constant 0 : index
    %0 = vector.load %arg1[%c0, %c0_0] : memref<128x128xbf16, #tpu.memory_space<vmem>>, vector<128x128xbf16>
    %c0_1 = arith.constant 0 : index
    %c0_2 = arith.constant 0 : index
    %1 = vector.load %arg2[%c0_1, %c0_2] : memref<128x1024xbf16, #tpu.memory_space<vmem>>, vector<128x1024xbf16>
    %cst = arith.constant dense<0.000000e+00> : vector<128x1024xf32>
    %2 = tpu.matmul %0, %1, %cst {dimension_numbers = #tpu.dot_dimension_numbers<[1], [0], [0], [1], [0, 0, 1, 1], [], []>} : vector<128x128xbf16>, vector<128x1024xbf16>, vector<128x1024xf32> -> vector<128x1024xf32>
    %c0_3 = arith.constant 0 : index
    %c0_4 = arith.constant 0 : index
    %3 = vector.load %arg3[%c0_3, %c0_4] : memref<1x1024xf32, #tpu.memory_space<vmem>>, vector<1x1024xf32>
    %4 = vector.broadcast %3 : vector<1x1024xf32> to vector<128x1024xf32>
    %5 = arith.addf %2, %4 : vector<128x1024xf32>
    %cst_5 = arith.constant 0.00999999977 : f32
    %6 = vector.broadcast %cst_5 : f32 to vector<128x1024xf32>
    %7 = arith.mulf %6, %5 : vector<128x1024xf32>
    %8 = arith.maximumf %5, %7 : vector<128x1024xf32>
    %9 = arith.truncf %8 : vector<128x1024xf32> to vector<128x1024xbf16>
    %c0_6 = arith.constant 0 : index
    %c0_7 = arith.constant 0 : index
    %10 = vector.load %arg4[%c0_6, %c0_7] : memref<1024x256xbf16, #tpu.memory_space<vmem>>, vector<1024x256xbf16>
    %cst_8 = arith.constant dense<0.000000e+00> : vector<128x256xf32>
    %11 = tpu.matmul %9, %10, %cst_8 {dimension_numbers = #tpu.dot_dimension_numbers<[1], [0], [0], [1], [0, 0, 1, 1], [], []>} : vector<128x1024xbf16>, vector<1024x256xbf16>, vector<128x256xf32> -> vector<128x256xf32>
    %c0_9 = arith.constant 0 : index
    %c0_10 = arith.constant 0 : index
    %12 = vector.load %arg5[%c0_9, %c0_10] : memref<1x256xf32, #tpu.memory_space<vmem>>, vector<1x256xf32>
    %13 = vector.broadcast %12 : vector<1x256xf32> to vector<128x256xf32>
    %14 = arith.addf %11, %13 : vector<128x256xf32>
    %cst_11 = arith.constant 0.00999999977 : f32
    %15 = vector.broadcast %cst_11 : f32 to vector<128x256xf32>
    %16 = arith.mulf %15, %14 : vector<128x256xf32>
    %17 = arith.maximumf %14, %16 : vector<128x256xf32>
    %18 = arith.truncf %17 : vector<128x256xf32> to vector<128x256xbf16>
    %c0_12 = arith.constant 0 : index
    %c0_13 = arith.constant 0 : index
    %19 = vector.load %arg6[%c0_12, %c0_13] : memref<256x128xbf16, #tpu.memory_space<vmem>>, vector<256x128xbf16>
    %cst_14 = arith.constant dense<0.000000e+00> : vector<128x128xf32>
    %20 = tpu.matmul %18, %19, %cst_14 {dimension_numbers = #tpu.dot_dimension_numbers<[1], [0], [0], [1], [0, 0, 1, 1], [], []>} : vector<128x256xbf16>, vector<256x128xbf16>, vector<128x128xf32> -> vector<128x128xf32>
    %c0_15 = arith.constant 0 : index
    %c0_16 = arith.constant 0 : index
    %21 = vector.load %arg7[%c0_15, %c0_16] : memref<1x128xf32, #tpu.memory_space<vmem>>, vector<1x128xf32>
    %22 = vector.broadcast %21 : vector<1x128xf32> to vector<128x128xf32>
    %23 = arith.addf %20, %22 : vector<128x128xf32>
    %cst_17 = arith.constant 0.00999999977 : f32
    %24 = vector.broadcast %cst_17 : f32 to vector<128x128xf32>
    %25 = arith.mulf %24, %23 : vector<128x128xf32>
    %26 = arith.maximumf %23, %25 : vector<128x128xf32>
    %27 = arith.truncf %26 : vector<128x128xf32> to vector<128x128xbf16>
    %c0_18 = arith.constant 0 : index
    %c0_19 = arith.constant 0 : index
    %28 = vector.load %arg8[%c0_18, %c0_19] : memref<128x128xbf16, #tpu.memory_space<vmem>>, vector<128x128xbf16>
    %cst_20 = arith.constant dense<0.000000e+00> : vector<128x128xf32>
    %29 = tpu.matmul %27, %28, %cst_20 {dimension_numbers = #tpu.dot_dimension_numbers<[1], [0], [0], [1], [0, 0, 1, 1], [], []>} : vector<128x128xbf16>, vector<128x128xbf16>, vector<128x128xf32> -> vector<128x128xf32>
    %c0_21 = arith.constant 0 : index
    %c0_22 = arith.constant 0 : index
    %30 = vector.load %arg9[%c0_21, %c0_22] : memref<1x128xf32, #tpu.memory_space<vmem>>, vector<1x128xf32>
    %31 = vector.broadcast %30 : vector<1x128xf32> to vector<128x128xf32>
    %32 = arith.addf %29, %31 : vector<128x128xf32>
    %cst_23 = arith.constant 0.00999999977 : f32
    %33 = vector.broadcast %cst_23 : f32 to vector<128x128xf32>
    %34 = arith.mulf %33, %32 : vector<128x128xf32>
    %35 = arith.maximumf %32, %34 : vector<128x128xf32>
    %c0_24 = arith.constant 0 : index
    %c0_25 = arith.constant 0 : index
    %36 = vector.load %arg18[%c0_24, %c0_25] : memref<128x128xf32, #tpu.memory_space<vmem>>, vector<128x128xf32>
    tpu.vector_store %arg18[%c0_24, %c0_25], %35 {strides = array<i32>} : memref<128x128xf32, #tpu.memory_space<vmem>>, vector<128x128xf32>,
    %37 = arith.truncf %35 : vector<128x128xf32> to vector<128x128xbf16>
    %c0_26 = arith.constant 0 : index
    %c0_27 = arith.constant 0 : index
    %38 = vector.load %arg10[%c0_26, %c0_27] : memref<128x128xbf16, #tpu.memory_space<vmem>>, vector<128x128xbf16>
    %cst_28 = arith.constant dense<0.000000e+00> : vector<128x128xf32>
    %39 = tpu.matmul %37, %38, %cst_28 {dimension_numbers = #tpu.dot_dimension_numbers<[1], [0], [0], [1], [0, 0, 1, 1], [], []>} : vector<128x128xbf16>, vector<128x128xbf16>, vector<128x128xf32> -> vector<128x128xf32>
    %c0_29 = arith.constant 0 : index
    %c0_30 = arith.constant 0 : index
    %40 = vector.load %arg11[%c0_29, %c0_30] : memref<1x128xf32, #tpu.memory_space<vmem>>, vector<1x128xf32>
    %41 = vector.broadcast %40 : vector<1x128xf32> to vector<128x128xf32>
    %42 = arith.addf %39, %41 : vector<128x128xf32>
    %cst_31 = arith.constant 0.00999999977 : f32
    %43 = vector.broadcast %cst_31 : f32 to vector<128x128xf32>
    %44 = arith.mulf %43, %42 : vector<128x128xf32>
    %45 = arith.maximumf %42, %44 : vector<128x128xf32>
    %46 = arith.truncf %45 : vector<128x128xf32> to vector<128x128xbf16>
    %c0_32 = arith.constant 0 : index
    %c0_33 = arith.constant 0 : index
    %47 = vector.load %arg12[%c0_32, %c0_33] : memref<128x256xbf16, #tpu.memory_space<vmem>>, vector<128x256xbf16>
    %cst_34 = arith.constant dense<0.000000e+00> : vector<128x256xf32>
    %48 = tpu.matmul %46, %47, %cst_34 {dimension_numbers = #tpu.dot_dimension_numbers<[1], [0], [0], [1], [0, 0, 1, 1], [], []>} : vector<128x128xbf16>, vector<128x256xbf16>, vector<128x256xf32> -> vector<128x256xf32>
    %c0_35 = arith.constant 0 : index
    %c0_36 = arith.constant 0 : index
    %49 = vector.load %arg13[%c0_35, %c0_36] : memref<1x256xf32, #tpu.memory_space<vmem>>, vector<1x256xf32>
    %50 = vector.broadcast %49 : vector<1x256xf32> to vector<128x256xf32>
    %51 = arith.addf %48, %50 : vector<128x256xf32>
    %cst_37 = arith.constant 0.00999999977 : f32
    %52 = vector.broadcast %cst_37 : f32 to vector<128x256xf32>
    %53 = arith.mulf %52, %51 : vector<128x256xf32>
    %54 = arith.maximumf %51, %53 : vector<128x256xf32>
    %55 = arith.truncf %54 : vector<128x256xf32> to vector<128x256xbf16>
    %c0_38 = arith.constant 0 : index
    %c0_39 = arith.constant 0 : index
    %56 = vector.load %arg14[%c0_38, %c0_39] : memref<256x1024xbf16, #tpu.memory_space<vmem>>, vector<256x1024xbf16>
    %cst_40 = arith.constant dense<0.000000e+00> : vector<128x1024xf32>
    %57 = tpu.matmul %55, %56, %cst_40 {dimension_numbers = #tpu.dot_dimension_numbers<[1], [0], [0], [1], [0, 0, 1, 1], [], []>} : vector<128x256xbf16>, vector<256x1024xbf16>, vector<128x1024xf32> -> vector<128x1024xf32>
    %c0_41 = arith.constant 0 : index
    %c0_42 = arith.constant 0 : index
    %58 = vector.load %arg15[%c0_41, %c0_42] : memref<1x1024xf32, #tpu.memory_space<vmem>>, vector<1x1024xf32>
    %59 = vector.broadcast %58 : vector<1x1024xf32> to vector<128x1024xf32>
    %60 = arith.addf %57, %59 : vector<128x1024xf32>
    %cst_43 = arith.constant 0.00999999977 : f32
    %61 = vector.broadcast %cst_43 : f32 to vector<128x1024xf32>
    %62 = arith.mulf %61, %60 : vector<128x1024xf32>
    %63 = arith.maximumf %60, %62 : vector<128x1024xf32>
    %64 = arith.truncf %63 : vector<128x1024xf32> to vector<128x1024xbf16>
    %c0_44 = arith.constant 0 : index
    %c0_45 = arith.constant 0 : index
    %65 = vector.load %arg16[%c0_44, %c0_45] : memref<1024x128xbf16, #tpu.memory_space<vmem>>, vector<1024x128xbf16>
    %cst_46 = arith.constant dense<0.000000e+00> : vector<128x128xf32>
    %66 = tpu.matmul %64, %65, %cst_46 {dimension_numbers = #tpu.dot_dimension_numbers<[1], [0], [0], [1], [0, 0, 1, 1], [], []>} : vector<128x1024xbf16>, vector<1024x128xbf16>, vector<128x128xf32> -> vector<128x128xf32>
    %c0_47 = arith.constant 0 : index
    %c0_48 = arith.constant 0 : index
    %67 = vector.load %arg17[%c0_47, %c0_48] : memref<1x128xf32, #tpu.memory_space<vmem>>, vector<1x128xf32>
    %68 = vector.broadcast %67 : vector<1x128xf32> to vector<128x128xf32>
    %69 = arith.addf %66, %68 : vector<128x128xf32>
    %c0_49 = arith.constant 0 : index
    %c0_50 = arith.constant 0 : index
    %70 = vector.load %arg19[%c0_49, %c0_50] : memref<128x128xf32, #tpu.memory_space<vmem>>, vector<128x128xf32>
    tpu.vector_store %arg19[%c0_49, %c0_50], %69 {strides = array<i32>} : memref<128x128xf32, #tpu.memory_space<vmem>>, vector<128x128xf32>,
    return
  }
  func.func @transform_0(%arg0: i32) -> (i32, i32) {
    %c0_i32 = arith.constant 0 : i32
    %c0_i32_0 = arith.constant 0 : i32
    return %arg0, %c0_i32 : i32, i32
  }
  func.func @transform_1(%arg0: i32) -> (i32, i32) {
    %c0_i32 = arith.constant 0 : i32
    %c0_i32_0 = arith.constant 0 : i32
    %c0_i32_1 = arith.constant 0 : i32
    return %c0_i32, %c0_i32_0 : i32, i32
  }
  func.func @transform_2(%arg0: i32) -> (i32, i32) {
    %c0_i32 = arith.constant 0 : i32
    %c0_i32_0 = arith.constant 0 : i32
    %c0_i32_1 = arith.constant 0 : i32
    return %c0_i32, %c0_i32_0 : i32, i32
  }
  func.func @transform_3(%arg0: i32) -> (i32, i32) {
    %c0_i32 = arith.constant 0 : i32
    %c0_i32_0 = arith.constant 0 : i32
    %c0_i32_1 = arith.constant 0 : i32
    return %c0_i32, %c0_i32_0 : i32, i32
  }
  func.func @transform_4(%arg0: i32) -> (i32, i32) {
    %c0_i32 = arith.constant 0 : i32
    %c0_i32_0 = arith.constant 0 : i32
    %c0_i32_1 = arith.constant 0 : i32
    return %c0_i32, %c0_i32_0 : i32, i32
  }
  func.func @transform_5(%arg0: i32) -> (i32, i32) {
    %c0_i32 = arith.constant 0 : i32
    %c0_i32_0 = arith.constant 0 : i32
    %c0_i32_1 = arith.constant 0 : i32
    return %c0_i32, %c0_i32_0 : i32, i32
  }
  func.func @transform_6(%arg0: i32) -> (i32, i32) {
    %c0_i32 = arith.constant 0 : i32
    %c0_i32_0 = arith.constant 0 : i32
    %c0_i32_1 = arith.constant 0 : i32
    return %c0_i32, %c0_i32_0 : i32, i32
  }
  func.func @transform_7(%arg0: i32) -> (i32, i32) {
    %c0_i32 = arith.constant 0 : i32
    %c0_i32_0 = arith.constant 0 : i32
    %c0_i32_1 = arith.constant 0 : i32
    return %c0_i32, %c0_i32_0 : i32, i32
  }
  func.func @transform_8(%arg0: i32) -> (i32, i32) {
    %c0_i32 = arith.constant 0 : i32
    %c0_i32_0 = arith.constant 0 : i32
    %c0_i32_1 = arith.constant 0 : i32
    return %c0_i32, %c0_i32_0 : i32, i32
  }
  func.func @transform_9(%arg0: i32) -> (i32, i32) {
    %c0_i32 = arith.constant 0 : i32
    %c0_i32_0 = arith.constant 0 : i32
    %c0_i32_1 = arith.constant 0 : i32
    return %c0_i32, %c0_i32_0 : i32, i32
  }
  func.func @transform_10(%arg0: i32) -> (i32, i32) {
    %c0_i32 = arith.constant 0 : i32
    %c0_i32_0 = arith.constant 0 : i32
    %c0_i32_1 = arith.constant 0 : i32
    return %c0_i32, %c0_i32_0 : i32, i32
  }
  func.func @transform_11(%arg0: i32) -> (i32, i32) {
    %c0_i32 = arith.constant 0 : i32
    %c0_i32_0 = arith.constant 0 : i32
    %c0_i32_1 = arith.constant 0 : i32
    return %c0_i32, %c0_i32_0 : i32, i32
  }
  func.func @transform_12(%arg0: i32) -> (i32, i32) {
    %c0_i32 = arith.constant 0 : i32
    %c0_i32_0 = arith.constant 0 : i32
    %c0_i32_1 = arith.constant 0 : i32
    return %c0_i32, %c0_i32_0 : i32, i32
  }
  func.func @transform_13(%arg0: i32) -> (i32, i32) {
    %c0_i32 = arith.constant 0 : i32
    %c0_i32_0 = arith.constant 0 : i32
    %c0_i32_1 = arith.constant 0 : i32
    return %c0_i32, %c0_i32_0 : i32, i32
  }
  func.func @transform_14(%arg0: i32) -> (i32, i32) {
    %c0_i32 = arith.constant 0 : i32
    %c0_i32_0 = arith.constant 0 : i32
    %c0_i32_1 = arith.constant 0 : i32
    return %c0_i32, %c0_i32_0 : i32, i32
  }
  func.func @transform_15(%arg0: i32) -> (i32, i32) {
    %c0_i32 = arith.constant 0 : i32
    %c0_i32_0 = arith.constant 0 : i32
    %c0_i32_1 = arith.constant 0 : i32
    return %c0_i32, %c0_i32_0 : i32, i32
  }
  func.func @transform_16(%arg0: i32) -> (i32, i32) {
    %c0_i32 = arith.constant 0 : i32
    %c0_i32_0 = arith.constant 0 : i32
    %c0_i32_1 = arith.constant 0 : i32
    return %c0_i32, %c0_i32_0 : i32, i32
  }
  func.func @transform_17(%arg0: i32) -> (i32, i32) {
    %c0_i32 = arith.constant 0 : i32
    %c0_i32_0 = arith.constant 0 : i32
    return %arg0, %c0_i32 : i32, i32
  }
  func.func @transform_18(%arg0: i32) -> (i32, i32) {
    %c0_i32 = arith.constant 0 : i32
    %c0_i32_0 = arith.constant 0 : i32
    return %arg0, %c0_i32 : i32, i32
  }
}

module attributes {stable_mosaic.version = 11 : i64} {
  func.func @autoencoder_kernel(%arg0: i32, %arg1: memref<128x128xbf16, #tpu.memory_space<vmem>>, %arg2: memref<128x1024xbf16, #tpu.memory_space<vmem>>, %arg3: memref<1x1024xf32, #tpu.memory_space<vmem>>, %arg4: memref<1024x256xbf16, #tpu.memory_space<vmem>>, %arg5: memref<1x256xf32, #tpu.memory_space<vmem>>, %arg6: memref<256x128xbf16, #tpu.memory_space<vmem>>, %arg7: memref<1x128xf32, #tpu.memory_space<vmem>>, %arg8: memref<128x128xbf16, #tpu.memory_space<vmem>>, %arg9: memref<1x128xf32, #tpu.memory_space<vmem>>, %arg10: memref<128x128xbf16, #tpu.memory_space<vmem>>, %arg11: memref<1x128xf32, #tpu.memory_space<vmem>>, %arg12: memref<128x256xbf16, #tpu.memory_space<vmem>>, %arg13: memref<1x256xf32, #tpu.memory_space<vmem>>, %arg14: memref<256x1024xbf16, #tpu.memory_space<vmem>>, %arg15: memref<1x1024xf32, #tpu.memory_space<vmem>>, %arg16: memref<1024x128xbf16, #tpu.memory_space<vmem>>, %arg17: memref<1x128xf32, #tpu.memory_space<vmem>>, %arg18: memref<128x128xf32, #tpu.memory_space<vmem>>, %arg19: memref<128x128xf32, #tpu.memory_space<vmem>>) attributes {dimension_semantics = [#tpu.dimension_semantics<parallel>], iteration_bounds = array<i64: 1>, scalar_prefetch = 0 : i64, scratch_operands = 0 : i64, tpu.core_type = #tpu.core_type<tc>, window_params = [{transform_indices = @transform_0, window_bounds = array<i64: 128, 128>}, {pipeline_mode = #tpu.pipeline_mode<synchronous>, transform_indices = @transform_1, window_bounds = array<i64: 128, 1024>}, {pipeline_mode = #tpu.pipeline_mode<synchronous>, transform_indices = @transform_2, window_bounds = array<i64: 1, 1024>}, {pipeline_mode = #tpu.pipeline_mode<synchronous>, transform_indices = @transform_3, window_bounds = array<i64: 1024, 256>}, {pipeline_mode = #tpu.pipeline_mode<synchronous>, transform_indices = @transform_4, window_bounds = array<i64: 1, 256>}, {pipeline_mode = #tpu.pipeline_mode<synchronous>, transform_indices = @transform_5, window_bounds = array<i64: 256, 128>}, {pipeline_mode = #tpu.pipeline_mode<synchronous>, transform_indices = @transform_6, window_bounds = array<i64: 1, 128>}, {pipeline_mode = #tpu.pipeline_mode<synchronous>, transform_indices = @transform_7, window_bounds = array<i64: 128, 128>}, {pipeline_mode = #tpu.pipeline_mode<synchronous>, transform_indices = @transform_8, window_bounds = array<i64: 1, 128>}, {pipeline_mode = #tpu.pipeline_mode<synchronous>, transform_indices = @transform_9, window_bounds = array<i64: 128, 128>}, {pipeline_mode = #tpu.pipeline_mode<synchronous>, transform_indices = @transform_10, window_bounds = array<i64: 1, 128>}, {pipeline_mode = #tpu.pipeline_mode<synchronous>, transform_indices = @transform_11, window_bounds = array<i64: 128, 256>}, {pipeline_mode = #tpu.pipeline_mode<synchronous>, transform_indices = @transform_12, window_bounds = array<i64: 1, 256>}, {pipeline_mode = #tpu.pipeline_mode<synchronous>, transform_indices = @transform_13, window_bounds = array<i64: 256, 1024>}, {pipeline_mode = #tpu.pipeline_mode<synchronous>, transform_indices = @transform_14, window_bounds = array<i64: 1, 1024>}, {pipeline_mode = #tpu.pipeline_mode<synchronous>, transform_indices = @transform_15, window_bounds = array<i64: 1024, 128>}, {pipeline_mode = #tpu.pipeline_mode<synchronous>, transform_indices = @transform_16, window_bounds = array<i64: 1, 128>}, {transform_indices = @transform_17, window_bounds = array<i64: 128, 128>}, {transform_indices = @transform_18, window_bounds = array<i64: 128, 128>}]} {
    %c0 = arith.constant 0 : index
    %c0_0 = arith.constant 0 : index
    %0 = vector.load %arg1[%c0, %c0_0] : memref<128x128xbf16, #tpu.memory_space<vmem>>, vector<128x128xbf16>
    %c0_1 = arith.constant 0 : index
    %c0_2 = arith.constant 0 : index
    %1 = vector.load %arg2[%c0_1, %c0_2] : memref<128x1024xbf16, #tpu.memory_space<vmem>>, vector<128x1024xbf16>
    %cst = arith.constant dense<0.000000e+00> : vector<128x1024xf32>
    %2 = tpu.matmul %0, %1, %cst {dimension_numbers = #tpu.dot_dimension_numbers<[1], [0], [0], [1], [0, 0, 1, 1], [], []>} : vector<128x128xbf16>, vector<128x1024xbf16>, vector<128x1024xf32> -> vector<128x1024xf32>
    %c0_3 = arith.constant 0 : index
    %c0_4 = arith.constant 0 : index
    %3 = vector.load %arg3[%c0_3, %c0_4] : memref<1x1024xf32, #tpu.memory_space<vmem>>, vector<1x1024xf32>
    %4 = vector.broadcast %3 : vector<1x1024xf32> to vector<128x1024xf32>
    %5 = arith.addf %2, %4 : vector<128x1024xf32>
    %cst_5 = arith.constant 0.00999999977 : f32
    %6 = vector.broadcast %cst_5 : f32 to vector<128x1024xf32>
    %7 = arith.mulf %6, %5 : vector<128x1024xf32>
    %8 = arith.maximumf %5, %7 : vector<128x1024xf32>
    %9 = arith.truncf %8 : vector<128x1024xf32> to vector<128x1024xbf16>
    %c0_6 = arith.constant 0 : index
    %c0_7 = arith.constant 0 : index
    %10 = vector.load %arg4[%c0_6, %c0_7] : memref<1024x256xbf16, #tpu.memory_space<vmem>>, vector<1024x256xbf16>
    %cst_8 = arith.constant dense<0.000000e+00> : vector<128x256xf32>
    %11 = tpu.matmul %9, %10, %cst_8 {dimension_numbers = #tpu.dot_dimension_numbers<[1], [0], [0], [1], [0, 0, 1, 1], [], []>} : vector<128x1024xbf16>, vector<1024x256xbf16>, vector<128x256xf32> -> vector<128x256xf32>
    %c0_9 = arith.constant 0 : index
    %c0_10 = arith.constant 0 : index
    %12 = vector.load %arg5[%c0_9, %c0_10] : memref<1x256xf32, #tpu.memory_space<vmem>>, vector<1x256xf32>
    %13 = vector.broadcast %12 : vector<1x256xf32> to vector<128x256xf32>
    %14 = arith.addf %11, %13 : vector<128x256xf32>
    %cst_11 = arith.constant 0.00999999977 : f32
    %15 = vector.broadcast %cst_11 : f32 to vector<128x256xf32>
    %16 = arith.mulf %15, %14 : vector<128x256xf32>
    %17 = arith.maximumf %14, %16 : vector<128x256xf32>
    %18 = arith.truncf %17 : vector<128x256xf32> to vector<128x256xbf16>
    %c0_12 = arith.constant 0 : index
    %c0_13 = arith.constant 0 : index
    %19 = vector.load %arg6[%c0_12, %c0_13] : memref<256x128xbf16, #tpu.memory_space<vmem>>, vector<256x128xbf16>
    %cst_14 = arith.constant dense<0.000000e+00> : vector<128x128xf32>
    %20 = tpu.matmul %18, %19, %cst_14 {dimension_numbers = #tpu.dot_dimension_numbers<[1], [0], [0], [1], [0, 0, 1, 1], [], []>} : vector<128x256xbf16>, vector<256x128xbf16>, vector<128x128xf32> -> vector<128x128xf32>
    %c0_15 = arith.constant 0 : index
    %c0_16 = arith.constant 0 : index
    %21 = vector.load %arg7[%c0_15, %c0_16] : memref<1x128xf32, #tpu.memory_space<vmem>>, vector<1x128xf32>
    %22 = vector.broadcast %21 : vector<1x128xf32> to vector<128x128xf32>
    %23 = arith.addf %20, %22 : vector<128x128xf32>
    %cst_17 = arith.constant 0.00999999977 : f32
    %24 = vector.broadcast %cst_17 : f32 to vector<128x128xf32>
    %25 = arith.mulf %24, %23 : vector<128x128xf32>
    %26 = arith.maximumf %23, %25 : vector<128x128xf32>
    %27 = arith.truncf %26 : vector<128x128xf32> to vector<128x128xbf16>
    %c0_18 = arith.constant 0 : index
    %c0_19 = arith.constant 0 : index
    %28 = vector.load %arg8[%c0_18, %c0_19] : memref<128x128xbf16, #tpu.memory_space<vmem>>, vector<128x128xbf16>
    %cst_20 = arith.constant dense<0.000000e+00> : vector<128x128xf32>
    %29 = tpu.matmul %27, %28, %cst_20 {dimension_numbers = #tpu.dot_dimension_numbers<[1], [0], [0], [1], [0, 0, 1, 1], [], []>} : vector<128x128xbf16>, vector<128x128xbf16>, vector<128x128xf32> -> vector<128x128xf32>
    %c0_21 = arith.constant 0 : index
    %c0_22 = arith.constant 0 : index
    %30 = vector.load %arg9[%c0_21, %c0_22] : memref<1x128xf32, #tpu.memory_space<vmem>>, vector<1x128xf32>
    %31 = vector.broadcast %30 : vector<1x128xf32> to vector<128x128xf32>
    %32 = arith.addf %29, %31 : vector<128x128xf32>
    %cst_23 = arith.constant 0.00999999977 : f32
    %33 = vector.broadcast %cst_23 : f32 to vector<128x128xf32>
    %34 = arith.mulf %33, %32 : vector<128x128xf32>
    %35 = arith.maximumf %32, %34 : vector<128x128xf32>
    %c0_24 = arith.constant 0 : index
    %c0_25 = arith.constant 0 : index
    %36 = vector.load %arg18[%c0_24, %c0_25] : memref<128x128xf32, #tpu.memory_space<vmem>>, vector<128x128xf32>
    tpu.vector_store %arg18[%c0_24, %c0_25], %35 {strides = array<i32>} : memref<128x128xf32, #tpu.memory_space<vmem>>, vector<128x128xf32>,
    %37 = arith.truncf %35 : vector<128x128xf32> to vector<128x128xbf16>
    %c0_26 = arith.constant 0 : index
    %c0_27 = arith.constant 0 : index
    %38 = vector.load %arg10[%c0_26, %c0_27] : memref<128x128xbf16, #tpu.memory_space<vmem>>, vector<128x128xbf16>
    %cst_28 = arith.constant dense<0.000000e+00> : vector<128x128xf32>
    %39 = tpu.matmul %37, %38, %cst_28 {dimension_numbers = #tpu.dot_dimension_numbers<[1], [0], [0], [1], [0, 0, 1, 1], [], []>} : vector<128x128xbf16>, vector<128x128xbf16>, vector<128x128xf32> -> vector<128x128xf32>
    %c0_29 = arith.constant 0 : index
    %c0_30 = arith.constant 0 : index
    %40 = vector.load %arg11[%c0_29, %c0_30] : memref<1x128xf32, #tpu.memory_space<vmem>>, vector<1x128xf32>
    %41 = vector.broadcast %40 : vector<1x128xf32> to vector<128x128xf32>
    %42 = arith.addf %39, %41 : vector<128x128xf32>
    %cst_31 = arith.constant 0.00999999977 : f32
    %43 = vector.broadcast %cst_31 : f32 to vector<128x128xf32>
    %44 = arith.mulf %43, %42 : vector<128x128xf32>
    %45 = arith.maximumf %42, %44 : vector<128x128xf32>
    %46 = arith.truncf %45 : vector<128x128xf32> to vector<128x128xbf16>
    %c0_32 = arith.constant 0 : index
    %c0_33 = arith.constant 0 : index
    %47 = vector.load %arg12[%c0_32, %c0_33] : memref<128x256xbf16, #tpu.memory_space<vmem>>, vector<128x256xbf16>
    %cst_34 = arith.constant dense<0.000000e+00> : vector<128x256xf32>
    %48 = tpu.matmul %46, %47, %cst_34 {dimension_numbers = #tpu.dot_dimension_numbers<[1], [0], [0], [1], [0, 0, 1, 1], [], []>} : vector<128x128xbf16>, vector<128x256xbf16>, vector<128x256xf32> -> vector<128x256xf32>
    %c0_35 = arith.constant 0 : index
    %c0_36 = arith.constant 0 : index
    %49 = vector.load %arg13[%c0_35, %c0_36] : memref<1x256xf32, #tpu.memory_space<vmem>>, vector<1x256xf32>
    %50 = vector.broadcast %49 : vector<1x256xf32> to vector<128x256xf32>
    %51 = arith.addf %48, %50 : vector<128x256xf32>
    %cst_37 = arith.constant 0.00999999977 : f32
    %52 = vector.broadcast %cst_37 : f32 to vector<128x256xf32>
    %53 = arith.mulf %52, %51 : vector<128x256xf32>
    %54 = arith.maximumf %51, %53 : vector<128x256xf32>
    %55 = arith.truncf %54 : vector<128x256xf32> to vector<128x256xbf16>
    %c0_38 = arith.constant 0 : index
    %c0_39 = arith.constant 0 : index
    %56 = vector.load %arg14[%c0_38, %c0_39] : memref<256x1024xbf16, #tpu.memory_space<vmem>>, vector<256x1024xbf16>
    %cst_40 = arith.constant dense<0.000000e+00> : vector<128x1024xf32>
    %57 = tpu.matmul %55, %56, %cst_40 {dimension_numbers = #tpu.dot_dimension_numbers<[1], [0], [0], [1], [0, 0, 1, 1], [], []>} : vector<128x256xbf16>, vector<256x1024xbf16>, vector<128x1024xf32> -> vector<128x1024xf32>
    %c0_41 = arith.constant 0 : index
    %c0_42 = arith.constant 0 : index
    %58 = vector.load %arg15[%c0_41, %c0_42] : memref<1x1024xf32, #tpu.memory_space<vmem>>, vector<1x1024xf32>
    %59 = vector.broadcast %58 : vector<1x1024xf32> to vector<128x1024xf32>
    %60 = arith.addf %57, %59 : vector<128x1024xf32>
    %cst_43 = arith.constant 0.00999999977 : f32
    %61 = vector.broadcast %cst_43 : f32 to vector<128x1024xf32>
    %62 = arith.mulf %61, %60 : vector<128x1024xf32>
    %63 = arith.maximumf %60, %62 : vector<128x1024xf32>
    %64 = arith.truncf %63 : vector<128x1024xf32> to vector<128x1024xbf16>
    %c0_44 = arith.constant 0 : index
    %c0_45 = arith.constant 0 : index
    %65 = vector.load %arg16[%c0_44, %c0_45] : memref<1024x128xbf16, #tpu.memory_space<vmem>>, vector<1024x128xbf16>
    %cst_46 = arith.constant dense<0.000000e+00> : vector<128x128xf32>
    %66 = tpu.matmul %64, %65, %cst_46 {dimension_numbers = #tpu.dot_dimension_numbers<[1], [0], [0], [1], [0, 0, 1, 1], [], []>} : vector<128x1024xbf16>, vector<1024x128xbf16>, vector<128x128xf32> -> vector<128x128xf32>
    %c0_47 = arith.constant 0 : index
    %c0_48 = arith.constant 0 : index
    %67 = vector.load %arg17[%c0_47, %c0_48] : memref<1x128xf32, #tpu.memory_space<vmem>>, vector<1x128xf32>
    %68 = vector.broadcast %67 : vector<1x128xf32> to vector<128x128xf32>
    %69 = arith.addf %66, %68 : vector<128x128xf32>
    %c0_49 = arith.constant 0 : index
    %c0_50 = arith.constant 0 : index
    %70 = vector.load %arg19[%c0_49, %c0_50] : memref<128x128xf32, #tpu.memory_space<vmem>>, vector<128x128xf32>
    tpu.vector_store %arg19[%c0_49, %c0_50], %69 {strides = array<i32>} : memref<128x128xf32, #tpu.memory_space<vmem>>, vector<128x128xf32>,
    return
  }
  func.func @transform_0(%arg0: i32) -> (i32, i32) {
    %c0_i32 = arith.constant 0 : i32
    %c0_i32_0 = arith.constant 0 : i32
    return %arg0, %c0_i32 : i32, i32
  }
  func.func @transform_1(%arg0: i32) -> (i32, i32) {
    %c0_i32 = arith.constant 0 : i32
    %c0_i32_0 = arith.constant 0 : i32
    %c0_i32_1 = arith.constant 0 : i32
    return %c0_i32, %c0_i32_0 : i32, i32
  }
  func.func @transform_2(%arg0: i32) -> (i32, i32) {
    %c0_i32 = arith.constant 0 : i32
    %c0_i32_0 = arith.constant 0 : i32
    %c0_i32_1 = arith.constant 0 : i32
    return %c0_i32, %c0_i32_0 : i32, i32
  }
  func.func @transform_3(%arg0: i32) -> (i32, i32) {
    %c0_i32 = arith.constant 0 : i32
    %c0_i32_0 = arith.constant 0 : i32
    %c0_i32_1 = arith.constant 0 : i32
    return %c0_i32, %c0_i32_0 : i32, i32
  }
  func.func @transform_4(%arg0: i32) -> (i32, i32) {
    %c0_i32 = arith.constant 0 : i32
    %c0_i32_0 = arith.constant 0 : i32
    %c0_i32_1 = arith.constant 0 : i32
    return %c0_i32, %c0_i32_0 : i32, i32
  }
  func.func @transform_5(%arg0: i32) -> (i32, i32) {
    %c0_i32 = arith.constant 0 : i32
    %c0_i32_0 = arith.constant 0 : i32
    %c0_i32_1 = arith.constant 0 : i32
    return %c0_i32, %c0_i32_0 : i32, i32
  }
  func.func @transform_6(%arg0: i32) -> (i32, i32) {
    %c0_i32 = arith.constant 0 : i32
    %c0_i32_0 = arith.constant 0 : i32
    %c0_i32_1 = arith.constant 0 : i32
    return %c0_i32, %c0_i32_0 : i32, i32
  }
  func.func @transform_7(%arg0: i32) -> (i32, i32) {
    %c0_i32 = arith.constant 0 : i32
    %c0_i32_0 = arith.constant 0 : i32
    %c0_i32_1 = arith.constant 0 : i32
    return %c0_i32, %c0_i32_0 : i32, i32
  }
  func.func @transform_8(%arg0: i32) -> (i32, i32) {
    %c0_i32 = arith.constant 0 : i32
    %c0_i32_0 = arith.constant 0 : i32
    %c0_i32_1 = arith.constant 0 : i32
    return %c0_i32, %c0_i32_0 : i32, i32
  }
  func.func @transform_9(%arg0: i32) -> (i32, i32) {
    %c0_i32 = arith.constant 0 : i32
    %c0_i32_0 = arith.constant 0 : i32
    %c0_i32_1 = arith.constant 0 : i32
    return %c0_i32, %c0_i32_0 : i32, i32
  }
  func.func @transform_10(%arg0: i32) -> (i32, i32) {
    %c0_i32 = arith.constant 0 : i32
    %c0_i32_0 = arith.constant 0 : i32
    %c0_i32_1 = arith.constant 0 : i32
    return %c0_i32, %c0_i32_0 : i32, i32
  }
  func.func @transform_11(%arg0: i32) -> (i32, i32) {
    %c0_i32 = arith.constant 0 : i32
    %c0_i32_0 = arith.constant 0 : i32
    %c0_i32_1 = arith.constant 0 : i32
    return %c0_i32, %c0_i32_0 : i32, i32
  }
  func.func @transform_12(%arg0: i32) -> (i32, i32) {
    %c0_i32 = arith.constant 0 : i32
    %c0_i32_0 = arith.constant 0 : i32
    %c0_i32_1 = arith.constant 0 : i32
    return %c0_i32, %c0_i32_0 : i32, i32
  }
  func.func @transform_13(%arg0: i32) -> (i32, i32) {
    %c0_i32 = arith.constant 0 : i32
    %c0_i32_0 = arith.constant 0 : i32
    %c0_i32_1 = arith.constant 0 : i32
    return %c0_i32, %c0_i32_0 : i32, i32
  }
  func.func @transform_14(%arg0: i32) -> (i32, i32) {
    %c0_i32 = arith.constant 0 : i32
    %c0_i32_0 = arith.constant 0 : i32
    %c0_i32_1 = arith.constant 0 : i32
    return %c0_i32, %c0_i32_0 : i32, i32
  }
  func.func @transform_15(%arg0: i32) -> (i32, i32) {
    %c0_i32 = arith.constant 0 : i32
    %c0_i32_0 = arith.constant 0 : i32
    %c0_i32_1 = arith.constant 0 : i32
    return %c0_i32, %c0_i32_0 : i32, i32
  }
  func.func @transform_16(%arg0: i32) -> (i32, i32) {
    %c0_i32 = arith.constant 0 : i32
    %c0_i32_0 = arith.constant 0 : i32
    %c0_i32_1 = arith.constant 0 : i32
    return %c0_i32, %c0_i32_0 : i32, i32
  }
  func.func @transform_17(%arg0: i32) -> (i32, i32) {
    %c0_i32 = arith.constant 0 : i32
    %c0_i32_0 = arith.constant 0 : i32
    return %arg0, %c0_i32 : i32, i32
  }
  func.func @transform_18(%arg0: i32) -> (i32, i32) {
    %c0_i32 = arith.constant 0 : i32
    %c0_i32_0 = arith.constant 0 : i32
    return %arg0, %c0_i32 : i32, i32
  }
}

</mosaic_0001>

<bundles_post_ra>
// kernel: tpu_custom_call.1
= control target key start
LH: loop header
LB: loop body
LE: loop exit
PB: predicated region body
PF: predicated region fallthrough
CT: control target
= control target key end

     0   :  { %s9179_s0 = inlined_call_operand.hbm [shape: bf16[128,128], index: 0, kind: input, shape index: {}]   ;;  %s9180_s1 = inlined_call_operand.hbm [shape: bf16[128,1024], index: 1, kind: input, shape index: {}]   ;;  %s9181_s2 = inlined_call_operand.hbm [shape: f32[1,1024], index: 2, kind: input, shape index: {}]   ;;  %s9182_s3 = inlined_call_operand.hbm [shape: bf16[1024,256], index: 3, kind: input, shape index: {}]   ;;  %s9183_s4 = inlined_call_operand.vmem [shape: f32[1,256], index: 4, kind: input, shape index: {}]   ;;  %s9184_s5 = inlined_call_operand.hbm [shape: bf16[256,128], index: 5, kind: input, shape index: {}]   ;;  %s9185_s6 = inlined_call_operand.vmem [shape: f32[1,128], index: 6, kind: input, shape index: {}]   ;;  %s9186_s7 = inlined_call_operand.hbm [shape: bf16[128,128], index: 7, kind: input, shape index: {}]   ;;  %s9187_s8 = inlined_call_operand.vmem [shape: f32[1,128], index: 8, kind: input, shape index: {}]   ;;  %s9188_s9 = inlined_call_operand.hbm [shape: bf16[128,128], index: 9, kind: input, shape index: {}]   ;;  %s9189_s10 = inlined_call_operand.vmem [shape: f32[1,128], index: 10, kind: input, shape index: {}]   ;;  %s9190_s11 = inlined_call_operand.hbm [shape: bf16[128,256], index: 11, kind: input, shape index: {}]   ;;  %s9191_s12 = inlined_call_operand.vmem [shape: f32[1,256], index: 12, kind: input, shape index: {}]   ;;  %s9192_s13 = inlined_call_operand.hbm [shape: bf16[256,1024], index: 13, kind: input, shape index: {}]   ;;  %s9193_s14 = inlined_call_operand.vmem [shape: f32[1,1024], index: 14, kind: input, shape index: {}]   ;;  %s9194_s15 = inlined_call_operand.hbm [shape: bf16[1024,128], index: 15, kind: input, shape index: {}]   ;;  %s9195_s16 = inlined_call_operand.vmem [shape: f32[1,128], index: 16, kind: input, shape index: {}]   ;;  %s9196_s17 = inlined_call_operand.hbm [shape: f32[128,128], index: 17, kind: output, shape index: {0}]   ;;  %s9197_s18 = inlined_call_operand.hbm [shape: f32[128,128], index: 18, kind: output, shape index: {1}]  }
   0x1   :  { %9206 = sst [smem:[#allocation30_spill]] %s9179_s0 }
   0x2   :  { %9207 = sst [smem:[#allocation31_spill]] %s9180_s1 }
   0x3   :  { %9208 = sst [smem:[#allocation32_spill]] %s9181_s2 }
   0x4   :  { %9209 = sst [smem:[#allocation33_spill]] %s9197_s18 }
   0x5   :  { %24 = vsyncpa [#allocation3], 0 }
   0x6   :  { %25 = vsyncpa [#allocation6], 0 }
   0x7   :  { %26 = vsyncpa [#allocation9], 0 }
   0x8   :  { %27 = vsyncpa [#allocation12], 0 }
   0x9   :  { %28 = vsyncpa [#allocation15], 0 }
   0xa   :  { %29 = vsyncpa [#allocation18], 0 }
   0xb   :  { %30 = vsyncpa [#allocation4], 0 }
   0xc   :  { %31 = vsyncpa [#allocation21], 0  ;;  %s7946_s27 = smov [#allocation5]   ;;  %s9210_s0 = sld [smem:[#allocation31_spill]] }
   0xd   :  { %s49_s28 = sshll.u32 %s7946_s27, 4  ;;  %s50_s28 = int_to_ptr.vmem [resolvable:$true] %s49_s28 }
  0x12   :  { %s7666_s19 = scalar_lea.hbm %s9210_s0, 8192 }
  0x13   :  { %p7667_p0 = scmp.ne.s32.totalorder %s9210_s0, %s7666_s19  ;;  %p7670_p1 = scmp.lt.u32.totalorder %s7666_s19, %s9210_s0 }
  0x15   :  { %p7672_p2 = pnand %p7670_p1, %p7667_p0 }
  0x17   :  { %7675 = shalt.err (!%p7672_p2)
}
  0x18   :  { %s7676_s2 = scalar_lea.vmem %s50_s28, 8192  ;;  %p7681_p4 = scmp.lt.s32.totalorder %s50_s28, %s50_s28 }
  0x19   :  { %p7677_p3 = scmp.ne.s32.totalorder %s50_s28, %s7676_s2  ;;  %p7682_p5 = scmp.lt.s32.totalorder %s7676_s2, %s7676_s2 }
  0x1b   :  { %p7683_p6 = por %p7682_p5, %p7681_p4 }
  0x1d   :  { %p7684_p7 = pnand %p7683_p6, %p7677_p3 }
  0x1f   :  { %7687 = shalt.err (!%p7684_p7)
}
  0x20   :  { %s9202_s23 = smov 512   ;;  %s9203_s24 = smov 32  }
  0x21   :  { %55 = dma.hbm_to_vmem [thread:$0]  %s9210_s0, 8192, %s50_s28, [#allocation6], %s9202_s23, %s9202_s23, %s9203_s24  }
  0x22   :  { %s7949_s27 = smov [#allocation8]   ;;  %s7688_s1 = scalar_lea.hbm %s9182_s3, 16384 }
  0x23   :  { %s71_s29 = sshll.u32 %s7949_s27, 4  ;;  %p7689_p8 = scmp.ne.s32.totalorder %s9182_s3, %s7688_s1  ;;  %s72_s29 = int_to_ptr.vmem [resolvable:$true] %s71_s29 }
  0x24   :  { %p7692_p9 = scmp.lt.u32.totalorder %s7688_s1, %s9182_s3 }
  0x26   :  { %p7694_p10 = pnand %p7692_p9, %p7689_p8 }
  0x28   :  { %7697 = shalt.err (!%p7694_p10)
}
  0x29   :  { %s7698_s18 = scalar_lea.vmem %s72_s29, 16384  ;;  %p7703_p12 = scmp.lt.s32.totalorder %s72_s29, %s72_s29 }
  0x2a   :  { %p7699_p11 = scmp.ne.s32.totalorder %s72_s29, %s7698_s18  ;;  %p7704_p13 = scmp.lt.s32.totalorder %s7698_s18, %s7698_s18 }
  0x2c   :  { %p7705_p0 = por %p7704_p13, %p7703_p12 }
  0x2e   :  { %p7706_p1 = pnand %p7705_p0, %p7699_p11 }
  0x30   :  { %7709 = shalt.err (!%p7706_p1)
}
  0x31   :  { %s7950_s28 = smov 128   ;;  %s7951_s0 = smov 8  }
  0x32   :  { %77 = dma.hbm_to_vmem [thread:$0]  %s9182_s3, 16384, %s72_s29, [#allocation9], %s7950_s28, %s7950_s28, %s7951_s0  }
  0x33   :  { %s7952_s27 = smov [#allocation11]   ;;  %s7953_s19 = smov [#allocation14]  }
  0x34   :  { %s99_s30 = sshll.u32 %s7952_s27, 4  ;;  %s127_s1 = sshll.u32 %s7953_s19, 4  ;;  %s100_s30 = int_to_ptr.vmem [resolvable:$true] %s99_s30  ;;  %s8090_s1 = int_to_ptr.vmem [resolvable:$true] %s127_s1 }
  0x35   :  { %s7710_s21 = scalar_lea.hbm %s9186_s7, 1024 }
  0x36   :  { %p7711_p2 = scmp.ne.s32.totalorder %s9186_s7, %s7710_s21  ;;  %p7714_p3 = scmp.lt.u32.totalorder %s7710_s21, %s9186_s7 }
  0x38   :  { %p7716_p4 = pnand %p7714_p3, %p7711_p2 }
  0x3a   :  { %7719 = shalt.err (!%p7716_p4)
}
  0x3b   :  { %s7720_s3 = scalar_lea.vmem %s100_s30, 1024  ;;  %p7725_p6 = scmp.lt.s32.totalorder %s100_s30, %s100_s30 }
  0x3c   :  { %p7721_p5 = scmp.ne.s32.totalorder %s100_s30, %s7720_s3  ;;  %p7726_p7 = scmp.lt.s32.totalorder %s7720_s3, %s7720_s3 }
  0x3e   :  { %p7727_p8 = por %p7726_p7, %p7725_p6 }
  0x40   :  { %p7728_p9 = pnand %p7727_p8, %p7721_p5 }
  0x42   :  { %7731 = shalt.err (!%p7728_p9)
}
  0x43   :  { %s9204_s29 = smov 64   ;;  %s7955_s25 = smov 4  }
  0x44   :  { %105 = dma.hbm_to_vmem [thread:$0]  %s9186_s7, 1024, %s100_s30, [#allocation12], %s9204_s29, %s9204_s29, %s7955_s25  }
  0x45   :  { %s7732_s19 = scalar_lea.hbm %s9190_s11, 2048 }
  0x46   :  { %p7733_p10 = scmp.ne.s32.totalorder %s9190_s11, %s7732_s19  ;;  %p7736_p11 = scmp.lt.u32.totalorder %s7732_s19, %s9190_s11 }
  0x48   :  { %p7738_p12 = pnand %p7736_p11, %p7733_p10 }
  0x4a   :  { %7741 = shalt.err (!%p7738_p12)
}
  0x4b   :  { %s7742_s2 = scalar_lea.vmem %s8090_s1, 2048  ;;  %p7747_p0 = scmp.lt.s32.totalorder %s8090_s1, %s8090_s1 }
  0x4c   :  { %p7743_p13 = scmp.ne.s32.totalorder %s8090_s1, %s7742_s2  ;;  %p7748_p1 = scmp.lt.s32.totalorder %s7742_s2, %s7742_s2 }
  0x4e   :  { %p7749_p2 = por %p7748_p1, %p7747_p0 }
  0x50   :  { %p7750_p3 = pnand %p7749_p2, %p7743_p13 }
  0x52   :  { %7753 = shalt.err (!%p7750_p3)
}
  0x53   :  { %133 = dma.hbm_to_vmem [thread:$0]  %s9190_s11, 2048, %s8090_s1, [#allocation15], %s7950_s28, %s7950_s28, %s7951_s0  }
  0x54   :  { %s7956_s3 = smov [#allocation2]   ;;  %s7957_s27 = smov [#allocation7]  }
  0x55   :  { %s37_s26 = sshll.u32 %s7956_s3, 4  ;;  %s62_s23 = sshll.u32 %s7957_s27, 4  ;;  %s38_s26 = int_to_ptr.vmem [resolvable:$true] %s37_s26  ;;  %s63_s23 = int_to_ptr.vmem [resolvable:$true] %s62_s23 }
  0x56   :  { %s9211_s18 = sld [smem:[#allocation30_spill]] }
  0x5c   :  { %s7754_s20 = scalar_lea.hbm %s9211_s18, 1024 }
  0x5d   :  { %p7755_p4 = scmp.ne.s32.totalorder %s9211_s18, %s7754_s20  ;;  %p7758_p5 = scmp.lt.u32.totalorder %s7754_s20, %s9211_s18 }
  0x5f   :  { %p7760_p6 = pnand %p7758_p5, %p7755_p4 }
  0x61   :  { %7763 = shalt.err (!%p7760_p6)
}
  0x62   :  { %s7764_s11 = scalar_lea.vmem %s38_s26, 1024  ;;  %p7769_p8 = scmp.lt.s32.totalorder %s38_s26, %s38_s26 }
  0x63   :  { %p7765_p7 = scmp.ne.s32.totalorder %s38_s26, %s7764_s11  ;;  %p7770_p9 = scmp.lt.s32.totalorder %s7764_s11, %s7764_s11 }
  0x65   :  { %p7771_p10 = por %p7770_p9, %p7769_p8 }
  0x67   :  { %p7772_p11 = pnand %p7771_p10, %p7765_p7 }
  0x69   :  { %7775 = shalt.err (!%p7772_p11)
}
  0x6a   :  { %s9212_s1 = smov 64   ;;  %s9213_s29 = sld [smem:[#allocation32_spill]] }
  0x6b   :  { %43 = dma.hbm_to_vmem [thread:$0]  %s9211_s18, 1024, %s38_s26, [#allocation3], %s9212_s1, %s9212_s1, %s7955_s25  }
  0x70   :  { %s7776_s24 = scalar_lea.hbm %s9213_s29, 128 }
  0x71   :  { %p7777_p12 = scmp.ne.s32.totalorder %s9213_s29, %s7776_s24  ;;  %p7780_p13 = scmp.lt.u32.totalorder %s7776_s24, %s9213_s29 }
  0x73   :  { %p7782_p0 = pnand %p7780_p13, %p7777_p12 }
  0x75   :  { %7785 = shalt.err (!%p7782_p0)
}
  0x76   :  { %s7786_s2 = scalar_lea.vmem %s63_s23, 128  ;;  %p7791_p2 = scmp.lt.s32.totalorder %s63_s23, %s63_s23 }
  0x77   :  { %p7787_p1 = scmp.ne.s32.totalorder %s63_s23, %s7786_s2  ;;  %p7792_p3 = scmp.lt.s32.totalorder %s7786_s2, %s7786_s2 }
  0x79   :  { %p7793_p4 = por %p7792_p3, %p7791_p2 }
  0x7b   :  { %p7794_p5 = pnand %p7793_p4, %p7787_p1 }
  0x7d   :  { %7797 = shalt.err (!%p7794_p5)
}
  0x7e   :  { %65 = dma.hbm_to_vmem [thread:$0]  %s9213_s29, 128, %s63_s23, [#allocation6]  }
  0x7f   :  { %s7958_s11 = smov [#allocation10]   ;;  %s7959_s30 = smov [#allocation13]  }
  0x80   :  { %s85_s7 = sshll.u32 %s7958_s11, 4  ;;  %s113_s3 = sshll.u32 %s7959_s30, 4  ;;  %s86_s7 = int_to_ptr.vmem [resolvable:$true] %s85_s7  ;;  %s8154_s3 = int_to_ptr.vmem [resolvable:$true] %s113_s3 }
  0x81   :  { %s7798_s19 = scalar_lea.hbm %s9184_s5, 2048 }
  0x82   :  { %p7799_p6 = scmp.ne.s32.totalorder %s9184_s5, %s7798_s19  ;;  %p7802_p7 = scmp.lt.u32.totalorder %s7798_s19, %s9184_s5 }
  0x84   :  { %p7804_p8 = pnand %p7802_p7, %p7799_p6 }
  0x86   :  { %7807 = shalt.err (!%p7804_p8)
}
  0x87   :  { %s7808_s23 = scalar_lea.vmem %s86_s7, 2048  ;;  %p7813_p10 = scmp.lt.s32.totalorder %s86_s7, %s86_s7 }
  0x88   :  { %p7809_p9 = scmp.ne.s32.totalorder %s86_s7, %s7808_s23  ;;  %p7814_p11 = scmp.lt.s32.totalorder %s7808_s23, %s7808_s23 }
  0x8a   :  { %p7815_p12 = por %p7814_p11, %p7813_p10 }
  0x8c   :  { %p7816_p13 = pnand %p7815_p12, %p7809_p9 }
  0x8e   :  { %7819 = shalt.err (!%p7816_p13)
}
  0x8f   :  { %91 = dma.hbm_to_vmem [thread:$0]  %s9184_s5, 2048, %s86_s7, [#allocation9], %s9212_s1, %s9212_s1, %s7955_s25  }
  0x90   :  { %s7820_s30 = scalar_lea.hbm %s9188_s9, 1024 }
  0x91   :  { %p7821_p0 = scmp.ne.s32.totalorder %s9188_s9, %s7820_s30  ;;  %p7824_p1 = scmp.lt.u32.totalorder %s7820_s30, %s9188_s9 }
  0x93   :  { %p7826_p2 = pnand %p7824_p1, %p7821_p0 }
  0x95   :  { %7829 = shalt.err (!%p7826_p2)
}
  0x96   :  { %s7830_s21 = scalar_lea.vmem %s8154_s3, 1024  ;;  %p7835_p4 = scmp.lt.s32.totalorder %s8154_s3, %s8154_s3 }
  0x97   :  { %p7831_p3 = scmp.ne.s32.totalorder %s8154_s3, %s7830_s21  ;;  %p7836_p5 = scmp.lt.s32.totalorder %s7830_s21, %s7830_s21 }
  0x99   :  { %p7837_p6 = por %p7836_p5, %p7835_p4 }
  0x9b   :  { %p7838_p7 = pnand %p7837_p6, %p7831_p3 }
  0x9d   :  { %7841 = shalt.err (!%p7838_p7)
}
  0x9e   :  { %119 = dma.hbm_to_vmem [thread:$0]  %s9188_s9, 1024, %s8154_s3, [#allocation12], %s9212_s1, %s9212_s1, %s7955_s25  }
  0x9f   :  { %s7960_s22 = smov [#allocation16]   ;;  %s7961_s23 = smov [#allocation17]  }
  0xa0   :  { %s141_s2 = sshll.u32 %s7960_s22, 4  ;;  %s155_s29 = sshll.u32 %s7961_s23, 4  ;;  %s142_s2 = int_to_ptr.vmem [resolvable:$true] %s141_s2  ;;  %s8191_s29 = int_to_ptr.vmem [resolvable:$true] %s155_s29 }
  0xa1   :  { %s7842_s11 = scalar_lea.hbm %s9192_s13, 16384 }
  0xa2   :  { %p7843_p8 = scmp.ne.s32.totalorder %s9192_s13, %s7842_s11  ;;  %p7846_p9 = scmp.lt.u32.totalorder %s7842_s11, %s9192_s13 }
  0xa4   :  { %p7848_p10 = pnand %p7846_p9, %p7843_p8 }
  0xa6   :  { %7851 = shalt.err (!%p7848_p10)
}
  0xa7   :  { %s7852_s9 = scalar_lea.vmem %s142_s2, 16384  ;;  %p7857_p12 = scmp.lt.s32.totalorder %s142_s2, %s142_s2 }
  0xa8   :  { %p7853_p11 = scmp.ne.s32.totalorder %s142_s2, %s7852_s9  ;;  %p7858_p13 = scmp.lt.s32.totalorder %s7852_s9, %s7852_s9 }
  0xaa   :  { %p7859_p0 = por %p7858_p13, %p7857_p12 }
  0xac   :  { %p7860_p1 = pnand %p7859_p0, %p7853_p11 }
  0xae   :  { %7863 = shalt.err (!%p7860_p1)
}
  0xaf   :  { %s9214_s3 = smov 32   ;;  %s9215_s20 = smov 512  }
  0xb0   :  { %147 = dma.hbm_to_vmem [thread:$0]  %s9192_s13, 16384, %s142_s2, [#allocation15], %s9215_s20, %s9215_s20, %s9214_s3  }
  0xb1   :  { %s7864_s23 = scalar_lea.hbm %s9194_s15, 8192 }
  0xb2   :  { %p7865_p2 = scmp.ne.s32.totalorder %s9194_s15, %s7864_s23  ;;  %p7868_p3 = scmp.lt.u32.totalorder %s7864_s23, %s9194_s15 }
  0xb4   :  { %p7870_p4 = pnand %p7868_p3, %p7865_p2 }
  0xb6   :  { %7873 = shalt.err (!%p7870_p4)
}
  0xb7   :  { %s7874_s27 = scalar_lea.vmem %s8191_s29, 8192  ;;  %p7879_p6 = scmp.lt.s32.totalorder %s8191_s29, %s8191_s29 }
  0xb8   :  { %p7875_p5 = scmp.ne.s32.totalorder %s8191_s29, %s7874_s27  ;;  %p7880_p7 = scmp.lt.s32.totalorder %s7874_s27, %s7874_s27 }
  0xba   :  { %p7881_p8 = por %p7880_p7, %p7879_p6 }
  0xbc   :  { %p7882_p9 = pnand %p7881_p8, %p7875_p5 }
  0xbe   :  { %7885 = shalt.err (!%p7882_p9)
}
  0xbf   :  { %161 = dma.hbm_to_vmem [thread:$0]  %s9194_s15, 8192, %s8191_s29, [#allocation18], %s9212_s1, %s9212_s1, %s7955_s25  }
  0xc0   :  { %7930 = dma.done.wait [#allocation3], 1024  }
  0xc1   :  { %7931 = vsyncadd [#allocation3], 4294966272 }
  0xc2   :  { %7932 = dma.done.wait [#allocation6], 8320  }
  0xc3   :  { %7933 = vsyncadd [#allocation6], 4294958976 }
  0xc4   :  { %7934 = dma.done.wait [#allocation9], 18432  }
  0xc5   :  { %7935 = vsyncadd [#allocation9], 4294948864 }
  0xc6   :  { %7936 = dma.done.wait [#allocation12], 2048  }
  0xc7   :  { %7937 = vsyncadd [#allocation12], 4294965248 }
  0xc8   :  { %7938 = dma.done.wait [#allocation15], 18432  }
  0xc9   :  { %7939 = vsyncadd [#allocation15], 4294948864 }
  0xca   :  { %7940 = dma.done.wait [#allocation18], 8192  }
  0xcb   :  { %7941 = vsyncadd [#allocation18], 4294959104  ;;  %v7962_v0 = vmov 0   ;;  %v211_v1 = vld [vmem:[#allocation5] sm:$0xff]  ;;  %v212_v32 = vld [vmem:[#allocation5 + $0x8] sm:$0xff]  ;;  %s7963_s20 = smov [#allocation19]  }
  0xcc   :  { %717 = vmatprep.mubr.bf16.mxu0 %v7962_v0  ;;  %757 = vmatprep.mubr.bf16.mxu1 %v7962_v0  ;;  %v215_v2 = vld [vmem:[#allocation5 + $0x20] sm:$0xff]  ;;  %v213_v33 = vld [vmem:[#allocation5 + $0x10] sm:$0xff]  ;;  %v216_v35 = vld [vmem:[#allocation5 + $0x28] sm:$0xff]  ;;  %s6284_s21 = sshll.u32 %s7963_s20, 4  ;;  %s6285_s21 = int_to_ptr.vmem [resolvable:$true] %s6284_s21 }
  0xcd   :  { %v219_v3 = vld [vmem:[#allocation5 + $0x40] sm:$0xff]  ;;  %v6326_v4 = vcombine.high %v211_v1, %v215_v2  ;;  %v6325_v5 = vcombine.low %v211_v1, %v215_v2  ;;  %v217_v34 = vld [vmem:[#allocation5 + $0x30] sm:$0xff]  ;;  %v6328_v40 = vcombine.high %v212_v32, %v216_v35  ;;  %v220_v41 = vld [vmem:[#allocation5 + $0x48] sm:$0xff]  ;;  %v6327_v45 = vcombine.low %v212_v32, %v216_v35  ;;  %s7886_s5 = scalar_lea.vmem %s6285_s21, 2048  ;;  %p7891_p11 = scmp.lt.s32.totalorder %s6285_s21, %s6285_s21 }
  0xce   :  { %v223_v6 = vld [vmem:[#allocation5 + $0x60] sm:$0xff]  ;;  %v6330_v38 = vcombine.high %v213_v33, %v217_v34  ;;  %v224_v42 = vld [vmem:[#allocation5 + $0x68] sm:$0xff]  ;;  %v221_v43 = vld [vmem:[#allocation5 + $0x50] sm:$0xff]  ;;  %v6329_v48 = vcombine.low %v213_v33, %v217_v34  ;;  %p7887_p10 = scmp.ne.s32.totalorder %s6285_s21, %s7886_s5  ;;  %p7892_p12 = scmp.lt.s32.totalorder %s7886_s5, %s7886_s5 }
  0xcf   :  { %v6334_v7 = vcombine.high %v219_v3, %v223_v6  ;;  %v227_v8 = vld [vmem:[#allocation5 + $0x80] sm:$0xff]  ;;  %685 = vmatprep.subr.bf16.mxu0 %v6326_v4  ;;  %7177 = vmatprep.subr.bf16.mxu1 %v6326_v4  ;;  %v6333_v10 = vcombine.low %v219_v3, %v223_v6  ;;  %v225_v44 = vld [vmem:[#allocation5 + $0x70] sm:$0xff]  ;;  %v6336_v46 = vcombine.high %v220_v41, %v224_v42  ;;  %v228_v47 = vld [vmem:[#allocation5 + $0x88] sm:$0xff] }
  0xd0   :  { %v231_v9 = vld [vmem:[#allocation5 + $0xa0] sm:$0xff]  ;;  %686 = vmatpush1.bf16.msra.mxu0 %v6325_v5  ;;  %7185 = vmatpush1.bf16.msra.mxu1 %v6325_v5  ;;  %v232_v49 = vld [vmem:[#allocation5 + $0xa8] sm:$0xff]  ;;  %v6338_v50 = vcombine.high %v221_v43, %v225_v44  ;;  %v229_v51 = vld [vmem:[#allocation5 + $0x90] sm:$0xff]  ;;  %v6335_v54 = vcombine.low %v220_v41, %v224_v42  ;;  %v6337_v58 = vcombine.low %v221_v43, %v225_v44  ;;  %p7893_p13 = por %p7892_p12, %p7891_p11 }
  0xd1   :  { %687 = vmatprep.subr.bf16.mxu0 %v6334_v7  ;;  %v6342_v11 = vcombine.high %v227_v8, %v231_v9  ;;  %v235_v12 = vld [vmem:[#allocation5 + $0xc0] sm:$0xff]  ;;  %7178 = vmatprep.subr.bf16.mxu1 %v6334_v7  ;;  %v6341_v14 = vcombine.low %v227_v8, %v231_v9  ;;  %v233_v52 = vld [vmem:[#allocation5 + $0xb0] sm:$0xff]  ;;  %v8237_v53 = vld [vmem:[#allocation2 + $0x8] sm:$0xff]   ;;  %v6344_v56 = vcombine.high %v228_v47, %v232_v49 }
  0xd2   :  { %v239_v13 = vld [vmem:[#allocation5 + $0xe0] sm:$0xff]  ;;  %v8240_v55 = vld [vmem:[#allocation2 + $0x28] sm:$0xff]   ;;  %v6346_v60 = vcombine.high %v229_v51, %v233_v52  ;;  %v237_v61 = vld [vmem:[#allocation5 + $0xd0] sm:$0xff]  ;;  %v6343_v63 = vcombine.low %v228_v47, %v232_v49  ;;  %v6345_v3 = vcombine.low %v229_v51, %v233_v52  ;;  %p7894_p0 = pnand %p7893_p13, %p7887_p10 }
  0xd3   :  { %v6350_v15 = vcombine.high %v235_v12, %v239_v13  ;;  %v243_v16 = vld [vmem:[#allocation5 + $0x100] sm:$0xff]  ;;  %v6349_v18 = vcombine.low %v235_v12, %v239_v13  ;;  %v236_v57 = vld [vmem:[#allocation5 + $0xc8] sm:$0xff]  ;;  %v241_v62 = vld [vmem:[#allocation5 + $0xf0] sm:$0xff] }
  0xd4   :  { %688 = vmatpush1.bf16.msra.mxu0 %v6333_v10  ;;  %7186 = vmatpush1.bf16.msra.mxu1 %v6333_v10  ;;  %v247_v17 = vld [vmem:[#allocation5 + $0x120] sm:$0xff]  ;;  %v240_v59 = vld [vmem:[#allocation5 + $0xe8] sm:$0xff]  ;;  %v6354_v5 = vcombine.high %v237_v61, %v241_v62  ;;  %v245_v6 = vld [vmem:[#allocation5 + $0x110] sm:$0xff] }
  0xd5   :  { %689 = vmatprep.subr.bf16.mxu0 %v6342_v11  ;;  %7179 = vmatprep.subr.bf16.mxu1 %v6342_v11  ;;  %v6358_v19 = vcombine.high %v243_v16, %v247_v17  ;;  %v251_v20 = vld [vmem:[#allocation5 + $0x140] sm:$0xff]  ;;  %v6357_v22 = vcombine.low %v243_v16, %v247_v17  ;;  %v6352_v1 = vcombine.high %v236_v57, %v240_v59  ;;  %v244_v2 = vld [vmem:[#allocation5 + $0x108] sm:$0xff]  ;;  %v249_v7 = vld [vmem:[#allocation5 + $0x130] sm:$0xff] }
  0xd6   :  { %v255_v21 = vld [vmem:[#allocation5 + $0x160] sm:$0xff]  ;;  %v248_v4 = vld [vmem:[#allocation5 + $0x128] sm:$0xff]  ;;  %v8245_v8 = vld [vmem:[#allocation2 + $0x10] sm:$0xff]   ;;  %v6351_v9 = vcombine.low %v236_v57, %v240_v59  ;;  %v6362_v17 = vcombine.high %v245_v6, %v249_v7 }
  0xd7   :  { %v6366_v23 = vcombine.high %v251_v20, %v255_v21  ;;  %v259_v24 = vld [vmem:[#allocation5 + $0x180] sm:$0xff]  ;;  %v6365_v26 = vcombine.low %v251_v20, %v255_v21  ;;  %v252_v10 = vld [vmem:[#allocation5 + $0x148] sm:$0xff]  ;;  %v8248_v11 = vld [vmem:[#allocation2 + $0x30] sm:$0xff]   ;;  %v6360_v12 = vcombine.high %v244_v2, %v248_v4 }
  0xd8   :  { %690 = vmatpush1.bf16.msra.mxu0 %v6341_v14  ;;  %7187 = vmatpush1.bf16.msra.mxu1 %v6341_v14  ;;  %v263_v25 = vld [vmem:[#allocation5 + $0x1a0] sm:$0xff]  ;;  %v256_v13 = vld [vmem:[#allocation5 + $0x168] sm:$0xff]  ;;  %v6353_v14 = vcombine.low %v237_v61, %v241_v62  ;;  %v257_v16 = vld [vmem:[#allocation5 + $0x170] sm:$0xff] }
  0xd9   :  { %691 = vmatprep.subr.bf16.mxu0 %v6350_v15  ;;  %7180 = vmatprep.subr.bf16.mxu1 %v6350_v15  ;;  %v6374_v27 = vcombine.high %v259_v24, %v263_v25  ;;  %v267_v28 = vld [vmem:[#allocation5 + $0x1c0] sm:$0xff]  ;;  %v6373_v30 = vcombine.low %v259_v24, %v263_v25  ;;  %v253_v15 = vld [vmem:[#allocation5 + $0x150] sm:$0xff]  ;;  %v264_v20 = vld [vmem:[#allocation5 + $0x1a8] sm:$0xff]  ;;  %v6368_v21 = vcombine.high %v252_v10, %v256_v13 }
  0xda   :  { %v271_v29 = vld [vmem:[#allocation5 + $0x1e0] sm:$0xff]  ;;  %v265_v24 = vld [vmem:[#allocation5 + $0x1b0] sm:$0xff]  ;;  %v6370_v25 = vcombine.high %v253_v15, %v257_v16  ;;  %v6369_v32 = vcombine.low %v253_v15, %v257_v16  ;;  %v226_v49 = vld [vmem:[#allocation5 + $0x78] sm:$0xff] }
  0xdb   :  { %v6382_v31 = vcombine.high %v267_v28, %v271_v29  ;;  %v6381_v36 = vcombine.low %v267_v28, %v271_v29  ;;  %v8230_v37 = vld [vmem:[#allocation2] sm:$0xff]   ;;  %v268_v28 = vld [vmem:[#allocation5 + $0x1c8] sm:$0xff]  ;;  %v269_v33 = vld [vmem:[#allocation5 + $0x1d0] sm:$0xff] }
  0xdc   :  { %692 = vmatpush1.bf16.msra.mxu0 %v6349_v18  ;;  %7188 = vmatpush1.bf16.msra.mxu1 %v6349_v18  ;;  %v8232_v39 = vld [vmem:[#allocation2 + $0x20] sm:$0xff]   ;;  %v6359_v18 = vcombine.low %v244_v2, %v248_v4  ;;  %v272_v29 = vld [vmem:[#allocation5 + $0x1e8] sm:$0xff]  ;;  %v273_v34 = vld [vmem:[#allocation5 + $0x1f0] sm:$0xff] }
  0xdd   :  { %693 = vmatprep.subr.bf16.mxu0 %v6358_v19  ;;  %7181 = vmatprep.subr.bf16.mxu1 %v6358_v19  ;;  %v260_v19 = vld [vmem:[#allocation5 + $0x188] sm:$0xff]  ;;  %v6384_v41 = vcombine.high %v268_v28, %v272_v29  ;;  %v6386_v43 = vcombine.high %v269_v33, %v273_v34  ;;  %v6383_v44 = vcombine.low %v268_v28, %v272_v29  ;;  %v230_v52 = vld [vmem:[#allocation5 + $0x98] sm:$0xff] }
  0xde   :  { %v242_v61 = vld [vmem:[#allocation5 + $0xf8] sm:$0xff]  ;;  %v7356_v62 = vld [vmem:[#allocation8 + $0x24] ss:$8 sps:$4 sm:$0xff]  }
  0xdf   :  { %v250_v4 = vld [vmem:[#allocation5 + $0x138] sm:$0xff] }
  0xe0   :  { %694 = vmatpush1.bf16.msra.mxu0 %v6357_v22  ;;  %7189 = vmatpush1.bf16.msra.mxu1 %v6357_v22  ;;  %v6361_v22 = vcombine.low %v245_v6, %v249_v7  ;;  %v7357_v6 = vld [vmem:[#allocation8 + $0x30] ss:$8 sps:$4 sm:$0xff]   ;;  %v7371_v28 = vld [vmem:[#allocation8 + $0x74] ss:$8 sps:$4 sm:$0xff]  }
  0xe1   :  { %695 = vmatprep.subr.bf16.mxu0 %v6366_v23  ;;  %7182 = vmatprep.subr.bf16.mxu1 %v6366_v23  ;;  %v261_v23 = vld [vmem:[#allocation5 + $0x190] sm:$0xff]  ;;  %v262_v16 = vld [vmem:[#allocation5 + $0x198] sm:$0xff] }
  0xe2   :  { %v6378_v35 = vcombine.high %v261_v23, %v265_v24  ;;  %v6377_v42 = vcombine.low %v261_v23, %v265_v24  ;;  %v7368_v23 = vld [vmem:[#allocation8 + $0x64] ss:$8 sps:$4 sm:$0xff]  }
  0xe4   :  { %696 = vmatpush1.bf16.msra.mxu0 %v6365_v26  ;;  %7190 = vmatpush1.bf16.msra.mxu1 %v6365_v26  ;;  %v8253_v26 = vld [vmem:[#allocation2 + $0x18] sm:$0xff]  }
  0xe5   :  { %697 = vmatprep.subr.bf16.mxu0 %v6374_v27  ;;  %7183 = vmatprep.subr.bf16.mxu1 %v6374_v27  ;;  %v6367_v27 = vcombine.low %v252_v10, %v256_v13  ;;  %v258_v10 = vld [vmem:[#allocation5 + $0x178] sm:$0xff] }
  0xe8   :  { %698 = vmatpush1.bf16.msra.mxu0 %v6373_v30  ;;  %7191 = vmatpush1.bf16.msra.mxu1 %v6373_v30  ;;  %v8256_v30 = vld [vmem:[#allocation2 + $0x38] sm:$0xff]  }
  0xe9   :  { %699 = vmatprep.subr.bf16.mxu0 %v6382_v31  ;;  %7184 = vmatprep.subr.bf16.mxu1 %v6382_v31  ;;  %v6376_v31 = vcombine.high %v260_v19, %v264_v20 }
  0xec   :  { %700 = vmatpush1.bf16.msra.mxu0 %v6381_v36  ;;  %7192 = vmatpush1.bf16.msra.mxu1 %v6381_v36  ;;  %v6375_v36 = vcombine.low %v260_v19, %v264_v20  ;;  %v7363_v19 = vld [vmem:[#allocation8 + $0x50] ss:$8 sps:$4 sm:$0xff]  }
  0xed   :  { %911 = vmatprep.subr.bf16.mxu0 %v6330_v38  ;;  %798 = vmatprep.subr.bf16.mxu1 %v6328_v40  ;;  %v214_v38 = vld [vmem:[#allocation5 + $0x18] sm:$0xff] }
  0xee   :  { %v218_v40 = vld [vmem:[#allocation5 + $0x38] sm:$0xff] }
  0xef   :  { %718 = vmatmul.mubr.bf16.vlgmr.msra.gmra.mrb[0].mxu0 %v8230_v37  ;;  %758 = vmatmul.mubr.bf16.vlgmr.msra.gmra.mrb[0].mxu1 %v8232_v39  ;;  %v6332_v47 = vcombine.high %v214_v38, %v218_v40  ;;  %v6331_v51 = vcombine.low %v214_v38, %v218_v40  ;;  %v7380_v38 = vld [vmem:[#allocation8 + $0xa4] ss:$8 sps:$4 sm:$0xff]   ;;  %v7378_v40 = vld [vmem:[#allocation8 + $0xa0] ss:$8 sps:$4 sm:$0xff]  }
  0xf0   :  { %727 = vmatprep.mubr.bf16.mxu0 %v7962_v0  ;;  %799 = vmatpush1.bf16.msra.mxu1 %v6327_v45  ;;  %v7350_v45 = vld [vmem:[#allocation8 + $0x4] ss:$8 sps:$4 sm:$0xff]  }
  0xf1   :  { %767 = vmatprep.mubr.bf16.mxu1 %v7962_v0  ;;  %800 = vmatprep.subr.bf16.mxu1 %v6336_v46  ;;  %v6385_v46 = vcombine.low %v269_v33, %v273_v34  ;;  %v7374_v33 = vld [vmem:[#allocation8 + $0x84] ss:$8 sps:$4 sm:$0xff]   ;;  %v7372_v34 = vld [vmem:[#allocation8 + $0x80] ss:$8 sps:$4 sm:$0xff]  }
  0xf2   :  { %912 = vmatpush1.bf16.msra.mxu0 %v6329_v48  ;;  %v222_v48 = vld [vmem:[#allocation5 + $0x58] sm:$0xff] }
  0xf3   :  { %913 = vmatprep.subr.bf16.mxu0 %v6338_v50  ;;  %v7348_v50 = vld [vmem:[#allocation8] ss:$8 sps:$4 sm:$0xff]   ;;  %v6340_v57 = vcombine.high %v222_v48, %v226_v49  ;;  %v6339_v59 = vcombine.low %v222_v48, %v226_v49  ;;  %v7393_v48 = vld [vmem:[#allocation8 + $0xf0] ss:$8 sps:$4 sm:$0xff]  }
  0xf4   :  { %801 = vmatpush1.bf16.msra.mxu1 %v6335_v54  ;;  %v234_v54 = vld [vmem:[#allocation5 + $0xb8] sm:$0xff]  ;;  %v7660_v49 = vld [vmem:[#allocation2] sm:$0xff]  }
  0xf5   :  { %802 = vmatprep.subr.bf16.mxu1 %v6344_v56  ;;  %v7353_v56 = vld [vmem:[#allocation8 + $0x14] ss:$8 sps:$4 sm:$0xff]   ;;  %v6347_v2 = vcombine.low %v230_v52, %v234_v54 }
  0xf6   :  { %914 = vmatpush1.bf16.msra.mxu0 %v6337_v58  ;;  %v7351_v58 = vld [vmem:[#allocation8 + $0x10] ss:$8 sps:$4 sm:$0xff]  }
  0xf7   :  { %728 = vmatmul.mubr.bf16.gmra.mrb[4].mxu0 %v8237_v53  ;;  %915 = vmatprep.subr.bf16.mxu0 %v6346_v60  ;;  %v238_v60 = vld [vmem:[#allocation5 + $0xd8] sm:$0xff] }
  0xf8   :  { %737 = vmatprep.mubr.bf16.mxu0 %v7962_v0  ;;  %768 = vmatmul.mubr.bf16.gmra.mrb[4].mxu1 %v8240_v55  ;;  %v6355_v7 = vcombine.low %v238_v60, %v242_v61 }
  0xf9   :  { %803 = vmatpush1.bf16.msra.mxu1 %v6343_v63  ;;  %777 = vmatprep.mubr.bf16.mxu1 %v7962_v0  ;;  %v6348_v63 = vcombine.high %v230_v52, %v234_v54  ;;  %v7663_v52 = vld [vmem:[#allocation2 + $0x28] sm:$0xff]   ;;  %v7664_v54 = vld [vmem:[#allocation2 + $0x30] sm:$0xff]  }
  0xfa   :  { %804 = vmatprep.subr.bf16.mxu1 %v6352_v1  ;;  %916 = vmatpush1.bf16.msra.mxu0 %v6345_v3  ;;  %v7354_v1 = vld [vmem:[#allocation8 + $0x20] ss:$8 sps:$4 sm:$0xff]   ;;  %v246_v3 = vld [vmem:[#allocation5 + $0x118] sm:$0xff] }
  0xfb   :  { %917 = vmatprep.subr.bf16.mxu0 %v6354_v5  ;;  %v7359_v5 = vld [vmem:[#allocation8 + $0x34] ss:$8 sps:$4 sm:$0xff]   ;;  %v6364_v13 = vcombine.high %v246_v3, %v250_v4  ;;  %v6363_v15 = vcombine.low %v246_v3, %v250_v4 }
  0xfd   :  { %805 = vmatpush1.bf16.msra.mxu1 %v6351_v9  ;;  %v254_v9 = vld [vmem:[#allocation5 + $0x158] sm:$0xff] }
  0xfe   :  { %806 = vmatprep.subr.bf16.mxu1 %v6360_v12  ;;  %918 = vmatpush1.bf16.msra.mxu0 %v6353_v14  ;;  %v7362_v12 = vld [vmem:[#allocation8 + $0x44] ss:$8 sps:$4 sm:$0xff]   ;;  %v7360_v14 = vld [vmem:[#allocation8 + $0x40] ss:$8 sps:$4 sm:$0xff]   ;;  %v6371_v20 = vcombine.low %v254_v9, %v258_v10 }
  0xff   :  { %738 = vmatmul.mubr.bf16.gmra.mrb[8].mxu0 %v8245_v8  ;;  %919 = vmatprep.subr.bf16.mxu0 %v6362_v17  ;;  %v266_v17 = vld [vmem:[#allocation5 + $0x1b8] sm:$0xff] }
 0x100   :  { %747 = vmatprep.mubr.bf16.mxu0 %v7962_v0  ;;  %778 = vmatmul.mubr.bf16.gmra.mrb[8].mxu1 %v8248_v11  ;;  %v6380_v24 = vcombine.high %v262_v16, %v266_v17 }
 0x101   :  { %807 = vmatpush1.bf16.msra.mxu1 %v6359_v18  ;;  %787 = vmatprep.mubr.bf16.mxu1 %v7962_v0  ;;  %v7365_v18 = vld [vmem:[#allocation8 + $0x54] ss:$8 sps:$4 sm:$0xff]  }
 0x102   :  { %808 = vmatprep.subr.bf16.mxu1 %v6368_v21  ;;  %920 = vmatpush1.bf16.msra.mxu0 %v6361_v22  ;;  %v270_v21 = vld [vmem:[#allocation5 + $0x1d8] sm:$0xff] }
 0x103   :  { %921 = vmatprep.subr.bf16.mxu0 %v6370_v25  ;;  %v274_v22 = vld [vmem:[#allocation5 + $0x1f8] sm:$0xff]  ;;  %v7366_v25 = vld [vmem:[#allocation8 + $0x60] ss:$8 sps:$4 sm:$0xff]  }
 0x104   :  { %v6388_v29 = vcombine.high %v270_v21, %v274_v22 }
 0x105   :  { %809 = vmatpush1.bf16.msra.mxu1 %v6367_v27  ;;  %v6379_v27 = vcombine.low %v262_v16, %v266_v17 }
 0x106   :  { %810 = vmatprep.subr.bf16.mxu1 %v6376_v31  ;;  %922 = vmatpush1.bf16.msra.mxu0 %v6369_v32  ;;  %v7369_v31 = vld [vmem:[#allocation8 + $0x70] ss:$8 sps:$4 sm:$0xff]   ;;  %v6387_v32 = vcombine.low %v270_v21, %v274_v22 }
 0x107   :  { %748 = vmatmul.mubr.bf16.gmra.mrb[12].mxu0 %v8253_v26  ;;  %923 = vmatprep.subr.bf16.mxu0 %v6378_v35  ;;  %v7377_v35 = vld [vmem:[#allocation8 + $0x94] ss:$8 sps:$4 sm:$0xff]  }
 0x108   :  { %788 = vmatmul.mubr.bf16.gmra.mrb[12].mxu1 %v8256_v30  ;;  %943 = vmatprep.mubr.bf16.mxu0 %v7962_v0 }
 0x109   :  { %811 = vmatpush1.bf16.msra.mxu1 %v6375_v36  ;;  %830 = vmatprep.mubr.bf16.mxu1 %v7962_v0  ;;  %v7375_v36 = vld [vmem:[#allocation8 + $0x90] ss:$8 sps:$4 sm:$0xff]  }
 0x10a   :  { %812 = vmatprep.subr.bf16.mxu1 %v6384_v41  ;;  %924 = vmatpush1.bf16.msra.mxu0 %v6377_v42  ;;  %v7383_v41 = vld [vmem:[#allocation8 + $0xb4] ss:$8 sps:$4 sm:$0xff]   ;;  %v7381_v42 = vld [vmem:[#allocation8 + $0xb0] ss:$8 sps:$4 sm:$0xff]  }
 0x10b   :  { %925 = vmatprep.subr.bf16.mxu0 %v6386_v43  ;;  %v7384_v43 = vld [vmem:[#allocation8 + $0xc0] ss:$8 sps:$4 sm:$0xff]  }
 0x10d   :  { %813 = vmatpush1.bf16.msra.mxu1 %v6383_v44  ;;  %v7389_v44 = vld [vmem:[#allocation8 + $0xd4] ss:$8 sps:$4 sm:$0xff]  }
 0x10e   :  { %926 = vmatpush1.bf16.msra.mxu0 %v6385_v46  ;;  %1024 = vmatprep.subr.bf16.mxu1 %v6332_v47  ;;  %v7390_v46 = vld [vmem:[#allocation8 + $0xe0] ss:$8 sps:$4 sm:$0xff]   ;;  %v7395_v47 = vld [vmem:[#allocation8 + $0xf4] ss:$8 sps:$4 sm:$0xff]  }
 0x10f   :  { %2237 = vmatprep.subr.bf16.mxu0 %v7350_v45  ;;  %v7387_v45 = vld [vmem:[#allocation8 + $0xd0] ss:$8 sps:$4 sm:$0xff]  }
 0x110   :  { %831 = vmatmul.mubr.bf16.vlgmr.msra.gmra.mrb[16].mxu1 %v8230_v37 }
 0x111   :  { %840 = vmatprep.mubr.bf16.mxu1 %v7962_v0  ;;  %944 = vmatmul.mubr.bf16.vlgmr.msra.gmra.mrb[16].mxu0 %v8230_v37  ;;  %v6356_v37 = vcombine.high %v238_v60, %v242_v61 }
 0x112   :  { %1025 = vmatpush1.bf16.msra.mxu1 %v6331_v51  ;;  %953 = vmatprep.mubr.bf16.mxu0 %v7962_v0  ;;  %v7662_v51 = vld [vmem:[#allocation2 + $0x20] sm:$0xff]  }
 0x113   :  { %1026 = vmatprep.subr.bf16.mxu1 %v6340_v57  ;;  %2238 = vmatpush1.bf16.msra.mxu0 %v7348_v50  ;;  %v7661_v50 = vld [vmem:[#allocation2 + $0x8] sm:$0xff]   ;;  %v8308_v57 = vld [vmem:[#allocation7] sm:$0xff] }
 0x114   :  { %2239 = vmatprep.subr.bf16.mxu0 %v7353_v56 }
 0x116   :  { %1027 = vmatpush1.bf16.msra.mxu1 %v6339_v59 }
 0x117   :  { %1028 = vmatprep.subr.bf16.mxu1 %v6348_v63  ;;  %2240 = vmatpush1.bf16.msra.mxu0 %v7351_v58 }
 0x118   :  { %841 = vmatmul.mubr.bf16.gmra.mrb[20].mxu1 %v8237_v53  ;;  %2241 = vmatprep.subr.bf16.mxu0 %v7356_v62 }
 0x119   :  { %850 = vmatprep.mubr.bf16.mxu1 %v7962_v0  ;;  %954 = vmatmul.mubr.bf16.gmra.mrb[20].mxu0 %v8237_v53  ;;  %v6372_v53 = vcombine.high %v254_v9, %v258_v10 }
 0x11a   :  { %963 = vmatprep.mubr.bf16.mxu0 %v7962_v0  ;;  %1029 = vmatpush1.bf16.msra.mxu1 %v6347_v2 }
 0x11b   :  { %1030 = vmatprep.subr.bf16.mxu1 %v6356_v37  ;;  %2242 = vmatpush1.bf16.msra.mxu0 %v7354_v1 }
 0x11c   :  { %2243 = vmatprep.subr.bf16.mxu0 %v7359_v5 }
 0x11e   :  { %1031 = vmatpush1.bf16.msra.mxu1 %v6355_v7 }
 0x11f   :  { %1032 = vmatprep.subr.bf16.mxu1 %v6364_v13  ;;  %2244 = vmatpush1.bf16.msra.mxu0 %v7357_v6 }
 0x120   :  { %851 = vmatmul.mubr.bf16.gmra.mrb[24].mxu1 %v8245_v8  ;;  %2245 = vmatprep.subr.bf16.mxu0 %v7362_v12 }
 0x121   :  { %860 = vmatprep.mubr.bf16.mxu1 %v7962_v0  ;;  %964 = vmatmul.mubr.bf16.gmra.mrb[24].mxu0 %v8245_v8 }
 0x122   :  { %973 = vmatprep.mubr.bf16.mxu0 %v7962_v0  ;;  %1033 = vmatpush1.bf16.msra.mxu1 %v6363_v15 }
 0x123   :  { %1034 = vmatprep.subr.bf16.mxu1 %v6372_v53  ;;  %2246 = vmatpush1.bf16.msra.mxu0 %v7360_v14 }
 0x124   :  { %2247 = vmatprep.subr.bf16.mxu0 %v7365_v18 }
 0x126   :  { %1035 = vmatpush1.bf16.msra.mxu1 %v6371_v20 }
 0x127   :  { %1036 = vmatprep.subr.bf16.mxu1 %v6380_v24  ;;  %2248 = vmatpush1.bf16.msra.mxu0 %v7363_v19 }
 0x128   :  { %861 = vmatmul.mubr.bf16.gmra.mrb[28].mxu1 %v8253_v26  ;;  %2249 = vmatprep.subr.bf16.mxu0 %v7368_v23 }
 0x129   :  { %870 = vmatprep.mubr.bf16.mxu1 %v7962_v0  ;;  %974 = vmatmul.mubr.bf16.gmra.mrb[28].mxu0 %v8253_v26 }
 0x12a   :  { %983 = vmatprep.mubr.bf16.mxu0 %v7962_v0  ;;  %1037 = vmatpush1.bf16.msra.mxu1 %v6379_v27 }
 0x12b   :  { %1038 = vmatprep.subr.bf16.mxu1 %v6388_v29  ;;  %2250 = vmatpush1.bf16.msra.mxu0 %v7366_v25 }
 0x12c   :  { %2251 = vmatprep.subr.bf16.mxu0 %v7371_v28 }
 0x12e   :  { %1039 = vmatpush1.bf16.msra.mxu1 %v6387_v32 }
 0x12f   :  { %2252 = vmatpush1.bf16.msra.mxu0 %v7369_v31 }
 0x130   :  { %871 = vmatmul.mubr.bf16.gmra.mrb[32].mxu1 %v8232_v39  ;;  %2253 = vmatprep.subr.bf16.mxu0 %v7374_v33 }
 0x131   :  { %880 = vmatprep.mubr.bf16.mxu1 %v7962_v0  ;;  %984 = vmatmul.mubr.bf16.gmra.mrb[32].mxu0 %v8232_v39  ;;  %v7386_v39 = vld [vmem:[#allocation8 + $0xc4] ss:$8 sps:$4 sm:$0xff]  }
 0x132   :  { %993 = vmatprep.mubr.bf16.mxu0 %v7962_v0 }
 0x133   :  { %2254 = vmatpush1.bf16.msra.mxu0 %v7372_v34 }
 0x134   :  { %2255 = vmatprep.subr.bf16.mxu0 %v7377_v35 }
 0x137   :  { %2256 = vmatpush1.bf16.msra.mxu0 %v7375_v36 }
 0x138   :  { %881 = vmatmul.mubr.bf16.gmra.mrb[36].mxu1 %v8240_v55  ;;  %2257 = vmatprep.subr.bf16.mxu0 %v7380_v38 }
 0x139   :  { %890 = vmatprep.mubr.bf16.mxu1 %v7962_v0  ;;  %994 = vmatmul.mubr.bf16.gmra.mrb[36].mxu0 %v8240_v55  ;;  %v7392_v55 = vld [vmem:[#allocation8 + $0xe4] ss:$8 sps:$4 sm:$0xff]  }
 0x13a   :  { %1003 = vmatprep.mubr.bf16.mxu0 %v7962_v0 }
 0x13b   :  { %2258 = vmatpush1.bf16.msra.mxu0 %v7378_v40 }
 0x13c   :  { %2259 = vmatprep.subr.bf16.mxu0 %v7383_v41  ;;  %v7396_v41 = vld [vmem:[#allocation8 + $0x100] ss:$8 sps:$4 sm:$0xff]  }
 0x13f   :  { %2260 = vmatpush1.bf16.msra.mxu0 %v7381_v42 }
 0x140   :  { %891 = vmatmul.mubr.bf16.gmra.mrb[40].mxu1 %v8248_v11  ;;  %2261 = vmatprep.subr.bf16.mxu0 %v7386_v39 }
 0x141   :  { %900 = vmatprep.mubr.bf16.mxu1 %v7962_v0  ;;  %1004 = vmatmul.mubr.bf16.gmra.mrb[40].mxu0 %v8248_v11  ;;  %v7398_v11 = vld [vmem:[#allocation8 + $0x104] ss:$8 sps:$4 sm:$0xff]  }
 0x142   :  { %1013 = vmatprep.mubr.bf16.mxu0 %v7962_v0 }
 0x143   :  { %2262 = vmatpush1.bf16.msra.mxu0 %v7384_v43 }
 0x144   :  { %2263 = vmatprep.subr.bf16.mxu0 %v7389_v44 }
 0x147   :  { %2264 = vmatpush1.bf16.msra.mxu0 %v7387_v45 }
 0x148   :  { %901 = vmatmul.mubr.bf16.gmra.mrb[44].mxu1 %v8256_v30  ;;  %2265 = vmatprep.subr.bf16.mxu0 %v7392_v55 }
 0x149   :  { %1014 = vmatmul.mubr.bf16.gmra.mrb[44].mxu0 %v8256_v30  ;;  %1056 = vmatprep.mubr.bf16.mxu1 %v7962_v0 }
 0x14b   :  { %2266 = vmatpush1.bf16.msra.mxu0 %v7390_v46  ;;  %v7401_v46 = vld [vmem:[#allocation8 + $0x114] ss:$8 sps:$4 sm:$0xff]  }
 0x14c   :  { %2267 = vmatprep.subr.bf16.mxu0 %v7395_v47 }
 0x14f   :  { %2268 = vmatpush1.bf16.msra.mxu0 %v7393_v48 }
 0x150   :  { %1057 = vmatmul.mubr.bf16.vlgmr.msra.gmra.mrb[48].mxu1 %v7660_v49  ;;  %2350 = vmatprep.subr.bf16.mxu0 %v7398_v11 }
 0x151   :  { %1066 = vmatprep.mubr.bf16.mxu1 %v7962_v0 }
 0x158   :  { %1067 = vmatmul.mubr.bf16.gmra.mrb[52].mxu1 %v7661_v50 }
 0x159   :  { %1076 = vmatprep.mubr.bf16.mxu1 %v7962_v0 }
 0x160   :  { %1077 = vmatmul.mubr.bf16.gmra.mrb[56].mxu1 %v8245_v8  ;;  %v277_v8 = vlaneseq }
 0x161   :  { %1086 = vmatprep.mubr.bf16.mxu1 %v7962_v0 }
 0x162   :  { %v8303_v56 = vshrl.u32 %v277_v8, 7 }
 0x164   :  { %v8311_v58 = vsub.s32 1, %v8303_v56 }
 0x166   :  { %v8319_v60 = vrot.slane %v8308_v57, %v8311_v58 }
 0x168   :  { %1087 = vmatmul.mubr.bf16.gmra.mrb[60].mxu1 %v8253_v26  ;;  %v8306_v26 = vsub.s32 0, %v8303_v56 }
 0x169   :  { %1096 = vmatprep.mubr.bf16.mxu1 %v7962_v0 }
 0x16a   :  { %v8315_v59 = vrot.slane %v8308_v57, %v8306_v26 }
 0x170   :  { %1097 = vmatmul.mubr.bf16.gmra.mrb[64].mxu1 %v7662_v51 }
 0x171   :  { %1106 = vmatprep.mubr.bf16.mxu1 %v7962_v0 }
 0x178   :  { %1107 = vmatmul.mubr.bf16.gmra.mrb[68].mxu1 %v7663_v52 }
 0x179   :  { %1116 = vmatprep.mubr.bf16.mxu1 %v7962_v0 }
 0x180   :  { %1117 = vmatmul.mubr.bf16.gmra.mrb[72].mxu1 %v7664_v54 }
 0x181   :  { %1126 = vmatprep.mubr.bf16.mxu1 %v7962_v0 }
 0x188   :  { %1127 = vmatmul.mubr.bf16.gmra.mrb[76].mxu1 %v8256_v30 }
 0x1c2   :  { %v719_v30 = vpop.f32.mrb[0].mxu0  ;;  %v759_v63 = vpop.f32.mrb[0].mxu1 }
 0x1c3   :  { %v720_v61 = vadd.f32 %v719_v30, %v8315_v59  ;;  %v721_v62 = vpop.f32.mrb[1].mxu0  ;;  %v760_v3 = vadd.f32 %v759_v63, %v8315_v59  ;;  %v761_v4 = vpop.f32.mrb[1].mxu1  ;;  %v7399_v63 = vld [vmem:[#allocation8 + $0x110] ss:$8 sps:$4 sm:$0xff]  }
 0x1c4   :  { %v722_v1 = vadd.f32 %v721_v62, %v8319_v60  ;;  %v723_v2 = vpop.f32.mrb[2].mxu0  ;;  %v762_v7 = vadd.f32 %v761_v4, %v8319_v60  ;;  %v763_v9 = vpop.f32.mrb[2].mxu1 }
 0x1c5   :  { %v1137_v5 = vmul.f32 0.01, %v720_v61  ;;  %v724_v37 = vadd.f32 %v723_v2, %v8315_v59  ;;  %v725_v6 = vpop.f32.mrb[3].mxu0  ;;  %v1201_v13 = vmul.f32 0.01, %v760_v3  ;;  %v764_v14 = vadd.f32 %v763_v9, %v8315_v59  ;;  %v765_v15 = vpop.f32.mrb[3].mxu1 }
 0x1c6   :  { %v1138_v10 = vmul.f32 0.01, %v722_v1  ;;  %v726_v12 = vadd.f32 %v725_v6, %v8319_v60  ;;  %v1202_v17 = vmul.f32 0.01, %v762_v7  ;;  %v766_v18 = vadd.f32 %v765_v15, %v8319_v60 }
 0x1c7   :  { %v1145_v16 = vmul.f32 0.01, %v724_v37  ;;  %v1329_v19 = vmax.f32 %v760_v3, %v1201_v13  ;;  %v1209_v20 = vmul.f32 0.01, %v764_v14  ;;  %v1265_v21 = vmax.f32 %v720_v61, %v1137_v5  ;;  %v7404_v5 = vld [vmem:[#allocation8 + $0x124] ss:$8 sps:$4 sm:$0xff]  }
 0x1c8   :  { %v1146_v53 = vmul.f32 0.01, %v726_v12  ;;  %v1330_v23 = vmax.f32 %v762_v7, %v1202_v17  ;;  %v1210_v24 = vmul.f32 0.01, %v766_v18  ;;  %v1266_v25 = vmax.f32 %v722_v1, %v1138_v10 }
 0x1c9   :  { %v1273_v22 = vmax.f32 %v724_v37, %v1145_v16  ;;  %v1337_v29 = vmax.f32 %v764_v14, %v1209_v20 }
 0x1ca   :  { %v1274_v27 = vmax.f32 %v726_v12, %v1146_v53  ;;  %v729_v28 = vpop.f32.mrb[4].mxu0  ;;  %v1338_v34 = vmax.f32 %v766_v18, %v1210_v24  ;;  %v287_v18 = vsub.s32 2, %v8303_v56 }
 0x1cb   :  { %v1393_v31 = vpack.c.bf16 %v1273_v22, %v1265_v21  ;;  %v730_v32 = vadd.f32 %v729_v28, %v8315_v59  ;;  %v731_v33 = vpop.f32.mrb[5].mxu0  ;;  %v769_v35 = vpop.f32.mrb[4].mxu1  ;;  %v8332_v43 = vpack.c.bf16 %v1337_v29, %v1329_v19  ;;  %v7402_v21 = vld [vmem:[#allocation8 + $0x120] ss:$8 sps:$4 sm:$0xff]   ;;  %v7407_v29 = vld [vmem:[#allocation8 + $0x134] ss:$8 sps:$4 sm:$0xff]  }
 0x1cc   :  { %v732_v36 = vadd.f32 %v731_v33, %v8319_v60  ;;  %v733_v38 = vpop.f32.mrb[6].mxu0  ;;  %v1394_v40 = vpack.c.bf16 %v1274_v27, %v1266_v25  ;;  %v770_v42 = vadd.f32 %v769_v35, %v8315_v59  ;;  %v771_v39 = vpop.f32.mrb[5].mxu1  ;;  %v8336_v11 = vpack.c.bf16 %v1338_v34, %v1330_v23 }
 0x1cd   :  { %v1153_v44 = vmul.f32 0.01, %v730_v32  ;;  %v734_v45 = vadd.f32 %v733_v38, %v8315_v59  ;;  %v735_v55 = vpop.f32.mrb[7].mxu0  ;;  %v772_v47 = vadd.f32 %v771_v39, %v8319_v60  ;;  %v773_v48 = vpop.f32.mrb[6].mxu1 }
 0x1ce   :  { %v1154_v49 = vmul.f32 0.01, %v732_v36  ;;  %v736_v50 = vadd.f32 %v735_v55, %v8319_v60  ;;  %2269 = vmatprep.mubr.bf16.mxu0 %v1394_v40  ;;  %v1217_v51 = vmul.f32 0.01, %v770_v42  ;;  %v774_v52 = vadd.f32 %v773_v48, %v8315_v59  ;;  %v775_v54 = vpop.f32.mrb[7].mxu1 }
 0x1cf   :  { %v1161_v8 = vmul.f32 0.01, %v734_v45  ;;  %2270 = vmatmul.mubr.bf16.vlgmr.msra.gmra.mrb[48].mxu0 %v1393_v31  ;;  %v1218_v30 = vmul.f32 0.01, %v772_v47  ;;  %v776_v61 = vadd.f32 %v775_v54, %v8319_v60  ;;  %v1281_v3 = vmax.f32 %v730_v32, %v1153_v44  ;;  %v7405_v55 = vld [vmem:[#allocation8 + $0x130] ss:$8 sps:$4 sm:$0xff]  }
 0x1d0   :  { %v1162_v62 = vmul.f32 0.01, %v736_v50  ;;  %2351 = vmatpush1.bf16.msra.mxu0 %v7396_v41  ;;  %v1345_v1 = vmax.f32 %v770_v42, %v1217_v51  ;;  %v1225_v2 = vmul.f32 0.01, %v774_v52  ;;  %v1282_v7 = vmax.f32 %v732_v36, %v1154_v49  ;;  %v7410_v51 = vld [vmem:[#allocation8 + $0x144] ss:$8 sps:$4 sm:$0xff]  }
 0x1d1   :  { %v1289_v4 = vmax.f32 %v734_v45, %v1161_v8  ;;  %2352 = vmatprep.subr.bf16.mxu0 %v7401_v46  ;;  %v1346_v37 = vmax.f32 %v772_v47, %v1218_v30  ;;  %v1226_v6 = vmul.f32 0.01, %v776_v61  ;;  %v291_v44 = vsub.s32 3, %v8303_v56 }
 0x1d2   :  { %v1290_v9 = vmax.f32 %v736_v50, %v1162_v62  ;;  %v739_v10 = vpop.f32.mrb[8].mxu0  ;;  %v1353_v12 = vmax.f32 %v774_v52, %v1225_v2  ;;  %v8358_v48 = vrot.slane %v8308_v57, %v287_v18 }
 0x1d3   :  { %v740_v13 = vadd.f32 %v739_v10, %v8315_v59  ;;  %v741_v14 = vpop.f32.mrb[9].mxu0  ;;  %v1401_v15 = vpack.c.bf16 %v1289_v4, %v1281_v3  ;;  %v1354_v16 = vmax.f32 %v776_v61, %v1226_v6  ;;  %v779_v17 = vpop.f32.mrb[8].mxu1  ;;  %v7408_v10 = vld [vmem:[#allocation8 + $0x140] ss:$8 sps:$4 sm:$0xff]  }
 0x1d4   :  { %v742_v53 = vadd.f32 %v741_v14, %v8319_v60  ;;  %2353 = vmatpush1.bf16.msra.mxu0 %v7399_v63  ;;  %v743_v19 = vpop.f32.mrb[10].mxu0  ;;  %v1402_v20 = vpack.c.bf16 %v1290_v9, %v1282_v7  ;;  %v780_v22 = vadd.f32 %v779_v17, %v8315_v59  ;;  %v781_v23 = vpop.f32.mrb[9].mxu1  ;;  %v8345_v24 = vpack.c.bf16 %v1353_v12, %v1345_v1 }
 0x1d5   :  { %v1169_v25 = vmul.f32 0.01, %v740_v13  ;;  %v744_v27 = vadd.f32 %v743_v19, %v8315_v59  ;;  %v745_v28 = vpop.f32.mrb[11].mxu0  ;;  %2354 = vmatprep.subr.bf16.mxu0 %v7404_v5  ;;  %v782_v31 = vadd.f32 %v781_v23, %v8319_v60  ;;  %v783_v32 = vpop.f32.mrb[10].mxu1  ;;  %v8349_v33 = vpack.c.bf16 %v1354_v16, %v1346_v37 }
 0x1d6   :  { %v1170_v34 = vmul.f32 0.01, %v742_v53  ;;  %v746_v35 = vadd.f32 %v745_v28, %v8319_v60  ;;  %2279 = vmatprep.mubr.bf16.mxu0 %v1402_v20  ;;  %v1233_v36 = vmul.f32 0.01, %v780_v22  ;;  %v784_v38 = vadd.f32 %v783_v32, %v8315_v59  ;;  %v785_v40 = vpop.f32.mrb[11].mxu1 }
 0x1d7   :  { %v1177_v41 = vmul.f32 0.01, %v744_v27  ;;  %2280 = vmatmul.mubr.bf16.gmra.mrb[52].mxu0 %v1401_v15  ;;  %v1234_v42 = vmul.f32 0.01, %v782_v31  ;;  %v786_v39 = vadd.f32 %v785_v40, %v8319_v60  ;;  %v1297_v49 = vmax.f32 %v740_v13, %v1169_v25 }
 0x1d8   :  { %v1178_v45 = vmul.f32 0.01, %v746_v35  ;;  %2355 = vmatpush1.bf16.msra.mxu0 %v7402_v21  ;;  %v1361_v46 = vmax.f32 %v780_v22, %v1233_v36  ;;  %v1241_v47 = vmul.f32 0.01, %v784_v38  ;;  %v1298_v8 = vmax.f32 %v742_v53, %v1170_v34  ;;  %v7413_v53 = vld [vmem:[#allocation8 + $0x154] ss:$8 sps:$4 sm:$0xff]  }
 0x1d9   :  { %v1305_v50 = vmax.f32 %v744_v27, %v1177_v41  ;;  %2356 = vmatprep.subr.bf16.mxu0 %v7407_v29  ;;  %v1362_v52 = vmax.f32 %v782_v31, %v1234_v42  ;;  %v1242_v54 = vmul.f32 0.01, %v786_v39  ;;  %v295_v63 = vsub.s32 4, %v8303_v56  ;;  %v7411_v36 = vld [vmem:[#allocation8 + $0x150] ss:$8 sps:$4 sm:$0xff]  }
 0x1da   :  { %v1306_v30 = vmax.f32 %v746_v35, %v1178_v45  ;;  %v749_v61 = vpop.f32.mrb[12].mxu0  ;;  %v1369_v62 = vmax.f32 %v784_v38, %v1241_v47  ;;  %v299_v37 = vsub.s32 5, %v8303_v56  ;;  %v8377_v34 = vrot.slane %v8308_v57, %v291_v44 }
 0x1db   :  { %v750_v1 = vadd.f32 %v749_v61, %v8315_v59  ;;  %v751_v2 = vpop.f32.mrb[13].mxu0  ;;  %v1409_v3 = vpack.c.bf16 %v1305_v50, %v1297_v49  ;;  %v1370_v4 = vmax.f32 %v786_v39, %v1242_v54  ;;  %v789_v5 = vpop.f32.mrb[12].mxu1  ;;  %v7416_v39 = vld [vmem:[#allocation8 + $0x164] ss:$8 sps:$4 sm:$0xff]  }
 0x1dc   :  { %v752_v6 = vadd.f32 %v751_v2, %v8319_v60  ;;  %2357 = vmatpush1.bf16.msra.mxu0 %v7405_v55  ;;  %v753_v7 = vpop.f32.mrb[14].mxu0  ;;  %v1410_v9 = vpack.c.bf16 %v1306_v30, %v1298_v8  ;;  %v790_v12 = vadd.f32 %v789_v5, %v8315_v59  ;;  %v791_v13 = vpop.f32.mrb[13].mxu1  ;;  %v8365_v14 = vpack.c.bf16 %v1369_v62, %v1361_v46  ;;  %v7414_v8 = vld [vmem:[#allocation8 + $0x160] ss:$8 sps:$4 sm:$0xff]   ;;  %v7419_v2 = vld [vmem:[#allocation8 + $0x174] ss:$8 sps:$4 sm:$0xff]  }
 0x1dd   :  { %v1185_v15 = vmul.f32 0.01, %v750_v1  ;;  %v754_v16 = vadd.f32 %v753_v7, %v8315_v59  ;;  %v755_v17 = vpop.f32.mrb[15].mxu0  ;;  %2358 = vmatprep.subr.bf16.mxu0 %v7410_v51  ;;  %v792_v19 = vadd.f32 %v791_v13, %v8319_v60  ;;  %v793_v20 = vpop.f32.mrb[14].mxu1  ;;  %v8369_v21 = vpack.c.bf16 %v1370_v4, %v1362_v52 }
 0x1de   :  { %v1186_v22 = vmul.f32 0.01, %v752_v6  ;;  %v756_v23 = vadd.f32 %v755_v17, %v8319_v60  ;;  %2289 = vmatprep.mubr.bf16.mxu0 %v1410_v9  ;;  %v1249_v25 = vmul.f32 0.01, %v790_v12  ;;  %v794_v27 = vadd.f32 %v793_v20, %v8315_v59  ;;  %v795_v28 = vpop.f32.mrb[15].mxu1 }
 0x1df   :  { %v1193_v29 = vmul.f32 0.01, %v754_v16  ;;  %2290 = vmatmul.mubr.bf16.gmra.mrb[56].mxu0 %v1409_v3  ;;  %v1250_v31 = vmul.f32 0.01, %v792_v19  ;;  %v796_v32 = vadd.f32 %v795_v28, %v8319_v60  ;;  %v8382_v59 = vrot.slane %v8308_v57, %v295_v63 }
 0x1e0   :  { %v1194_v35 = vmul.f32 0.01, %v756_v23  ;;  %2359 = vmatpush1.bf16.msra.mxu0 %v7408_v10  ;;  %v1377_v38 = vmax.f32 %v790_v12, %v1249_v25  ;;  %v1257_v40 = vmul.f32 0.01, %v794_v27  ;;  %v1313_v41 = vmax.f32 %v750_v1, %v1185_v15 }
 0x1e1   :  { %v1321_v42 = vmax.f32 %v754_v16, %v1193_v29  ;;  %2360 = vmatprep.subr.bf16.mxu0 %v7413_v53  ;;  %v1378_v60 = vmax.f32 %v792_v19, %v1250_v31  ;;  %v1258_v45 = vmul.f32 0.01, %v796_v32  ;;  %v1314_v55 = vmax.f32 %v752_v6, %v1186_v22  ;;  %v7417_v22 = vld [vmem:[#allocation8 + $0x170] ss:$8 sps:$4 sm:$0xff]   ;;  %v7422_v29 = vld [vmem:[#allocation8 + $0x184] ss:$8 sps:$4 sm:$0xff]  }
 0x1e2   :  { %v1322_v46 = vmax.f32 %v756_v23, %v1194_v35  ;;  %v1385_v47 = vmax.f32 %v794_v27, %v1257_v40  ;;  %v8387_v49 = vrot.slane %v8308_v57, %v299_v37 }
 0x1e3   :  { %v1417_v50 = vpack.c.bf16 %v1321_v42, %v1313_v41  ;;  %v1386_v51 = vmax.f32 %v796_v32, %v1258_v45  ;;  %v832_v52 = vpop.f32.mrb[16].mxu1 }
 0x1e4   :  { %2361 = vmatpush1.bf16.msra.mxu0 %v7411_v36  ;;  %v1418_v54 = vpack.c.bf16 %v1322_v46, %v1314_v55  ;;  %v833_v30 = vadd.f32 %v832_v52, %v8358_v48  ;;  %v834_v61 = vpop.f32.mrb[17].mxu1  ;;  %v8390_v62 = vpack.c.bf16 %v1385_v47, %v1377_v38  ;;  %v945_v1 = vpop.f32.mrb[16].mxu0 }
 0x1e5   :  { %2362 = vmatprep.subr.bf16.mxu0 %v7416_v39  ;;  %v835_v3 = vadd.f32 %v834_v61, %v8377_v34  ;;  %v836_v4 = vpop.f32.mrb[18].mxu1  ;;  %v8393_v5 = vpack.c.bf16 %v1386_v51, %v1378_v60  ;;  %v946_v6 = vadd.f32 %v945_v1, %v8382_v59  ;;  %v947_v7 = vpop.f32.mrb[17].mxu0  ;;  %v7425_v51 = vld [vmem:[#allocation8 + $0x194] ss:$8 sps:$4 sm:$0xff]  }
 0x1e6   :  { %2299 = vmatprep.mubr.bf16.mxu0 %v1418_v54  ;;  %v1139_v9 = vmul.f32 0.01, %v833_v30  ;;  %v837_v10 = vadd.f32 %v836_v4, %v8358_v48  ;;  %v838_v12 = vpop.f32.mrb[19].mxu1  ;;  %v948_v13 = vadd.f32 %v947_v7, %v8387_v49  ;;  %v949_v15 = vpop.f32.mrb[18].mxu0 }
 0x1e7   :  { %2300 = vmatmul.mubr.bf16.gmra.mrb[60].mxu0 %v1417_v50  ;;  %v1140_v16 = vmul.f32 0.01, %v835_v3  ;;  %v839_v17 = vadd.f32 %v838_v12, %v8377_v34  ;;  %v1141_v53 = vmul.f32 0.01, %v946_v6  ;;  %v950_v19 = vadd.f32 %v949_v15, %v8382_v59  ;;  %v951_v20 = vpop.f32.mrb[19].mxu0 }
 0x1e8   :  { %2363 = vmatpush1.bf16.msra.mxu0 %v7414_v8  ;;  %2309 = vmatprep.mubr.bf16.mxu0 %v8336_v11  ;;  %v1267_v23 = vmax.f32 %v833_v30, %v1139_v9  ;;  %v1147_v25 = vmul.f32 0.01, %v837_v10  ;;  %v1142_v27 = vmul.f32 0.01, %v948_v13  ;;  %v952_v28 = vadd.f32 %v951_v20, %v8387_v49  ;;  %v7420_v11 = vld [vmem:[#allocation8 + $0x180] ss:$8 sps:$4 sm:$0xff]  }
 0x1e9   :  { %2364 = vmatprep.subr.bf16.mxu0 %v7419_v2  ;;  %v1268_v31 = vmax.f32 %v835_v3, %v1140_v16  ;;  %v1148_v32 = vmul.f32 0.01, %v839_v17  ;;  %v1269_v35 = vmax.f32 %v946_v6, %v1141_v53  ;;  %v1149_v36 = vmul.f32 0.01, %v950_v19 }
 0x1ea   :  { %v1275_v38 = vmax.f32 %v837_v10, %v1147_v25  ;;  %v1270_v40 = vmax.f32 %v948_v13, %v1142_v27  ;;  %v1150_v41 = vmul.f32 0.01, %v952_v28 }
 0x1eb   :  { %v1276_v42 = vmax.f32 %v839_v17, %v1148_v32  ;;  %v842_v39 = vpop.f32.mrb[20].mxu1  ;;  %v1277_v60 = vmax.f32 %v950_v19, %v1149_v36  ;;  %v7423_v17 = vld [vmem:[#allocation8 + $0x190] ss:$8 sps:$4 sm:$0xff]  }
 0x1ec   :  { %2365 = vmatpush1.bf16.msra.mxu0 %v7417_v22  ;;  %v8402_v45 = vpack.c.bf16 %v1275_v38, %v1267_v23  ;;  %v843_v55 = vadd.f32 %v842_v39, %v8358_v48  ;;  %v844_v46 = vpop.f32.mrb[21].mxu1  ;;  %v1278_v47 = vmax.f32 %v952_v28, %v1150_v41  ;;  %v955_v50 = vpop.f32.mrb[20].mxu0  ;;  %v7428_v23 = vld [vmem:[#allocation8 + $0x1a4] ss:$8 sps:$4 sm:$0xff]  }
 0x1ed   :  { %2366 = vmatprep.subr.bf16.mxu0 %v7422_v29  ;;  %v845_v52 = vadd.f32 %v844_v46, %v8377_v34  ;;  %v846_v54 = vpop.f32.mrb[22].mxu1  ;;  %v8406_v8 = vpack.c.bf16 %v1276_v42, %v1268_v31  ;;  %v8408_v30 = vpack.c.bf16 %v1277_v60, %v1269_v35  ;;  %v956_v61 = vadd.f32 %v955_v50, %v8382_v59  ;;  %v957_v1 = vpop.f32.mrb[21].mxu0 }
 0x1ee   :  { %v1155_v2 = vmul.f32 0.01, %v843_v55  ;;  %v847_v3 = vadd.f32 %v846_v54, %v8358_v48  ;;  %v848_v4 = vpop.f32.mrb[23].mxu1  ;;  %v958_v6 = vadd.f32 %v957_v1, %v8387_v49  ;;  %v959_v7 = vpop.f32.mrb[22].mxu0  ;;  %v8413_v9 = vpack.c.bf16 %v1278_v47, %v1270_v40 }
 0x1ef   :  { %2310 = vmatmul.mubr.bf16.gmra.mrb[64].mxu0 %v8332_v43  ;;  %v1156_v10 = vmul.f32 0.01, %v845_v52  ;;  %v849_v12 = vadd.f32 %v848_v4, %v8377_v34  ;;  %v1157_v13 = vmul.f32 0.01, %v956_v61  ;;  %v960_v15 = vadd.f32 %v959_v7, %v8382_v59  ;;  %v961_v16 = vpop.f32.mrb[23].mxu0 }
 0x1f0   :  { %2367 = vmatpush1.bf16.msra.mxu0 %v7420_v11  ;;  %2319 = vmatprep.mubr.bf16.mxu0 %v8349_v33  ;;  %v1283_v53 = vmax.f32 %v843_v55, %v1155_v2  ;;  %v1163_v19 = vmul.f32 0.01, %v847_v3  ;;  %v1158_v20 = vmul.f32 0.01, %v958_v6  ;;  %v962_v22 = vadd.f32 %v961_v16, %v8387_v49  ;;  %v7426_v33 = vld [vmem:[#allocation8 + $0x1a0] ss:$8 sps:$4 sm:$0xff]  }
 0x1f1   :  { %2368 = vmatprep.subr.bf16.mxu0 %v7425_v51  ;;  %v1284_v25 = vmax.f32 %v845_v52, %v1156_v10  ;;  %v1164_v43 = vmul.f32 0.01, %v849_v12  ;;  %v1285_v27 = vmax.f32 %v956_v61, %v1157_v13  ;;  %v1165_v28 = vmul.f32 0.01, %v960_v15  ;;  %v7431_v11 = vld [vmem:[#allocation8 + $0x1b4] ss:$8 sps:$4 sm:$0xff]  }
 0x1f2   :  { %v1291_v29 = vmax.f32 %v847_v3, %v1163_v19  ;;  %v1286_v31 = vmax.f32 %v958_v6, %v1158_v20  ;;  %v1166_v32 = vmul.f32 0.01, %v962_v22  ;;  %v7434_v20 = vld [vmem:[#allocation8 + $0x1c4] ss:$8 sps:$4 sm:$0xff]  }
 0x1f3   :  { %v1292_v35 = vmax.f32 %v849_v12, %v1164_v43  ;;  %v852_v36 = vpop.f32.mrb[24].mxu1  ;;  %v1293_v38 = vmax.f32 %v960_v15, %v1165_v28  ;;  %v7429_v15 = vld [vmem:[#allocation8 + $0x1b0] ss:$8 sps:$4 sm:$0xff]  }
 0x1f4   :  { %2369 = vmatpush1.bf16.msra.mxu0 %v7423_v17  ;;  %v853_v40 = vadd.f32 %v852_v36, %v8358_v48  ;;  %v854_v41 = vpop.f32.mrb[25].mxu1  ;;  %v8421_v42 = vpack.c.bf16 %v1291_v29, %v1283_v53  ;;  %v1294_v39 = vmax.f32 %v962_v22, %v1166_v32  ;;  %v965_v60 = vpop.f32.mrb[24].mxu0 }
 0x1f5   :  { %2370 = vmatprep.subr.bf16.mxu0 %v7428_v23  ;;  %v855_v55 = vadd.f32 %v854_v41, %v8377_v34  ;;  %v856_v46 = vpop.f32.mrb[26].mxu1  ;;  %v8424_v47 = vpack.c.bf16 %v1292_v35, %v1284_v25  ;;  %v966_v50 = vadd.f32 %v965_v60, %v8382_v59  ;;  %v967_v51 = vpop.f32.mrb[25].mxu0  ;;  %v8427_v52 = vpack.c.bf16 %v1293_v38, %v1285_v27  ;;  %v7437_v41 = vld [vmem:[#allocation8 + $0x1d4] ss:$8 sps:$4 sm:$0xff]  }
 0x1f6   :  { %v1171_v54 = vmul.f32 0.01, %v853_v40  ;;  %v857_v61 = vadd.f32 %v856_v46, %v8358_v48  ;;  %v858_v1 = vpop.f32.mrb[27].mxu1  ;;  %v968_v2 = vadd.f32 %v967_v51, %v8387_v49  ;;  %v969_v3 = vpop.f32.mrb[26].mxu0  ;;  %v8431_v4 = vpack.c.bf16 %v1294_v39, %v1286_v31 }
 0x1f7   :  { %2320 = vmatmul.mubr.bf16.gmra.mrb[68].mxu0 %v8345_v24  ;;  %v1172_v6 = vmul.f32 0.01, %v855_v55  ;;  %v859_v7 = vadd.f32 %v858_v1, %v8377_v34  ;;  %v1173_v10 = vmul.f32 0.01, %v966_v50  ;;  %v970_v12 = vadd.f32 %v969_v3, %v8382_v59  ;;  %v971_v13 = vpop.f32.mrb[27].mxu0 }
 0x1f8   :  { %2371 = vmatpush1.bf16.msra.mxu0 %v7426_v33  ;;  %2329 = vmatprep.mubr.bf16.mxu0 %v8369_v21  ;;  %v1299_v16 = vmax.f32 %v853_v40, %v1171_v54  ;;  %v1179_v17 = vmul.f32 0.01, %v857_v61  ;;  %v1174_v53 = vmul.f32 0.01, %v968_v2  ;;  %v972_v19 = vadd.f32 %v971_v13, %v8387_v49  ;;  %v7432_v21 = vld [vmem:[#allocation8 + $0x1c0] ss:$8 sps:$4 sm:$0xff]  }
 0x1f9   :  { %2372 = vmatprep.subr.bf16.mxu0 %v7431_v11  ;;  %v1300_v22 = vmax.f32 %v855_v55, %v1172_v6  ;;  %v1180_v24 = vmul.f32 0.01, %v859_v7  ;;  %v1301_v23 = vmax.f32 %v966_v50, %v1173_v10  ;;  %v1181_v25 = vmul.f32 0.01, %v970_v12 }
 0x1fa   :  { %v1307_v43 = vmax.f32 %v857_v61, %v1179_v17  ;;  %v1302_v27 = vmax.f32 %v968_v2, %v1174_v53  ;;  %v1182_v28 = vmul.f32 0.01, %v972_v19 }
 0x1fb   :  { %v1308_v29 = vmax.f32 %v859_v7, %v1180_v24  ;;  %v862_v31 = vpop.f32.mrb[28].mxu1  ;;  %v1309_v32 = vmax.f32 %v970_v12, %v1181_v25 }
 0x1fc   :  { %2373 = vmatpush1.bf16.msra.mxu0 %v7429_v15  ;;  %v863_v35 = vadd.f32 %v862_v31, %v8358_v48  ;;  %v864_v36 = vpop.f32.mrb[29].mxu1  ;;  %v8439_v38 = vpack.c.bf16 %v1307_v43, %v1299_v16  ;;  %v1310_v33 = vmax.f32 %v972_v19, %v1182_v28  ;;  %v975_v40 = vpop.f32.mrb[28].mxu0  ;;  %v7435_v15 = vld [vmem:[#allocation8 + $0x1d0] ss:$8 sps:$4 sm:$0xff]  }
 0x1fd   :  { %2374 = vmatprep.subr.bf16.mxu0 %v7434_v20  ;;  %v865_v39 = vadd.f32 %v864_v36, %v8377_v34  ;;  %v866_v60 = vpop.f32.mrb[30].mxu1  ;;  %v8442_v11 = vpack.c.bf16 %v1308_v29, %v1300_v22  ;;  %v976_v55 = vadd.f32 %v975_v40, %v8382_v59  ;;  %v977_v46 = vpop.f32.mrb[29].mxu0  ;;  %v8445_v50 = vpack.c.bf16 %v1309_v32, %v1301_v23  ;;  %v7440_v20 = vld [vmem:[#allocation8 + $0x1e4] ss:$8 sps:$4 sm:$0xff]   ;;  %v7443_v40 = vld [vmem:[#allocation8 + $0x1f4] ss:$8 sps:$4 sm:$0xff]  }
 0x1fe   :  { %v1187_v51 = vmul.f32 0.01, %v863_v35  ;;  %v867_v54 = vadd.f32 %v866_v60, %v8358_v48  ;;  %v868_v61 = vpop.f32.mrb[31].mxu1  ;;  %v978_v1 = vadd.f32 %v977_v46, %v8387_v49  ;;  %v979_v2 = vpop.f32.mrb[30].mxu0  ;;  %v8449_v3 = vpack.c.bf16 %v1310_v33, %v1302_v27 }
 0x1ff   :  { %2330 = vmatmul.mubr.bf16.gmra.mrb[72].mxu0 %v8365_v14  ;;  %v1188_v6 = vmul.f32 0.01, %v865_v39  ;;  %v869_v7 = vadd.f32 %v868_v61, %v8377_v34  ;;  %v1189_v10 = vmul.f32 0.01, %v976_v55  ;;  %v980_v12 = vadd.f32 %v979_v2, %v8382_v59  ;;  %v981_v13 = vpop.f32.mrb[31].mxu0 }
 0x200   :  { %2375 = vmatpush1.bf16.msra.mxu0 %v7432_v21  ;;  %2339 = vmatprep.mubr.bf16.mxu0 %v8393_v5  ;;  %v1315_v16 = vmax.f32 %v863_v35, %v1187_v51  ;;  %v1195_v17 = vmul.f32 0.01, %v867_v54  ;;  %v1190_v53 = vmul.f32 0.01, %v978_v1  ;;  %v982_v19 = vadd.f32 %v981_v13, %v8387_v49  ;;  %v7438_v5 = vld [vmem:[#allocation8 + $0x1e0] ss:$8 sps:$4 sm:$0xff]  }
 0x201   :  { %2376 = vmatprep.subr.bf16.mxu0 %v7437_v41  ;;  %v1316_v22 = vmax.f32 %v865_v39, %v1188_v6  ;;  %v1196_v14 = vmul.f32 0.01, %v869_v7  ;;  %v1317_v24 = vmax.f32 %v976_v55, %v1189_v10  ;;  %v1197_v23 = vmul.f32 0.01, %v980_v12 }
 0x202   :  { %v1323_v25 = vmax.f32 %v867_v54, %v1195_v17  ;;  %v1318_v43 = vmax.f32 %v978_v1, %v1190_v53  ;;  %v1198_v27 = vmul.f32 0.01, %v982_v19  ;;  %v7441_v17 = vld [vmem:[#allocation8 + $0x1f0] ss:$8 sps:$4 sm:$0xff]  }
 0x203   :  { %v1324_v28 = vmax.f32 %v869_v7, %v1196_v14  ;;  %v872_v29 = vpop.f32.mrb[32].mxu1  ;;  %v1325_v31 = vmax.f32 %v980_v12, %v1197_v23  ;;  %v7446_v14 = vld [vmem:[#allocation8 + $0x204] ss:$8 sps:$4 sm:$0xff]  }
 0x204   :  { %2377 = vmatpush1.bf16.msra.mxu0 %v7435_v15  ;;  %v873_v32 = vadd.f32 %v872_v29, %v8358_v48  ;;  %v874_v21 = vpop.f32.mrb[33].mxu1  ;;  %v8457_v35 = vpack.c.bf16 %v1323_v25, %v1315_v16  ;;  %v1326_v36 = vmax.f32 %v982_v19, %v1198_v27  ;;  %v985_v33 = vpop.f32.mrb[32].mxu0 }
 0x205   :  { %2378 = vmatprep.subr.bf16.mxu0 %v7440_v20  ;;  %v875_v41 = vadd.f32 %v874_v21, %v8377_v34  ;;  %v876_v39 = vpop.f32.mrb[34].mxu1  ;;  %v8460_v60 = vpack.c.bf16 %v1324_v28, %v1316_v22  ;;  %v986_v55 = vadd.f32 %v985_v33, %v8382_v59  ;;  %v987_v46 = vpop.f32.mrb[33].mxu0  ;;  %v8463_v51 = vpack.c.bf16 %v1325_v31, %v1317_v24 }
 0x206   :  { %v1203_v54 = vmul.f32 0.01, %v873_v32  ;;  %v877_v61 = vadd.f32 %v876_v39, %v8358_v48  ;;  %v878_v1 = vpop.f32.mrb[35].mxu1  ;;  %v988_v2 = vadd.f32 %v987_v46, %v8387_v49  ;;  %v989_v6 = vpop.f32.mrb[34].mxu0  ;;  %v8467_v7 = vpack.c.bf16 %v1326_v36, %v1318_v43 }
 0x207   :  { %2340 = vmatmul.mubr.bf16.gmra.mrb[76].mxu0 %v8390_v62  ;;  %v1204_v10 = vmul.f32 0.01, %v875_v41  ;;  %v879_v12 = vadd.f32 %v878_v1, %v8377_v34  ;;  %v1205_v13 = vmul.f32 0.01, %v986_v55  ;;  %v990_v15 = vadd.f32 %v989_v6, %v8382_v59  ;;  %v991_v16 = vpop.f32.mrb[35].mxu0 }
 0x208   :  { %2379 = vmatpush1.bf16.msra.mxu0 %v7438_v5  ;;  %2382 = vmatprep.mubr.bf16.mxu0 %v8406_v8  ;;  %v1331_v53 = vmax.f32 %v873_v32, %v1203_v54  ;;  %v1211_v19 = vmul.f32 0.01, %v877_v61  ;;  %v1206_v20 = vmul.f32 0.01, %v988_v2  ;;  %v992_v22 = vadd.f32 %v991_v16, %v8387_v49  ;;  %v7444_v8 = vld [vmem:[#allocation8 + $0x200] ss:$8 sps:$4 sm:$0xff]  }
 0x209   :  { %2380 = vmatprep.subr.bf16.mxu0 %v7443_v40  ;;  %v1332_v24 = vmax.f32 %v875_v41, %v1204_v10  ;;  %v1212_v62 = vmul.f32 0.01, %v879_v12  ;;  %v1333_v23 = vmax.f32 %v986_v55, %v1205_v13  ;;  %v1213_v25 = vmul.f32 0.01, %v990_v15  ;;  %v7449_v41 = vld [vmem:[#allocation8 + $0x214] ss:$8 sps:$4 sm:$0xff]  }
 0x20a   :  { %v1339_v43 = vmax.f32 %v877_v61, %v1211_v19  ;;  %v1334_v27 = vmax.f32 %v988_v2, %v1206_v20  ;;  %v1214_v28 = vmul.f32 0.01, %v992_v22 }
 0x20b   :  { %v1340_v29 = vmax.f32 %v879_v12, %v1212_v62  ;;  %v882_v31 = vpop.f32.mrb[36].mxu1  ;;  %v1341_v5 = vmax.f32 %v990_v15, %v1213_v25  ;;  %v7452_v25 = vld [vmem:[#allocation8 + $0x224] ss:$8 sps:$4 sm:$0xff]  }
 0x20c   :  { %2381 = vmatpush1.bf16.msra.mxu0 %v7441_v17  ;;  %v883_v32 = vadd.f32 %v882_v31, %v8358_v48  ;;  %v884_v21 = vpop.f32.mrb[37].mxu1  ;;  %v8475_v36 = vpack.c.bf16 %v1339_v43, %v1331_v53  ;;  %v1342_v33 = vmax.f32 %v992_v22, %v1214_v28  ;;  %v995_v40 = vpop.f32.mrb[36].mxu0  ;;  %v7447_v22 = vld [vmem:[#allocation8 + $0x210] ss:$8 sps:$4 sm:$0xff]  }
 0x20d   :  { %2463 = vmatprep.subr.bf16.mxu0 %v7446_v14  ;;  %v885_v39 = vadd.f32 %v884_v21, %v8377_v34  ;;  %v886_v55 = vpop.f32.mrb[38].mxu1  ;;  %v8478_v46 = vpack.c.bf16 %v1340_v29, %v1332_v24  ;;  %v996_v54 = vadd.f32 %v995_v40, %v8382_v59  ;;  %v997_v61 = vpop.f32.mrb[37].mxu0  ;;  %v8481_v1 = vpack.c.bf16 %v1341_v5, %v1333_v23 }
 0x20e   :  { %v1219_v2 = vmul.f32 0.01, %v883_v32  ;;  %v887_v6 = vadd.f32 %v886_v55, %v8358_v48  ;;  %v888_v10 = vpop.f32.mrb[39].mxu1  ;;  %v998_v12 = vadd.f32 %v997_v61, %v8387_v49  ;;  %v999_v13 = vpop.f32.mrb[38].mxu0  ;;  %v8485_v15 = vpack.c.bf16 %v1342_v33, %v1334_v27 }
 0x20f   :  { %2383 = vmatmul.mubr.bf16.vlgmr.msra.gmra.mrb[48].mxu0 %v8402_v45  ;;  %v1220_v16 = vmul.f32 0.01, %v885_v39  ;;  %v889_v17 = vadd.f32 %v888_v10, %v8377_v34  ;;  %v1221_v53 = vmul.f32 0.01, %v996_v54  ;;  %v1000_v19 = vadd.f32 %v999_v13, %v8382_v59  ;;  %v1001_v20 = vpop.f32.mrb[39].mxu0 }
 0x210   :  { %2464 = vmatpush1.bf16.msra.mxu0 %v7444_v8  ;;  %2392 = vmatprep.mubr.bf16.mxu0 %v8424_v47  ;;  %v1347_v14 = vmax.f32 %v883_v32, %v1219_v2  ;;  %v1227_v24 = vmul.f32 0.01, %v887_v6  ;;  %v1222_v62 = vmul.f32 0.01, %v998_v12  ;;  %v1002_v23 = vadd.f32 %v1001_v20, %v8387_v49  ;;  %v7450_v32 = vld [vmem:[#allocation8 + $0x220] ss:$8 sps:$4 sm:$0xff]  }
 0x211   :  { %2465 = vmatprep.subr.bf16.mxu0 %v7449_v41  ;;  %v1348_v43 = vmax.f32 %v885_v39, %v1220_v16  ;;  %v1228_v45 = vmul.f32 0.01, %v889_v17  ;;  %v1349_v27 = vmax.f32 %v996_v54, %v1221_v53  ;;  %v1229_v28 = vmul.f32 0.01, %v1000_v19  ;;  %v7455_v2 = vld [vmem:[#allocation8 + $0x234] ss:$8 sps:$4 sm:$0xff]  }
 0x212   :  { %v1355_v29 = vmax.f32 %v887_v6, %v1227_v24  ;;  %v1350_v31 = vmax.f32 %v998_v12, %v1222_v62  ;;  %v1230_v5 = vmul.f32 0.01, %v1002_v23  ;;  %v303_v47 = vsub.s32 6, %v8303_v56 }
 0x213   :  { %v1356_v21 = vmax.f32 %v889_v17, %v1228_v45  ;;  %v892_v33 = vpop.f32.mrb[40].mxu1  ;;  %v1357_v8 = vmax.f32 %v1000_v19, %v1229_v28  ;;  %v307_v54 = vsub.s32 7, %v8303_v56 }
 0x214   :  { %2466 = vmatpush1.bf16.msra.mxu0 %v7447_v22  ;;  %v893_v40 = vadd.f32 %v892_v33, %v8358_v48  ;;  %v894_v55 = vpop.f32.mrb[41].mxu1  ;;  %v8494_v61 = vpack.c.bf16 %v1355_v29, %v1347_v14  ;;  %v1358_v41 = vmax.f32 %v1002_v23, %v1230_v5  ;;  %v1005_v39 = vpop.f32.mrb[40].mxu0 }
 0x215   :  { %2467 = vmatprep.subr.bf16.mxu0 %v7452_v25  ;;  %v895_v6 = vadd.f32 %v894_v55, %v8377_v34  ;;  %v896_v10 = vpop.f32.mrb[42].mxu1  ;;  %v8498_v12 = vpack.c.bf16 %v1356_v21, %v1348_v43  ;;  %v1006_v13 = vadd.f32 %v1005_v39, %v8382_v59  ;;  %v1007_v16 = vpop.f32.mrb[41].mxu0  ;;  %v8501_v17 = vpack.c.bf16 %v1357_v8, %v1349_v27  ;;  %v7453_v27 = vld [vmem:[#allocation8 + $0x230] ss:$8 sps:$4 sm:$0xff]  }
 0x216   :  { %v1235_v53 = vmul.f32 0.01, %v893_v40  ;;  %v897_v19 = vadd.f32 %v896_v10, %v8358_v48  ;;  %v898_v20 = vpop.f32.mrb[43].mxu1  ;;  %v1008_v22 = vadd.f32 %v1007_v16, %v8387_v49  ;;  %v1009_v14 = vpop.f32.mrb[42].mxu0  ;;  %v8505_v24 = vpack.c.bf16 %v1358_v41, %v1350_v31  ;;  %v7458_v31 = vld [vmem:[#allocation8 + $0x244] ss:$8 sps:$4 sm:$0xff]  }
 0x217   :  { %2393 = vmatmul.mubr.bf16.gmra.mrb[52].mxu0 %v8421_v42  ;;  %v1236_v62 = vmul.f32 0.01, %v895_v6  ;;  %v899_v23 = vadd.f32 %v898_v20, %v8377_v34  ;;  %v1237_v25 = vmul.f32 0.01, %v1006_v13  ;;  %v1010_v43 = vadd.f32 %v1009_v14, %v8382_v59  ;;  %v1011_v45 = vpop.f32.mrb[43].mxu0 }
 0x218   :  { %2468 = vmatpush1.bf16.msra.mxu0 %v7450_v32  ;;  %2402 = vmatprep.mubr.bf16.mxu0 %v8442_v11  ;;  %v1363_v28 = vmax.f32 %v893_v40, %v1235_v53  ;;  %v1243_v29 = vmul.f32 0.01, %v897_v19  ;;  %v1238_v5 = vmul.f32 0.01, %v1008_v22  ;;  %v1012_v21 = vadd.f32 %v1011_v45, %v8387_v49  ;;  %v7456_v40 = vld [vmem:[#allocation8 + $0x240] ss:$8 sps:$4 sm:$0xff]  }
 0x219   :  { %2469 = vmatprep.subr.bf16.mxu0 %v7455_v2  ;;  %v1364_v33 = vmax.f32 %v895_v6, %v1236_v62  ;;  %v1244_v42 = vmul.f32 0.01, %v899_v23  ;;  %v1365_v8 = vmax.f32 %v1006_v13, %v1237_v25  ;;  %v1245_v55 = vmul.f32 0.01, %v1010_v43  ;;  %v7461_v62 = vld [vmem:[#allocation8 + $0x254] ss:$8 sps:$4 sm:$0xff]  }
 0x21a   :  { %v1371_v41 = vmax.f32 %v897_v19, %v1243_v29  ;;  %v1366_v39 = vmax.f32 %v1008_v22, %v1238_v5  ;;  %v1246_v10 = vmul.f32 0.01, %v1012_v21  ;;  %v8515_v11 = vrot.slane %v8308_v57, %v303_v47  ;;  %v7665_v19 = vld [vmem:[#allocation7] sm:$0xff] }
 0x21b   :  { %v1372_v16 = vmax.f32 %v899_v23, %v1244_v42  ;;  %v902_v20 = vpop.f32.mrb[44].mxu1  ;;  %v1373_v32 = vmax.f32 %v1010_v43, %v1245_v55  ;;  %v8522_v22 = vrot.slane %v7665_v19, %v307_v54 }
 0x21c   :  { %2470 = vmatpush1.bf16.msra.mxu0 %v7453_v27  ;;  %v903_v2 = vadd.f32 %v902_v20, %v8358_v48  ;;  %v904_v53 = vpop.f32.mrb[45].mxu1  ;;  %v8518_v6 = vpack.c.bf16 %v1371_v41, %v1363_v28  ;;  %v1374_v13 = vmax.f32 %v1012_v21, %v1246_v10  ;;  %v1015_v14 = vpop.f32.mrb[44].mxu0 }
 0x21d   :  { %2471 = vmatprep.subr.bf16.mxu0 %v7458_v31  ;;  %v905_v23 = vadd.f32 %v904_v53, %v8377_v34  ;;  %v906_v57 = vpop.f32.mrb[46].mxu1  ;;  %v8525_v25 = vpack.c.bf16 %v1372_v16, %v1364_v33  ;;  %v1016_v43 = vadd.f32 %v1015_v14, %v8382_v59  ;;  %v1017_v45 = vpop.f32.mrb[45].mxu0  ;;  %v8528_v27 = vpack.c.bf16 %v1373_v32, %v1365_v8  ;;  %v7459_v8 = vld [vmem:[#allocation8 + $0x250] ss:$8 sps:$4 sm:$0xff]  }
 0x21e   :  { %v1251_v28 = vmul.f32 0.01, %v903_v2  ;;  %v907_v29 = vadd.f32 %v906_v57, %v8358_v48  ;;  %v908_v5 = vpop.f32.mrb[47].mxu1  ;;  %v1018_v21 = vadd.f32 %v1017_v45, %v8387_v49  ;;  %v1019_v42 = vpop.f32.mrb[46].mxu0  ;;  %v8532_v55 = vpack.c.bf16 %v1374_v13, %v1366_v39  ;;  %v7464_v39 = vld [vmem:[#allocation8 + $0x264] ss:$8 sps:$4 sm:$0xff]  }
 0x21f   :  { %2403 = vmatmul.mubr.bf16.gmra.mrb[56].mxu0 %v8439_v38  ;;  %v1252_v31 = vmul.f32 0.01, %v905_v23  ;;  %v909_v33 = vadd.f32 %v908_v5, %v8377_v34  ;;  %v1253_v41 = vmul.f32 0.01, %v1016_v43  ;;  %v1020_v10 = vadd.f32 %v1019_v42, %v8382_v59  ;;  %v1021_v16 = vpop.f32.mrb[47].mxu0 }
 0x220   :  { %2472 = vmatpush1.bf16.msra.mxu0 %v7456_v40  ;;  %2412 = vmatprep.mubr.bf16.mxu0 %v8460_v60  ;;  %v1379_v48 = vmax.f32 %v903_v2, %v1251_v28  ;;  %v1259_v20 = vmul.f32 0.01, %v907_v29  ;;  %v1254_v32 = vmul.f32 0.01, %v1018_v21  ;;  %v1022_v53 = vadd.f32 %v1021_v16, %v8387_v49  ;;  %v7462_v60 = vld [vmem:[#allocation8 + $0x260] ss:$8 sps:$4 sm:$0xff]  }
 0x221   :  { %2473 = vmatprep.subr.bf16.mxu0 %v7461_v62  ;;  %v1380_v13 = vmax.f32 %v905_v23, %v1252_v31  ;;  %v1260_v38 = vmul.f32 0.01, %v909_v33  ;;  %v1381_v14 = vmax.f32 %v1016_v43, %v1253_v41  ;;  %v1261_v19 = vmul.f32 0.01, %v1020_v10  ;;  %v7467_v62 = vld [vmem:[#allocation8 + $0x274] ss:$8 sps:$4 sm:$0xff]  }
 0x222   :  { %v1387_v34 = vmax.f32 %v907_v29, %v1259_v20  ;;  %v1382_v57 = vmax.f32 %v1018_v21, %v1254_v32  ;;  %v1262_v45 = vmul.f32 0.01, %v1022_v53 }
 0x223   :  { %v1388_v59 = vmax.f32 %v909_v33, %v1260_v38  ;;  %v1389_v5 = vmax.f32 %v1020_v10, %v1261_v19  ;;  %v1058_v40 = vpop.f32.mrb[48].mxu1 }
 0x224   :  { %2474 = vmatpush1.bf16.msra.mxu0 %v7459_v8  ;;  %v8539_v42 = vpack.c.bf16 %v1387_v34, %v1379_v48  ;;  %v1390_v2 = vmax.f32 %v1022_v53, %v1262_v45  ;;  %v1059_v28 = vadd.f32 %v1058_v40, %v8515_v11  ;;  %v1060_v49 = vpop.f32.mrb[49].mxu1  ;;  %v7465_v48 = vld [vmem:[#allocation8 + $0x270] ss:$8 sps:$4 sm:$0xff]   ;;  %v7470_v53 = vld [vmem:[#allocation8 + $0x284] ss:$8 sps:$4 sm:$0xff]  }
 0x225   :  { %2475 = vmatprep.subr.bf16.mxu0 %v7464_v39  ;;  %v8542_v23 = vpack.c.bf16 %v1388_v59, %v1380_v13  ;;  %v1061_v43 = vadd.f32 %v1060_v49, %v8522_v22  ;;  %v1062_v29 = vpop.f32.mrb[50].mxu1  ;;  %v8545_v21 = vpack.c.bf16 %v1389_v5, %v1381_v14  ;;  %v7468_v34 = vld [vmem:[#allocation8 + $0x280] ss:$8 sps:$4 sm:$0xff]   ;;  %v7473_v59 = vld [vmem:[#allocation8 + $0x294] ss:$8 sps:$4 sm:$0xff]  }
 0x226   :  { %v1143_v31 = vmul.f32 0.01, %v1059_v28  ;;  %v1063_v33 = vadd.f32 %v1062_v29, %v8515_v11  ;;  %v1064_v41 = vpop.f32.mrb[51].mxu1  ;;  %v8548_v10 = vpack.c.bf16 %v1390_v2, %v1382_v57 }
 0x227   :  { %2413 = vmatmul.mubr.bf16.gmra.mrb[60].mxu0 %v8457_v35  ;;  %v1144_v16 = vmul.f32 0.01, %v1061_v43  ;;  %v1065_v8 = vadd.f32 %v1064_v41, %v8522_v22 }
 0x228   :  { %2476 = vmatpush1.bf16.msra.mxu0 %v7462_v60  ;;  %2422 = vmatprep.mubr.bf16.mxu0 %v8478_v46  ;;  %v1271_v20 = vmax.f32 %v1059_v28, %v1143_v31  ;;  %v1151_v32 = vmul.f32 0.01, %v1063_v33 }
 0x229   :  { %2477 = vmatprep.subr.bf16.mxu0 %v7467_v62  ;;  %v1272_v39 = vmax.f32 %v1061_v43, %v1144_v16  ;;  %v1152_v13 = vmul.f32 0.01, %v1065_v8  ;;  %v7471_v43 = vld [vmem:[#allocation8 + $0x290] ss:$8 sps:$4 sm:$0xff]  }
 0x22a   :  { %v1279_v38 = vmax.f32 %v1063_v33, %v1151_v32  ;;  %v7476_v33 = vld [vmem:[#allocation8 + $0x2a4] ss:$8 sps:$4 sm:$0xff]   ;;  %v7474_v32 = vld [vmem:[#allocation8 + $0x2a0] ss:$8 sps:$4 sm:$0xff]  }
 0x22b   :  { %v1280_v14 = vmax.f32 %v1065_v8, %v1152_v13  ;;  %v1068_v19 = vpop.f32.mrb[52].mxu1  ;;  %v7479_v13 = vld [vmem:[#allocation8 + $0x2b4] ss:$8 sps:$4 sm:$0xff]  }
 0x22c   :  { %2478 = vmatpush1.bf16.msra.mxu0 %v7465_v48  ;;  %v8553_v57 = vpack.c.bf16 %v1279_v38, %v1271_v20  ;;  %v1069_v35 = vadd.f32 %v1068_v19, %v8515_v11  ;;  %v1070_v45 = vpop.f32.mrb[53].mxu1 }
 0x22d   :  { %2479 = vmatprep.subr.bf16.mxu0 %v7470_v53  ;;  %v1071_v46 = vadd.f32 %v1070_v45, %v8522_v22  ;;  %v1072_v5 = vpop.f32.mrb[54].mxu1  ;;  %v8557_v40 = vpack.c.bf16 %v1280_v14, %v1272_v39 }
 0x22e   :  { %v1159_v60 = vmul.f32 0.01, %v1069_v35  ;;  %v1073_v2 = vadd.f32 %v1072_v5, %v8515_v11  ;;  %v1074_v28 = vpop.f32.mrb[55].mxu1 }
 0x22f   :  { %2423 = vmatmul.mubr.bf16.gmra.mrb[64].mxu0 %v8475_v36  ;;  %v1160_v49 = vmul.f32 0.01, %v1071_v46  ;;  %v1075_v62 = vadd.f32 %v1074_v28, %v8522_v22 }
 0x230   :  { %2480 = vmatpush1.bf16.msra.mxu0 %v7468_v34  ;;  %2432 = vmatprep.mubr.bf16.mxu0 %v8498_v12  ;;  %v1287_v29 = vmax.f32 %v1069_v35, %v1159_v60  ;;  %v1167_v31 = vmul.f32 0.01, %v1073_v2 }
 0x231   :  { %2481 = vmatprep.subr.bf16.mxu0 %v7473_v59  ;;  %v1288_v41 = vmax.f32 %v1071_v46, %v1160_v49  ;;  %v1168_v16 = vmul.f32 0.01, %v1075_v62  ;;  %v7477_v46 = vld [vmem:[#allocation8 + $0x2b0] ss:$8 sps:$4 sm:$0xff]  }
 0x232   :  { %v1295_v8 = vmax.f32 %v1073_v2, %v1167_v31  ;;  %v7482_v2 = vld [vmem:[#allocation8 + $0x2c4] ss:$8 sps:$4 sm:$0xff]   ;;  %v7480_v31 = vld [vmem:[#allocation8 + $0x2c0] ss:$8 sps:$4 sm:$0xff]  }
 0x233   :  { %v1296_v48 = vmax.f32 %v1075_v62, %v1168_v16  ;;  %v1078_v20 = vpop.f32.mrb[56].mxu1  ;;  %v7485_v16 = vld [vmem:[#allocation8 + $0x2d4] ss:$8 sps:$4 sm:$0xff]  }
 0x234   :  { %2482 = vmatpush1.bf16.msra.mxu0 %v7471_v43  ;;  %v1079_v36 = vadd.f32 %v1078_v20, %v8515_v11  ;;  %v1080_v53 = vpop.f32.mrb[57].mxu1  ;;  %v8564_v39 = vpack.c.bf16 %v1295_v8, %v1287_v29 }
 0x235   :  { %2483 = vmatprep.subr.bf16.mxu0 %v7476_v33  ;;  %v1081_v12 = vadd.f32 %v1080_v53, %v8522_v22  ;;  %v1082_v38 = vpop.f32.mrb[58].mxu1  ;;  %v8567_v14 = vpack.c.bf16 %v1296_v48, %v1288_v41 }
 0x236   :  { %v1175_v19 = vmul.f32 0.01, %v1079_v36  ;;  %v1083_v34 = vadd.f32 %v1082_v38, %v8515_v11  ;;  %v1084_v35 = vpop.f32.mrb[59].mxu1 }
 0x237   :  { %2433 = vmatmul.mubr.bf16.gmra.mrb[68].mxu0 %v8494_v61  ;;  %v1176_v45 = vmul.f32 0.01, %v1081_v12  ;;  %v1085_v59 = vadd.f32 %v1084_v35, %v8522_v22 }
 0x238   :  { %2484 = vmatpush1.bf16.msra.mxu0 %v7474_v32  ;;  %2442 = vmatprep.mubr.bf16.mxu0 %v8525_v25  ;;  %v1303_v5 = vmax.f32 %v1079_v36, %v1175_v19  ;;  %v1183_v60 = vmul.f32 0.01, %v1083_v34 }
 0x239   :  { %2485 = vmatprep.subr.bf16.mxu0 %v7479_v13  ;;  %v1304_v28 = vmax.f32 %v1081_v12, %v1176_v45  ;;  %v1184_v49 = vmul.f32 0.01, %v1085_v59  ;;  %v7483_v12 = vld [vmem:[#allocation8 + $0x2d0] ss:$8 sps:$4 sm:$0xff]  }
 0x23a   :  { %v1311_v62 = vmax.f32 %v1083_v34, %v1183_v60  ;;  %v7488_v34 = vld [vmem:[#allocation8 + $0x2e4] ss:$8 sps:$4 sm:$0xff]   ;;  %v7486_v60 = vld [vmem:[#allocation8 + $0x2e0] ss:$8 sps:$4 sm:$0xff]  }
 0x23b   :  { %v1312_v43 = vmax.f32 %v1085_v59, %v1184_v49  ;;  %v1088_v29 = vpop.f32.mrb[60].mxu1  ;;  %v7491_v49 = vld [vmem:[#allocation8 + $0x2f4] ss:$8 sps:$4 sm:$0xff]  }
 0x23c   :  { %2486 = vmatpush1.bf16.msra.mxu0 %v7477_v46  ;;  %v1089_v61 = vadd.f32 %v1088_v29, %v8515_v11  ;;  %v1090_v33 = vpop.f32.mrb[61].mxu1  ;;  %v8574_v41 = vpack.c.bf16 %v1311_v62, %v1303_v5 }
 0x23d   :  { %2487 = vmatprep.subr.bf16.mxu0 %v7482_v2  ;;  %v1091_v25 = vadd.f32 %v1090_v33, %v8522_v22  ;;  %v1092_v8 = vpop.f32.mrb[62].mxu1  ;;  %v8577_v48 = vpack.c.bf16 %v1312_v43, %v1304_v28 }
 0x23e   :  { %v1191_v20 = vmul.f32 0.01, %v1089_v61  ;;  %v1093_v32 = vadd.f32 %v1092_v8, %v8515_v11  ;;  %v1094_v36 = vpop.f32.mrb[63].mxu1  ;;  %v7541_v8 = vld [vmem:[#allocation10] sm:$0xff]  }
 0x23f   :  { %2443 = vmatmul.mubr.bf16.gmra.mrb[72].mxu0 %v8518_v6  ;;  %v1192_v53 = vmul.f32 0.01, %v1091_v25  ;;  %v1095_v13 = vadd.f32 %v1094_v36, %v8522_v22 }
 0x240   :  { %2488 = vmatpush1.bf16.msra.mxu0 %v7480_v31  ;;  %2452 = vmatprep.mubr.bf16.mxu0 %v8542_v23  ;;  %v1319_v38 = vmax.f32 %v1089_v61, %v1191_v20  ;;  %v1199_v19 = vmul.f32 0.01, %v1093_v32  ;;  %v7542_v20 = vld [vmem:[#allocation10 + $0x48] sm:$0xff]  }
 0x241   :  { %2489 = vmatprep.subr.bf16.mxu0 %v7485_v16  ;;  %v1320_v35 = vmax.f32 %v1091_v25, %v1192_v53  ;;  %v1200_v45 = vmul.f32 0.01, %v1095_v13  ;;  %v7540_v25 = vld [vmem:[#allocation10 + $0x40] sm:$0xff]  }
 0x242   :  { %v1327_v59 = vmax.f32 %v1093_v32, %v1199_v19  ;;  %v7489_v32 = vld [vmem:[#allocation8 + $0x2f0] ss:$8 sps:$4 sm:$0xff]   ;;  %6761 = vmatprep.subr.bf16.mxu1 %v7540_v25 }
 0x243   :  { %v1328_v46 = vmax.f32 %v1095_v13, %v1200_v45  ;;  %v1098_v5 = vpop.f32.mrb[64].mxu1  ;;  %v7494_v13 = vld [vmem:[#allocation8 + $0x304] ss:$8 sps:$4 sm:$0xff]   ;;  %6762 = vmatpush3.bf16.msra.mxu1 %v7541_v8  ;;  %v7544_v45 = vld [vmem:[#allocation10 + $0x50] sm:$0xff]  }
 0x244   :  { %2490 = vmatpush1.bf16.msra.mxu0 %v7483_v12  ;;  %v1099_v6 = vadd.f32 %v1098_v5, %v8515_v11  ;;  %v1100_v2 = vpop.f32.mrb[65].mxu1  ;;  %v8584_v28 = vpack.c.bf16 %v1327_v59, %v1319_v38  ;;  %6763 = vmatprep.subr.bf16.mxu1 %v7542_v20  ;;  %v7492_v59 = vld [vmem:[#allocation8 + $0x300] ss:$8 sps:$4 sm:$0xff]   ;;  %v7495_v25 = vld [vmem:[#allocation8 + $0x310] ss:$8 sps:$4 sm:$0xff]  }
 0x245   :  { %2491 = vmatprep.subr.bf16.mxu0 %v7488_v34  ;;  %v1101_v23 = vadd.f32 %v1100_v2, %v8522_v22  ;;  %v1102_v62 = vpop.f32.mrb[66].mxu1  ;;  %v8587_v43 = vpack.c.bf16 %v1328_v46, %v1320_v35 }
 0x246   :  { %v1207_v29 = vmul.f32 0.01, %v1099_v6  ;;  %v1103_v31 = vadd.f32 %v1102_v62, %v8515_v11  ;;  %v1104_v61 = vpop.f32.mrb[67].mxu1 }
 0x247   :  { %2453 = vmatmul.mubr.bf16.gmra.mrb[76].mxu0 %v8539_v42  ;;  %v1208_v33 = vmul.f32 0.01, %v1101_v23  ;;  %v1105_v16 = vadd.f32 %v1104_v61, %v8522_v22  ;;  %v7543_v42 = vld [vmem:[#allocation10 + $0x8] sm:$0xff]  }
 0x248   :  { %2492 = vmatpush1.bf16.msra.mxu0 %v7486_v60  ;;  %2495 = vmatprep.mubr.bf16.mxu0 %v8413_v9  ;;  %v1335_v36 = vmax.f32 %v1099_v6, %v1207_v29  ;;  %v1215_v53 = vmul.f32 0.01, %v1103_v31  ;;  %v7497_v60 = vld [vmem:[#allocation8 + $0x314] ss:$8 sps:$4 sm:$0xff]  }
 0x249   :  { %2493 = vmatprep.subr.bf16.mxu0 %v7491_v49  ;;  %v1336_v12 = vmax.f32 %v1101_v23, %v1208_v33  ;;  %v1216_v38 = vmul.f32 0.01, %v1105_v16  ;;  %6764 = vmatpush3.bf16.msra.mxu1 %v7543_v42  ;;  %v7498_v42 = vld [vmem:[#allocation8 + $0x320] ss:$8 sps:$4 sm:$0xff]  }
 0x24a   :  { %v1343_v19 = vmax.f32 %v1103_v31, %v1215_v53  ;;  %v7545_v31 = vld [vmem:[#allocation10 + $0x10] sm:$0xff]   ;;  %6765 = vmatprep.subr.bf16.mxu1 %v7544_v45 }
 0x24b   :  { %v1344_v34 = vmax.f32 %v1105_v16, %v1216_v38  ;;  %v1108_v35 = vpop.f32.mrb[68].mxu1  ;;  %v7546_v16 = vld [vmem:[#allocation10 + $0x58] sm:$0xff]  }
 0x24c   :  { %2494 = vmatpush1.bf16.msra.mxu0 %v7489_v32  ;;  %v1109_v46 = vadd.f32 %v1108_v35, %v8515_v11  ;;  %v1110_v9 = vpop.f32.mrb[69].mxu1  ;;  %v8594_v5 = vpack.c.bf16 %v1343_v19, %v1335_v36  ;;  %v7500_v32 = vld [vmem:[#allocation8 + $0x324] ss:$8 sps:$4 sm:$0xff]   ;;  %v7503_v45 = vld [vmem:[#allocation8 + $0x334] ss:$8 sps:$4 sm:$0xff]  }
 0x24d   :  { %2576 = vmatprep.subr.bf16.mxu0 %v7494_v13  ;;  %v1111_v6 = vadd.f32 %v1110_v9, %v8522_v22  ;;  %v1112_v2 = vpop.f32.mrb[70].mxu1  ;;  %v8597_v49 = vpack.c.bf16 %v1344_v34, %v1336_v12  ;;  %6766 = vmatpush3.bf16.msra.mxu1 %v7545_v31  ;;  %v7547_v12 = vld [vmem:[#allocation10 + $0x18] sm:$0xff]   ;;  %v7548_v19 = vld [vmem:[#allocation10 + $0x60] sm:$0xff]   ;;  %v7550_v31 = vld [vmem:[#allocation10 + $0x68] sm:$0xff]  }
 0x24e   :  { %v1223_v23 = vmul.f32 0.01, %v1109_v46  ;;  %v1113_v62 = vadd.f32 %v1112_v2, %v8515_v11  ;;  %v1114_v29 = vpop.f32.mrb[71].mxu1  ;;  %6767 = vmatprep.subr.bf16.mxu1 %v7546_v16 }
 0x24f   :  { %2496 = vmatmul.mubr.bf16.vlgmr.msra.gmra.mrb[48].mxu0 %v8408_v30  ;;  %v1224_v61 = vmul.f32 0.01, %v1111_v6  ;;  %v1115_v33 = vadd.f32 %v1114_v29, %v8522_v22 }
 0x250   :  { %2577 = vmatpush1.bf16.msra.mxu0 %v7492_v59  ;;  %2505 = vmatprep.mubr.bf16.mxu0 %v8431_v4  ;;  %v1351_v8 = vmax.f32 %v1109_v46, %v1223_v23  ;;  %v1231_v20 = vmul.f32 0.01, %v1113_v62  ;;  %v7549_v23 = vld [vmem:[#allocation10 + $0x20] sm:$0xff]  }
 0x251   :  { %2578 = vmatprep.subr.bf16.mxu0 %v7497_v60  ;;  %v1352_v36 = vmax.f32 %v1111_v6, %v1224_v61  ;;  %v1232_v53 = vmul.f32 0.01, %v1115_v33  ;;  %6768 = vmatpush3.bf16.msra.mxu1 %v7547_v12  ;;  %v7501_v61 = vld [vmem:[#allocation8 + $0x330] ss:$8 sps:$4 sm:$0xff]   ;;  %v7504_v12 = vld [vmem:[#allocation8 + $0x340] ss:$8 sps:$4 sm:$0xff]  }
 0x252   :  { %v1359_v13 = vmax.f32 %v1113_v62, %v1231_v20  ;;  %6769 = vmatprep.subr.bf16.mxu1 %v7548_v19  ;;  %v7509_v19 = vld [vmem:[#allocation8 + $0x354] ss:$8 sps:$4 sm:$0xff]  }
 0x253   :  { %v1360_v38 = vmax.f32 %v1115_v33, %v1232_v53  ;;  %v1118_v30 = vpop.f32.mrb[72].mxu1 }
 0x254   :  { %2579 = vmatpush1.bf16.msra.mxu0 %v7495_v25  ;;  %v1119_v34 = vadd.f32 %v1118_v30, %v8515_v11  ;;  %v1120_v35 = vpop.f32.mrb[73].mxu1  ;;  %v8604_v4 = vpack.c.bf16 %v1359_v13, %v1351_v8  ;;  %v7506_v25 = vld [vmem:[#allocation8 + $0x344] ss:$8 sps:$4 sm:$0xff]   ;;  %v7552_v13 = vld [vmem:[#allocation10 + $0x70] sm:$0xff]  }
 0x255   :  { %2580 = vmatprep.subr.bf16.mxu0 %v7500_v32  ;;  %v1121_v59 = vadd.f32 %v1120_v35, %v8522_v22  ;;  %v1122_v46 = vpop.f32.mrb[74].mxu1  ;;  %v8607_v9 = vpack.c.bf16 %v1360_v38, %v1352_v36  ;;  %6770 = vmatpush3.bf16.msra.mxu1 %v7549_v23  ;;  %v7551_v36 = vld [vmem:[#allocation10 + $0x28] sm:$0xff]   ;;  %v7507_v23 = vld [vmem:[#allocation8 + $0x350] ss:$8 sps:$4 sm:$0xff]  }
 0x256   :  { %v1239_v60 = vmul.f32 0.01, %v1119_v34  ;;  %v1123_v6 = vadd.f32 %v1122_v46, %v8515_v11  ;;  %v1124_v2 = vpop.f32.mrb[75].mxu1  ;;  %6771 = vmatprep.subr.bf16.mxu1 %v7550_v31  ;;  %v7512_v31 = vld [vmem:[#allocation8 + $0x364] ss:$8 sps:$4 sm:$0xff]  }
 0x257   :  { %2506 = vmatmul.mubr.bf16.gmra.mrb[52].mxu0 %v8427_v52  ;;  %v1240_v62 = vmul.f32 0.01, %v1121_v59  ;;  %v1125_v29 = vadd.f32 %v1124_v2, %v8522_v22 }
 0x258   :  { %2581 = vmatpush1.bf16.msra.mxu0 %v7498_v42  ;;  %2515 = vmatprep.mubr.bf16.mxu0 %v8449_v3  ;;  %v1367_v33 = vmax.f32 %v1119_v34, %v1239_v60  ;;  %v1247_v16 = vmul.f32 0.01, %v1123_v6  ;;  %v7553_v60 = vld [vmem:[#allocation10 + $0x30] sm:$0xff]  }
 0x259   :  { %2582 = vmatprep.subr.bf16.mxu0 %v7503_v45  ;;  %v1368_v8 = vmax.f32 %v1121_v59, %v1240_v62  ;;  %v1248_v20 = vmul.f32 0.01, %v1125_v29  ;;  %6772 = vmatpush3.bf16.msra.mxu1 %v7551_v36  ;;  %v7521_v36 = vld [vmem:[#allocation8 + $0x394] ss:$8 sps:$4 sm:$0xff]  }
 0x25a   :  { %v1375_v32 = vmax.f32 %v1123_v6, %v1247_v16  ;;  %6773 = vmatprep.subr.bf16.mxu1 %v7552_v13  ;;  %v7527_v13 = vld [vmem:[#allocation8 + $0x3b4] ss:$8 sps:$4 sm:$0xff]  }
 0x25b   :  { %v1376_v53 = vmax.f32 %v1125_v29, %v1248_v20  ;;  %v1128_v52 = vpop.f32.mrb[76].mxu1  ;;  %v7518_v20 = vld [vmem:[#allocation8 + $0x384] ss:$8 sps:$4 sm:$0xff]  }
 0x25c   :  { %2583 = vmatpush1.bf16.msra.mxu0 %v7501_v61  ;;  %v1129_v38 = vadd.f32 %v1128_v52, %v8515_v11  ;;  %v1130_v30 = vpop.f32.mrb[77].mxu1  ;;  %v8614_v3 = vpack.c.bf16 %v1375_v32, %v1367_v33  ;;  %v7516_v32 = vld [vmem:[#allocation8 + $0x380] ss:$8 sps:$4 sm:$0xff]   ;;  %v7524_v52 = vld [vmem:[#allocation8 + $0x3a4] ss:$8 sps:$4 sm:$0xff]  }
 0x25d   :  { %2584 = vmatprep.subr.bf16.mxu0 %v7506_v25  ;;  %v1131_v42 = vadd.f32 %v1130_v30, %v8522_v22  ;;  %v1132_v34 = vpop.f32.mrb[78].mxu1  ;;  %v8617_v35 = vpack.c.bf16 %v1376_v53, %v1368_v8  ;;  %6774 = vmatpush3.bf16.msra.mxu1 %v7553_v60  ;;  %v7510_v25 = vld [vmem:[#allocation8 + $0x360] ss:$8 sps:$4 sm:$0xff]   ;;  %v7519_v53 = vld [vmem:[#allocation8 + $0x390] ss:$8 sps:$4 sm:$0xff]  }
 0x25e   :  { %v1255_v45 = vmul.f32 0.01, %v1129_v38  ;;  %v1133_v59 = vadd.f32 %v1132_v34, %v8515_v11  ;;  %v1134_v46 = vpop.f32.mrb[79].mxu1  ;;  %v7536_v30 = vld [vmem:[#allocation8 + $0x3e4] ss:$8 sps:$4 sm:$0xff]  }
 0x25f   :  { %2516 = vmatmul.mubr.bf16.gmra.mrb[56].mxu0 %v8445_v50  ;;  %v1256_v6 = vmul.f32 0.01, %v1131_v42  ;;  %v1135_v2 = vadd.f32 %v1134_v46, %v8522_v22  ;;  %v7515_v22 = vld [vmem:[#allocation8 + $0x374] ss:$8 sps:$4 sm:$0xff]  }
 0x260   :  { %2585 = vmatpush1.bf16.msra.mxu0 %v7504_v12  ;;  %2525 = vmatprep.mubr.bf16.mxu0 %v8467_v7  ;;  %v1383_v62 = vmax.f32 %v1129_v38, %v1255_v45  ;;  %v1263_v29 = vmul.f32 0.01, %v1133_v59  ;;  %v7513_v7 = vld [vmem:[#allocation8 + $0x370] ss:$8 sps:$4 sm:$0xff]   ;;  %v7530_v12 = vld [vmem:[#allocation8 + $0x3c4] ss:$8 sps:$4 sm:$0xff]  }
 0x261   :  { %2586 = vmatprep.subr.bf16.mxu0 %v7509_v19  ;;  %v1384_v61 = vmax.f32 %v1131_v42, %v1256_v6  ;;  %v1264_v33 = vmul.f32 0.01, %v1135_v2  ;;  %v7533_v38 = vld [vmem:[#allocation8 + $0x3d4] ss:$8 sps:$4 sm:$0xff]  }
 0x262   :  { %v1391_v11 = vmax.f32 %v1133_v59, %v1263_v29  ;;  %v7539_v19 = vld [vmem:[#allocation8 + $0x3f4] ss:$8 sps:$4 sm:$0xff]  }
 0x263   :  { %v1392_v16 = vmax.f32 %v1135_v2, %v1264_v33 }
 0x264   :  { %2587 = vmatpush1.bf16.msra.mxu0 %v7507_v23  ;;  %v8623_v50 = vpack.c.bf16 %v1391_v11, %v1383_v62 }
 0x265   :  { %2588 = vmatprep.subr.bf16.mxu0 %v7512_v31  ;;  %v1456_v8 = vpack.c.bf16 %v1392_v16, %v1384_v61  ;;  %v7557_v16 = vld [vmem:[#allocation11 + $0x8] sm:$0xff]  }
 0x267   :  { %2526 = vmatmul.mubr.bf16.gmra.mrb[60].mxu0 %v8463_v51  ;;  %v7522_v51 = vld [vmem:[#allocation8 + $0x3a0] ss:$8 sps:$4 sm:$0xff]  }
 0x268   :  { %2589 = vmatpush1.bf16.msra.mxu0 %v7510_v25  ;;  %2535 = vmatprep.mubr.bf16.mxu0 %v8485_v15  ;;  %v7525_v15 = vld [vmem:[#allocation8 + $0x3b0] ss:$8 sps:$4 sm:$0xff]  }
 0x269   :  { %2590 = vmatprep.subr.bf16.mxu0 %v7515_v22 }
 0x26c   :  { %2591 = vmatpush1.bf16.msra.mxu0 %v7513_v7 }
 0x26d   :  { %2592 = vmatprep.subr.bf16.mxu0 %v7518_v20 }
 0x26f   :  { %2536 = vmatmul.mubr.bf16.gmra.mrb[64].mxu0 %v8481_v1  ;;  %v7528_v1 = vld [vmem:[#allocation8 + $0x3c0] ss:$8 sps:$4 sm:$0xff]  }
 0x270   :  { %2593 = vmatpush1.bf16.msra.mxu0 %v7516_v32  ;;  %2545 = vmatprep.mubr.bf16.mxu0 %v8505_v24  ;;  %v7531_v24 = vld [vmem:[#allocation8 + $0x3d0] ss:$8 sps:$4 sm:$0xff]  }
 0x271   :  { %2594 = vmatprep.subr.bf16.mxu0 %v7521_v36  ;;  %v7558_v32 = vld [vmem:[#allocation11 + $0x10] sm:$0xff]  }
 0x274   :  { %2595 = vmatpush1.bf16.msra.mxu0 %v7519_v53 }
 0x275   :  { %2596 = vmatprep.subr.bf16.mxu0 %v7524_v52 }
 0x277   :  { %2546 = vmatmul.mubr.bf16.gmra.mrb[68].mxu0 %v8501_v17  ;;  %v7534_v17 = vld [vmem:[#allocation8 + $0x3e0] ss:$8 sps:$4 sm:$0xff]  }
 0x278   :  { %2597 = vmatpush1.bf16.msra.mxu0 %v7522_v51  ;;  %2555 = vmatprep.mubr.bf16.mxu0 %v8532_v55  ;;  %v7537_v55 = vld [vmem:[#allocation8 + $0x3f0] ss:$8 sps:$4 sm:$0xff]  }
 0x279   :  { %2598 = vmatprep.subr.bf16.mxu0 %v7527_v13 }
 0x27c   :  { %2599 = vmatpush1.bf16.msra.mxu0 %v7525_v15 }
 0x27d   :  { %2600 = vmatprep.subr.bf16.mxu0 %v7530_v12 }
 0x27f   :  { %2556 = vmatmul.mubr.bf16.gmra.mrb[72].mxu0 %v8528_v27  ;;  %v7554_v27 = vld [vmem:[#allocation10 + $0x78] sm:$0xff]  }
 0x280   :  { %2601 = vmatpush1.bf16.msra.mxu0 %v7528_v1  ;;  %2565 = vmatprep.mubr.bf16.mxu0 %v8548_v10  ;;  %v7556_v10 = vld [vmem:[#allocation11] sm:$0xff]  }
 0x281   :  { %2602 = vmatprep.subr.bf16.mxu0 %v7533_v38  ;;  %6775 = vmatprep.subr.bf16.mxu1 %v7554_v27 }
 0x284   :  { %2603 = vmatpush1.bf16.msra.mxu0 %v7531_v24 }
 0x285   :  { %2604 = vmatprep.subr.bf16.mxu0 %v7536_v30 }
 0x287   :  { %2566 = vmatmul.mubr.bf16.gmra.mrb[76].mxu0 %v8545_v21  ;;  %v7555_v21 = vld [vmem:[#allocation10 + $0x38] sm:$0xff]  }
 0x288   :  { %2605 = vmatpush1.bf16.msra.mxu0 %v7534_v17  ;;  %2608 = vmatprep.mubr.bf16.mxu0 %v8557_v40 }
 0x289   :  { %2606 = vmatprep.subr.bf16.mxu0 %v7539_v19  ;;  %6776 = vmatpush3.bf16.msra.mxu1 %v7555_v21  ;;  %v7559_v19 = vld [vmem:[#allocation11 + $0x18] sm:$0xff]  }
 0x28a   :  { %7113 = vmatprep.subr.bf16.mxu1 %v7556_v10 }
 0x28c   :  { %2607 = vmatpush1.bf16.msra.mxu0 %v7537_v55 }
 0x28f   :  { %2609 = vmatmul.mubr.bf16.vlgmr.msra.gmra.mrb[48].mxu0 %v8553_v57  ;;  %v1585_v57 = vld [vmem:[%s9183_s4] sm:$0x3] }
 0x290   :  { %2618 = vmatprep.mubr.bf16.mxu0 %v8567_v14  ;;  %v8653_v40 = vrot.slane %v1585_v57, %v8306_v26 }
 0x297   :  { %2619 = vmatmul.mubr.bf16.gmra.mrb[52].mxu0 %v8564_v39  ;;  %v8656_v39 = vrot.slane %v1585_v57, %v8311_v58 }
 0x298   :  { %2628 = vmatprep.mubr.bf16.mxu0 %v8577_v48 }
 0x29f   :  { %2629 = vmatmul.mubr.bf16.gmra.mrb[56].mxu0 %v8574_v41 }
 0x2a0   :  { %2638 = vmatprep.mubr.bf16.mxu0 %v8587_v43 }
 0x2a7   :  { %2639 = vmatmul.mubr.bf16.gmra.mrb[60].mxu0 %v8584_v28 }
 0x2a8   :  { %2648 = vmatprep.mubr.bf16.mxu0 %v8597_v49 }
 0x2af   :  { %2649 = vmatmul.mubr.bf16.gmra.mrb[64].mxu0 %v8594_v5 }
 0x2b0   :  { %2658 = vmatprep.mubr.bf16.mxu0 %v8607_v9 }
 0x2b7   :  { %2659 = vmatmul.mubr.bf16.gmra.mrb[68].mxu0 %v8604_v4 }
 0x2b8   :  { %2668 = vmatprep.mubr.bf16.mxu0 %v8617_v35 }
 0x2bf   :  { %2669 = vmatmul.mubr.bf16.gmra.mrb[72].mxu0 %v8614_v3 }
 0x2c0   :  { %2678 = vmatprep.mubr.bf16.mxu0 %v1456_v8 }
 0x2c7   :  { %2679 = vmatmul.mubr.bf16.gmra.mrb[76].mxu0 %v8623_v50 }
 0x362   :  { %v2610_v14 = vpop.f32.mrb[48].mxu0 }
 0x363   :  { %v7193_v41 = vadd.f32 %v2610_v14, %v8653_v40  ;;  %v2612_v48 = vpop.f32.mrb[49].mxu0 }
 0x364   :  { %v7194_v28 = vadd.f32 %v2612_v48, %v8656_v39  ;;  %v2614_v43 = vpop.f32.mrb[50].mxu0 }
 0x365   :  { %v2689_v5 = vmul.f32 0.01, %v7193_v41  ;;  %v7195_v49 = vadd.f32 %v2614_v43, %v8653_v40  ;;  %v2616_v4 = vpop.f32.mrb[51].mxu0 }
 0x366   :  { %v2690_v9 = vmul.f32 0.01, %v7194_v28  ;;  %v7196_v3 = vadd.f32 %v2616_v4, %v8656_v39 }
 0x367   :  { %v2691_v42 = vmul.f32 0.01, %v7195_v49  ;;  %v2721_v35 = vmax.f32 %v7193_v41, %v2689_v5  ;;  %v7560_v41 = vld [vmem:[#allocation11 + $0x20] sm:$0xff]  }
 0x368   :  { %v2692_v34 = vmul.f32 0.01, %v7196_v3  ;;  %v2722_v59 = vmax.f32 %v7194_v28, %v2690_v9 }
 0x369   :  { %v2723_v45 = vmax.f32 %v7195_v49, %v2691_v42 }
 0x36a   :  { %v2724_v46 = vmax.f32 %v7196_v3, %v2692_v34  ;;  %v2620_v60 = vpop.f32.mrb[52].mxu0 }
 0x36b   :  { %v2753_v6 = vpack.c.bf16 %v2723_v45, %v2721_v35  ;;  %v7197_v2 = vadd.f32 %v2620_v60, %v8653_v40  ;;  %v2622_v23 = vpop.f32.mrb[53].mxu0 }
 0x36c   :  { %v7198_v62 = vadd.f32 %v2622_v23, %v8656_v39  ;;  %v2624_v29 = vpop.f32.mrb[54].mxu0  ;;  %v2754_v31 = vpack.c.bf16 %v2724_v46, %v2722_v59  ;;  %v7561_v59 = vld [vmem:[#allocation11 + $0x28] sm:$0xff]  }
 0x36d   :  { %v2693_v61 = vmul.f32 0.01, %v7197_v2  ;;  %v7199_v33 = vadd.f32 %v2624_v29, %v8653_v40  ;;  %v2626_v11 = vpop.f32.mrb[55].mxu0 }
 0x36e   :  { %v2694_v25 = vmul.f32 0.01, %v7198_v62  ;;  %v7200_v50 = vadd.f32 %v2626_v11, %v8656_v39  ;;  %2936 = vmatprep.mubr.bf16.mxu1 %v2754_v31 }
 0x36f   :  { %v2695_v22 = vmul.f32 0.01, %v7199_v33  ;;  %2937 = vmatmul.mubr.bf16.vlgmr.msra.gmra.mrb[80].mxu1 %v2753_v6  ;;  %v2725_v7 = vmax.f32 %v7197_v2, %v2693_v61 }
 0x370   :  { %v2696_v8 = vmul.f32 0.01, %v7200_v50  ;;  %7114 = vmatpush3.bf16.msra.mxu1 %v7556_v10  ;;  %v2726_v36 = vmax.f32 %v7198_v62, %v2694_v25 }
 0x371   :  { %v2727_v20 = vmax.f32 %v7199_v33, %v2695_v22  ;;  %7115 = vmatprep.subr.bf16.mxu1 %v7557_v16 }
 0x372   :  { %v2728_v53 = vmax.f32 %v7200_v50, %v2696_v8  ;;  %v2630_v52 = vpop.f32.mrb[56].mxu0 }
 0x373   :  { %v7201_v51 = vadd.f32 %v2630_v52, %v8653_v40  ;;  %v2632_v13 = vpop.f32.mrb[57].mxu0  ;;  %v2755_v15 = vpack.c.bf16 %v2727_v20, %v2725_v7 }
 0x374   :  { %v7202_v12 = vadd.f32 %v2632_v13, %v8656_v39  ;;  %v2634_v1 = vpop.f32.mrb[58].mxu0  ;;  %v2756_v38 = vpack.c.bf16 %v2728_v53, %v2726_v36  ;;  %7116 = vmatpush3.bf16.msra.mxu1 %v7557_v16 }
 0x375   :  { %v2697_v24 = vmul.f32 0.01, %v7201_v51  ;;  %v7203_v30 = vadd.f32 %v2634_v1, %v8653_v40  ;;  %v2636_v17 = vpop.f32.mrb[59].mxu0  ;;  %7117 = vmatprep.subr.bf16.mxu1 %v7558_v32 }
 0x376   :  { %v2698_v55 = vmul.f32 0.01, %v7202_v12  ;;  %v7204_v27 = vadd.f32 %v2636_v17, %v8656_v39  ;;  %2944 = vmatprep.mubr.bf16.mxu1 %v2756_v38 }
 0x377   :  { %v2699_v21 = vmul.f32 0.01, %v7203_v30  ;;  %2945 = vmatmul.mubr.bf16.gmra.mrb[84].mxu1 %v2755_v15  ;;  %v2729_v57 = vmax.f32 %v7201_v51, %v2697_v24 }
 0x378   :  { %v2700_v10 = vmul.f32 0.01, %v7204_v27  ;;  %7118 = vmatpush3.bf16.msra.mxu1 %v7558_v32  ;;  %v2730_v48 = vmax.f32 %v7202_v12, %v2698_v55 }
 0x379   :  { %v2731_v14 = vmax.f32 %v7203_v30, %v2699_v21  ;;  %7119 = vmatprep.subr.bf16.mxu1 %v7559_v19 }
 0x37a   :  { %v2732_v28 = vmax.f32 %v7204_v27, %v2700_v10  ;;  %v2640_v43 = vpop.f32.mrb[60].mxu0 }
 0x37b   :  { %v7205_v5 = vadd.f32 %v2640_v43, %v8653_v40  ;;  %v2642_v49 = vpop.f32.mrb[61].mxu0  ;;  %v2757_v4 = vpack.c.bf16 %v2731_v14, %v2729_v57 }
 0x37c   :  { %v7206_v9 = vadd.f32 %v2642_v49, %v8656_v39  ;;  %v2644_v3 = vpop.f32.mrb[62].mxu0  ;;  %v2758_v42 = vpack.c.bf16 %v2732_v28, %v2730_v48  ;;  %7120 = vmatpush3.bf16.msra.mxu1 %v7559_v19 }
 0x37d   :  { %v2701_v34 = vmul.f32 0.01, %v7205_v5  ;;  %v7207_v35 = vadd.f32 %v2644_v3, %v8653_v40  ;;  %v2646_v45 = vpop.f32.mrb[63].mxu0  ;;  %7121 = vmatprep.subr.bf16.mxu1 %v7560_v41 }
 0x37e   :  { %v2702_v46 = vmul.f32 0.01, %v7206_v9  ;;  %v7208_v60 = vadd.f32 %v2646_v45, %v8656_v39  ;;  %2952 = vmatprep.mubr.bf16.mxu1 %v2758_v42 }
 0x37f   :  { %v2703_v6 = vmul.f32 0.01, %v7207_v35  ;;  %2953 = vmatmul.mubr.bf16.gmra.mrb[88].mxu1 %v2757_v4  ;;  %v2733_v23 = vmax.f32 %v7205_v5, %v2701_v34 }
 0x380   :  { %v2704_v2 = vmul.f32 0.01, %v7208_v60  ;;  %7122 = vmatpush3.bf16.msra.mxu1 %v7560_v41  ;;  %v2734_v29 = vmax.f32 %v7206_v9, %v2702_v46 }
 0x381   :  { %v2735_v62 = vmax.f32 %v7207_v35, %v2703_v6  ;;  %7123 = vmatprep.subr.bf16.mxu1 %v7561_v59 }
 0x382   :  { %v2736_v31 = vmax.f32 %v7208_v60, %v2704_v2  ;;  %v2650_v61 = vpop.f32.mrb[64].mxu0 }
 0x383   :  { %v7209_v33 = vadd.f32 %v2650_v61, %v8653_v40  ;;  %v2652_v11 = vpop.f32.mrb[65].mxu0  ;;  %v2759_v16 = vpack.c.bf16 %v2735_v62, %v2733_v23 }
 0x384   :  { %v7210_v25 = vadd.f32 %v2652_v11, %v8656_v39  ;;  %v2654_v50 = vpop.f32.mrb[66].mxu0  ;;  %v2760_v22 = vpack.c.bf16 %v2736_v31, %v2734_v29  ;;  %7124 = vmatpush3.bf16.msra.mxu1 %v7561_v59 }
 0x385   :  { %v2705_v8 = vmul.f32 0.01, %v7209_v33  ;;  %v7211_v7 = vadd.f32 %v2654_v50, %v8653_v40  ;;  %v2656_v20 = vpop.f32.mrb[67].mxu0 }
 0x386   :  { %v2706_v32 = vmul.f32 0.01, %v7210_v25  ;;  %v7212_v36 = vadd.f32 %v2656_v20, %v8656_v39  ;;  %2960 = vmatprep.mubr.bf16.mxu1 %v2760_v22 }
 0x387   :  { %v2707_v53 = vmul.f32 0.01, %v7211_v7  ;;  %2961 = vmatmul.mubr.bf16.gmra.mrb[92].mxu1 %v2759_v16  ;;  %v2737_v51 = vmax.f32 %v7209_v33, %v2705_v8 }
 0x388   :  { %v2708_v52 = vmul.f32 0.01, %v7212_v36  ;;  %v2738_v15 = vmax.f32 %v7210_v25, %v2706_v32 }
 0x389   :  { %v2739_v13 = vmax.f32 %v7211_v7, %v2707_v53 }
 0x38a   :  { %v2740_v12 = vmax.f32 %v7212_v36, %v2708_v52  ;;  %v2660_v1 = vpop.f32.mrb[68].mxu0 }
 0x38b   :  { %v7213_v38 = vadd.f32 %v2660_v1, %v8653_v40  ;;  %v2662_v24 = vpop.f32.mrb[69].mxu0  ;;  %v2761_v30 = vpack.c.bf16 %v2739_v13, %v2737_v51 }
 0x38c   :  { %v7214_v17 = vadd.f32 %v2662_v24, %v8656_v39  ;;  %v2664_v19 = vpop.f32.mrb[70].mxu0  ;;  %v2762_v55 = vpack.c.bf16 %v2740_v12, %v2738_v15 }
 0x38d   :  { %v2709_v27 = vmul.f32 0.01, %v7213_v38  ;;  %v7215_v21 = vadd.f32 %v2664_v19, %v8653_v40  ;;  %v2666_v10 = vpop.f32.mrb[71].mxu0  ;;  %v7564_v19 = vld [vmem:[#allocation13] sm:$0xff]  }
 0x38e   :  { %v2710_v57 = vmul.f32 0.01, %v7214_v17  ;;  %v7216_v14 = vadd.f32 %v2666_v10, %v8656_v39  ;;  %2968 = vmatprep.mubr.bf16.mxu1 %v2762_v55  ;;  %v8693_v55 = vld [vmem:[%s9185_s6] ss:$0 sm:$0xff] }
 0x38f   :  { %v2711_v41 = vmul.f32 0.01, %v7215_v21  ;;  %2969 = vmatmul.mubr.bf16.gmra.mrb[96].mxu1 %v2761_v30  ;;  %v2741_v28 = vmax.f32 %v7213_v38, %v2709_v27 }
 0x390   :  { %v2712_v48 = vmul.f32 0.01, %v7216_v14  ;;  %v2742_v5 = vmax.f32 %v7214_v17, %v2710_v57  ;;  %v7562_v17 = vld [vmem:[#allocation11 + $0x30] sm:$0xff]  }
 0x391   :  { %v2743_v43 = vmax.f32 %v7215_v21, %v2711_v41  ;;  %7125 = vmatprep.subr.bf16.mxu1 %v7562_v17 }
 0x392   :  { %v2744_v49 = vmax.f32 %v7216_v14, %v2712_v48  ;;  %v2670_v4 = vpop.f32.mrb[72].mxu0  ;;  %7126 = vmatpush3.bf16.msra.mxu1 %v7562_v17 }
 0x393   :  { %v7217_v9 = vadd.f32 %v2670_v4, %v8653_v40  ;;  %v2672_v3 = vpop.f32.mrb[73].mxu0  ;;  %v2763_v42 = vpack.c.bf16 %v2743_v43, %v2741_v28 }
 0x394   :  { %v7218_v34 = vadd.f32 %v2672_v3, %v8656_v39  ;;  %v2674_v35 = vpop.f32.mrb[74].mxu0  ;;  %v2764_v45 = vpack.c.bf16 %v2744_v49, %v2742_v5 }
 0x395   :  { %v2713_v59 = vmul.f32 0.01, %v7217_v9  ;;  %v7219_v46 = vadd.f32 %v2674_v35, %v8653_v40  ;;  %v2676_v60 = vpop.f32.mrb[75].mxu0 }
 0x396   :  { %v2714_v6 = vmul.f32 0.01, %v7218_v34  ;;  %v7220_v2 = vadd.f32 %v2676_v60, %v8656_v39  ;;  %2976 = vmatprep.mubr.bf16.mxu1 %v2764_v45 }
 0x397   :  { %v2715_v23 = vmul.f32 0.01, %v7219_v46  ;;  %2977 = vmatmul.mubr.bf16.gmra.mrb[100].mxu1 %v2763_v42  ;;  %v2745_v29 = vmax.f32 %v7217_v9, %v2713_v59 }
 0x398   :  { %v2716_v62 = vmul.f32 0.01, %v7220_v2  ;;  %v2746_v61 = vmax.f32 %v7218_v34, %v2714_v6 }
 0x399   :  { %v2747_v31 = vmax.f32 %v7219_v46, %v2715_v23 }
 0x39a   :  { %v2748_v33 = vmax.f32 %v7220_v2, %v2716_v62  ;;  %v2680_v11 = vpop.f32.mrb[76].mxu0 }
 0x39b   :  { %v7221_v16 = vadd.f32 %v2680_v11, %v8653_v40  ;;  %v2682_v25 = vpop.f32.mrb[77].mxu0  ;;  %v2765_v50 = vpack.c.bf16 %v2747_v31, %v2745_v29 }
 0x39c   :  { %v7222_v22 = vadd.f32 %v2682_v25, %v8656_v39  ;;  %v2684_v8 = vpop.f32.mrb[78].mxu0  ;;  %v2766_v7 = vpack.c.bf16 %v2748_v33, %v2746_v61 }
 0x39d   :  { %v2717_v20 = vmul.f32 0.01, %v7221_v16  ;;  %v7223_v32 = vadd.f32 %v2684_v8, %v8653_v40  ;;  %v2686_v36 = vpop.f32.mrb[79].mxu0  ;;  %v7563_v40 = vld [vmem:[#allocation11 + $0x38] sm:$0xff]  }
 0x39e   :  { %v2718_v53 = vmul.f32 0.01, %v7222_v22  ;;  %v7224_v52 = vadd.f32 %v2686_v36, %v8656_v39  ;;  %2984 = vmatprep.mubr.bf16.mxu1 %v2766_v7  ;;  %7127 = vmatprep.subr.bf16.mxu1 %v7563_v40 }
 0x39f   :  { %v2719_v51 = vmul.f32 0.01, %v7223_v32  ;;  %2985 = vmatmul.mubr.bf16.gmra.mrb[104].mxu1 %v2765_v50  ;;  %v2749_v15 = vmax.f32 %v7221_v16, %v2717_v20  ;;  %v7565_v50 = vld [vmem:[#allocation13 + $0x8] sm:$0xff]  }
 0x3a0   :  { %v2720_v13 = vmul.f32 0.01, %v7224_v52  ;;  %v2750_v1 = vmax.f32 %v7222_v22, %v2718_v53  ;;  %7128 = vmatpush3.bf16.msra.mxu1 %v7563_v40 }
 0x3a1   :  { %v2751_v12 = vmax.f32 %v7223_v32, %v2719_v51  ;;  %7145 = vmatprep.subr.bf16.mxu1 %v7564_v19  ;;  %v7566_v32 = vld [vmem:[#allocation13 + $0x10] sm:$0xff]  }
 0x3a2   :  { %v2752_v38 = vmax.f32 %v7224_v52, %v2720_v13 }
 0x3a3   :  { %v2767_v24 = vpack.c.bf16 %v2751_v12, %v2749_v15 }
 0x3a4   :  { %v2768_v30 = vpack.c.bf16 %v2752_v38, %v2750_v1 }
 0x3a6   :  { %2992 = vmatprep.mubr.bf16.mxu1 %v2768_v30 }
 0x3a7   :  { %2993 = vmatmul.mubr.bf16.gmra.mrb[108].mxu1 %v2767_v24  ;;  %v7567_v24 = vld [vmem:[#allocation13 + $0x18] sm:$0xff]  }
 0x442   :  { %v6777_v39 = vpop.f32.mrb[80].mxu1 }
 0x443   :  { %v6778_v27 = vpop.f32.mrb[81].mxu1 }
 0x444   :  { %v6779_v21 = vadd.f32 %v6778_v27, %v6777_v39  ;;  %v6780_v10 = vpop.f32.mrb[82].mxu1  ;;  %v7568_v39 = vld [vmem:[#allocation13 + $0x20] sm:$0xff]  }
 0x445   :  { %v6781_v57 = vpop.f32.mrb[83].mxu1 }
 0x446   :  { %v2939_v14 = vadd.f32 %v6779_v21, %v8693_v55  ;;  %v6782_v41 = vadd.f32 %v6781_v57, %v6780_v10 }
 0x448   :  { %v3001_v48 = vmul.f32 0.01, %v2939_v14  ;;  %v2942_v28 = vadd.f32 %v6782_v41, %v8693_v55 }
 0x44a   :  { %v3002_v43 = vmul.f32 0.01, %v2942_v28  ;;  %v6783_v5 = vpop.f32.mrb[84].mxu1  ;;  %v3017_v4 = vmax.f32 %v2939_v14, %v3001_v48 }
 0x44b   :  { %v6784_v49 = vpop.f32.mrb[85].mxu1 }
 0x44c   :  { %v3018_v9 = vmax.f32 %v2942_v28, %v3002_v43  ;;  %v6785_v3 = vadd.f32 %v6784_v49, %v6783_v5  ;;  %v6786_v42 = vpop.f32.mrb[86].mxu1 }
 0x44d   :  { %v6787_v34 = vpop.f32.mrb[87].mxu1 }
 0x44e   :  { %v2947_v35 = vadd.f32 %v6785_v3, %v8693_v55  ;;  %v6788_v45 = vadd.f32 %v6787_v34, %v6786_v42  ;;  %v3033_v59 = vpack.c.bf16 %v3018_v9, %v3017_v4 }
 0x450   :  { %v3003_v46 = vmul.f32 0.01, %v2947_v35  ;;  %v2950_v60 = vadd.f32 %v6788_v45, %v8693_v55  ;;  %7129 = vmatprep.mubr.bf16.mxu1 %v3033_v59 }
 0x452   :  { %v3004_v6 = vmul.f32 0.01, %v2950_v60  ;;  %v6789_v2 = vpop.f32.mrb[88].mxu1  ;;  %v3019_v62 = vmax.f32 %v2947_v35, %v3003_v46 }
 0x453   :  { %v6790_v23 = vpop.f32.mrb[89].mxu1 }
 0x454   :  { %v3020_v29 = vmax.f32 %v2950_v60, %v3004_v6  ;;  %v6791_v31 = vadd.f32 %v6790_v23, %v6789_v2  ;;  %v6792_v61 = vpop.f32.mrb[90].mxu1 }
 0x455   :  { %v6793_v33 = vpop.f32.mrb[91].mxu1 }
 0x456   :  { %v3034_v11 = vpack.c.bf16 %v3020_v29, %v3019_v62  ;;  %v2955_v16 = vadd.f32 %v6791_v31, %v8693_v55  ;;  %v6794_v25 = vadd.f32 %v6793_v33, %v6792_v61 }
 0x458   :  { %v3005_v22 = vmul.f32 0.01, %v2955_v16  ;;  %v2958_v8 = vadd.f32 %v6794_v25, %v8693_v55  ;;  %7130 = vmatmul.mubr.bf16.vlgmr.msra.gmra.mrb[112].mxu1 %v3034_v11 }
 0x459   :  { %7146 = vmatpush3.bf16.msra.mxu1 %v7564_v19 }
 0x45a   :  { %v3006_v7 = vmul.f32 0.01, %v2958_v8  ;;  %v6795_v20 = vpop.f32.mrb[92].mxu1  ;;  %7147 = vmatprep.subr.bf16.mxu1 %v7565_v50  ;;  %v3021_v53 = vmax.f32 %v2955_v16, %v3005_v22 }
 0x45b   :  { %v6796_v36 = vpop.f32.mrb[93].mxu1 }
 0x45c   :  { %v3022_v52 = vmax.f32 %v2958_v8, %v3006_v7  ;;  %v6797_v51 = vadd.f32 %v6796_v36, %v6795_v20  ;;  %v6798_v13 = vpop.f32.mrb[94].mxu1 }
 0x45d   :  { %v6799_v15 = vpop.f32.mrb[95].mxu1  ;;  %7148 = vmatpush3.bf16.msra.mxu1 %v7565_v50 }
 0x45e   :  { %v2963_v12 = vadd.f32 %v6797_v51, %v8693_v55  ;;  %v6800_v1 = vadd.f32 %v6799_v15, %v6798_v13  ;;  %v3035_v38 = vpack.c.bf16 %v3022_v52, %v3021_v53  ;;  %7149 = vmatprep.subr.bf16.mxu1 %v7566_v32 }
 0x460   :  { %v3007_v30 = vmul.f32 0.01, %v2963_v12  ;;  %v2966_v17 = vadd.f32 %v6800_v1, %v8693_v55  ;;  %7133 = vmatprep.mubr.bf16.mxu1 %v3035_v38 }
 0x461   :  { %7150 = vmatpush3.bf16.msra.mxu1 %v7566_v32 }
 0x462   :  { %v3008_v40 = vmul.f32 0.01, %v2966_v17  ;;  %v6801_v19 = vpop.f32.mrb[96].mxu1  ;;  %7151 = vmatprep.subr.bf16.mxu1 %v7567_v24  ;;  %v3023_v21 = vmax.f32 %v2963_v12, %v3007_v30 }
 0x463   :  { %v6802_v27 = vpop.f32.mrb[97].mxu1 }
 0x464   :  { %v3024_v10 = vmax.f32 %v2966_v17, %v3008_v40  ;;  %v6803_v57 = vadd.f32 %v6802_v27, %v6801_v19  ;;  %v6804_v14 = vpop.f32.mrb[98].mxu1 }
 0x465   :  { %v6805_v41 = vpop.f32.mrb[99].mxu1  ;;  %7152 = vmatpush3.bf16.msra.mxu1 %v7567_v24 }
 0x466   :  { %v2971_v48 = vadd.f32 %v6803_v57, %v8693_v55  ;;  %v6806_v28 = vadd.f32 %v6805_v41, %v6804_v14  ;;  %v3036_v43 = vpack.c.bf16 %v3024_v10, %v3023_v21  ;;  %7153 = vmatprep.subr.bf16.mxu1 %v7568_v39  ;;  %v7569_v21 = vld [vmem:[#allocation13 + $0x28] sm:$0xff]   ;;  %v7570_v10 = vld [vmem:[#allocation13 + $0x30] sm:$0xff]   ;;  %v7571_v57 = vld [vmem:[#allocation13 + $0x38] sm:$0xff]  }
 0x467   :  { %v7574_v14 = vld [vmem:[#allocation14 + $0x4] ss:$8 sps:$4 sm:$0xff]  }
 0x468   :  { %v3009_v5 = vmul.f32 0.01, %v2971_v48  ;;  %v2974_v49 = vadd.f32 %v6806_v28, %v8693_v55  ;;  %7134 = vmatmul.mubr.bf16.gmra.mrb[116].mxu1 %v3036_v43 }
 0x469   :  { %7154 = vmatpush3.bf16.msra.mxu1 %v7568_v39 }
 0x46a   :  { %v3010_v4 = vmul.f32 0.01, %v2974_v49  ;;  %v6807_v9 = vpop.f32.mrb[100].mxu1  ;;  %v3025_v42 = vmax.f32 %v2971_v48, %v3009_v5  ;;  %7155 = vmatprep.subr.bf16.mxu1 %v7569_v21 }
 0x46b   :  { %v6808_v3 = vpop.f32.mrb[101].mxu1 }
 0x46c   :  { %v3026_v34 = vmax.f32 %v2974_v49, %v3010_v4  ;;  %v6809_v35 = vadd.f32 %v6808_v3, %v6807_v9  ;;  %v6810_v45 = vpop.f32.mrb[102].mxu1 }
 0x46d   :  { %v6811_v59 = vpop.f32.mrb[103].mxu1  ;;  %7156 = vmatpush3.bf16.msra.mxu1 %v7569_v21 }
 0x46e   :  { %v2979_v46 = vadd.f32 %v6809_v35, %v8693_v55  ;;  %v6812_v60 = vadd.f32 %v6811_v59, %v6810_v45  ;;  %v3037_v6 = vpack.c.bf16 %v3026_v34, %v3025_v42  ;;  %7157 = vmatprep.subr.bf16.mxu1 %v7570_v10 }
 0x470   :  { %v3011_v2 = vmul.f32 0.01, %v2979_v46  ;;  %v2982_v23 = vadd.f32 %v6812_v60, %v8693_v55  ;;  %7137 = vmatprep.mubr.bf16.mxu1 %v3037_v6 }
 0x471   :  { %7158 = vmatpush3.bf16.msra.mxu1 %v7570_v10 }
 0x472   :  { %v3012_v62 = vmul.f32 0.01, %v2982_v23  ;;  %v6813_v29 = vpop.f32.mrb[104].mxu1  ;;  %v3027_v61 = vmax.f32 %v2979_v46, %v3011_v2  ;;  %7159 = vmatprep.subr.bf16.mxu1 %v7571_v57 }
 0x473   :  { %v6814_v31 = vpop.f32.mrb[105].mxu1 }
 0x474   :  { %v3028_v33 = vmax.f32 %v2982_v23, %v3012_v62  ;;  %v6815_v11 = vadd.f32 %v6814_v31, %v6813_v29  ;;  %v6816_v16 = vpop.f32.mrb[106].mxu1  ;;  %v7572_v23 = vld [vmem:[#allocation14] ss:$8 sps:$4 sm:$0xff]   ;;  %v7577_v62 = vld [vmem:[#allocation14 + $0x14] ss:$8 sps:$4 sm:$0xff]  }
 0x475   :  { %v6817_v25 = vpop.f32.mrb[107].mxu1  ;;  %7160 = vmatpush3.bf16.msra.mxu1 %v7571_v57  ;;  %v7575_v29 = vld [vmem:[#allocation14 + $0x10] ss:$8 sps:$4 sm:$0xff]   ;;  %v7580_v31 = vld [vmem:[#allocation14 + $0x24] ss:$8 sps:$4 sm:$0xff]  }
 0x476   :  { %v2987_v50 = vadd.f32 %v6815_v11, %v8693_v55  ;;  %v6818_v22 = vadd.f32 %v6817_v25, %v6816_v16  ;;  %v3038_v8 = vpack.c.bf16 %v3028_v33, %v3027_v61  ;;  %3581 = vmatprep.subr.bf16.mxu1 %v7574_v14 }
 0x478   :  { %v3013_v7 = vmul.f32 0.01, %v2987_v50  ;;  %v2990_v20 = vadd.f32 %v6818_v22, %v8693_v55  ;;  %7138 = vmatmul.mubr.bf16.gmra.mrb[120].mxu1 %v3038_v8 }
 0x47a   :  { %v3014_v32 = vmul.f32 0.01, %v2990_v20  ;;  %v6819_v36 = vpop.f32.mrb[108].mxu1  ;;  %v3029_v52 = vmax.f32 %v2987_v50, %v3013_v7  ;;  %v7578_v50 = vld [vmem:[#allocation14 + $0x20] ss:$8 sps:$4 sm:$0xff]  }
 0x47b   :  { %v6820_v53 = vpop.f32.mrb[109].mxu1 }
 0x47c   :  { %v3030_v51 = vmax.f32 %v2990_v20, %v3014_v32  ;;  %v6821_v13 = vadd.f32 %v6820_v53, %v6819_v36  ;;  %v6822_v15 = vpop.f32.mrb[110].mxu1  ;;  %v7583_v20 = vld [vmem:[#allocation14 + $0x34] ss:$8 sps:$4 sm:$0xff]  }
 0x47d   :  { %v6823_v12 = vpop.f32.mrb[111].mxu1 }
 0x47e   :  { %v2995_v1 = vadd.f32 %v6821_v13, %v8693_v55  ;;  %v6824_v38 = vadd.f32 %v6823_v12, %v6822_v15  ;;  %v3039_v24 = vpack.c.bf16 %v3030_v51, %v3029_v52  ;;  %v7581_v15 = vld [vmem:[#allocation14 + $0x30] ss:$8 sps:$4 sm:$0xff]  }
 0x480   :  { %v3015_v30 = vmul.f32 0.01, %v2995_v1  ;;  %v2998_v17 = vadd.f32 %v6824_v38, %v8693_v55  ;;  %7141 = vmatprep.mubr.bf16.mxu1 %v3039_v24  ;;  %v8714_v55 = vld [vmem:[%s9187_s8] ss:$0 sm:$0xff] }
 0x482   :  { %v3016_v40 = vmul.f32 0.01, %v2998_v17  ;;  %v3031_v19 = vmax.f32 %v2995_v1, %v3015_v30  ;;  %v7586_v1 = vld [vmem:[#allocation14 + $0x44] ss:$8 sps:$4 sm:$0xff]  }
 0x484   :  { %v3032_v39 = vmax.f32 %v2998_v17, %v3016_v40  ;;  %v7584_v17 = vld [vmem:[#allocation14 + $0x40] ss:$8 sps:$4 sm:$0xff]   ;;  %v7589_v40 = vld [vmem:[#allocation14 + $0x54] ss:$8 sps:$4 sm:$0xff]  }
 0x486   :  { %v3040_v27 = vpack.c.bf16 %v3032_v39, %v3031_v19  ;;  %v7587_v19 = vld [vmem:[#allocation14 + $0x50] ss:$8 sps:$4 sm:$0xff]  }
 0x488   :  { %7142 = vmatmul.mubr.bf16.gmra.mrb[124].mxu1 %v3040_v27 }
 0x52b   :  { %v7131_v41 = vpop.f32.mrb[112].mxu1 }
 0x52c   :  { %v3155_v48 = vadd.f32 %v7131_v41, %v8714_v55  ;;  %v3146_v28 = vpop.f32.mrb[113].mxu1 }
 0x52d   :  { %v3147_v43 = vadd.f32 %v8714_v55, %v3146_v28  ;;  %v7132_v5 = vpop.f32.mrb[114].mxu1 }
 0x52e   :  { %v3211_v49 = vmul.f32 0.01, %v3155_v48  ;;  %v3158_v4 = vadd.f32 %v7132_v5, %v8714_v55  ;;  %v3149_v9 = vpop.f32.mrb[115].mxu1 }
 0x52f   :  { %v3209_v3 = vmul.f32 0.01, %v3147_v43  ;;  %v3150_v42 = vadd.f32 %v8714_v55, %v3149_v9 }
 0x530   :  { %v3227_v34 = vmax.f32 %v3155_v48, %v3211_v49  ;;  %v3212_v35 = vmul.f32 0.01, %v3158_v4 }
 0x531   :  { %v3225_v45 = vmax.f32 %v3147_v43, %v3209_v3  ;;  %v3210_v59 = vmul.f32 0.01, %v3150_v42 }
 0x532   :  { %3243 = vst [vmem:[#allocation19 + $0x10] sm:$0xff] %v3227_v34  ;;  %v3228_v46 = vmax.f32 %v3158_v4, %v3212_v35 }
 0x533   :  { %3241 = vst [vmem:[#allocation19] sm:$0xff] %v3225_v45  ;;  %v3226_v60 = vmax.f32 %v3150_v42, %v3210_v59 }
 0x534   :  { %3244 = vst [vmem:[#allocation19 + $0x18] sm:$0xff] %v3228_v46  ;;  %v3258_v6 = vpack.c.bf16 %v3228_v46, %v3227_v34 }
 0x535   :  { %3242 = vst [vmem:[#allocation19 + $0x8] sm:$0xff] %v3226_v60  ;;  %v3257_v2 = vpack.c.bf16 %v3226_v60, %v3225_v45 }
 0x537   :  { %7161 = vmatprep.mubr.bf16.mxu1 %v3257_v2 }
 0x538   :  { %7162 = vmatmul.mubr.bf16.vlgmr.msra.gmra.mrb[128].mxu1 %v3258_v6 }
 0x539   :  { %3582 = vmatpush1.bf16.msra.mxu1 %v7572_v23 }
 0x53a   :  { %3583 = vmatprep.subr.bf16.mxu1 %v7577_v62 }
 0x53b   :  { %v7135_v61 = vpop.f32.mrb[116].mxu1 }
 0x53c   :  { %v3171_v33 = vadd.f32 %v7135_v61, %v8714_v55  ;;  %v3162_v11 = vpop.f32.mrb[117].mxu1 }
 0x53d   :  { %v3163_v16 = vadd.f32 %v8714_v55, %v3162_v11  ;;  %v7136_v25 = vpop.f32.mrb[118].mxu1  ;;  %3584 = vmatpush1.bf16.msra.mxu1 %v7575_v29 }
 0x53e   :  { %v3215_v22 = vmul.f32 0.01, %v3171_v33  ;;  %v3174_v8 = vadd.f32 %v7136_v25, %v8714_v55  ;;  %v3165_v7 = vpop.f32.mrb[119].mxu1  ;;  %3585 = vmatprep.subr.bf16.mxu1 %v7580_v31 }
 0x53f   :  { %v3213_v32 = vmul.f32 0.01, %v3163_v16  ;;  %v3166_v36 = vadd.f32 %v8714_v55, %v3165_v7  ;;  %v7592_v7 = vld [vmem:[#allocation14 + $0x64] ss:$8 sps:$4 sm:$0xff]  }
 0x540   :  { %v3231_v53 = vmax.f32 %v3171_v33, %v3215_v22  ;;  %v3216_v52 = vmul.f32 0.01, %v3174_v8 }
 0x541   :  { %v3229_v51 = vmax.f32 %v3163_v16, %v3213_v32  ;;  %v3214_v13 = vmul.f32 0.01, %v3166_v36  ;;  %3586 = vmatpush1.bf16.msra.mxu1 %v7578_v50  ;;  %v7593_v32 = vld [vmem:[#allocation14 + $0x70] ss:$8 sps:$4 sm:$0xff]  }
 0x542   :  { %3247 = vst [vmem:[#allocation19 + $0x30] sm:$0xff] %v3231_v53  ;;  %v3232_v12 = vmax.f32 %v3174_v8, %v3216_v52  ;;  %3587 = vmatprep.subr.bf16.mxu1 %v7583_v20  ;;  %v7590_v20 = vld [vmem:[#allocation14 + $0x60] ss:$8 sps:$4 sm:$0xff]  }
 0x543   :  { %3245 = vst [vmem:[#allocation19 + $0x20] sm:$0xff] %v3229_v51  ;;  %v3230_v38 = vmax.f32 %v3166_v36, %v3214_v13  ;;  %v8733_v36 = vld [vmem:[#allocation16] sm:$0xff]  ;;  %v3775_v52 = vld [vmem:[#allocation16 + $0x8] sm:$0xff] }
 0x544   :  { %3248 = vst [vmem:[#allocation19 + $0x38] sm:$0xff] %v3232_v12  ;;  %v3260_v24 = vpack.c.bf16 %v3232_v12, %v3231_v53  ;;  %v8735_v53 = vld [vmem:[#allocation16 + $0x20] sm:$0xff] }
 0x545   :  { %3246 = vst [vmem:[#allocation19 + $0x28] sm:$0xff] %v3230_v38  ;;  %v3259_v30 = vpack.c.bf16 %v3230_v38, %v3229_v51  ;;  %3588 = vmatpush1.bf16.msra.mxu1 %v7581_v15  ;;  %v6568_v51 = vcombine.low %v8733_v36, %v8735_v53  ;;  %v6569_v13 = vcombine.high %v8733_v36, %v8735_v53  ;;  %v3779_v15 = vld [vmem:[#allocation16 + $0x28] sm:$0xff] }
 0x546   :  { %3589 = vmatprep.subr.bf16.mxu1 %v7586_v1  ;;  %v6570_v12 = vcombine.low %v3775_v52, %v3779_v15  ;;  %v6571_v1 = vcombine.high %v3775_v52, %v3779_v15  ;;  %v3783_v38 = vld [vmem:[#allocation16 + $0x48] sm:$0xff]  ;;  %v8744_v15 = vld [vmem:[%s9189_s10] ss:$0 sm:$0xff] }
 0x547   :  { %7165 = vmatprep.mubr.bf16.mxu1 %v3259_v30 }
 0x548   :  { %7166 = vmatmul.mubr.bf16.gmra.mrb[132].mxu1 %v3260_v24  ;;  %v3787_v24 = vld [vmem:[#allocation16 + $0x68] sm:$0xff]  ;;  %4697 = vmatprep.subr.bf16.mxu0 %v6571_v1 }
 0x549   :  { %3590 = vmatpush1.bf16.msra.mxu1 %v7584_v17  ;;  %v6579_v30 = vcombine.high %v3783_v38, %v3787_v24  ;;  %v3791_v17 = vld [vmem:[#allocation16 + $0x88] sm:$0xff]  ;;  %4698 = vmatpush1.bf16.msra.mxu0 %v6570_v12 }
 0x54a   :  { %3591 = vmatprep.subr.bf16.mxu1 %v7589_v40  ;;  %v3795_v40 = vld [vmem:[#allocation16 + $0xa8] sm:$0xff] }
 0x54b   :  { %v7139_v39 = vpop.f32.mrb[120].mxu1  ;;  %4699 = vmatprep.subr.bf16.mxu0 %v6579_v30 }
 0x54c   :  { %v3187_v27 = vadd.f32 %v7139_v39, %v8714_v55  ;;  %v3178_v21 = vpop.f32.mrb[121].mxu1  ;;  %v6587_v39 = vcombine.high %v3791_v17, %v3795_v40 }
 0x54d   :  { %v3179_v10 = vadd.f32 %v8714_v55, %v3178_v21  ;;  %v7140_v57 = vpop.f32.mrb[122].mxu1  ;;  %3592 = vmatpush1.bf16.msra.mxu1 %v7587_v19  ;;  %v6578_v19 = vcombine.low %v3783_v38, %v3787_v24  ;;  %v3803_v21 = vld [vmem:[#allocation16 + $0xe8] sm:$0xff] }
 0x54e   :  { %v3219_v14 = vmul.f32 0.01, %v3187_v27  ;;  %v3190_v41 = vadd.f32 %v7140_v57, %v8714_v55  ;;  %v3181_v48 = vpop.f32.mrb[123].mxu1  ;;  %3593 = vmatprep.subr.bf16.mxu1 %v7592_v7 }
 0x54f   :  { %v3217_v28 = vmul.f32 0.01, %v3179_v10  ;;  %v3182_v43 = vadd.f32 %v8714_v55, %v3181_v48  ;;  %4700 = vmatpush1.bf16.msra.mxu0 %v6578_v19 }
 0x550   :  { %v3235_v5 = vmax.f32 %v3187_v27, %v3219_v14  ;;  %v3220_v49 = vmul.f32 0.01, %v3190_v41  ;;  %v3799_v27 = vld [vmem:[#allocation16 + $0xc8] sm:$0xff]  ;;  %4701 = vmatprep.subr.bf16.mxu0 %v6587_v39 }
 0x551   :  { %v3233_v4 = vmax.f32 %v3179_v10, %v3217_v28  ;;  %v3218_v9 = vmul.f32 0.01, %v3182_v43  ;;  %3594 = vmatpush1.bf16.msra.mxu1 %v7590_v20  ;;  %v6586_v10 = vcombine.low %v3791_v17, %v3795_v40  ;;  %v6595_v57 = vcombine.high %v3799_v27, %v3803_v21  ;;  %v3807_v14 = vld [vmem:[#allocation16 + $0x108] sm:$0xff] }
 0x552   :  { %3251 = vst [vmem:[#allocation19 + $0x50] sm:$0xff] %v3235_v5  ;;  %v3236_v3 = vmax.f32 %v3190_v41, %v3220_v49  ;;  %v3811_v41 = vld [vmem:[#allocation16 + $0x128] sm:$0xff]  ;;  %v6594_v48 = vcombine.low %v3799_v27, %v3803_v21 }
 0x553   :  { %3249 = vst [vmem:[#allocation19 + $0x40] sm:$0xff] %v3233_v4  ;;  %v3234_v42 = vmax.f32 %v3182_v43, %v3218_v9  ;;  %4702 = vmatpush1.bf16.msra.mxu0 %v6586_v10  ;;  %v6603_v28 = vcombine.high %v3807_v14, %v3811_v41  ;;  %v3815_v43 = vld [vmem:[#allocation16 + $0x148] sm:$0xff]  ;;  %v6602_v49 = vcombine.low %v3807_v14, %v3811_v41  ;;  %v3782_v41 = vld [vmem:[#allocation16 + $0x40] sm:$0xff] }
 0x554   :  { %3252 = vst [vmem:[#allocation19 + $0x58] sm:$0xff] %v3236_v3  ;;  %v3262_v34 = vpack.c.bf16 %v3236_v3, %v3235_v5  ;;  %4703 = vmatprep.subr.bf16.mxu0 %v6595_v57  ;;  %v3819_v5 = vld [vmem:[#allocation16 + $0x168] sm:$0xff] }
 0x555   :  { %3250 = vst [vmem:[#allocation19 + $0x48] sm:$0xff] %v3234_v42  ;;  %v3261_v35 = vpack.c.bf16 %v3234_v42, %v3233_v4  ;;  %v6611_v4 = vcombine.high %v3815_v43, %v3819_v5  ;;  %v3823_v9 = vld [vmem:[#allocation16 + $0x188] sm:$0xff]  ;;  %v6610_v42 = vcombine.low %v3815_v43, %v3819_v5 }
 0x556   :  { %v3827_v3 = vld [vmem:[#allocation16 + $0x1a8] sm:$0xff] }
 0x557   :  { %7169 = vmatprep.mubr.bf16.mxu1 %v3261_v35  ;;  %4704 = vmatpush1.bf16.msra.mxu0 %v6594_v48  ;;  %v3831_v35 = vld [vmem:[#allocation16 + $0x1c8] sm:$0xff]  ;;  %v3786_v48 = vld [vmem:[#allocation16 + $0x60] sm:$0xff] }
 0x558   :  { %7170 = vmatmul.mubr.bf16.gmra.mrb[136].mxu1 %v3262_v34  ;;  %4705 = vmatprep.subr.bf16.mxu0 %v6603_v28  ;;  %v6619_v34 = vcombine.high %v3823_v9, %v3827_v3  ;;  %v3871_v20 = vld [vmem:[#allocation16 + $0x308] sm:$0xff] }
 0x55b   :  { %v7143_v45 = vpop.f32.mrb[124].mxu1  ;;  %4706 = vmatpush1.bf16.msra.mxu0 %v6602_v49 }
 0x55c   :  { %v3203_v59 = vadd.f32 %v7143_v45, %v8714_v55  ;;  %v3194_v46 = vpop.f32.mrb[125].mxu1  ;;  %4707 = vmatprep.subr.bf16.mxu0 %v6611_v4  ;;  %v3835_v45 = vld [vmem:[#allocation16 + $0x1e8] sm:$0xff]  ;;  %v6577_v4 = vcombine.high %v3782_v41, %v3786_v48 }
 0x55d   :  { %v3195_v60 = vadd.f32 %v8714_v55, %v3194_v46  ;;  %v7144_v6 = vpop.f32.mrb[126].mxu1  ;;  %v6627_v46 = vcombine.high %v3831_v35, %v3835_v45 }
 0x55e   :  { %v3223_v2 = vmul.f32 0.01, %v3203_v59  ;;  %v3206_v23 = vadd.f32 %v7144_v6, %v8714_v55  ;;  %v3197_v62 = vpop.f32.mrb[127].mxu1  ;;  %v3843_v6 = vld [vmem:[#allocation16 + $0x228] sm:$0xff] }
 0x55f   :  { %v3221_v29 = vmul.f32 0.01, %v3195_v60  ;;  %v3198_v31 = vadd.f32 %v8714_v55, %v3197_v62  ;;  %v7595_v55 = vld [vmem:[#allocation14 + $0x74] ss:$8 sps:$4 sm:$0xff]   ;;  %4708 = vmatpush1.bf16.msra.mxu0 %v6610_v42  ;;  %v3847_v62 = vld [vmem:[#allocation16 + $0x248] sm:$0xff]  ;;  %v6576_v42 = vcombine.low %v3782_v41, %v3786_v48 }
 0x560   :  { %v3239_v61 = vmax.f32 %v3203_v59, %v3223_v2  ;;  %v3224_v33 = vmul.f32 0.01, %v3206_v23  ;;  %3595 = vmatprep.subr.bf16.mxu1 %v7595_v55  ;;  %v6618_v59 = vcombine.low %v3823_v9, %v3827_v3  ;;  %4709 = vmatprep.subr.bf16.mxu0 %v6619_v34  ;;  %v6626_v2 = vcombine.low %v3831_v35, %v3835_v45  ;;  %v3875_v55 = vld [vmem:[#allocation16 + $0x328] sm:$0xff]  ;;  %v3790_v9 = vld [vmem:[#allocation16 + $0x80] sm:$0xff] }
 0x561   :  { %v3237_v11 = vmax.f32 %v3195_v60, %v3221_v29  ;;  %v3222_v16 = vmul.f32 0.01, %v3198_v31  ;;  %3596 = vmatpush1.bf16.msra.mxu1 %v7593_v32  ;;  %v3839_v60 = vld [vmem:[#allocation16 + $0x208] sm:$0xff]  ;;  %v6667_v52 = vcombine.high %v3871_v20, %v3875_v55  ;;  %v3794_v3 = vld [vmem:[#allocation16 + $0xa0] sm:$0xff] }
 0x562   :  { %3255 = vst [vmem:[#allocation19 + $0x70] sm:$0xff] %v3239_v61  ;;  %v3240_v25 = vmax.f32 %v3206_v23, %v3224_v33  ;;  %4584 = vmatprep.subr.bf16.mxu1 %v6569_v13  ;;  %v6635_v23 = vcombine.high %v3839_v60, %v3843_v6  ;;  %v3851_v29 = vld [vmem:[#allocation16 + $0x268] sm:$0xff]  ;;  %v6666_v13 = vcombine.low %v3871_v20, %v3875_v55  ;;  %v3798_v35 = vld [vmem:[#allocation16 + $0xc0] sm:$0xff] }
 0x563   :  { %3253 = vst [vmem:[#allocation19 + $0x60] sm:$0xff] %v3237_v11  ;;  %v3238_v50 = vmax.f32 %v3198_v31, %v3222_v16  ;;  %4710 = vmatpush1.bf16.msra.mxu0 %v6618_v59  ;;  %v6634_v31 = vcombine.low %v3839_v60, %v3843_v6  ;;  %v3855_v33 = vld [vmem:[#allocation16 + $0x288] sm:$0xff]  ;;  %v6642_v16 = vcombine.low %v3847_v62, %v3851_v29  ;;  %v3802_v45 = vld [vmem:[#allocation16 + $0xe0] sm:$0xff] }
 0x564   :  { %3256 = vst [vmem:[#allocation19 + $0x78] sm:$0xff] %v3240_v25  ;;  %v3264_v22 = vpack.c.bf16 %v3240_v25, %v3239_v61  ;;  %4711 = vmatprep.subr.bf16.mxu0 %v6627_v46  ;;  %v6643_v61 = vcombine.high %v3847_v62, %v3851_v29  ;;  %v6585_v34 = vcombine.high %v3790_v9, %v3794_v3  ;;  %v3818_v20 = vld [vmem:[#allocation16 + $0x160] sm:$0xff] }
 0x565   :  { %3254 = vst [vmem:[#allocation19 + $0x68] sm:$0xff] %v3238_v50  ;;  %v3263_v8 = vpack.c.bf16 %v3238_v50, %v3237_v11  ;;  %v3859_v11 = vld [vmem:[#allocation16 + $0x2a8] sm:$0xff]  ;;  %v6584_v6 = vcombine.low %v3790_v9, %v3794_v3  ;;  %v6593_v62 = vcombine.high %v3798_v35, %v3802_v45 }
 0x566   :  { %v6651_v25 = vcombine.high %v3855_v33, %v3859_v11  ;;  %v3863_v50 = vld [vmem:[#allocation16 + $0x2c8] sm:$0xff] }
 0x567   :  { %7173 = vmatprep.mubr.bf16.mxu1 %v3263_v8  ;;  %4712 = vmatpush1.bf16.msra.mxu0 %v6626_v2  ;;  %v6650_v8 = vcombine.low %v3855_v33, %v3859_v11 }
 0x568   :  { %7174 = vmatmul.mubr.bf16.gmra.mrb[140].mxu1 %v3264_v22  ;;  %4713 = vmatprep.subr.bf16.mxu0 %v6635_v23  ;;  %v3867_v22 = vld [vmem:[#allocation16 + $0x2e8] sm:$0xff] }
 0x569   :  { %3613 = vmatprep.mubr.bf16.mxu1 %v7962_v0  ;;  %v6659_v7 = vcombine.high %v3863_v50, %v3867_v22  ;;  %v6658_v32 = vcombine.low %v3863_v50, %v3867_v22 }
 0x56b   :  { %4714 = vmatpush1.bf16.msra.mxu0 %v6634_v31  ;;  %v3810_v31 = vld [vmem:[#allocation16 + $0x120] sm:$0xff] }
 0x56c   :  { %4715 = vmatprep.subr.bf16.mxu0 %v6643_v61 }
 0x56f   :  { %4716 = vmatpush1.bf16.msra.mxu0 %v6642_v16  ;;  %v6592_v16 = vcombine.low %v3798_v35, %v3802_v45 }
 0x570   :  { %4717 = vmatprep.subr.bf16.mxu0 %v6651_v25 }
 0x573   :  { %4718 = vmatpush1.bf16.msra.mxu0 %v6650_v8 }
 0x574   :  { %4719 = vmatprep.subr.bf16.mxu0 %v6659_v7  ;;  %v3814_v7 = vld [vmem:[#allocation16 + $0x140] sm:$0xff] }
 0x577   :  { %4720 = vmatpush1.bf16.msra.mxu0 %v6658_v32 }
 0x578   :  { %4721 = vmatprep.subr.bf16.mxu0 %v6667_v52 }
 0x57b   :  { %4722 = vmatpush1.bf16.msra.mxu0 %v6666_v13 }
 0x60b   :  { %v7163_v12 = vpop.f32.mrb[128].mxu1 }
 0x60c   :  { %v3379_v1 = vadd.f32 %v7163_v12, %v8744_v15  ;;  %v3370_v38 = vpop.f32.mrb[129].mxu1 }
 0x60d   :  { %v3371_v24 = vadd.f32 %v8744_v15, %v3370_v38  ;;  %v7164_v30 = vpop.f32.mrb[130].mxu1  ;;  %v3822_v38 = vld [vmem:[#allocation16 + $0x180] sm:$0xff] }
 0x60e   :  { %v3435_v17 = vmul.f32 0.01, %v3379_v1  ;;  %v3382_v40 = vadd.f32 %v7164_v30, %v8744_v15  ;;  %v3373_v19 = vpop.f32.mrb[131].mxu1  ;;  %v6608_v30 = vcombine.low %v3814_v7, %v3818_v20 }
 0x60f   :  { %v3433_v39 = vmul.f32 0.01, %v3371_v24  ;;  %v3374_v27 = vadd.f32 %v8744_v15, %v3373_v19  ;;  %v3834_v19 = vld [vmem:[#allocation16 + $0x1e0] sm:$0xff] }
 0x610   :  { %v3436_v21 = vmul.f32 0.01, %v3382_v40  ;;  %v3451_v57 = vmax.f32 %v3379_v1, %v3435_v17  ;;  %v6609_v1 = vcombine.high %v3814_v7, %v3818_v20 }
 0x611   :  { %v3434_v10 = vmul.f32 0.01, %v3374_v27  ;;  %v3449_v28 = vmax.f32 %v3371_v24, %v3433_v39  ;;  %v3826_v24 = vld [vmem:[#allocation16 + $0x1a0] sm:$0xff] }
 0x612   :  { %v3452_v14 = vmax.f32 %v3382_v40, %v3436_v21  ;;  %v6617_v17 = vcombine.high %v3822_v38, %v3826_v24  ;;  %v3830_v40 = vld [vmem:[#allocation16 + $0x1c0] sm:$0xff] }
 0x613   :  { %v3450_v43 = vmax.f32 %v3374_v27, %v3434_v10  ;;  %v6616_v10 = vcombine.low %v3822_v38, %v3826_v24  ;;  %v6625_v41 = vcombine.high %v3830_v40, %v3834_v19 }
 0x614   :  { %v3466_v5 = vpack.c.bf16 %v3452_v14, %v3451_v57 }
 0x615   :  { %v3465_v49 = vpack.c.bf16 %v3450_v43, %v3449_v28 }
 0x617   :  { %3614 = vmatmul.mubr.bf16.vlgmr.msra.gmra.mrb[144].mxu1 %v3465_v49  ;;  %v3842_v49 = vld [vmem:[#allocation16 + $0x220] sm:$0xff] }
 0x618   :  { %3623 = vmatprep.mubr.bf16.mxu1 %v7962_v0  ;;  %4585 = vmatpush1.bf16.msra.mxu1 %v6568_v51  ;;  %v3806_v51 = vld [vmem:[#allocation16 + $0x100] sm:$0xff] }
 0x619   :  { %4586 = vmatprep.subr.bf16.mxu1 %v6577_v4  ;;  %v6601_v50 = vcombine.high %v3806_v51, %v3810_v31  ;;  %v6600_v13 = vcombine.low %v3806_v51, %v3810_v31  ;;  %v3858_v51 = vld [vmem:[#allocation16 + $0x2a0] sm:$0xff] }
 0x61b   :  { %v7167_v59 = vpop.f32.mrb[132].mxu1 }
 0x61c   :  { %v3395_v46 = vadd.f32 %v7167_v59, %v8744_v15  ;;  %v3386_v60 = vpop.f32.mrb[133].mxu1  ;;  %4587 = vmatpush1.bf16.msra.mxu1 %v6576_v42  ;;  %v6624_v42 = vcombine.low %v3830_v40, %v3834_v19 }
 0x61d   :  { %v3387_v2 = vadd.f32 %v8744_v15, %v3386_v60  ;;  %v7168_v23 = vpop.f32.mrb[134].mxu1  ;;  %4588 = vmatprep.subr.bf16.mxu1 %v6585_v34  ;;  %v3850_v60 = vld [vmem:[#allocation16 + $0x260] sm:$0xff] }
 0x61e   :  { %v3439_v29 = vmul.f32 0.01, %v3395_v46  ;;  %v3398_v36 = vadd.f32 %v7168_v23, %v8744_v15  ;;  %v3389_v53 = vpop.f32.mrb[135].mxu1 }
 0x61f   :  { %v3437_v61 = vmul.f32 0.01, %v3387_v2  ;;  %v3390_v33 = vadd.f32 %v8744_v15, %v3389_v53  ;;  %3624 = vmatmul.mubr.bf16.gmra.mrb[148].mxu1 %v3466_v5  ;;  %v3838_v5 = vld [vmem:[#allocation16 + $0x200] sm:$0xff] }
 0x620   :  { %v3440_v11 = vmul.f32 0.01, %v3398_v36  ;;  %3633 = vmatprep.mubr.bf16.mxu1 %v7962_v0  ;;  %4589 = vmatpush1.bf16.msra.mxu1 %v6584_v6  ;;  %v3455_v22 = vmax.f32 %v3395_v46, %v3439_v29  ;;  %v6633_v35 = vcombine.high %v3838_v5, %v3842_v49  ;;  %v3846_v46 = vld [vmem:[#allocation16 + $0x240] sm:$0xff] }
 0x621   :  { %v3438_v25 = vmul.f32 0.01, %v3390_v33  ;;  %4590 = vmatprep.subr.bf16.mxu1 %v6593_v62  ;;  %v3453_v55 = vmax.f32 %v3387_v2, %v3437_v61  ;;  %v6632_v62 = vcombine.low %v3838_v5, %v3842_v49  ;;  %v3854_v53 = vld [vmem:[#allocation16 + $0x280] sm:$0xff]  ;;  %v6640_v31 = vcombine.low %v3846_v46, %v3850_v60 }
 0x622   :  { %v3456_v8 = vmax.f32 %v3398_v36, %v3440_v11  ;;  %v6641_v36 = vcombine.high %v3846_v46, %v3850_v60  ;;  %v6649_v61 = vcombine.high %v3854_v53, %v3858_v51  ;;  %v3866_v11 = vld [vmem:[#allocation16 + $0x2e0] sm:$0xff] }
 0x623   :  { %v3454_v32 = vmax.f32 %v3390_v33, %v3438_v25  ;;  %v3862_v33 = vld [vmem:[#allocation16 + $0x2c0] sm:$0xff] }
 0x624   :  { %v3468_v52 = vpack.c.bf16 %v3456_v8, %v3455_v22  ;;  %4591 = vmatpush1.bf16.msra.mxu1 %v6592_v16  ;;  %v6648_v22 = vcombine.low %v3854_v53, %v3858_v51  ;;  %v6657_v20 = vcombine.high %v3862_v33, %v3866_v11  ;;  %v3894_v46 = vld [vmem:[#allocation16 + $0x3c0] sm:$0xff]  ;;  %v3776_v53 = vld [vmem:[#allocation16 + $0x10] sm:$0xff] }
 0x625   :  { %v3467_v12 = vpack.c.bf16 %v3454_v32, %v3453_v55  ;;  %4592 = vmatprep.subr.bf16.mxu1 %v6601_v50  ;;  %v3898_v60 = vld [vmem:[#allocation16 + $0x3e0] sm:$0xff]  ;;  %v3780_v51 = vld [vmem:[#allocation16 + $0x30] sm:$0xff] }
 0x627   :  { %3634 = vmatmul.mubr.bf16.gmra.mrb[152].mxu1 %v3467_v12  ;;  %v3874_v12 = vld [vmem:[#allocation16 + $0x320] sm:$0xff] }
 0x628   :  { %3643 = vmatprep.mubr.bf16.mxu1 %v7962_v0  ;;  %4593 = vmatpush1.bf16.msra.mxu1 %v6600_v13  ;;  %v3870_v13 = vld [vmem:[#allocation16 + $0x300] sm:$0xff] }
 0x629   :  { %4594 = vmatprep.subr.bf16.mxu1 %v6609_v1  ;;  %v6665_v40 = vcombine.high %v3870_v13, %v3874_v12 }
 0x62b   :  { %v7171_v39 = vpop.f32.mrb[136].mxu1 }
 0x62c   :  { %v3411_v27 = vadd.f32 %v7171_v39, %v8744_v15  ;;  %v3402_v21 = vpop.f32.mrb[137].mxu1  ;;  %4595 = vmatpush1.bf16.msra.mxu1 %v6608_v30  ;;  %v6656_v30 = vcombine.low %v3862_v33, %v3866_v11  ;;  %v3781_v33 = vld [vmem:[#allocation16 + $0x38] sm:$0xff]  ;;  %v6572_v11 = vcombine.low %v3776_v53, %v3780_v51 }
 0x62d   :  { %v3403_v57 = vadd.f32 %v8744_v15, %v3402_v21  ;;  %v7172_v14 = vpop.f32.mrb[138].mxu1  ;;  %4596 = vmatprep.subr.bf16.mxu1 %v6617_v17 }
 0x62e   :  { %v3443_v48 = vmul.f32 0.01, %v3411_v27  ;;  %v3414_v28 = vadd.f32 %v7172_v14, %v8744_v15  ;;  %v3405_v43 = vpop.f32.mrb[139].mxu1 }
 0x62f   :  { %v3441_v4 = vmul.f32 0.01, %v3403_v57  ;;  %v3406_v9 = vadd.f32 %v8744_v15, %v3405_v43  ;;  %3644 = vmatmul.mubr.bf16.gmra.mrb[156].mxu1 %v3468_v52  ;;  %v3883_v43 = vld [vmem:[#allocation16 + $0x368] sm:$0xff] }
 0x630   :  { %v3444_v3 = vmul.f32 0.01, %v3414_v28  ;;  %3653 = vmatprep.mubr.bf16.mxu1 %v7962_v0  ;;  %4597 = vmatpush1.bf16.msra.mxu1 %v6616_v10  ;;  %v3459_v45 = vmax.f32 %v3411_v27, %v3443_v48  ;;  %v3879_v48 = vld [vmem:[#allocation16 + $0x348] sm:$0xff] }
 0x631   :  { %v3442_v34 = vmul.f32 0.01, %v3406_v9  ;;  %4598 = vmatprep.subr.bf16.mxu1 %v6625_v41  ;;  %v3457_v6 = vmax.f32 %v3403_v57, %v3441_v4  ;;  %v6664_v57 = vcombine.low %v3870_v13, %v3874_v12  ;;  %v3882_v41 = vld [vmem:[#allocation16 + $0x360] sm:$0xff]  ;;  %v6674_v49 = vcombine.low %v3879_v48, %v3883_v43 }
 0x632   :  { %v3460_v59 = vmax.f32 %v3414_v28, %v3444_v3  ;;  %v6675_v4 = vcombine.high %v3879_v48, %v3883_v43  ;;  %v3890_v3 = vld [vmem:[#allocation16 + $0x3a0] sm:$0xff] }
 0x633   :  { %v3458_v2 = vmax.f32 %v3406_v9, %v3442_v34  ;;  %v3886_v9 = vld [vmem:[#allocation16 + $0x380] sm:$0xff] }
 0x634   :  { %v3470_v23 = vpack.c.bf16 %v3460_v59, %v3459_v45  ;;  %4599 = vmatpush1.bf16.msra.mxu1 %v6624_v42  ;;  %4723 = vmatprep.subr.bf16.mxu0 %v6675_v4  ;;  %v3887_v42 = vld [vmem:[#allocation16 + $0x388] sm:$0xff]  ;;  %v6681_v34 = vcombine.high %v3886_v9, %v3890_v3 }
 0x635   :  { %v3469_v29 = vpack.c.bf16 %v3458_v2, %v3457_v6  ;;  %4600 = vmatprep.subr.bf16.mxu1 %v6633_v35  ;;  %4724 = vmatpush1.bf16.msra.mxu0 %v6674_v49  ;;  %v3891_v35 = vld [vmem:[#allocation16 + $0x3a8] sm:$0xff]  ;;  %v6689_v2 = vcombine.high %v3894_v46, %v3898_v60 }
 0x636   :  { %v6682_v45 = vcombine.low %v3887_v42, %v3891_v35  ;;  %v6683_v59 = vcombine.high %v3887_v42, %v3891_v35  ;;  %v3895_v6 = vld [vmem:[#allocation16 + $0x3c8] sm:$0xff]  ;;  %v3792_v35 = vld [vmem:[#allocation16 + $0x90] sm:$0xff] }
 0x637   :  { %3654 = vmatmul.mubr.bf16.gmra.mrb[160].mxu1 %v3469_v29 }
 0x638   :  { %3663 = vmatprep.mubr.bf16.mxu1 %v7962_v0  ;;  %4601 = vmatpush1.bf16.msra.mxu1 %v6632_v62  ;;  %v6688_v62 = vcombine.low %v3894_v46, %v3898_v60  ;;  %v3793_v46 = vld [vmem:[#allocation16 + $0x98] sm:$0xff] }
 0x639   :  { %4602 = vmatprep.subr.bf16.mxu1 %v6641_v36  ;;  %4725 = vmatprep.subr.bf16.mxu0 %v6683_v59  ;;  %v3797_v60 = vld [vmem:[#allocation16 + $0xb8] sm:$0xff] }
 0x63a   :  { %4726 = vmatpush1.bf16.msra.mxu0 %v6682_v45 }
 0x63b   :  { %v7175_v16 = vpop.f32.mrb[140].mxu1 }
 0x63c   :  { %v3427_v25 = vadd.f32 %v7175_v16, %v8744_v15  ;;  %v3418_v50 = vpop.f32.mrb[141].mxu1  ;;  %4603 = vmatpush1.bf16.msra.mxu1 %v6640_v31  ;;  %v3777_v31 = vld [vmem:[#allocation16 + $0x18] sm:$0xff] }
 0x63d   :  { %v3419_v8 = vadd.f32 %v8744_v15, %v3418_v50  ;;  %v7176_v7 = vpop.f32.mrb[142].mxu1  ;;  %4604 = vmatprep.subr.bf16.mxu1 %v6649_v61  ;;  %v6573_v61 = vcombine.high %v3776_v53, %v3780_v51  ;;  %v6574_v16 = vcombine.low %v3777_v31, %v3781_v33  ;;  %v3489_v50 = vld [vmem:[%s9191_s12] sm:$0x3]  ;;  %v6591_v51 = vcombine.high %v3793_v46, %v3797_v60 }
 0x63e   :  { %v3447_v55 = vmul.f32 0.01, %v3427_v25  ;;  %v3430_v32 = vadd.f32 %v7176_v7, %v8744_v15  ;;  %v3421_v52 = vpop.f32.mrb[143].mxu1 }
 0x63f   :  { %v3445_v1 = vmul.f32 0.01, %v3419_v8  ;;  %v3422_v38 = vadd.f32 %v8744_v15, %v3421_v52  ;;  %3664 = vmatmul.mubr.bf16.gmra.mrb[164].mxu1 %v3470_v23  ;;  %v3878_v15 = vld [vmem:[#allocation16 + $0x340] sm:$0xff]  ;;  %v3899_v23 = vld [vmem:[#allocation16 + $0x3e8] sm:$0xff] }
 0x640   :  { %v3448_v24 = vmul.f32 0.01, %v3430_v32  ;;  %3673 = vmatprep.mubr.bf16.mxu1 %v7962_v0  ;;  %4605 = vmatpush1.bf16.msra.mxu1 %v6648_v22  ;;  %v3463_v19 = vmax.f32 %v3427_v25, %v3447_v55  ;;  %v6673_v28 = vcombine.high %v3878_v15, %v3882_v41  ;;  %v6672_v5 = vcombine.low %v3878_v15, %v3882_v41  ;;  %v3789_v15 = vld [vmem:[#allocation16 + $0x78] sm:$0xff] }
 0x641   :  { %v3446_v17 = vmul.f32 0.01, %v3422_v38  ;;  %4606 = vmatprep.subr.bf16.mxu1 %v6657_v20  ;;  %v3461_v27 = vmax.f32 %v3419_v8, %v3445_v1  ;;  %v6690_v29 = vcombine.low %v3895_v6, %v3899_v23  ;;  %v6691_v36 = vcombine.high %v3895_v6, %v3899_v23 }
 0x642   :  { %v3464_v39 = vmax.f32 %v3430_v32, %v3448_v24  ;;  %v6575_v25 = vcombine.high %v3777_v31, %v3781_v33  ;;  %v8776_v22 = vrot.slane %v3489_v50, %v8306_v26  ;;  %v8779_v8 = vrot.slane %v3489_v50, %v8311_v58  ;;  %v3800_v31 = vld [vmem:[#allocation16 + $0xd0] sm:$0xff] }
 0x643   :  { %v3462_v21 = vmax.f32 %v3422_v38, %v3446_v17  ;;  %4727 = vmatprep.subr.bf16.mxu0 %v6691_v36  ;;  %v3804_v50 = vld [vmem:[#allocation16 + $0xf0] sm:$0xff] }
 0x644   :  { %v3472_v10 = vpack.c.bf16 %v3464_v39, %v3463_v19  ;;  %4607 = vmatpush1.bf16.msra.mxu1 %v6656_v30  ;;  %4728 = vmatpush1.bf16.msra.mxu0 %v6690_v29  ;;  %v3784_v39 = vld [vmem:[#allocation16 + $0x50] sm:$0xff] }
 0x645   :  { %v3471_v14 = vpack.c.bf16 %v3462_v21, %v3461_v27  ;;  %4608 = vmatprep.subr.bf16.mxu1 %v6665_v40  ;;  %4923 = vmatprep.subr.bf16.mxu0 %v6575_v25 }
 0x647   :  { %3674 = vmatmul.mubr.bf16.gmra.mrb[168].mxu1 %v3471_v14  ;;  %v3785_v14 = vld [vmem:[#allocation16 + $0x58] sm:$0xff] }
 0x648   :  { %3683 = vmatprep.mubr.bf16.mxu1 %v7962_v0  ;;  %4609 = vmatpush1.bf16.msra.mxu1 %v6664_v57  ;;  %v6680_v0 = vcombine.low %v3886_v9, %v3890_v3  ;;  %v3788_v57 = vld [vmem:[#allocation16 + $0x70] sm:$0xff] }
 0x649   :  { %4610 = vmatprep.subr.bf16.mxu1 %v6673_v28  ;;  %v6581_v42 = vcombine.high %v3784_v39, %v3788_v57  ;;  %v6580_v23 = vcombine.low %v3784_v39, %v3788_v57  ;;  %v3812_v39 = vld [vmem:[#allocation16 + $0x130] sm:$0xff]  ;;  %v3813_v57 = vld [vmem:[#allocation16 + $0x138] sm:$0xff] }
 0x64c   :  { %4611 = vmatpush1.bf16.msra.mxu1 %v6672_v5 }
 0x64d   :  { %4612 = vmatprep.subr.bf16.mxu1 %v6681_v34  ;;  %v6583_v34 = vcombine.high %v3785_v14, %v3789_v15 }
 0x64f   :  { %3684 = vmatmul.mubr.bf16.gmra.mrb[172].mxu1 %v3472_v10 }
 0x650   :  { %4613 = vmatpush1.bf16.msra.mxu1 %v6680_v0  ;;  %v3796_v0 = vld [vmem:[#allocation16 + $0xb0] sm:$0xff] }
 0x651   :  { %4614 = vmatprep.subr.bf16.mxu1 %v6689_v2  ;;  %v6589_v29 = vcombine.high %v3792_v35, %v3796_v0 }
 0x654   :  { %4615 = vmatpush1.bf16.msra.mxu1 %v6688_v62  ;;  %v6582_v62 = vcombine.low %v3785_v14, %v3789_v15 }
 0x655   :  { %4810 = vmatprep.subr.bf16.mxu1 %v6573_v61 }
 0x6ea   :  { %v3615_v7 = vpop.f32.mrb[144].mxu1 }
 0x6eb   :  { %v3616_v20 = vadd.f32 %v3615_v7, %v8776_v22  ;;  %v3617_v55 = vpop.f32.mrb[145].mxu1  ;;  %v3801_v7 = vld [vmem:[#allocation16 + $0xd8] sm:$0xff] }
 0x6ec   :  { %v3618_v32 = vadd.f32 %v3617_v55, %v8779_v8  ;;  %v3619_v52 = vpop.f32.mrb[146].mxu1 }
 0x6ed   :  { %v3694_v13 = vmul.f32 0.01, %v3616_v20  ;;  %v3620_v12 = vadd.f32 %v3619_v52, %v8776_v22  ;;  %v3621_v1 = vpop.f32.mrb[147].mxu1 }
 0x6ee   :  { %v3695_v38 = vmul.f32 0.01, %v3618_v32  ;;  %v3622_v24 = vadd.f32 %v3621_v1, %v8779_v8  ;;  %v6590_v1 = vcombine.low %v3793_v46, %v3797_v60 }
 0x6ef   :  { %v3696_v30 = vmul.f32 0.01, %v3620_v12  ;;  %v3726_v40 = vmax.f32 %v3616_v20, %v3694_v13  ;;  %v3805_v20 = vld [vmem:[#allocation16 + $0xf8] sm:$0xff] }
 0x6f0   :  { %v3697_v17 = vmul.f32 0.01, %v3622_v24  ;;  %v3727_v27 = vmax.f32 %v3618_v32, %v3695_v38  ;;  %v6588_v32 = vcombine.low %v3792_v35, %v3796_v0  ;;  %v3820_v0 = vld [vmem:[#allocation16 + $0x170] sm:$0xff] }
 0x6f1   :  { %v3728_v19 = vmax.f32 %v3620_v12, %v3696_v30 }
 0x6f2   :  { %v3729_v21 = vmax.f32 %v3622_v24, %v3697_v17  ;;  %v3625_v10 = vpop.f32.mrb[148].mxu1  ;;  %v6597_v17 = vcombine.high %v3800_v31, %v3804_v50 }
 0x6f3   :  { %v8785_v41 = vpack.c.bf16 %v3728_v19, %v3726_v40  ;;  %v3626_v48 = vadd.f32 %v3625_v10, %v8776_v22  ;;  %v3627_v28 = vpop.f32.mrb[149].mxu1  ;;  %v6599_v40 = vcombine.high %v3801_v7, %v3805_v20  ;;  %v3808_v19 = vld [vmem:[#allocation16 + $0x110] sm:$0xff]  ;;  %v3809_v10 = vld [vmem:[#allocation16 + $0x118] sm:$0xff] }
 0x6f4   :  { %v8788_v43 = vpack.c.bf16 %v3729_v21, %v3727_v27  ;;  %v3628_v5 = vadd.f32 %v3627_v28, %v8779_v8  ;;  %v3629_v49 = vpop.f32.mrb[150].mxu1  ;;  %v6598_v28 = vcombine.low %v3801_v7, %v3805_v20 }
 0x6f5   :  { %v3698_v4 = vmul.f32 0.01, %v3626_v48  ;;  %v3630_v9 = vadd.f32 %v3629_v49, %v8776_v22  ;;  %v3631_v3 = vpop.f32.mrb[151].mxu1 }
 0x6f6   :  { %v3699_v45 = vmul.f32 0.01, %v3628_v5  ;;  %v3632_v59 = vadd.f32 %v3631_v3, %v8779_v8  ;;  %4616 = vmatprep.mubr.bf16.mxu1 %v8788_v43  ;;  %4729 = vmatprep.mubr.bf16.mxu0 %v8788_v43  ;;  %v3816_v3 = vld [vmem:[#allocation16 + $0x150] sm:$0xff] }
 0x6f7   :  { %v3700_v6 = vmul.f32 0.01, %v3630_v9  ;;  %4617 = vmatmul.mubr.bf16.vlgmr.msra.gmra.mrb[176].mxu1 %v8785_v41  ;;  %4730 = vmatmul.mubr.bf16.vlgmr.msra.gmra.mrb[80].mxu0 %v8785_v41  ;;  %v3730_v36 = vmax.f32 %v3626_v48, %v3698_v4  ;;  %v6596_v48 = vcombine.low %v3800_v31, %v3804_v50  ;;  %v3828_v50 = vld [vmem:[#allocation16 + $0x1b0] sm:$0xff] }
 0x6f8   :  { %v3701_v2 = vmul.f32 0.01, %v3632_v59  ;;  %4811 = vmatpush1.bf16.msra.mxu1 %v6572_v11  ;;  %4924 = vmatpush1.bf16.msra.mxu0 %v6574_v16  ;;  %v3731_v61 = vmax.f32 %v3628_v5, %v3699_v45  ;;  %v6605_v5 = vcombine.high %v3808_v19, %v3812_v39  ;;  %v3817_v45 = vld [vmem:[#allocation16 + $0x158] sm:$0xff] }
 0x6f9   :  { %v3732_v53 = vmax.f32 %v3630_v9, %v3700_v6  ;;  %4812 = vmatprep.subr.bf16.mxu1 %v6581_v42  ;;  %4925 = vmatprep.subr.bf16.mxu0 %v6583_v34  ;;  %v6607_v9 = vcombine.high %v3809_v10, %v3813_v57 }
 0x6fa   :  { %v3733_v33 = vmax.f32 %v3632_v59, %v3701_v2  ;;  %v3635_v25 = vpop.f32.mrb[152].mxu1  ;;  %v3821_v59 = vld [vmem:[#allocation16 + $0x178] sm:$0xff]  ;;  %v6604_v2 = vcombine.low %v3808_v19, %v3812_v39 }
 0x6fb   :  { %v8797_v55 = vpack.c.bf16 %v3732_v53, %v3730_v36  ;;  %v3636_v11 = vadd.f32 %v3635_v25, %v8776_v22  ;;  %v3637_v16 = vpop.f32.mrb[153].mxu1  ;;  %v6606_v36 = vcombine.low %v3809_v10, %v3813_v57  ;;  %v3824_v25 = vld [vmem:[#allocation16 + $0x190] sm:$0xff]  ;;  %v3833_v10 = vld [vmem:[#allocation16 + $0x1d8] sm:$0xff] }
 0x6fc   :  { %v8800_v52 = vpack.c.bf16 %v3733_v33, %v3731_v61  ;;  %v3638_v13 = vadd.f32 %v3637_v16, %v8779_v8  ;;  %4813 = vmatpush1.bf16.msra.mxu1 %v6580_v23  ;;  %v3639_v12 = vpop.f32.mrb[154].mxu1  ;;  %4926 = vmatpush1.bf16.msra.mxu0 %v6582_v62  ;;  %v6613_v61 = vcombine.high %v3816_v3, %v3820_v0  ;;  %v3829_v16 = vld [vmem:[#allocation16 + $0x1b8] sm:$0xff] }
 0x6fd   :  { %v3702_v38 = vmul.f32 0.01, %v3636_v11  ;;  %v3640_v24 = vadd.f32 %v3639_v12, %v8776_v22  ;;  %v3641_v30 = vpop.f32.mrb[155].mxu1  ;;  %4814 = vmatprep.subr.bf16.mxu1 %v6589_v29  ;;  %4927 = vmatprep.subr.bf16.mxu0 %v6591_v51  ;;  %v6615_v33 = vcombine.high %v3817_v45, %v3821_v59  ;;  %v6612_v12 = vcombine.low %v3816_v3, %v3820_v0  ;;  %v3837_v57 = vld [vmem:[#allocation16 + $0x1f8] sm:$0xff] }
 0x6fe   :  { %v3703_v27 = vmul.f32 0.01, %v3638_v13  ;;  %v3642_v21 = vadd.f32 %v3641_v30, %v8779_v8  ;;  %4626 = vmatprep.mubr.bf16.mxu1 %v8800_v52  ;;  %4739 = vmatprep.mubr.bf16.mxu0 %v8800_v52  ;;  %v6631_v0 = vcombine.high %v3833_v10, %v3837_v57 }
 0x6ff   :  { %v3704_v14 = vmul.f32 0.01, %v3640_v24  ;;  %4627 = vmatmul.mubr.bf16.gmra.mrb[180].mxu1 %v8797_v55  ;;  %4740 = vmatmul.mubr.bf16.gmra.mrb[84].mxu0 %v8797_v55  ;;  %v3734_v49 = vmax.f32 %v3636_v11, %v3702_v38  ;;  %v3825_v11 = vld [vmem:[#allocation16 + $0x198] sm:$0xff]  ;;  %v6621_v38 = vcombine.high %v3824_v25, %v3828_v50 }
 0x700   :  { %v3705_v15 = vmul.f32 0.01, %v3642_v21  ;;  %4815 = vmatpush1.bf16.msra.mxu1 %v6588_v32  ;;  %4928 = vmatpush1.bf16.msra.mxu0 %v6590_v1  ;;  %v3735_v42 = vmax.f32 %v3638_v13, %v3703_v27  ;;  %v6614_v1 = vcombine.low %v3817_v45, %v3821_v59  ;;  %v3840_v45 = vld [vmem:[#allocation16 + $0x210] sm:$0xff] }
 0x701   :  { %v3736_v4 = vmax.f32 %v3640_v24, %v3704_v14  ;;  %4816 = vmatprep.subr.bf16.mxu1 %v6597_v17  ;;  %4929 = vmatprep.subr.bf16.mxu0 %v6599_v40  ;;  %v6623_v17 = vcombine.high %v3825_v11, %v3829_v16  ;;  %v3832_v40 = vld [vmem:[#allocation16 + $0x1d0] sm:$0xff] }
 0x702   :  { %v3737_v34 = vmax.f32 %v3642_v21, %v3705_v15  ;;  %v3645_v35 = vpop.f32.mrb[156].mxu1  ;;  %v3836_v21 = vld [vmem:[#allocation16 + $0x1f0] sm:$0xff] }
 0x703   :  { %v8809_v46 = vpack.c.bf16 %v3736_v4, %v3734_v49  ;;  %v3646_v60 = vadd.f32 %v3645_v35, %v8776_v22  ;;  %v3647_v6 = vpop.f32.mrb[157].mxu1  ;;  %v6629_v35 = vcombine.high %v3832_v40, %v3836_v21  ;;  %v3844_v59 = vld [vmem:[#allocation16 + $0x230] sm:$0xff] }
 0x704   :  { %v8812_v23 = vpack.c.bf16 %v3737_v34, %v3735_v42  ;;  %v3648_v62 = vadd.f32 %v3647_v6, %v8779_v8  ;;  %4817 = vmatpush1.bf16.msra.mxu1 %v6596_v48  ;;  %v3649_v29 = vpop.f32.mrb[158].mxu1  ;;  %4930 = vmatpush1.bf16.msra.mxu0 %v6598_v28  ;;  %v6620_v28 = vcombine.low %v3824_v25, %v3828_v50  ;;  %v3848_v50 = vld [vmem:[#allocation16 + $0x250] sm:$0xff] }
 0x705   :  { %v3706_v53 = vmul.f32 0.01, %v3646_v60  ;;  %v3650_v51 = vadd.f32 %v3649_v29, %v8776_v22  ;;  %v3651_v31 = vpop.f32.mrb[159].mxu1  ;;  %4818 = vmatprep.subr.bf16.mxu1 %v6605_v5  ;;  %4931 = vmatprep.subr.bf16.mxu0 %v6607_v9  ;;  %v6622_v9 = vcombine.low %v3825_v11, %v3829_v16  ;;  %v3852_v16 = vld [vmem:[#allocation16 + $0x270] sm:$0xff] }
 0x706   :  { %v3707_v7 = vmul.f32 0.01, %v3648_v62  ;;  %v3652_v20 = vadd.f32 %v3651_v31, %v8779_v8  ;;  %4636 = vmatprep.mubr.bf16.mxu1 %v8812_v23  ;;  %4749 = vmatprep.mubr.bf16.mxu0 %v8812_v23  ;;  %v6637_v31 = vcombine.high %v3840_v45, %v3844_v59 }
 0x707   :  { %v3708_v32 = vmul.f32 0.01, %v3650_v51  ;;  %4637 = vmatmul.mubr.bf16.gmra.mrb[184].mxu1 %v8809_v46  ;;  %4750 = vmatmul.mubr.bf16.gmra.mrb[88].mxu0 %v8809_v46  ;;  %v3738_v24 = vmax.f32 %v3646_v60, %v3706_v53  ;;  %v6628_v53 = vcombine.low %v3832_v40, %v3836_v21 }
 0x708   :  { %v3709_v13 = vmul.f32 0.01, %v3652_v20  ;;  %4819 = vmatpush1.bf16.msra.mxu1 %v6604_v2  ;;  %4932 = vmatpush1.bf16.msra.mxu0 %v6606_v36  ;;  %v3739_v19 = vmax.f32 %v3648_v62, %v3707_v7  ;;  %v3841_v2 = vld [vmem:[#allocation16 + $0x218] sm:$0xff] }
 0x709   :  { %v3740_v30 = vmax.f32 %v3650_v51, %v3708_v32  ;;  %4820 = vmatprep.subr.bf16.mxu1 %v6613_v61  ;;  %4933 = vmatprep.subr.bf16.mxu0 %v6615_v33  ;;  %v3845_v62 = vld [vmem:[#allocation16 + $0x238] sm:$0xff]  ;;  %v6630_v51 = vcombine.low %v3833_v10, %v3837_v57  ;;  %v6645_v10 = vcombine.high %v3848_v50, %v3852_v16 }
 0x70a   :  { %v3741_v39 = vmax.f32 %v3652_v20, %v3709_v13  ;;  %v3655_v27 = vpop.f32.mrb[160].mxu1  ;;  %v6639_v25 = vcombine.high %v3841_v2, %v3845_v62  ;;  %v3849_v32 = vld [vmem:[#allocation16 + $0x258] sm:$0xff] }
 0x70b   :  { %v8821_v14 = vpack.c.bf16 %v3740_v30, %v3738_v24  ;;  %v3656_v15 = vadd.f32 %v3655_v27, %v8776_v22  ;;  %v3657_v48 = vpop.f32.mrb[161].mxu1  ;;  %v3853_v13 = vld [vmem:[#allocation16 + $0x278] sm:$0xff]  ;;  %v6636_v24 = vcombine.low %v3840_v45, %v3844_v59 }
 0x70c   :  { %v8824_v5 = vpack.c.bf16 %v3741_v39, %v3739_v19  ;;  %v3658_v49 = vadd.f32 %v3657_v48, %v8779_v8  ;;  %4821 = vmatpush1.bf16.msra.mxu1 %v6612_v12  ;;  %v3659_v4 = vpop.f32.mrb[162].mxu1  ;;  %4934 = vmatpush1.bf16.msra.mxu0 %v6614_v1  ;;  %v6638_v19 = vcombine.low %v3841_v2, %v3845_v62  ;;  %v3860_v48 = vld [vmem:[#allocation16 + $0x2b0] sm:$0xff] }
 0x70d   :  { %v3710_v3 = vmul.f32 0.01, %v3656_v15  ;;  %v3660_v42 = vadd.f32 %v3659_v4, %v8776_v22  ;;  %v3661_v34 = vpop.f32.mrb[163].mxu1  ;;  %4822 = vmatprep.subr.bf16.mxu1 %v6621_v38  ;;  %4935 = vmatprep.subr.bf16.mxu0 %v6623_v17  ;;  %v6647_v57 = vcombine.high %v3849_v32, %v3853_v13  ;;  %v3857_v4 = vld [vmem:[#allocation16 + $0x298] sm:$0xff] }
 0x70e   :  { %v3711_v60 = vmul.f32 0.01, %v3658_v49  ;;  %v3662_v6 = vadd.f32 %v3661_v34, %v8779_v8  ;;  %4646 = vmatprep.mubr.bf16.mxu1 %v8824_v5  ;;  %4759 = vmatprep.mubr.bf16.mxu0 %v8824_v5  ;;  %v6644_v34 = vcombine.low %v3848_v50, %v3852_v16 }
 0x70f   :  { %v3712_v29 = vmul.f32 0.01, %v3660_v42  ;;  %4647 = vmatmul.mubr.bf16.gmra.mrb[188].mxu1 %v8821_v14  ;;  %4760 = vmatmul.mubr.bf16.gmra.mrb[92].mxu0 %v8821_v14  ;;  %v3742_v61 = vmax.f32 %v3656_v15, %v3710_v3  ;;  %v3856_v15 = vld [vmem:[#allocation16 + $0x290] sm:$0xff] }
 0x710   :  { %v3713_v36 = vmul.f32 0.01, %v3662_v6  ;;  %4823 = vmatpush1.bf16.msra.mxu1 %v6620_v28  ;;  %4936 = vmatpush1.bf16.msra.mxu0 %v6622_v9  ;;  %v3743_v7 = vmax.f32 %v3658_v49, %v3711_v60  ;;  %v3861_v9 = vld [vmem:[#allocation16 + $0x2b8] sm:$0xff] }
 0x711   :  { %v3744_v33 = vmax.f32 %v3660_v42, %v3712_v29  ;;  %4824 = vmatprep.subr.bf16.mxu1 %v6629_v35  ;;  %4937 = vmatprep.subr.bf16.mxu0 %v6631_v0  ;;  %v6646_v35 = vcombine.low %v3849_v32, %v3853_v13  ;;  %v6653_v0 = vcombine.high %v3856_v15, %v3860_v48 }
 0x712   :  { %v3745_v20 = vmax.f32 %v3662_v6, %v3713_v36  ;;  %v3665_v11 = vpop.f32.mrb[164].mxu1  ;;  %v6655_v60 = vcombine.high %v3857_v4, %v3861_v9  ;;  %v3864_v6 = vld [vmem:[#allocation16 + $0x2d0] sm:$0xff] }
 0x713   :  { %v8833_v12 = vpack.c.bf16 %v3744_v33, %v3742_v61  ;;  %v3666_v1 = vadd.f32 %v3665_v11, %v8776_v22  ;;  %v3667_v38 = vpop.f32.mrb[165].mxu1  ;;  %v3868_v36 = vld [vmem:[#allocation16 + $0x2f0] sm:$0xff]  ;;  %v6654_v11 = vcombine.low %v3857_v4, %v3861_v9 }
 0x714   :  { %v8836_v30 = vpack.c.bf16 %v3745_v20, %v3743_v7  ;;  %v3668_v17 = vadd.f32 %v3667_v38, %v8779_v8  ;;  %4825 = vmatpush1.bf16.msra.mxu1 %v6628_v53  ;;  %v3669_v40 = vpop.f32.mrb[166].mxu1  ;;  %4938 = vmatpush1.bf16.msra.mxu0 %v6630_v51  ;;  %v3865_v53 = vld [vmem:[#allocation16 + $0x2d8] sm:$0xff]  ;;  %v3880_v9 = vld [vmem:[#allocation16 + $0x350] sm:$0xff] }
 0x715   :  { %v3714_v39 = vmul.f32 0.01, %v3666_v1  ;;  %v3670_v27 = vadd.f32 %v3669_v40, %v8776_v22  ;;  %v3671_v21 = vpop.f32.mrb[167].mxu1  ;;  %4826 = vmatprep.subr.bf16.mxu1 %v6637_v31  ;;  %4939 = vmatprep.subr.bf16.mxu0 %v6639_v25  ;;  %v3869_v51 = vld [vmem:[#allocation16 + $0x2f8] sm:$0xff]  ;;  %v6652_v25 = vcombine.low %v3856_v15, %v3860_v48 }
 0x716   :  { %v3715_v28 = vmul.f32 0.01, %v3668_v17  ;;  %v3672_v49 = vadd.f32 %v3671_v21, %v8779_v8  ;;  %4656 = vmatprep.mubr.bf16.mxu1 %v8836_v30  ;;  %4769 = vmatprep.mubr.bf16.mxu0 %v8836_v30  ;;  %v6663_v38 = vcombine.high %v3865_v53, %v3869_v51  ;;  %v6662_v15 = vcombine.low %v3865_v53, %v3869_v51 }
 0x717   :  { %v3716_v3 = vmul.f32 0.01, %v3670_v27  ;;  %4657 = vmatmul.mubr.bf16.gmra.mrb[192].mxu1 %v8833_v12  ;;  %4770 = vmatmul.mubr.bf16.gmra.mrb[96].mxu0 %v8833_v12  ;;  %v3746_v45 = vmax.f32 %v3666_v1, %v3714_v39  ;;  %v6661_v1 = vcombine.high %v3864_v6, %v3868_v36  ;;  %v3873_v39 = vld [vmem:[#allocation16 + $0x318] sm:$0xff] }
 0x718   :  { %v3717_v42 = vmul.f32 0.01, %v3672_v49  ;;  %4827 = vmatpush1.bf16.msra.mxu1 %v6636_v24  ;;  %4940 = vmatpush1.bf16.msra.mxu0 %v6638_v19  ;;  %v3747_v2 = vmax.f32 %v3668_v17, %v3715_v28  ;;  %v3872_v24 = vld [vmem:[#allocation16 + $0x310] sm:$0xff] }
 0x719   :  { %v3748_v59 = vmax.f32 %v3670_v27, %v3716_v3  ;;  %4828 = vmatprep.subr.bf16.mxu1 %v6645_v10  ;;  %4941 = vmatprep.subr.bf16.mxu0 %v6647_v57  ;;  %v3876_v17 = vld [vmem:[#allocation16 + $0x330] sm:$0xff]  ;;  %v3877_v27 = vld [vmem:[#allocation16 + $0x338] sm:$0xff]  ;;  %v6660_v57 = vcombine.low %v3864_v6, %v3868_v36 }
 0x71a   :  { %v3749_v62 = vmax.f32 %v3672_v49, %v3717_v42  ;;  %v3675_v29 = vpop.f32.mrb[168].mxu1  ;;  %v6669_v48 = vcombine.high %v3872_v24, %v3876_v17  ;;  %v6671_v4 = vcombine.high %v3873_v39, %v3877_v27  ;;  %v6668_v6 = vcombine.low %v3872_v24, %v3876_v17 }
 0x71b   :  { %v8845_v31 = vpack.c.bf16 %v3748_v59, %v3746_v45  ;;  %v3676_v61 = vadd.f32 %v3675_v29, %v8776_v22  ;;  %v3677_v33 = vpop.f32.mrb[169].mxu1  ;;  %v3885_v45 = vld [vmem:[#allocation16 + $0x378] sm:$0xff]  ;;  %v6670_v53 = vcombine.low %v3873_v39, %v3877_v27 }
 0x71c   :  { %v8848_v50 = vpack.c.bf16 %v3749_v62, %v3747_v2  ;;  %v3678_v7 = vadd.f32 %v3677_v33, %v8779_v8  ;;  %4829 = vmatpush1.bf16.msra.mxu1 %v6644_v34  ;;  %v3679_v20 = vpop.f32.mrb[170].mxu1  ;;  %4942 = vmatpush1.bf16.msra.mxu0 %v6646_v35  ;;  %v3884_v35 = vld [vmem:[#allocation16 + $0x370] sm:$0xff] }
 0x71d   :  { %v3718_v16 = vmul.f32 0.01, %v3676_v61  ;;  %v3680_v32 = vadd.f32 %v3679_v20, %v8776_v22  ;;  %v3681_v13 = vpop.f32.mrb[171].mxu1  ;;  %4830 = vmatprep.subr.bf16.mxu1 %v6653_v0  ;;  %4943 = vmatprep.subr.bf16.mxu0 %v6655_v60  ;;  %v3881_v0 = vld [vmem:[#allocation16 + $0x358] sm:$0xff]  ;;  %v3888_v20 = vld [vmem:[#allocation16 + $0x390] sm:$0xff]  ;;  %v6676_v24 = vcombine.low %v3880_v9, %v3884_v35 }
 0x71e   :  { %v3719_v40 = vmul.f32 0.01, %v3678_v7  ;;  %v3682_v19 = vadd.f32 %v3681_v13, %v8779_v8  ;;  %4666 = vmatprep.mubr.bf16.mxu1 %v8848_v50  ;;  %4779 = vmatprep.mubr.bf16.mxu0 %v8848_v50  ;;  %v3889_v13 = vld [vmem:[#allocation16 + $0x398] sm:$0xff]  ;;  %v6678_v17 = vcombine.low %v3881_v0, %v3885_v45 }
 0x71f   :  { %v3720_v21 = vmul.f32 0.01, %v3680_v32  ;;  %4667 = vmatmul.mubr.bf16.gmra.mrb[196].mxu1 %v8845_v31  ;;  %4780 = vmatmul.mubr.bf16.gmra.mrb[100].mxu0 %v8845_v31  ;;  %v3750_v28 = vmax.f32 %v3676_v61, %v3718_v16 }
 0x720   :  { %v3721_v10 = vmul.f32 0.01, %v3682_v19  ;;  %4831 = vmatpush1.bf16.msra.mxu1 %v6652_v25  ;;  %4944 = vmatpush1.bf16.msra.mxu0 %v6654_v11  ;;  %v3751_v3 = vmax.f32 %v3678_v7, %v3719_v40  ;;  %v6677_v25 = vcombine.high %v3880_v9, %v3884_v35  ;;  %v6679_v7 = vcombine.high %v3881_v0, %v3885_v45  ;;  %v3892_v11 = vld [vmem:[#allocation16 + $0x3b0] sm:$0xff]  ;;  %v7596_v0 = vld [vmem:[#allocation17 + $0x40] sm:$0xff]  }
 0x721   :  { %v3752_v49 = vmax.f32 %v3680_v32, %v3720_v21  ;;  %4832 = vmatprep.subr.bf16.mxu1 %v6661_v1  ;;  %4945 = vmatprep.subr.bf16.mxu0 %v6663_v38  ;;  %v3893_v1 = vld [vmem:[#allocation16 + $0x3b8] sm:$0xff]  ;;  %v6685_v40 = vcombine.high %v3888_v20, %v3892_v11  ;;  %v7598_v45 = vld [vmem:[#allocation17 + $0xc0] sm:$0xff]  }
 0x722   :  { %v3753_v42 = vmax.f32 %v3682_v19, %v3721_v10  ;;  %v3685_v34 = vpop.f32.mrb[172].mxu1  ;;  %v3896_v10 = vld [vmem:[#allocation16 + $0x3d0] sm:$0xff]  ;;  %v6686_v9 = vcombine.low %v3889_v13, %v3893_v1 }
 0x723   :  { %v8857_v59 = vpack.c.bf16 %v3752_v49, %v3750_v28  ;;  %v3686_v60 = vadd.f32 %v3685_v34, %v8776_v22  ;;  %v3687_v2 = vpop.f32.mrb[173].mxu1  ;;  %v3901_v28 = vld [vmem:[#allocation16 + $0x3f8] sm:$0xff] }
 0x724   :  { %v8860_v62 = vpack.c.bf16 %v3753_v42, %v3751_v3  ;;  %v3688_v29 = vadd.f32 %v3687_v2, %v8779_v8  ;;  %4833 = vmatpush1.bf16.msra.mxu1 %v6660_v57  ;;  %v3689_v36 = vpop.f32.mrb[174].mxu1  ;;  %4946 = vmatpush1.bf16.msra.mxu0 %v6662_v15  ;;  %v3900_v15 = vld [vmem:[#allocation16 + $0x3f0] sm:$0xff]  ;;  %v7599_v2 = vld [vmem:[#allocation17 + $0x80] sm:$0xff]  }
 0x725   :  { %v3722_v51 = vmul.f32 0.01, %v3686_v60  ;;  %v3690_v61 = vadd.f32 %v3689_v36, %v8776_v22  ;;  %v3691_v33 = vpop.f32.mrb[175].mxu1  ;;  %4834 = vmatprep.subr.bf16.mxu1 %v6669_v48  ;;  %4947 = vmatprep.subr.bf16.mxu0 %v6671_v4  ;;  %v3897_v48 = vld [vmem:[#allocation16 + $0x3d8] sm:$0xff]  ;;  %v6684_v4 = vcombine.low %v3888_v20, %v3892_v11  ;;  %v6693_v3 = vcombine.high %v3896_v10, %v3900_v15  ;;  %v7603_v36 = vld [vmem:[#allocation17 + $0x88] sm:$0xff]   ;;  %v7612_v20 = vld [vmem:[#allocation17 + $0x60] sm:$0xff]  }
 0x726   :  { %v3723_v16 = vmul.f32 0.01, %v3688_v29  ;;  %v3692_v32 = vadd.f32 %v3691_v33, %v8779_v8  ;;  %4676 = vmatprep.mubr.bf16.mxu1 %v8860_v62  ;;  %4789 = vmatprep.mubr.bf16.mxu0 %v8860_v62  ;;  %v6687_v8 = vcombine.high %v3889_v13, %v3893_v1  ;;  %v6695_v42 = vcombine.high %v3897_v48, %v3901_v28  ;;  %v7607_v33 = vld [vmem:[#allocation17 + $0x90] sm:$0xff]   ;;  %v7614_v11 = vld [vmem:[#allocation17 + $0xe0] sm:$0xff]   ;;  %v7616_v13 = vld [vmem:[#allocation17 + $0x68] sm:$0xff]  }
 0x727   :  { %v3724_v38 = vmul.f32 0.01, %v3690_v61  ;;  %4677 = vmatmul.mubr.bf16.gmra.mrb[200].mxu1 %v8857_v59  ;;  %4790 = vmatmul.mubr.bf16.gmra.mrb[104].mxu0 %v8857_v59  ;;  %v3754_v19 = vmax.f32 %v3686_v60, %v3722_v51  ;;  %v6692_v34 = vcombine.low %v3896_v10, %v3900_v15  ;;  %v6694_v35 = vcombine.low %v3897_v48, %v3901_v28  ;;  %v7597_v60 = vld [vmem:[#allocation17] sm:$0xff]   ;;  %v7606_v51 = vld [vmem:[#allocation17 + $0xd0] sm:$0xff]   ;;  %v7619_v1 = vld [vmem:[#allocation17 + $0xa8] sm:$0xff]  }
 0x728   :  { %v3725_v22 = vmul.f32 0.01, %v3692_v32  ;;  %4835 = vmatpush1.bf16.msra.mxu1 %v6668_v6  ;;  %4948 = vmatpush1.bf16.msra.mxu0 %v6670_v53  ;;  %v3755_v27 = vmax.f32 %v3688_v29, %v3723_v16  ;;  %v7600_v6 = vld [vmem:[#allocation17 + $0x48] sm:$0xff]   ;;  %v7604_v53 = vld [vmem:[#allocation17 + $0x50] sm:$0xff]   ;;  %v7613_v16 = vld [vmem:[#allocation17 + $0x20] sm:$0xff]  }
 0x729   :  { %v3756_v39 = vmax.f32 %v3690_v61, %v3724_v38  ;;  %4836 = vmatprep.subr.bf16.mxu1 %v6677_v25  ;;  %4949 = vmatprep.subr.bf16.mxu0 %v6679_v7  ;;  %v7602_v29 = vld [vmem:[#allocation17 + $0xc8] sm:$0xff]   ;;  %v7605_v61 = vld [vmem:[#allocation17 + $0x10] sm:$0xff]   ;;  %v7608_v25 = vld [vmem:[#allocation17 + $0x58] sm:$0xff]  }
 0x72a   :  { %v3757_v21 = vmax.f32 %v3692_v32, %v3725_v22  ;;  %v7611_v7 = vld [vmem:[#allocation17 + $0x98] sm:$0xff]   ;;  %v7615_v32 = vld [vmem:[#allocation17 + $0xa0] sm:$0xff]   ;;  %v7620_v38 = vld [vmem:[#allocation17 + $0x70] sm:$0xff]  }
 0x72b   :  { %v8869_v57 = vpack.c.bf16 %v3756_v39, %v3754_v19  ;;  %v7622_v22 = vld [vmem:[#allocation17 + $0xf0] sm:$0xff]   ;;  %v7627_v19 = vld [vmem:[#allocation17 + $0xb8] sm:$0xff]  }
 0x72c   :  { %v8871_v49 = vpack.c.bf16 %v3757_v21, %v3755_v27  ;;  %4837 = vmatpush1.bf16.msra.mxu1 %v6676_v24  ;;  %4950 = vmatpush1.bf16.msra.mxu0 %v6678_v17  ;;  %v7621_v24 = vld [vmem:[#allocation17 + $0x30] sm:$0xff]  }
 0x72d   :  { %4838 = vmatprep.subr.bf16.mxu1 %v6685_v40  ;;  %4951 = vmatprep.subr.bf16.mxu0 %v6687_v8  ;;  %v7623_v17 = vld [vmem:[#allocation17 + $0xb0] sm:$0xff]   ;;  %v7625_v40 = vld [vmem:[#allocation17 + $0x38] sm:$0xff]  }
 0x72e   :  { %4686 = vmatprep.mubr.bf16.mxu1 %v8871_v49  ;;  %4799 = vmatprep.mubr.bf16.mxu0 %v8871_v49 }
 0x72f   :  { %4687 = vmatmul.mubr.bf16.gmra.mrb[204].mxu1 %v8869_v57  ;;  %4800 = vmatmul.mubr.bf16.gmra.mrb[108].mxu0 %v8869_v57 }
 0x730   :  { %4839 = vmatpush1.bf16.msra.mxu1 %v6684_v4  ;;  %4842 = vmatprep.mubr.bf16.mxu1 %v8788_v43 }
 0x731   :  { %4952 = vmatpush1.bf16.msra.mxu0 %v6686_v9  ;;  %4955 = vmatprep.mubr.bf16.mxu0 %v8788_v43  ;;  %v7601_v43 = vld [vmem:[#allocation17 + $0x8] sm:$0xff]  }
 0x732   :  { %4840 = vmatprep.subr.bf16.mxu1 %v6693_v3  ;;  %4953 = vmatprep.subr.bf16.mxu0 %v6695_v42 }
 0x734   :  { %4841 = vmatpush1.bf16.msra.mxu1 %v6692_v34 }
 0x735   :  { %4954 = vmatpush1.bf16.msra.mxu0 %v6694_v35  ;;  %6857 = vmatprep.subr.bf16.mxu1 %v7596_v0 }
 0x736   :  { %6921 = vmatprep.subr.bf16.mxu0 %v7598_v45 }
 0x737   :  { %4843 = vmatmul.mubr.bf16.vlgmr.msra.gmra.mrb[208].mxu1 %v8785_v41 }
 0x738   :  { %4956 = vmatmul.mubr.bf16.vlgmr.msra.gmra.mrb[112].mxu0 %v8785_v41  ;;  %4852 = vmatprep.mubr.bf16.mxu1 %v8800_v52  ;;  %v7610_v41 = vld [vmem:[#allocation17 + $0xd8] sm:$0xff]  }
 0x739   :  { %4965 = vmatprep.mubr.bf16.mxu0 %v8800_v52  ;;  %6858 = vmatpush3.bf16.msra.mxu1 %v7597_v60  ;;  %v7609_v52 = vld [vmem:[#allocation17 + $0x18] sm:$0xff]  }
 0x73a   :  { %6922 = vmatpush3.bf16.msra.mxu0 %v7599_v2  ;;  %6859 = vmatprep.subr.bf16.mxu1 %v7600_v6 }
 0x73b   :  { %6923 = vmatprep.subr.bf16.mxu0 %v7602_v29 }
 0x73d   :  { %6860 = vmatpush3.bf16.msra.mxu1 %v7601_v43 }
 0x73e   :  { %6924 = vmatpush3.bf16.msra.mxu0 %v7603_v36  ;;  %6861 = vmatprep.subr.bf16.mxu1 %v7604_v53 }
 0x73f   :  { %4853 = vmatmul.mubr.bf16.gmra.mrb[212].mxu1 %v8797_v55  ;;  %6925 = vmatprep.subr.bf16.mxu0 %v7606_v51 }
 0x740   :  { %4966 = vmatmul.mubr.bf16.gmra.mrb[116].mxu0 %v8797_v55  ;;  %4862 = vmatprep.mubr.bf16.mxu1 %v8812_v23  ;;  %v7618_v55 = vld [vmem:[#allocation17 + $0xe8] sm:$0xff]  }
 0x741   :  { %4975 = vmatprep.mubr.bf16.mxu0 %v8812_v23  ;;  %6862 = vmatpush3.bf16.msra.mxu1 %v7605_v61  ;;  %v7617_v23 = vld [vmem:[#allocation17 + $0x28] sm:$0xff]  }
 0x742   :  { %6926 = vmatpush3.bf16.msra.mxu0 %v7607_v33  ;;  %6863 = vmatprep.subr.bf16.mxu1 %v7608_v25 }
 0x743   :  { %6927 = vmatprep.subr.bf16.mxu0 %v7610_v41 }
 0x745   :  { %6864 = vmatpush3.bf16.msra.mxu1 %v7609_v52 }
 0x746   :  { %6928 = vmatpush3.bf16.msra.mxu0 %v7611_v7  ;;  %6865 = vmatprep.subr.bf16.mxu1 %v7612_v20 }
 0x747   :  { %4863 = vmatmul.mubr.bf16.gmra.mrb[216].mxu1 %v8809_v46  ;;  %6929 = vmatprep.subr.bf16.mxu0 %v7614_v11 }
 0x748   :  { %4976 = vmatmul.mubr.bf16.gmra.mrb[120].mxu0 %v8809_v46  ;;  %4872 = vmatprep.mubr.bf16.mxu1 %v8824_v5  ;;  %v7624_v46 = vld [vmem:[#allocation17 + $0x78] sm:$0xff]  }
 0x749   :  { %4985 = vmatprep.mubr.bf16.mxu0 %v8824_v5  ;;  %6866 = vmatpush3.bf16.msra.mxu1 %v7613_v16  ;;  %v7626_v5 = vld [vmem:[#allocation17 + $0xf8] sm:$0xff]  }
 0x74a   :  { %6930 = vmatpush3.bf16.msra.mxu0 %v7615_v32  ;;  %6867 = vmatprep.subr.bf16.mxu1 %v7616_v13  ;;  %v7629_v13 = vld [vmem:[#allocation17 + $0x100] sm:$0xff]  }
 0x74b   :  { %6931 = vmatprep.subr.bf16.mxu0 %v7618_v55 }
 0x74d   :  { %6868 = vmatpush3.bf16.msra.mxu1 %v7617_v23 }
 0x74e   :  { %6932 = vmatpush3.bf16.msra.mxu0 %v7619_v1  ;;  %6869 = vmatprep.subr.bf16.mxu1 %v7620_v38 }
 0x74f   :  { %4873 = vmatmul.mubr.bf16.gmra.mrb[220].mxu1 %v8821_v14  ;;  %6933 = vmatprep.subr.bf16.mxu0 %v7622_v22 }
 0x750   :  { %4986 = vmatmul.mubr.bf16.gmra.mrb[124].mxu0 %v8821_v14  ;;  %4882 = vmatprep.mubr.bf16.mxu1 %v8836_v30  ;;  %v7628_v14 = vld [vmem:[#allocation17 + $0x140] sm:$0xff]  }
 0x751   :  { %4995 = vmatprep.mubr.bf16.mxu0 %v8836_v30  ;;  %6870 = vmatpush3.bf16.msra.mxu1 %v7621_v24  ;;  %v7630_v30 = vld [vmem:[#allocation17 + $0x1c0] sm:$0xff]  }
 0x752   :  { %6934 = vmatpush3.bf16.msra.mxu0 %v7623_v17  ;;  %6871 = vmatprep.subr.bf16.mxu1 %v7624_v46  ;;  %v7631_v17 = vld [vmem:[#allocation17 + $0x180] sm:$0xff]   ;;  %v7632_v46 = vld [vmem:[#allocation17 + $0x148] sm:$0xff]  }
 0x753   :  { %6935 = vmatprep.subr.bf16.mxu0 %v7626_v5  ;;  %v7634_v5 = vld [vmem:[#allocation17 + $0x1c8] sm:$0xff]  }
 0x755   :  { %6872 = vmatpush3.bf16.msra.mxu1 %v7625_v40 }
 0x756   :  { %6936 = vmatpush3.bf16.msra.mxu0 %v7627_v19  ;;  %6985 = vmatprep.subr.bf16.mxu1 %v7628_v14 }
 0x757   :  { %4883 = vmatmul.mubr.bf16.gmra.mrb[224].mxu1 %v8833_v12  ;;  %7049 = vmatprep.subr.bf16.mxu0 %v7630_v30 }
 0x758   :  { %4996 = vmatmul.mubr.bf16.gmra.mrb[128].mxu0 %v8833_v12  ;;  %4892 = vmatprep.mubr.bf16.mxu1 %v8848_v50  ;;  %v8912_v12 = vld [vmem:[%s9193_s14] sm:$0xff] }
 0x759   :  { %5005 = vmatprep.mubr.bf16.mxu0 %v8848_v50  ;;  %v8921_v50 = vrot.slane %v8912_v12, %v287_v18 }
 0x75f   :  { %4893 = vmatmul.mubr.bf16.gmra.mrb[228].mxu1 %v8845_v31 }
 0x760   :  { %5006 = vmatmul.mubr.bf16.gmra.mrb[132].mxu0 %v8845_v31  ;;  %4902 = vmatprep.mubr.bf16.mxu1 %v8860_v62  ;;  %v8916_v31 = vrot.slane %v8912_v12, %v8306_v26 }
 0x761   :  { %5015 = vmatprep.mubr.bf16.mxu0 %v8860_v62  ;;  %v8930_v62 = vrot.slane %v8912_v12, %v291_v44 }
 0x767   :  { %4903 = vmatmul.mubr.bf16.gmra.mrb[232].mxu1 %v8857_v59 }
 0x768   :  { %5016 = vmatmul.mubr.bf16.gmra.mrb[136].mxu0 %v8857_v59  ;;  %4912 = vmatprep.mubr.bf16.mxu1 %v8871_v49  ;;  %v8925_v59 = vrot.slane %v8912_v12, %v8311_v58 }
 0x769   :  { %5025 = vmatprep.mubr.bf16.mxu0 %v8871_v49 }
 0x76f   :  { %4913 = vmatmul.mubr.bf16.gmra.mrb[236].mxu1 %v8869_v57 }
 0x770   :  { %5026 = vmatmul.mubr.bf16.gmra.mrb[140].mxu0 %v8869_v57 }
 0x7ca   :  { %v4618_v39 = vpop.f32.mrb[176].mxu1  ;;  %v4731_v8 = vpop.f32.mrb[80].mxu0 }
 0x7cb   :  { %v4619_v27 = vadd.f32 %v4618_v39, %v8916_v31  ;;  %v4732_v26 = vadd.f32 %v4731_v8, %v8921_v50  ;;  %v4620_v21 = vpop.f32.mrb[177].mxu1  ;;  %v4733_v10 = vpop.f32.mrb[81].mxu0 }
 0x7cc   :  { %v4621_v18 = vadd.f32 %v4620_v21, %v8925_v59  ;;  %v4734_v57 = vadd.f32 %v4733_v10, %v8930_v62  ;;  %v4622_v15 = vpop.f32.mrb[178].mxu1  ;;  %v4735_v58 = vpop.f32.mrb[82].mxu0 }
 0x7cd   :  { %v5036_v48 = vmul.f32 0.01, %v4619_v27  ;;  %v5038_v28 = vmul.f32 0.01, %v4732_v26  ;;  %v4623_v49 = vadd.f32 %v4622_v15, %v8916_v31  ;;  %v4736_v44 = vadd.f32 %v4735_v58, %v8921_v50  ;;  %v4624_v4 = vpop.f32.mrb[179].mxu1  ;;  %v4737_v9 = vpop.f32.mrb[83].mxu0 }
 0x7ce   :  { %v5037_v3 = vmul.f32 0.01, %v4621_v18  ;;  %v5039_v42 = vmul.f32 0.01, %v4734_v57  ;;  %v4625_v34 = vadd.f32 %v4624_v4, %v8925_v59  ;;  %v4738_v35 = vadd.f32 %v4737_v9, %v8930_v62  ;;  %v7635_v9 = vld [vmem:[#allocation17 + $0x188] sm:$0xff]  }
 0x7cf   :  { %v5044_v0 = vmul.f32 0.01, %v4623_v49  ;;  %v5046_v45 = vmul.f32 0.01, %v4736_v44  ;;  %v5164_v6 = vmax.f32 %v4619_v27, %v5036_v48  ;;  %v5166_v29 = vmax.f32 %v4732_v26, %v5038_v28  ;;  %v7633_v28 = vld [vmem:[#allocation17 + $0x108] sm:$0xff]  }
 0x7d0   :  { %v5045_v60 = vmul.f32 0.01, %v4625_v34  ;;  %v5047_v2 = vmul.f32 0.01, %v4738_v35  ;;  %v5165_v53 = vmax.f32 %v4621_v18, %v5037_v3  ;;  %v5167_v51 = vmax.f32 %v4734_v57, %v5039_v42  ;;  %v7636_v3 = vld [vmem:[#allocation17 + $0x150] sm:$0xff]  }
 0x7d1   :  { %v5172_v43 = vmax.f32 %v4623_v49, %v5044_v0  ;;  %v5174_v36 = vmax.f32 %v4736_v44, %v5046_v45 }
 0x7d2   :  { %v5173_v61 = vmax.f32 %v4625_v34, %v5045_v60  ;;  %v5175_v33 = vmax.f32 %v4738_v35, %v5047_v2  ;;  %v4628_v25 = vpop.f32.mrb[180].mxu1  ;;  %v4741_v41 = vpop.f32.mrb[84].mxu0 }
 0x7d3   :  { %v5292_v52 = vpack.c.bf16 %v5172_v43, %v5164_v6  ;;  %v5294_v7 = vpack.c.bf16 %v5174_v36, %v5166_v29  ;;  %v4629_v20 = vadd.f32 %v4628_v25, %v8916_v31  ;;  %v4742_v11 = vadd.f32 %v4741_v41, %v8921_v50  ;;  %v4630_v16 = vpop.f32.mrb[181].mxu1  ;;  %v4743_v32 = vpop.f32.mrb[85].mxu0 }
 0x7d4   :  { %v4631_v55 = vadd.f32 %v4630_v16, %v8925_v59  ;;  %v4744_v23 = vadd.f32 %v4743_v32, %v8930_v62  ;;  %v4632_v1 = vpop.f32.mrb[182].mxu1  ;;  %v4745_v38 = vpop.f32.mrb[86].mxu0  ;;  %v5293_v22 = vpack.c.bf16 %v5173_v61, %v5165_v53  ;;  %v5295_v24 = vpack.c.bf16 %v5175_v33, %v5167_v51  ;;  %v7637_v51 = vld [vmem:[#allocation17 + $0x110] sm:$0xff]   ;;  %v7640_v16 = vld [vmem:[#allocation17 + $0x158] sm:$0xff]  }
 0x7d5   :  { %v5052_v40 = vmul.f32 0.01, %v4629_v20  ;;  %v5054_v19 = vmul.f32 0.01, %v4742_v11  ;;  %v4633_v14 = vadd.f32 %v4632_v1, %v8916_v31  ;;  %v4746_v30 = vadd.f32 %v4745_v38, %v8921_v50  ;;  %v4634_v39 = vpop.f32.mrb[183].mxu1  ;;  %v4747_v8 = vpop.f32.mrb[87].mxu0 }
 0x7d6   :  { %v5053_v27 = vmul.f32 0.01, %v4631_v55  ;;  %v5055_v26 = vmul.f32 0.01, %v4744_v23  ;;  %v4635_v21 = vadd.f32 %v4634_v39, %v8925_v59  ;;  %v4748_v10 = vadd.f32 %v4747_v8, %v8930_v62  ;;  %5907 = vmatprep.mubr.bf16.mxu1 %v5293_v22  ;;  %6004 = vmatprep.mubr.bf16.mxu0 %v5295_v24  ;;  %v7641_v8 = vld [vmem:[#allocation17 + $0x118] sm:$0xff]  }
 0x7d7   :  { %v5060_v18 = vmul.f32 0.01, %v4633_v14  ;;  %v5062_v57 = vmul.f32 0.01, %v4746_v30  ;;  %5908 = vmatmul.mubr.bf16.vlgmr.msra.gmra.mrb[240].mxu1 %v5292_v52  ;;  %6005 = vmatmul.mubr.bf16.vlgmr.msra.gmra.mrb[144].mxu0 %v5294_v7  ;;  %v5180_v15 = vmax.f32 %v4629_v20, %v5052_v40  ;;  %v5182_v49 = vmax.f32 %v4742_v11, %v5054_v19  ;;  %v7638_v20 = vld [vmem:[#allocation17 + $0x1d0] sm:$0xff]  }
 0x7d8   :  { %v5061_v58 = vmul.f32 0.01, %v4635_v21  ;;  %v5063_v48 = vmul.f32 0.01, %v4748_v10  ;;  %6986 = vmatpush3.bf16.msra.mxu1 %v7629_v13  ;;  %7050 = vmatpush3.bf16.msra.mxu0 %v7631_v17  ;;  %v5181_v42 = vmax.f32 %v4631_v55, %v5053_v27  ;;  %v5183_v34 = vmax.f32 %v4744_v23, %v5055_v26  ;;  %v7639_v11 = vld [vmem:[#allocation17 + $0x190] sm:$0xff]  }
 0x7d9   :  { %v5188_v44 = vmax.f32 %v4633_v14, %v5060_v18  ;;  %v5190_v4 = vmax.f32 %v4746_v30, %v5062_v57  ;;  %6987 = vmatprep.subr.bf16.mxu1 %v7632_v46  ;;  %7051 = vmatprep.subr.bf16.mxu0 %v7634_v5  ;;  %v7642_v5 = vld [vmem:[#allocation17 + $0x1d8] sm:$0xff]   ;;  %v7644_v18 = vld [vmem:[#allocation17 + $0x160] sm:$0xff]  }
 0x7da   :  { %v5189_v35 = vmax.f32 %v4635_v21, %v5061_v58  ;;  %v5191_v0 = vmax.f32 %v4748_v10, %v5063_v48  ;;  %v4638_v45 = vpop.f32.mrb[184].mxu1  ;;  %v4751_v60 = vpop.f32.mrb[88].mxu0  ;;  %v7643_v10 = vld [vmem:[#allocation17 + $0x198] sm:$0xff]  }
 0x7db   :  { %v4639_v2 = vadd.f32 %v4638_v45, %v8916_v31  ;;  %v4752_v6 = vadd.f32 %v4751_v60, %v8921_v50  ;;  %v4640_v29 = vpop.f32.mrb[185].mxu1  ;;  %v4753_v43 = vpop.f32.mrb[89].mxu0  ;;  %v5300_v36 = vpack.c.bf16 %v5188_v44, %v5180_v15  ;;  %v5302_v53 = vpack.c.bf16 %v5190_v4, %v5182_v49 }
 0x7dc   :  { %v4641_v61 = vadd.f32 %v4640_v29, %v8925_v59  ;;  %v4754_v33 = vadd.f32 %v4753_v43, %v8930_v62  ;;  %v4642_v25 = vpop.f32.mrb[186].mxu1  ;;  %v4755_v41 = vpop.f32.mrb[90].mxu0  ;;  %v5301_v52 = vpack.c.bf16 %v5189_v35, %v5181_v42  ;;  %v5303_v7 = vpack.c.bf16 %v5191_v0, %v5183_v34  ;;  %6988 = vmatpush3.bf16.msra.mxu1 %v7633_v28  ;;  %v7645_v35 = vld [vmem:[#allocation17 + $0x120] sm:$0xff]  }
 0x7dd   :  { %v5068_v32 = vmul.f32 0.01, %v4639_v2  ;;  %v5070_v13 = vmul.f32 0.01, %v4752_v6  ;;  %v4643_v55 = vadd.f32 %v4642_v25, %v8916_v31  ;;  %v4756_v23 = vadd.f32 %v4755_v41, %v8921_v50  ;;  %v4644_v1 = vpop.f32.mrb[187].mxu1  ;;  %v4757_v38 = vpop.f32.mrb[91].mxu0  ;;  %7052 = vmatpush3.bf16.msra.mxu0 %v7635_v9  ;;  %6989 = vmatprep.subr.bf16.mxu1 %v7636_v3 }
 0x7de   :  { %v5069_v22 = vmul.f32 0.01, %v4641_v61  ;;  %v5071_v24 = vmul.f32 0.01, %v4754_v33  ;;  %v4645_v17 = vadd.f32 %v4644_v1, %v8925_v59  ;;  %v4758_v46 = vadd.f32 %v4757_v38, %v8930_v62  ;;  %5915 = vmatprep.mubr.bf16.mxu1 %v5301_v52  ;;  %6012 = vmatprep.mubr.bf16.mxu0 %v5303_v7  ;;  %v7646_v43 = vld [vmem:[#allocation17 + $0x1e0] sm:$0xff]  }
 0x7df   :  { %v5076_v40 = vmul.f32 0.01, %v4643_v55  ;;  %v5078_v19 = vmul.f32 0.01, %v4756_v23  ;;  %5916 = vmatmul.mubr.bf16.gmra.mrb[244].mxu1 %v5300_v36  ;;  %6013 = vmatmul.mubr.bf16.gmra.mrb[148].mxu0 %v5302_v53  ;;  %v5196_v14 = vmax.f32 %v4639_v2, %v5068_v32  ;;  %v5198_v27 = vmax.f32 %v4752_v6, %v5070_v13  ;;  %v7647_v36 = vld [vmem:[#allocation17 + $0x1a0] sm:$0xff]   ;;  %v7648_v53 = vld [vmem:[#allocation17 + $0x168] sm:$0xff]  }
 0x7e0   :  { %v5077_v30 = vmul.f32 0.01, %v4645_v17  ;;  %v5079_v39 = vmul.f32 0.01, %v4758_v46  ;;  %6990 = vmatpush3.bf16.msra.mxu1 %v7637_v51  ;;  %7053 = vmatprep.subr.bf16.mxu0 %v7638_v20  ;;  %v5197_v57 = vmax.f32 %v4641_v61, %v5069_v22  ;;  %v5199_v15 = vmax.f32 %v4754_v33, %v5071_v24  ;;  %v7650_v32 = vld [vmem:[#allocation17 + $0x1e8] sm:$0xff]  }
 0x7e1   :  { %v5204_v26 = vmax.f32 %v4643_v55, %v5076_v40  ;;  %v5206_v21 = vmax.f32 %v4756_v23, %v5078_v19  ;;  %7054 = vmatpush3.bf16.msra.mxu0 %v7639_v11  ;;  %6991 = vmatprep.subr.bf16.mxu1 %v7640_v16  ;;  %v7649_v22 = vld [vmem:[#allocation17 + $0x128] sm:$0xff]   ;;  %v7652_v40 = vld [vmem:[#allocation17 + $0x170] sm:$0xff]  }
 0x7e2   :  { %v5205_v58 = vmax.f32 %v4645_v17, %v5077_v30  ;;  %v5207_v48 = vmax.f32 %v4758_v46, %v5079_v39  ;;  %v4648_v28 = vpop.f32.mrb[188].mxu1  ;;  %v4761_v49 = vpop.f32.mrb[92].mxu0  ;;  %7055 = vmatprep.subr.bf16.mxu0 %v7642_v5  ;;  %v7651_v5 = vld [vmem:[#allocation17 + $0x1a8] sm:$0xff]  }
 0x7e3   :  { %v4649_v44 = vadd.f32 %v4648_v28, %v8916_v31  ;;  %v4762_v4 = vadd.f32 %v4761_v49, %v8921_v50  ;;  %v4650_v9 = vpop.f32.mrb[189].mxu1  ;;  %v4763_v3 = vpop.f32.mrb[93].mxu0  ;;  %v5308_v42 = vpack.c.bf16 %v5204_v26, %v5196_v14  ;;  %v5310_v34 = vpack.c.bf16 %v5206_v21, %v5198_v27 }
 0x7e4   :  { %v4651_v0 = vadd.f32 %v4650_v9, %v8925_v59  ;;  %v4764_v45 = vadd.f32 %v4763_v3, %v8930_v62  ;;  %v4652_v60 = vpop.f32.mrb[190].mxu1  ;;  %v4765_v2 = vpop.f32.mrb[94].mxu0  ;;  %v5309_v6 = vpack.c.bf16 %v5205_v58, %v5197_v57  ;;  %v5311_v29 = vpack.c.bf16 %v5207_v48, %v5199_v15  ;;  %6992 = vmatpush3.bf16.msra.mxu1 %v7641_v8  ;;  %v7653_v58 = vld [vmem:[#allocation17 + $0x130] sm:$0xff]  }
 0x7e5   :  { %v5084_v51 = vmul.f32 0.01, %v4649_v44  ;;  %v5086_v61 = vmul.f32 0.01, %v4762_v4  ;;  %v4653_v33 = vadd.f32 %v4652_v60, %v8916_v31  ;;  %v4766_v25 = vadd.f32 %v4765_v2, %v8921_v50  ;;  %v4654_v41 = vpop.f32.mrb[191].mxu1  ;;  %v4767_v52 = vpop.f32.mrb[95].mxu0  ;;  %7056 = vmatpush3.bf16.msra.mxu0 %v7643_v10  ;;  %6993 = vmatprep.subr.bf16.mxu1 %v7644_v18 }
 0x7e6   :  { %v5085_v7 = vmul.f32 0.01, %v4651_v0  ;;  %v5087_v20 = vmul.f32 0.01, %v4764_v45  ;;  %v4655_v11 = vadd.f32 %v4654_v41, %v8925_v59  ;;  %v4768_v16 = vadd.f32 %v4767_v52, %v8930_v62  ;;  %5923 = vmatprep.mubr.bf16.mxu1 %v5309_v6  ;;  %6020 = vmatprep.mubr.bf16.mxu0 %v5311_v29  ;;  %v7654_v3 = vld [vmem:[#allocation17 + $0x1f0] sm:$0xff]  }
 0x7e7   :  { %v5092_v13 = vmul.f32 0.01, %v4653_v33  ;;  %v5094_v55 = vmul.f32 0.01, %v4766_v25  ;;  %5924 = vmatmul.mubr.bf16.gmra.mrb[248].mxu1 %v5308_v42  ;;  %6021 = vmatmul.mubr.bf16.gmra.mrb[152].mxu0 %v5310_v34  ;;  %v5212_v23 = vmax.f32 %v4649_v44, %v5084_v51  ;;  %v5214_v24 = vmax.f32 %v4762_v4, %v5086_v61  ;;  %v7655_v42 = vld [vmem:[#allocation17 + $0x1b0] sm:$0xff]   ;;  %v7656_v34 = vld [vmem:[#allocation17 + $0x178] sm:$0xff]  }
 0x7e8   :  { %v5093_v1 = vmul.f32 0.01, %v4655_v11  ;;  %v5095_v38 = vmul.f32 0.01, %v4768_v16  ;;  %6994 = vmatpush3.bf16.msra.mxu1 %v7645_v35  ;;  %7057 = vmatprep.subr.bf16.mxu0 %v7646_v43  ;;  %v5213_v19 = vmax.f32 %v4651_v0, %v5085_v7  ;;  %v5215_v14 = vmax.f32 %v4764_v45, %v5087_v20  ;;  %v7658_v51 = vld [vmem:[#allocation17 + $0x1f8] sm:$0xff]  }
 0x7e9   :  { %v5220_v17 = vmax.f32 %v4653_v33, %v5092_v13  ;;  %v5222_v46 = vmax.f32 %v4766_v25, %v5094_v55  ;;  %7058 = vmatpush3.bf16.msra.mxu0 %v7647_v36  ;;  %6995 = vmatprep.subr.bf16.mxu1 %v7648_v53  ;;  %v7657_v7 = vld [vmem:[#allocation17 + $0x138] sm:$0xff]  }
 0x7ea   :  { %v5221_v30 = vmax.f32 %v4655_v11, %v5093_v1  ;;  %v5223_v39 = vmax.f32 %v4768_v16, %v5095_v38  ;;  %v4658_v8 = vpop.f32.mrb[192].mxu1  ;;  %v4771_v27 = vpop.f32.mrb[96].mxu0  ;;  %7059 = vmatprep.subr.bf16.mxu0 %v7650_v32  ;;  %v7659_v32 = vld [vmem:[#allocation17 + $0x1b8] sm:$0xff]  }
 0x7eb   :  { %v4659_v26 = vadd.f32 %v4658_v8, %v8916_v31  ;;  %v4772_v21 = vadd.f32 %v4771_v27, %v8921_v50  ;;  %v4660_v10 = vpop.f32.mrb[193].mxu1  ;;  %v4773_v18 = vpop.f32.mrb[97].mxu0  ;;  %v5316_v57 = vpack.c.bf16 %v5220_v17, %v5212_v23  ;;  %v5318_v15 = vpack.c.bf16 %v5222_v46, %v5214_v24 }
 0x7ec   :  { %v4661_v48 = vadd.f32 %v4660_v10, %v8925_v59  ;;  %v4774_v28 = vadd.f32 %v4773_v18, %v8930_v62  ;;  %v4662_v49 = vpop.f32.mrb[194].mxu1  ;;  %v4775_v44 = vpop.f32.mrb[98].mxu0  ;;  %v5317_v4 = vpack.c.bf16 %v5221_v30, %v5213_v19  ;;  %v5319_v9 = vpack.c.bf16 %v5223_v39, %v5215_v14  ;;  %6996 = vmatpush3.bf16.msra.mxu1 %v7649_v22 }
 0x7ed   :  { %v5100_v35 = vmul.f32 0.01, %v4659_v26  ;;  %v5102_v0 = vmul.f32 0.01, %v4772_v21  ;;  %v4663_v45 = vadd.f32 %v4662_v49, %v8916_v31  ;;  %v4776_v60 = vadd.f32 %v4775_v44, %v8921_v50  ;;  %v4664_v2 = vpop.f32.mrb[195].mxu1  ;;  %v4777_v6 = vpop.f32.mrb[99].mxu0  ;;  %7060 = vmatpush3.bf16.msra.mxu0 %v7651_v5  ;;  %6997 = vmatprep.subr.bf16.mxu1 %v7652_v40 }
 0x7ee   :  { %v5101_v29 = vmul.f32 0.01, %v4661_v48  ;;  %v5103_v43 = vmul.f32 0.01, %v4774_v28  ;;  %v4665_v36 = vadd.f32 %v4664_v2, %v8925_v59  ;;  %v4778_v53 = vadd.f32 %v4777_v6, %v8930_v62  ;;  %5931 = vmatprep.mubr.bf16.mxu1 %v5317_v4  ;;  %6028 = vmatprep.mubr.bf16.mxu0 %v5319_v9 }
 0x7ef   :  { %v5108_v61 = vmul.f32 0.01, %v4663_v45  ;;  %v5110_v33 = vmul.f32 0.01, %v4776_v60  ;;  %5932 = vmatmul.mubr.bf16.gmra.mrb[252].mxu1 %v5316_v57  ;;  %6029 = vmatmul.mubr.bf16.gmra.mrb[156].mxu0 %v5318_v15  ;;  %v5228_v25 = vmax.f32 %v4659_v26, %v5100_v35  ;;  %v5230_v20 = vmax.f32 %v4772_v21, %v5102_v0 }
 0x7f0   :  { %v5109_v41 = vmul.f32 0.01, %v4665_v36  ;;  %v5111_v52 = vmul.f32 0.01, %v4778_v53  ;;  %6998 = vmatpush3.bf16.msra.mxu1 %v7653_v58  ;;  %7061 = vmatprep.subr.bf16.mxu0 %v7654_v3  ;;  %v5229_v13 = vmax.f32 %v4661_v48, %v5101_v29  ;;  %v5231_v55 = vmax.f32 %v4774_v28, %v5103_v43 }
 0x7f1   :  { %v5236_v11 = vmax.f32 %v4663_v45, %v5108_v61  ;;  %v5238_v16 = vmax.f32 %v4776_v60, %v5110_v33  ;;  %7062 = vmatpush3.bf16.msra.mxu0 %v7655_v42  ;;  %6999 = vmatprep.subr.bf16.mxu1 %v7656_v34 }
 0x7f2   :  { %v5237_v23 = vmax.f32 %v4665_v36, %v5109_v41  ;;  %v5239_v1 = vmax.f32 %v4778_v53, %v5111_v52  ;;  %v4668_v38 = vpop.f32.mrb[196].mxu1  ;;  %v4781_v22 = vpop.f32.mrb[100].mxu0  ;;  %7063 = vmatprep.subr.bf16.mxu0 %v7658_v51 }
 0x7f3   :  { %v5324_v24 = vpack.c.bf16 %v5236_v11, %v5228_v25  ;;  %v4669_v17 = vadd.f32 %v4668_v38, %v8916_v31  ;;  %v4782_v46 = vadd.f32 %v4781_v22, %v8921_v50  ;;  %v4670_v5 = vpop.f32.mrb[197].mxu1  ;;  %v4783_v40 = vpop.f32.mrb[101].mxu0  ;;  %v5326_v19 = vpack.c.bf16 %v5238_v16, %v5230_v20 }
 0x7f4   :  { %v4671_v14 = vadd.f32 %v4670_v5, %v8925_v59  ;;  %v4784_v30 = vadd.f32 %v4783_v40, %v8930_v62  ;;  %v4672_v39 = vpop.f32.mrb[198].mxu1  ;;  %v4785_v8 = vpop.f32.mrb[102].mxu0  ;;  %v5325_v27 = vpack.c.bf16 %v5237_v23, %v5229_v13  ;;  %v5327_v26 = vpack.c.bf16 %v5239_v1, %v5231_v55  ;;  %7000 = vmatpush3.bf16.msra.mxu1 %v7657_v7 }
 0x7f5   :  { %v5116_v21 = vmul.f32 0.01, %v4669_v17  ;;  %v5118_v10 = vmul.f32 0.01, %v4782_v46  ;;  %v4673_v18 = vadd.f32 %v4672_v39, %v8916_v31  ;;  %v4786_v57 = vadd.f32 %v4785_v8, %v8921_v50  ;;  %v4674_v15 = vpop.f32.mrb[199].mxu1  ;;  %v4787_v58 = vpop.f32.mrb[103].mxu0  ;;  %7064 = vmatpush3.bf16.msra.mxu0 %v7659_v32 }
 0x7f6   :  { %v5117_v48 = vmul.f32 0.01, %v4671_v14  ;;  %v5119_v28 = vmul.f32 0.01, %v4784_v30  ;;  %v4675_v49 = vadd.f32 %v4674_v15, %v8925_v59  ;;  %v4788_v44 = vadd.f32 %v4787_v58, %v8930_v62  ;;  %5939 = vmatprep.mubr.bf16.mxu1 %v5325_v27  ;;  %6036 = vmatprep.mubr.bf16.mxu0 %v5327_v26 }
 0x7f7   :  { %v5124_v4 = vmul.f32 0.01, %v4673_v18  ;;  %v5126_v9 = vmul.f32 0.01, %v4786_v57  ;;  %5940 = vmatmul.mubr.bf16.gmra.mrb[0].mxu1 %v5324_v24  ;;  %6037 = vmatmul.mubr.bf16.gmra.mrb[160].mxu0 %v5326_v19  ;;  %v5244_v34 = vmax.f32 %v4669_v17, %v5116_v21  ;;  %v5246_v35 = vmax.f32 %v4782_v46, %v5118_v10 }
 0x7f8   :  { %v5125_v3 = vmul.f32 0.01, %v4675_v49  ;;  %v5127_v42 = vmul.f32 0.01, %v4788_v44  ;;  %v5245_v60 = vmax.f32 %v4671_v14, %v5117_v48  ;;  %v5247_v2 = vmax.f32 %v4784_v30, %v5119_v28 }
 0x7f9   :  { %v5252_v0 = vmax.f32 %v4673_v18, %v5124_v4  ;;  %v5254_v45 = vmax.f32 %v4786_v57, %v5126_v9 }
 0x7fa   :  { %v5253_v6 = vmax.f32 %v4675_v49, %v5125_v3  ;;  %v5255_v29 = vmax.f32 %v4788_v44, %v5127_v42  ;;  %v4678_v43 = vpop.f32.mrb[200].mxu1  ;;  %v4791_v36 = vpop.f32.mrb[104].mxu0 }
 0x7fb   :  { %v5332_v53 = vpack.c.bf16 %v5252_v0, %v5244_v34  ;;  %v4679_v51 = vadd.f32 %v4678_v43, %v8916_v31  ;;  %v4792_v61 = vadd.f32 %v4791_v36, %v8921_v50  ;;  %v4680_v33 = vpop.f32.mrb[201].mxu1  ;;  %v4793_v25 = vpop.f32.mrb[105].mxu0  ;;  %v5334_v41 = vpack.c.bf16 %v5254_v45, %v5246_v35 }
 0x7fc   :  { %v4681_v52 = vadd.f32 %v4680_v33, %v8925_v59  ;;  %v4794_v7 = vadd.f32 %v4793_v25, %v8930_v62  ;;  %v4682_v20 = vpop.f32.mrb[202].mxu1  ;;  %v4795_v11 = vpop.f32.mrb[106].mxu0  ;;  %v5333_v16 = vpack.c.bf16 %v5253_v6, %v5245_v60  ;;  %v5335_v32 = vpack.c.bf16 %v5255_v29, %v5247_v2 }
 0x7fd   :  { %v5132_v13 = vmul.f32 0.01, %v4679_v51  ;;  %v5134_v55 = vmul.f32 0.01, %v4792_v61  ;;  %v4683_v23 = vadd.f32 %v4682_v20, %v8916_v31  ;;  %v4796_v1 = vadd.f32 %v4795_v11, %v8921_v50  ;;  %v4684_v38 = vpop.f32.mrb[203].mxu1  ;;  %v4797_v22 = vpop.f32.mrb[107].mxu0 }
 0x7fe   :  { %v5133_v24 = vmul.f32 0.01, %v4681_v52  ;;  %v5135_v17 = vmul.f32 0.01, %v4794_v7  ;;  %v4685_v46 = vadd.f32 %v4684_v38, %v8925_v59  ;;  %v4798_v5 = vadd.f32 %v4797_v22, %v8930_v62  ;;  %5947 = vmatprep.mubr.bf16.mxu1 %v5333_v16  ;;  %6044 = vmatprep.mubr.bf16.mxu0 %v5335_v32 }
 0x7ff   :  { %v5140_v40 = vmul.f32 0.01, %v4683_v23  ;;  %v5142_v19 = vmul.f32 0.01, %v4796_v1  ;;  %5948 = vmatmul.mubr.bf16.gmra.mrb[4].mxu1 %v5332_v53  ;;  %6045 = vmatmul.mubr.bf16.gmra.mrb[164].mxu0 %v5334_v41  ;;  %v5260_v39 = vmax.f32 %v4679_v51, %v5132_v13  ;;  %v5262_v8 = vmax.f32 %v4792_v61, %v5134_v55 }
 0x800   :  { %v5141_v14 = vmul.f32 0.01, %v4685_v46  ;;  %v5143_v30 = vmul.f32 0.01, %v4798_v5  ;;  %v5261_v21 = vmax.f32 %v4681_v52, %v5133_v24  ;;  %v5263_v10 = vmax.f32 %v4794_v7, %v5135_v17 }
 0x801   :  { %v5268_v27 = vmax.f32 %v4683_v23, %v5140_v40  ;;  %v5270_v26 = vmax.f32 %v4796_v1, %v5142_v19  ;;  %v9014_v7 = vrot.slane %v8912_v12, %v307_v54 }
 0x802   :  { %v5269_v18 = vmax.f32 %v4685_v46, %v5141_v14  ;;  %v5271_v57 = vmax.f32 %v4798_v5, %v5143_v30  ;;  %v4688_v15 = vpop.f32.mrb[204].mxu1  ;;  %v4801_v58 = vpop.f32.mrb[108].mxu0 }
 0x803   :  { %v5340_v48 = vpack.c.bf16 %v5268_v27, %v5260_v39  ;;  %v4689_v28 = vadd.f32 %v4688_v15, %v8916_v31  ;;  %v4802_v49 = vadd.f32 %v4801_v58, %v8921_v50  ;;  %v4690_v44 = vpop.f32.mrb[205].mxu1  ;;  %v4803_v4 = vpop.f32.mrb[109].mxu0  ;;  %v5342_v9 = vpack.c.bf16 %v5270_v26, %v5262_v8 }
 0x804   :  { %v4691_v3 = vadd.f32 %v4690_v44, %v8925_v59  ;;  %v4804_v42 = vadd.f32 %v4803_v4, %v8930_v62  ;;  %v4692_v34 = vpop.f32.mrb[206].mxu1  ;;  %v4805_v35 = vpop.f32.mrb[110].mxu0  ;;  %v5341_v0 = vpack.c.bf16 %v5269_v18, %v5261_v21  ;;  %v5343_v45 = vpack.c.bf16 %v5271_v57, %v5263_v10 }
 0x805   :  { %v5148_v60 = vmul.f32 0.01, %v4689_v28  ;;  %v5150_v2 = vmul.f32 0.01, %v4802_v49  ;;  %v4693_v6 = vadd.f32 %v4692_v34, %v8916_v31  ;;  %v4806_v29 = vadd.f32 %v4805_v35, %v8921_v50  ;;  %v4694_v43 = vpop.f32.mrb[207].mxu1  ;;  %v4807_v36 = vpop.f32.mrb[111].mxu0 }
 0x806   :  { %v5149_v53 = vmul.f32 0.01, %v4691_v3  ;;  %v5151_v51 = vmul.f32 0.01, %v4804_v42  ;;  %v4695_v61 = vadd.f32 %v4694_v43, %v8925_v59  ;;  %v4808_v33 = vadd.f32 %v4807_v36, %v8930_v62  ;;  %5955 = vmatprep.mubr.bf16.mxu1 %v5341_v0  ;;  %6052 = vmatprep.mubr.bf16.mxu0 %v5343_v45 }
 0x807   :  { %v5156_v25 = vmul.f32 0.01, %v4693_v6  ;;  %v5158_v41 = vmul.f32 0.01, %v4806_v29  ;;  %5956 = vmatmul.mubr.bf16.gmra.mrb[8].mxu1 %v5340_v48  ;;  %6053 = vmatmul.mubr.bf16.gmra.mrb[168].mxu0 %v5342_v9  ;;  %v8999_v31 = vrot.slane %v8912_v12, %v295_v63  ;;  %v9004_v50 = vrot.slane %v8912_v12, %v303_v47 }
 0x808   :  { %v5157_v52 = vmul.f32 0.01, %v4695_v61  ;;  %v5159_v59 = vmul.f32 0.01, %v4808_v33  ;;  %v9009_v62 = vrot.slane %v8912_v12, %v299_v37  ;;  %v5276_v20 = vmax.f32 %v4689_v28, %v5148_v60 }
 0x809   :  { %v5278_v63 = vmax.f32 %v4802_v49, %v5150_v2  ;;  %v5284_v11 = vmax.f32 %v4693_v6, %v5156_v25  ;;  %v5286_v16 = vmax.f32 %v4806_v29, %v5158_v41  ;;  %v5277_v32 = vmax.f32 %v4691_v3, %v5149_v53 }
 0x80a   :  { %v5279_v13 = vmax.f32 %v4804_v42, %v5151_v51  ;;  %v5285_v47 = vmax.f32 %v4695_v61, %v5157_v52  ;;  %v5287_v55 = vmax.f32 %v4808_v33, %v5159_v59  ;;  %v4844_v23 = vpop.f32.mrb[208].mxu1 }
 0x80b   :  { %v5348_v1 = vpack.c.bf16 %v5284_v11, %v5276_v20  ;;  %v4845_v38 = vadd.f32 %v4844_v23, %v8999_v31  ;;  %v4957_v22 = vpop.f32.mrb[112].mxu0  ;;  %v4846_v37 = vpop.f32.mrb[209].mxu1  ;;  %v5350_v24 = vpack.c.bf16 %v5286_v16, %v5278_v63 }
 0x80c   :  { %v4958_v56 = vadd.f32 %v4957_v22, %v9004_v50  ;;  %v4847_v54 = vadd.f32 %v4846_v37, %v9009_v62  ;;  %v4959_v12 = vpop.f32.mrb[113].mxu0  ;;  %v4848_v17 = vpop.f32.mrb[210].mxu1  ;;  %v5349_v46 = vpack.c.bf16 %v5285_v47, %v5277_v32  ;;  %v5351_v5 = vpack.c.bf16 %v5287_v55, %v5279_v13 }
 0x80d   :  { %v5040_v40 = vmul.f32 0.01, %v4845_v38  ;;  %v4960_v19 = vadd.f32 %v4959_v12, %v9014_v7  ;;  %v4849_v14 = vadd.f32 %v4848_v17, %v8999_v31  ;;  %v4961_v30 = vpop.f32.mrb[114].mxu0  ;;  %v4850_v39 = vpop.f32.mrb[211].mxu1 }
 0x80e   :  { %v5042_v8 = vmul.f32 0.01, %v4958_v56  ;;  %v5041_v27 = vmul.f32 0.01, %v4847_v54  ;;  %v4962_v26 = vadd.f32 %v4961_v30, %v9004_v50  ;;  %v4851_v21 = vadd.f32 %v4850_v39, %v9009_v62  ;;  %v4963_v10 = vpop.f32.mrb[115].mxu0  ;;  %5963 = vmatprep.mubr.bf16.mxu1 %v5349_v46  ;;  %6060 = vmatprep.mubr.bf16.mxu0 %v5351_v5 }
 0x80f   :  { %v5043_v18 = vmul.f32 0.01, %v4960_v19  ;;  %v5048_v57 = vmul.f32 0.01, %v4849_v14  ;;  %v4964_v15 = vadd.f32 %v4963_v10, %v9014_v7  ;;  %5964 = vmatmul.mubr.bf16.gmra.mrb[12].mxu1 %v5348_v1  ;;  %6061 = vmatmul.mubr.bf16.gmra.mrb[172].mxu0 %v5350_v24  ;;  %v5168_v28 = vmax.f32 %v4845_v38, %v5040_v40 }
 0x810   :  { %v5050_v58 = vmul.f32 0.01, %v4962_v26  ;;  %v5049_v48 = vmul.f32 0.01, %v4851_v21  ;;  %v5170_v4 = vmax.f32 %v4958_v56, %v5042_v8  ;;  %v5169_v9 = vmax.f32 %v4847_v54, %v5041_v27 }
 0x811   :  { %v5176_v49 = vmax.f32 %v4849_v14, %v5048_v57  ;;  %v5051_v44 = vmul.f32 0.01, %v4964_v15  ;;  %v5171_v35 = vmax.f32 %v4960_v19, %v5043_v18 }
 0x812   :  { %v5178_v3 = vmax.f32 %v4962_v26, %v5050_v58  ;;  %v5177_v42 = vmax.f32 %v4851_v21, %v5049_v48  ;;  %v4854_v34 = vpop.f32.mrb[212].mxu1 }
 0x813   :  { %v5296_v0 = vpack.c.bf16 %v5176_v49, %v5168_v28  ;;  %v5179_v45 = vmax.f32 %v4964_v15, %v5051_v44  ;;  %v4855_v60 = vadd.f32 %v4854_v34, %v8999_v31  ;;  %v4967_v2 = vpop.f32.mrb[116].mxu0  ;;  %v4856_v6 = vpop.f32.mrb[213].mxu1 }
 0x814   :  { %v5298_v29 = vpack.c.bf16 %v5178_v3, %v5170_v4  ;;  %v4968_v43 = vadd.f32 %v4967_v2, %v9004_v50  ;;  %v4857_v36 = vadd.f32 %v4856_v6, %v9009_v62  ;;  %v4969_v53 = vpop.f32.mrb[117].mxu0  ;;  %v4858_v51 = vpop.f32.mrb[214].mxu1  ;;  %v5297_v61 = vpack.c.bf16 %v5177_v42, %v5169_v9 }
 0x815   :  { %v5056_v33 = vmul.f32 0.01, %v4855_v60  ;;  %v4970_v25 = vadd.f32 %v4969_v53, %v9014_v7  ;;  %v4859_v41 = vadd.f32 %v4858_v51, %v8999_v31  ;;  %v4971_v52 = vpop.f32.mrb[118].mxu0  ;;  %v4860_v59 = vpop.f32.mrb[215].mxu1  ;;  %v5299_v20 = vpack.c.bf16 %v5179_v45, %v5171_v35 }
 0x816   :  { %v5058_v63 = vmul.f32 0.01, %v4968_v43  ;;  %v5057_v11 = vmul.f32 0.01, %v4857_v36  ;;  %v4972_v16 = vadd.f32 %v4971_v52, %v9004_v50  ;;  %v4861_v32 = vadd.f32 %v4860_v59, %v9009_v62  ;;  %v4973_v13 = vpop.f32.mrb[119].mxu0  ;;  %6101 = vmatprep.mubr.bf16.mxu1 %v5297_v61 }
 0x817   :  { %v5059_v47 = vmul.f32 0.01, %v4970_v25  ;;  %v5064_v55 = vmul.f32 0.01, %v4859_v41  ;;  %v4974_v23 = vadd.f32 %v4973_v13, %v9014_v7  ;;  %6198 = vmatprep.mubr.bf16.mxu0 %v5299_v20  ;;  %6102 = vmatmul.mubr.bf16.vlgmr.msra.gmra.mrb[16].mxu1 %v5296_v0  ;;  %v5184_v22 = vmax.f32 %v4855_v60, %v5056_v33 }
 0x818   :  { %v5066_v1 = vmul.f32 0.01, %v4972_v16  ;;  %v5065_v38 = vmul.f32 0.01, %v4861_v32  ;;  %6199 = vmatmul.mubr.bf16.vlgmr.msra.gmra.mrb[176].mxu0 %v5298_v29  ;;  %v5186_v56 = vmax.f32 %v4968_v43, %v5058_v63  ;;  %v5185_v54 = vmax.f32 %v4857_v36, %v5057_v11 }
 0x819   :  { %v5192_v37 = vmax.f32 %v4859_v41, %v5064_v55  ;;  %v5067_v24 = vmul.f32 0.01, %v4974_v23  ;;  %v5187_v5 = vmax.f32 %v4970_v25, %v5059_v47 }
 0x81a   :  { %v5194_v12 = vmax.f32 %v4972_v16, %v5066_v1  ;;  %v5193_v17 = vmax.f32 %v4861_v32, %v5065_v38  ;;  %v4864_v46 = vpop.f32.mrb[216].mxu1 }
 0x81b   :  { %v5304_v40 = vpack.c.bf16 %v5192_v37, %v5184_v22  ;;  %v5195_v19 = vmax.f32 %v4974_v23, %v5067_v24  ;;  %v4865_v14 = vadd.f32 %v4864_v46, %v8999_v31  ;;  %v4977_v30 = vpop.f32.mrb[120].mxu0  ;;  %v4866_v39 = vpop.f32.mrb[217].mxu1 }
 0x81c   :  { %v4978_v8 = vadd.f32 %v4977_v30, %v9004_v50  ;;  %v4867_v27 = vadd.f32 %v4866_v39, %v9009_v62  ;;  %v4979_v26 = vpop.f32.mrb[121].mxu0  ;;  %v4868_v21 = vpop.f32.mrb[218].mxu1  ;;  %v5305_v10 = vpack.c.bf16 %v5193_v17, %v5185_v54  ;;  %v5306_v18 = vpack.c.bf16 %v5194_v12, %v5186_v56 }
 0x81d   :  { %v5072_v57 = vmul.f32 0.01, %v4865_v14  ;;  %v4980_v15 = vadd.f32 %v4979_v26, %v9014_v7  ;;  %v4869_v58 = vadd.f32 %v4868_v21, %v8999_v31  ;;  %v4981_v48 = vpop.f32.mrb[122].mxu0  ;;  %v4870_v28 = vpop.f32.mrb[219].mxu1  ;;  %v5307_v49 = vpack.c.bf16 %v5195_v19, %v5187_v5 }
 0x81e   :  { %v5074_v44 = vmul.f32 0.01, %v4978_v8  ;;  %v5073_v4 = vmul.f32 0.01, %v4867_v27  ;;  %v4982_v9 = vadd.f32 %v4981_v48, %v9004_v50  ;;  %v4871_v3 = vadd.f32 %v4870_v28, %v9009_v62  ;;  %v4983_v42 = vpop.f32.mrb[123].mxu0  ;;  %6109 = vmatprep.mubr.bf16.mxu1 %v5305_v10 }
 0x81f   :  { %v5075_v34 = vmul.f32 0.01, %v4980_v15  ;;  %v5080_v35 = vmul.f32 0.01, %v4869_v58  ;;  %v4984_v0 = vadd.f32 %v4983_v42, %v9014_v7  ;;  %6206 = vmatprep.mubr.bf16.mxu0 %v5307_v49  ;;  %6110 = vmatmul.mubr.bf16.gmra.mrb[20].mxu1 %v5304_v40  ;;  %v5200_v2 = vmax.f32 %v4865_v14, %v5072_v57 }
 0x820   :  { %v5082_v45 = vmul.f32 0.01, %v4982_v9  ;;  %v5081_v60 = vmul.f32 0.01, %v4871_v3  ;;  %6207 = vmatmul.mubr.bf16.gmra.mrb[180].mxu0 %v5306_v18  ;;  %v5202_v43 = vmax.f32 %v4978_v8, %v5074_v44  ;;  %v5201_v36 = vmax.f32 %v4867_v27, %v5073_v4 }
 0x821   :  { %v5208_v6 = vmax.f32 %v4869_v58, %v5080_v35  ;;  %v5083_v29 = vmul.f32 0.01, %v4984_v0  ;;  %v5203_v33 = vmax.f32 %v4980_v15, %v5075_v34 }
 0x822   :  { %v5210_v53 = vmax.f32 %v4982_v9, %v5082_v45  ;;  %v5209_v51 = vmax.f32 %v4871_v3, %v5081_v60  ;;  %v4874_v61 = vpop.f32.mrb[220].mxu1 }
 0x823   :  { %v5312_v25 = vpack.c.bf16 %v5208_v6, %v5200_v2  ;;  %v5211_v41 = vmax.f32 %v4984_v0, %v5083_v29  ;;  %v4875_v52 = vadd.f32 %v4874_v61, %v8999_v31  ;;  %v4987_v59 = vpop.f32.mrb[124].mxu0  ;;  %v4876_v20 = vpop.f32.mrb[221].mxu1 }
 0x824   :  { %v4988_v63 = vadd.f32 %v4987_v59, %v9004_v50  ;;  %v4877_v11 = vadd.f32 %v4876_v20, %v9009_v62  ;;  %v4989_v16 = vpop.f32.mrb[125].mxu0  ;;  %v4878_v32 = vpop.f32.mrb[222].mxu1  ;;  %v5313_v13 = vpack.c.bf16 %v5209_v51, %v5201_v36  ;;  %v5314_v47 = vpack.c.bf16 %v5210_v53, %v5202_v43 }
 0x825   :  { %v5088_v55 = vmul.f32 0.01, %v4875_v52  ;;  %v4990_v23 = vadd.f32 %v4989_v16, %v9014_v7  ;;  %v4879_v1 = vadd.f32 %v4878_v32, %v8999_v31  ;;  %v4991_v38 = vpop.f32.mrb[126].mxu0  ;;  %v4880_v22 = vpop.f32.mrb[223].mxu1  ;;  %v5315_v37 = vpack.c.bf16 %v5211_v41, %v5203_v33 }
 0x826   :  { %v5090_v24 = vmul.f32 0.01, %v4988_v63  ;;  %v5089_v56 = vmul.f32 0.01, %v4877_v11  ;;  %v4992_v54 = vadd.f32 %v4991_v38, %v9004_v50  ;;  %v4881_v12 = vadd.f32 %v4880_v22, %v9009_v62  ;;  %v4993_v17 = vpop.f32.mrb[127].mxu0  ;;  %6117 = vmatprep.mubr.bf16.mxu1 %v5313_v13 }
 0x827   :  { %v5091_v46 = vmul.f32 0.01, %v4990_v23  ;;  %v5096_v5 = vmul.f32 0.01, %v4879_v1  ;;  %v4994_v40 = vadd.f32 %v4993_v17, %v9014_v7  ;;  %6214 = vmatprep.mubr.bf16.mxu0 %v5315_v37  ;;  %6118 = vmatmul.mubr.bf16.gmra.mrb[24].mxu1 %v5312_v25  ;;  %v5216_v30 = vmax.f32 %v4875_v52, %v5088_v55 }
 0x828   :  { %v5098_v19 = vmul.f32 0.01, %v4992_v54  ;;  %v5097_v14 = vmul.f32 0.01, %v4881_v12  ;;  %6215 = vmatmul.mubr.bf16.gmra.mrb[184].mxu0 %v5314_v47  ;;  %v5218_v27 = vmax.f32 %v4988_v63, %v5090_v24  ;;  %v5217_v26 = vmax.f32 %v4877_v11, %v5089_v56 }
 0x829   :  { %v5224_v39 = vmax.f32 %v4879_v1, %v5096_v5  ;;  %v5099_v8 = vmul.f32 0.01, %v4994_v40  ;;  %v5219_v57 = vmax.f32 %v4990_v23, %v5091_v46 }
 0x82a   :  { %v5226_v21 = vmax.f32 %v4992_v54, %v5098_v19  ;;  %v5225_v10 = vmax.f32 %v4881_v12, %v5097_v14  ;;  %v4884_v18 = vpop.f32.mrb[224].mxu1 }
 0x82b   :  { %v5320_v15 = vpack.c.bf16 %v5224_v39, %v5216_v30  ;;  %v5227_v58 = vmax.f32 %v4994_v40, %v5099_v8  ;;  %v4885_v48 = vadd.f32 %v4884_v18, %v8999_v31  ;;  %v4997_v28 = vpop.f32.mrb[128].mxu0  ;;  %v4886_v49 = vpop.f32.mrb[225].mxu1 }
 0x82c   :  { %v4998_v44 = vadd.f32 %v4997_v28, %v9004_v50  ;;  %v4887_v4 = vadd.f32 %v4886_v49, %v9009_v62  ;;  %v4999_v9 = vpop.f32.mrb[129].mxu0  ;;  %v4888_v3 = vpop.f32.mrb[226].mxu1  ;;  %v5321_v42 = vpack.c.bf16 %v5225_v10, %v5217_v26  ;;  %v5322_v34 = vpack.c.bf16 %v5226_v21, %v5218_v27 }
 0x82d   :  { %v5104_v35 = vmul.f32 0.01, %v4885_v48  ;;  %v5000_v0 = vadd.f32 %v4999_v9, %v9014_v7  ;;  %v4889_v45 = vadd.f32 %v4888_v3, %v8999_v31  ;;  %v5001_v60 = vpop.f32.mrb[130].mxu0  ;;  %v4890_v2 = vpop.f32.mrb[227].mxu1  ;;  %v5323_v6 = vpack.c.bf16 %v5227_v58, %v5219_v57 }
 0x82e   :  { %v5106_v29 = vmul.f32 0.01, %v4998_v44  ;;  %v5105_v43 = vmul.f32 0.01, %v4887_v4  ;;  %v5002_v36 = vadd.f32 %v5001_v60, %v9004_v50  ;;  %v4891_v53 = vadd.f32 %v4890_v2, %v9009_v62  ;;  %v5003_v51 = vpop.f32.mrb[131].mxu0  ;;  %6125 = vmatprep.mubr.bf16.mxu1 %v5321_v42 }
 0x82f   :  { %v5107_v61 = vmul.f32 0.01, %v5000_v0  ;;  %v5112_v33 = vmul.f32 0.01, %v4889_v45  ;;  %v5004_v25 = vadd.f32 %v5003_v51, %v9014_v7  ;;  %6222 = vmatprep.mubr.bf16.mxu0 %v5323_v6  ;;  %6126 = vmatmul.mubr.bf16.gmra.mrb[28].mxu1 %v5320_v15  ;;  %v5232_v59 = vmax.f32 %v4885_v48, %v5104_v35 }
 0x830   :  { %v5114_v41 = vmul.f32 0.01, %v5002_v36  ;;  %v5113_v52 = vmul.f32 0.01, %v4891_v53  ;;  %6223 = vmatmul.mubr.bf16.gmra.mrb[188].mxu0 %v5322_v34  ;;  %v5234_v11 = vmax.f32 %v4998_v44, %v5106_v29  ;;  %v5233_v16 = vmax.f32 %v4887_v4, %v5105_v43 }
 0x831   :  { %v5240_v20 = vmax.f32 %v4889_v45, %v5112_v33  ;;  %v5115_v63 = vmul.f32 0.01, %v5004_v25  ;;  %v5235_v55 = vmax.f32 %v5000_v0, %v5107_v61 }
 0x832   :  { %v5242_v32 = vmax.f32 %v5002_v36, %v5114_v41  ;;  %v5241_v13 = vmax.f32 %v4891_v53, %v5113_v52  ;;  %v4894_v47 = vpop.f32.mrb[228].mxu1 }
 0x833   :  { %v5328_v23 = vpack.c.bf16 %v5240_v20, %v5232_v59  ;;  %v5243_v1 = vmax.f32 %v5004_v25, %v5115_v63  ;;  %v4895_v38 = vadd.f32 %v4894_v47, %v8999_v31  ;;  %v5007_v22 = vpop.f32.mrb[132].mxu0  ;;  %v4896_v37 = vpop.f32.mrb[229].mxu1 }
 0x834   :  { %v5008_v24 = vadd.f32 %v5007_v22, %v9004_v50  ;;  %v4897_v56 = vadd.f32 %v4896_v37, %v9009_v62  ;;  %v5009_v54 = vpop.f32.mrb[133].mxu0  ;;  %v4898_v12 = vpop.f32.mrb[230].mxu1  ;;  %v5329_v17 = vpack.c.bf16 %v5241_v13, %v5233_v16  ;;  %v5330_v46 = vpack.c.bf16 %v5242_v32, %v5234_v11 }
 0x835   :  { %v5120_v5 = vmul.f32 0.01, %v4895_v38  ;;  %v5010_v40 = vadd.f32 %v5009_v54, %v9014_v7  ;;  %v4899_v19 = vadd.f32 %v4898_v12, %v8999_v31  ;;  %v5011_v14 = vpop.f32.mrb[134].mxu0  ;;  %v4900_v30 = vpop.f32.mrb[231].mxu1  ;;  %v5331_v39 = vpack.c.bf16 %v5243_v1, %v5235_v55 }
 0x836   :  { %v5122_v8 = vmul.f32 0.01, %v5008_v24  ;;  %v5121_v27 = vmul.f32 0.01, %v4897_v56  ;;  %v5012_v26 = vadd.f32 %v5011_v14, %v9004_v50  ;;  %v4901_v21 = vadd.f32 %v4900_v30, %v9009_v62  ;;  %v5013_v10 = vpop.f32.mrb[135].mxu0  ;;  %6133 = vmatprep.mubr.bf16.mxu1 %v5329_v17 }
 0x837   :  { %v5123_v18 = vmul.f32 0.01, %v5010_v40  ;;  %v5128_v57 = vmul.f32 0.01, %v4899_v19  ;;  %v5014_v15 = vadd.f32 %v5013_v10, %v9014_v7  ;;  %6230 = vmatprep.mubr.bf16.mxu0 %v5331_v39  ;;  %6134 = vmatmul.mubr.bf16.gmra.mrb[32].mxu1 %v5328_v23  ;;  %v5248_v28 = vmax.f32 %v4895_v38, %v5120_v5 }
 0x838   :  { %v5130_v58 = vmul.f32 0.01, %v5012_v26  ;;  %v5129_v48 = vmul.f32 0.01, %v4901_v21  ;;  %6231 = vmatmul.mubr.bf16.gmra.mrb[192].mxu0 %v5330_v46  ;;  %v5250_v4 = vmax.f32 %v5008_v24, %v5122_v8  ;;  %v5249_v9 = vmax.f32 %v4897_v56, %v5121_v27 }
 0x839   :  { %v5256_v49 = vmax.f32 %v4899_v19, %v5128_v57  ;;  %v5131_v44 = vmul.f32 0.01, %v5014_v15  ;;  %v5251_v35 = vmax.f32 %v5010_v40, %v5123_v18 }
 0x83a   :  { %v5258_v3 = vmax.f32 %v5012_v26, %v5130_v58  ;;  %v5257_v42 = vmax.f32 %v4901_v21, %v5129_v48  ;;  %v4904_v34 = vpop.f32.mrb[232].mxu1 }
 0x83b   :  { %v5336_v0 = vpack.c.bf16 %v5256_v49, %v5248_v28  ;;  %v5259_v45 = vmax.f32 %v5014_v15, %v5131_v44  ;;  %v4905_v60 = vadd.f32 %v4904_v34, %v8999_v31  ;;  %v5017_v2 = vpop.f32.mrb[136].mxu0  ;;  %v4906_v6 = vpop.f32.mrb[233].mxu1 }
 0x83c   :  { %v5018_v29 = vadd.f32 %v5017_v2, %v9004_v50  ;;  %v4907_v43 = vadd.f32 %v4906_v6, %v9009_v62  ;;  %v5019_v36 = vpop.f32.mrb[137].mxu0  ;;  %v4908_v53 = vpop.f32.mrb[234].mxu1  ;;  %v5337_v51 = vpack.c.bf16 %v5257_v42, %v5249_v9  ;;  %v5338_v61 = vpack.c.bf16 %v5258_v3, %v5250_v4 }
 0x83d   :  { %v5136_v33 = vmul.f32 0.01, %v4905_v60  ;;  %v5020_v25 = vadd.f32 %v5019_v36, %v9014_v7  ;;  %v4909_v41 = vadd.f32 %v4908_v53, %v8999_v31  ;;  %v5021_v52 = vpop.f32.mrb[138].mxu0  ;;  %v4910_v59 = vpop.f32.mrb[235].mxu1  ;;  %v5339_v20 = vpack.c.bf16 %v5259_v45, %v5251_v35 }
 0x83e   :  { %v5138_v63 = vmul.f32 0.01, %v5018_v29  ;;  %v5137_v11 = vmul.f32 0.01, %v4907_v43  ;;  %v5022_v16 = vadd.f32 %v5021_v52, %v9004_v50  ;;  %v4911_v32 = vadd.f32 %v4910_v59, %v9009_v62  ;;  %v5023_v13 = vpop.f32.mrb[139].mxu0  ;;  %6141 = vmatprep.mubr.bf16.mxu1 %v5337_v51 }
 0x83f   :  { %v5139_v47 = vmul.f32 0.01, %v5020_v25  ;;  %v5144_v55 = vmul.f32 0.01, %v4909_v41  ;;  %v5024_v23 = vadd.f32 %v5023_v13, %v9014_v7  ;;  %6238 = vmatprep.mubr.bf16.mxu0 %v5339_v20  ;;  %6142 = vmatmul.mubr.bf16.gmra.mrb[36].mxu1 %v5336_v0  ;;  %v5264_v22 = vmax.f32 %v4905_v60, %v5136_v33  ;;  %v9083_v52 = vld [vmem:[%s9195_s16] ss:$0 sm:$0xff] }
 0x840   :  { %v5146_v1 = vmul.f32 0.01, %v5022_v16  ;;  %v5145_v38 = vmul.f32 0.01, %v4911_v32  ;;  %6239 = vmatmul.mubr.bf16.gmra.mrb[196].mxu0 %v5338_v61  ;;  %v5266_v56 = vmax.f32 %v5018_v29, %v5138_v63  ;;  %v5265_v54 = vmax.f32 %v4907_v43, %v5137_v11 }
 0x841   :  { %v5272_v37 = vmax.f32 %v4909_v41, %v5144_v55  ;;  %v5147_v24 = vmul.f32 0.01, %v5024_v23  ;;  %v5267_v5 = vmax.f32 %v5020_v25, %v5139_v47 }
 0x842   :  { %v5274_v12 = vmax.f32 %v5022_v16, %v5146_v1  ;;  %v5273_v17 = vmax.f32 %v4911_v32, %v5145_v38  ;;  %v4914_v46 = vpop.f32.mrb[236].mxu1 }
 0x843   :  { %v5344_v40 = vpack.c.bf16 %v5272_v37, %v5264_v22  ;;  %v5275_v19 = vmax.f32 %v5024_v23, %v5147_v24  ;;  %v4915_v14 = vadd.f32 %v4914_v46, %v8999_v31  ;;  %v5027_v30 = vpop.f32.mrb[140].mxu0  ;;  %v4916_v39 = vpop.f32.mrb[237].mxu1 }
 0x844   :  { %v5028_v8 = vadd.f32 %v5027_v30, %v9004_v50  ;;  %v4917_v27 = vadd.f32 %v4916_v39, %v9009_v62  ;;  %v5029_v26 = vpop.f32.mrb[141].mxu0  ;;  %v4918_v21 = vpop.f32.mrb[238].mxu1  ;;  %v5345_v10 = vpack.c.bf16 %v5273_v17, %v5265_v54  ;;  %v5346_v18 = vpack.c.bf16 %v5274_v12, %v5266_v56 }
 0x845   :  { %v5152_v57 = vmul.f32 0.01, %v4915_v14  ;;  %v5030_v15 = vadd.f32 %v5029_v26, %v9014_v7  ;;  %v4919_v58 = vadd.f32 %v4918_v21, %v8999_v31  ;;  %v5031_v48 = vpop.f32.mrb[142].mxu0  ;;  %v4920_v28 = vpop.f32.mrb[239].mxu1  ;;  %v5347_v49 = vpack.c.bf16 %v5275_v19, %v5267_v5 }
 0x846   :  { %v5154_v44 = vmul.f32 0.01, %v5028_v8  ;;  %v5153_v4 = vmul.f32 0.01, %v4917_v27  ;;  %v5032_v9 = vadd.f32 %v5031_v48, %v9004_v50  ;;  %v4921_v3 = vadd.f32 %v4920_v28, %v9009_v62  ;;  %v5033_v42 = vpop.f32.mrb[143].mxu0  ;;  %6149 = vmatprep.mubr.bf16.mxu1 %v5345_v10 }
 0x847   :  { %v5155_v34 = vmul.f32 0.01, %v5030_v15  ;;  %v5160_v35 = vmul.f32 0.01, %v4919_v58  ;;  %v5034_v0 = vadd.f32 %v5033_v42, %v9014_v7  ;;  %6246 = vmatprep.mubr.bf16.mxu0 %v5347_v49  ;;  %6150 = vmatmul.mubr.bf16.gmra.mrb[40].mxu1 %v5344_v40  ;;  %v5280_v31 = vmax.f32 %v4915_v14, %v5152_v57 }
 0x848   :  { %v5162_v45 = vmul.f32 0.01, %v5032_v9  ;;  %v5161_v60 = vmul.f32 0.01, %v4921_v3  ;;  %6247 = vmatmul.mubr.bf16.gmra.mrb[200].mxu0 %v5346_v18  ;;  %v5282_v29 = vmax.f32 %v5028_v8, %v5154_v44  ;;  %v5281_v43 = vmax.f32 %v4917_v27, %v5153_v4 }
 0x849   :  { %v5288_v2 = vmax.f32 %v4919_v58, %v5160_v35  ;;  %v5163_v6 = vmul.f32 0.01, %v5034_v0  ;;  %v5283_v53 = vmax.f32 %v5030_v15, %v5155_v34 }
 0x84a   :  { %v5290_v36 = vmax.f32 %v5032_v9, %v5162_v45  ;;  %v5289_v50 = vmax.f32 %v4921_v3, %v5161_v60 }
 0x84b   :  { %v5352_v62 = vpack.c.bf16 %v5288_v2, %v5280_v31  ;;  %v5291_v51 = vmax.f32 %v5034_v0, %v5163_v6 }
 0x84c   :  { %v5353_v61 = vpack.c.bf16 %v5289_v50, %v5281_v43  ;;  %v5354_v33 = vpack.c.bf16 %v5290_v36, %v5282_v29 }
 0x84d   :  { %v5355_v25 = vpack.c.bf16 %v5291_v51, %v5283_v53 }
 0x84e   :  { %6157 = vmatprep.mubr.bf16.mxu1 %v5353_v61 }
 0x84f   :  { %6254 = vmatprep.mubr.bf16.mxu0 %v5355_v25  ;;  %6158 = vmatmul.mubr.bf16.gmra.mrb[44].mxu1 %v5352_v62 }
 0x850   :  { %6255 = vmatmul.mubr.bf16.gmra.mrb[204].mxu0 %v5354_v33 }
 0x8aa   :  { %v6873_v7 = vpop.f32.mrb[240].mxu1  ;;  %v6937_v41 = vpop.f32.mrb[144].mxu0 }
 0x8ab   :  { %v6874_v59 = vpop.f32.mrb[241].mxu1  ;;  %v6938_v20 = vpop.f32.mrb[145].mxu0 }
 0x8ac   :  { %v6875_v63 = vadd.f32 %v6874_v59, %v6873_v7  ;;  %v6939_v11 = vadd.f32 %v6938_v20, %v6937_v41  ;;  %v6876_v16 = vpop.f32.mrb[242].mxu1  ;;  %v6940_v32 = vpop.f32.mrb[146].mxu0 }
 0x8ad   :  { %v6877_v13 = vpop.f32.mrb[243].mxu1  ;;  %v6941_v47 = vpop.f32.mrb[147].mxu0 }
 0x8ae   :  { %v5910_v55 = vadd.f32 %v6875_v63, %v9083_v52  ;;  %v6878_v23 = vadd.f32 %v6877_v13, %v6876_v16  ;;  %v6942_v1 = vadd.f32 %v6941_v47, %v6940_v32 }
 0x8af   :  { %7897 = shalt.err (!%p7894_p0)
}
 0x8b0   :  { %s7898_s22 = scalar_lea.hbm %s9196_s17, 2048 }
 0x8b1   :  { %p7899_p1 = scmp.ne.s32.totalorder %s9196_s17, %s7898_s22  ;;  %p7902_p2 = scmp.lt.u32.totalorder %s7898_s22, %s9196_s17 }
 0x8b3   :  { %p7904_p3 = pnand %p7902_p2, %p7899_p1 }
 0x8b5   :  { %7907 = shalt.err (!%p7904_p3)
}
 0x8b6   :  { %6290 = dma.vmem_to_hbm [thread:$0]  %s6285_s21, 2048, %s9196_s17, [#allocation4], %s7950_s28, %s7950_s28, %s7951_s0   ;;  %v9101_v38 = vadd.f32 %v6939_v11, %v5910_v55  ;;  %v5913_v22 = vadd.f32 %v6878_v23, %v9083_v52  ;;  %v6879_v24 = vpop.f32.mrb[244].mxu1  ;;  %v6943_v56 = vpop.f32.mrb[148].mxu0 }
 0x8b7   :  { %v6880_v54 = vpop.f32.mrb[245].mxu1  ;;  %v6944_v12 = vpop.f32.mrb[149].mxu0  ;;  %s7964_s17 = smov [#allocation20]  }
 0x8b8   :  { %v9104_v37 = vadd.f32 %v6942_v1, %v5913_v22  ;;  %v6881_v17 = vadd.f32 %v6880_v54, %v6879_v24  ;;  %v6945_v46 = vadd.f32 %v6944_v12, %v6943_v56  ;;  %v6882_v5 = vpop.f32.mrb[246].mxu1  ;;  %v6946_v40 = vpop.f32.mrb[150].mxu0  ;;  %s6296_s13 = sshll.u32 %s7964_s17, 4  ;;  %s6297_s13 = int_to_ptr.vmem [resolvable:$true] %s6296_s13 }
 0x8b9   :  { %v6883_v19 = vpop.f32.mrb[247].mxu1  ;;  %v6947_v14 = vpop.f32.mrb[151].mxu0  ;;  %s7908_s2 = scalar_lea.vmem %s6297_s13, 2048  ;;  %p7913_p5 = scmp.lt.s32.totalorder %s6297_s13, %s6297_s13 }
 0x8ba   :  { %v5918_v30 = vadd.f32 %v6881_v17, %v9083_v52  ;;  %v6884_v39 = vadd.f32 %v6883_v19, %v6882_v5  ;;  %v6948_v8 = vadd.f32 %v6947_v14, %v6946_v40  ;;  %v6885_v10 = vpop.f32.mrb[248].mxu1  ;;  %v6949_v18 = vpop.f32.mrb[152].mxu0  ;;  %p7909_p4 = scmp.ne.s32.totalorder %s6297_s13, %s7908_s2  ;;  %p7914_p6 = scmp.lt.s32.totalorder %s7908_s2, %s7908_s2 }
 0x8bb   :  { %v6886_v57 = vpop.f32.mrb[249].mxu1  ;;  %v6950_v15 = vpop.f32.mrb[153].mxu0 }
 0x8bc   :  { %v9107_v27 = vadd.f32 %v6945_v46, %v5918_v30  ;;  %v5921_v26 = vadd.f32 %v6884_v39, %v9083_v52  ;;  %v6887_v58 = vadd.f32 %v6886_v57, %v6885_v10  ;;  %v6951_v48 = vadd.f32 %v6950_v15, %v6949_v18  ;;  %v6888_v28 = vpop.f32.mrb[250].mxu1  ;;  %v6952_v49 = vpop.f32.mrb[154].mxu0  ;;  %p7915_p7 = por %p7914_p6, %p7913_p5 }
 0x8bd   :  { %v6889_v44 = vpop.f32.mrb[251].mxu1  ;;  %v6953_v4 = vpop.f32.mrb[155].mxu0 }
 0x8be   :  { %v9110_v21 = vadd.f32 %v6948_v8, %v5921_v26  ;;  %v5926_v9 = vadd.f32 %v6887_v58, %v9083_v52  ;;  %v6890_v3 = vadd.f32 %v6889_v44, %v6888_v28  ;;  %v6954_v42 = vadd.f32 %v6953_v4, %v6952_v49  ;;  %p7916_p8 = pnand %p7915_p7, %p7909_p4 }
 0x8c0   :  { %v9113_v34 = vadd.f32 %v6951_v48, %v5926_v9  ;;  %v5929_v35 = vadd.f32 %v6890_v3, %v9083_v52 }
 0x8c2   :  { %v9116_v0 = vadd.f32 %v6954_v42, %v5929_v35  ;;  %v6891_v45 = vpop.f32.mrb[252].mxu1  ;;  %v6955_v60 = vpop.f32.mrb[156].mxu0 }
 0x8c3   :  { %v6892_v31 = vpop.f32.mrb[253].mxu1  ;;  %v6956_v2 = vpop.f32.mrb[157].mxu0 }
 0x8c4   :  { %v6893_v6 = vadd.f32 %v6892_v31, %v6891_v45  ;;  %v6957_v29 = vadd.f32 %v6956_v2, %v6955_v60  ;;  %v6894_v43 = vpop.f32.mrb[254].mxu1  ;;  %v6958_v36 = vpop.f32.mrb[158].mxu0 }
 0x8c5   :  { %v6895_v50 = vpop.f32.mrb[255].mxu1  ;;  %v6959_v53 = vpop.f32.mrb[159].mxu0 }
 0x8c6   :  { %v5934_v62 = vadd.f32 %v6893_v6, %v9083_v52  ;;  %v6896_v51 = vadd.f32 %v6895_v50, %v6894_v43  ;;  %v6960_v61 = vadd.f32 %v6959_v53, %v6958_v36 }
 0x8c8   :  { %v9119_v33 = vadd.f32 %v6957_v29, %v5934_v62  ;;  %v5937_v25 = vadd.f32 %v6896_v51, %v9083_v52 }
 0x8ca   :  { %v9122_v7 = vadd.f32 %v6960_v61, %v5937_v25  ;;  %v6897_v41 = vpop.f32.mrb[0].mxu1  ;;  %v6961_v59 = vpop.f32.mrb[160].mxu0 }
 0x8cb   :  { %v6898_v20 = vpop.f32.mrb[1].mxu1  ;;  %v6962_v63 = vpop.f32.mrb[161].mxu0 }
 0x8cc   :  { %v6899_v11 = vadd.f32 %v6898_v20, %v6897_v41  ;;  %v6963_v16 = vadd.f32 %v6962_v63, %v6961_v59  ;;  %v6900_v32 = vpop.f32.mrb[2].mxu1  ;;  %v6964_v13 = vpop.f32.mrb[162].mxu0 }
 0x8cd   :  { %v6901_v47 = vpop.f32.mrb[3].mxu1  ;;  %v6965_v55 = vpop.f32.mrb[163].mxu0 }
 0x8ce   :  { %v5942_v23 = vadd.f32 %v6899_v11, %v9083_v52  ;;  %v6902_v1 = vadd.f32 %v6901_v47, %v6900_v32  ;;  %v6966_v22 = vadd.f32 %v6965_v55, %v6964_v13 }
 0x8d0   :  { %v9125_v24 = vadd.f32 %v6963_v16, %v5942_v23  ;;  %v5945_v56 = vadd.f32 %v6902_v1, %v9083_v52 }
 0x8d2   :  { %v9128_v54 = vadd.f32 %v6966_v22, %v5945_v56  ;;  %v6903_v12 = vpop.f32.mrb[4].mxu1  ;;  %v6967_v17 = vpop.f32.mrb[164].mxu0 }
 0x8d3   :  { %v6904_v46 = vpop.f32.mrb[5].mxu1  ;;  %v6968_v5 = vpop.f32.mrb[165].mxu0 }
 0x8d4   :  { %v6905_v40 = vadd.f32 %v6904_v46, %v6903_v12  ;;  %v6969_v19 = vadd.f32 %v6968_v5, %v6967_v17  ;;  %v6906_v14 = vpop.f32.mrb[6].mxu1  ;;  %v6970_v30 = vpop.f32.mrb[166].mxu0 }
 0x8d5   :  { %v6907_v39 = vpop.f32.mrb[7].mxu1  ;;  %v6971_v8 = vpop.f32.mrb[167].mxu0 }
 0x8d6   :  { %v5950_v26 = vadd.f32 %v6905_v40, %v9083_v52  ;;  %v6908_v10 = vadd.f32 %v6907_v39, %v6906_v14  ;;  %v6972_v18 = vadd.f32 %v6971_v8, %v6970_v30 }
 0x8d8   :  { %v9131_v57 = vadd.f32 %v6969_v19, %v5950_v26  ;;  %v5953_v15 = vadd.f32 %v6908_v10, %v9083_v52 }
 0x8da   :  { %v9134_v58 = vadd.f32 %v6972_v18, %v5953_v15  ;;  %v6909_v48 = vpop.f32.mrb[8].mxu1  ;;  %v6973_v28 = vpop.f32.mrb[168].mxu0 }
 0x8db   :  { %v6910_v49 = vpop.f32.mrb[9].mxu1  ;;  %v6974_v44 = vpop.f32.mrb[169].mxu0 }
 0x8dc   :  { %v6911_v4 = vadd.f32 %v6910_v49, %v6909_v48  ;;  %v6975_v9 = vadd.f32 %v6974_v44, %v6973_v28  ;;  %v6912_v3 = vpop.f32.mrb[10].mxu1  ;;  %v6976_v42 = vpop.f32.mrb[170].mxu0 }
 0x8dd   :  { %v6913_v35 = vpop.f32.mrb[11].mxu1  ;;  %v6977_v45 = vpop.f32.mrb[171].mxu0 }
 0x8de   :  { %v5958_v60 = vadd.f32 %v6911_v4, %v9083_v52  ;;  %v6914_v31 = vadd.f32 %v6913_v35, %v6912_v3  ;;  %v6978_v2 = vadd.f32 %v6977_v45, %v6976_v42 }
 0x8e0   :  { %v9137_v6 = vadd.f32 %v6975_v9, %v5958_v60  ;;  %v5961_v29 = vadd.f32 %v6914_v31, %v9083_v52 }
 0x8e2   :  { %v9140_v43 = vadd.f32 %v6978_v2, %v5961_v29  ;;  %v6915_v36 = vpop.f32.mrb[12].mxu1  ;;  %v6979_v50 = vpop.f32.mrb[172].mxu0 }
 0x8e3   :  { %v6916_v53 = vpop.f32.mrb[13].mxu1  ;;  %v6980_v62 = vpop.f32.mrb[173].mxu0 }
 0x8e4   :  { %v6917_v51 = vadd.f32 %v6916_v53, %v6915_v36  ;;  %v6981_v61 = vadd.f32 %v6980_v62, %v6979_v50  ;;  %v6918_v25 = vpop.f32.mrb[14].mxu1  ;;  %v6982_v41 = vpop.f32.mrb[174].mxu0 }
 0x8e5   :  { %v6919_v59 = vpop.f32.mrb[15].mxu1  ;;  %v6983_v20 = vpop.f32.mrb[175].mxu0 }
 0x8e6   :  { %v5966_v63 = vadd.f32 %v6917_v51, %v9083_v52  ;;  %v6920_v11 = vadd.f32 %v6919_v59, %v6918_v25  ;;  %v6984_v16 = vadd.f32 %v6983_v20, %v6982_v41 }
 0x8e8   :  { %v9143_v32 = vadd.f32 %v6981_v61, %v5966_v63  ;;  %v5969_v13 = vadd.f32 %v6920_v11, %v9083_v52 }
 0x8ea   :  { %v9146_v47 = vadd.f32 %v6984_v16, %v5969_v13  ;;  %v7001_v55 = vpop.f32.mrb[16].mxu1 }
 0x8eb   :  { %v7065_v23 = vpop.f32.mrb[176].mxu0  ;;  %v7002_v1 = vpop.f32.mrb[17].mxu1 }
 0x8ec   :  { %v7003_v22 = vadd.f32 %v7002_v1, %v7001_v55  ;;  %v7066_v56 = vpop.f32.mrb[177].mxu0  ;;  %v7004_v12 = vpop.f32.mrb[18].mxu1 }
 0x8ed   :  { %v7067_v17 = vadd.f32 %v7066_v56, %v7065_v23  ;;  %v7068_v46 = vpop.f32.mrb[178].mxu0  ;;  %v7005_v5 = vpop.f32.mrb[19].mxu1 }
 0x8ee   :  { %v6104_v40 = vadd.f32 %v7003_v22, %v9101_v38  ;;  %v7006_v19 = vadd.f32 %v7005_v5, %v7004_v12  ;;  %v7069_v14 = vpop.f32.mrb[179].mxu0 }
 0x8ef   :  { %v7070_v30 = vadd.f32 %v7069_v14, %v7068_v46 }
 0x8f0   :  { %v6201_v39 = vadd.f32 %v7067_v17, %v6104_v40  ;;  %v6107_v8 = vadd.f32 %v7006_v19, %v9104_v37 }
 0x8f2   :  { %6263 = vst [vmem:[#allocation20] sm:$0xff] %v6201_v39  ;;  %v6204_v52 = vadd.f32 %v7070_v30, %v6107_v8  ;;  %v7007_v26 = vpop.f32.mrb[20].mxu1 }
 0x8f3   :  { %v7071_v10 = vpop.f32.mrb[180].mxu0  ;;  %v7008_v18 = vpop.f32.mrb[21].mxu1 }
 0x8f4   :  { %6264 = vst [vmem:[#allocation20 + $0x8] sm:$0xff] %v6204_v52  ;;  %v7009_v15 = vadd.f32 %v7008_v18, %v7007_v26  ;;  %v7072_v48 = vpop.f32.mrb[181].mxu0  ;;  %v7010_v28 = vpop.f32.mrb[22].mxu1 }
 0x8f5   :  { %v7073_v49 = vadd.f32 %v7072_v48, %v7071_v10  ;;  %v7074_v44 = vpop.f32.mrb[182].mxu0  ;;  %v7011_v4 = vpop.f32.mrb[23].mxu1 }
 0x8f6   :  { %v6112_v38 = vadd.f32 %v7009_v15, %v9107_v27  ;;  %v7012_v9 = vadd.f32 %v7011_v4, %v7010_v28  ;;  %v7075_v3 = vpop.f32.mrb[183].mxu0 }
 0x8f7   :  { %v7076_v42 = vadd.f32 %v7075_v3, %v7074_v44 }
 0x8f8   :  { %v6209_v35 = vadd.f32 %v7073_v49, %v6112_v38  ;;  %v6115_v37 = vadd.f32 %v7012_v9, %v9110_v21 }
 0x8fa   :  { %6265 = vst [vmem:[#allocation20 + $0x10] sm:$0xff] %v6209_v35  ;;  %v6212_v45 = vadd.f32 %v7076_v42, %v6115_v37  ;;  %v7013_v60 = vpop.f32.mrb[24].mxu1 }
 0x8fb   :  { %v7077_v31 = vpop.f32.mrb[184].mxu0  ;;  %v7014_v2 = vpop.f32.mrb[25].mxu1 }
 0x8fc   :  { %6266 = vst [vmem:[#allocation20 + $0x18] sm:$0xff] %v6212_v45  ;;  %v7015_v29 = vadd.f32 %v7014_v2, %v7013_v60  ;;  %v7078_v36 = vpop.f32.mrb[185].mxu0  ;;  %v7016_v50 = vpop.f32.mrb[26].mxu1 }
 0x8fd   :  { %v7079_v53 = vadd.f32 %v7078_v36, %v7077_v31  ;;  %v7080_v62 = vpop.f32.mrb[186].mxu0  ;;  %v7017_v51 = vpop.f32.mrb[27].mxu1 }
 0x8fe   :  { %v6120_v27 = vadd.f32 %v7015_v29, %v9113_v34  ;;  %v7018_v61 = vadd.f32 %v7017_v51, %v7016_v50  ;;  %v7081_v25 = vpop.f32.mrb[187].mxu0 }
 0x8ff   :  { %v7082_v41 = vadd.f32 %v7081_v25, %v7080_v62 }
 0x900   :  { %v6217_v59 = vadd.f32 %v7079_v53, %v6120_v27  ;;  %v6123_v21 = vadd.f32 %v7018_v61, %v9116_v0 }
 0x902   :  { %6267 = vst [vmem:[#allocation20 + $0x20] sm:$0xff] %v6217_v59  ;;  %v6220_v20 = vadd.f32 %v7082_v41, %v6123_v21  ;;  %v7019_v63 = vpop.f32.mrb[28].mxu1 }
 0x903   :  { %v7083_v11 = vpop.f32.mrb[188].mxu0  ;;  %v7020_v16 = vpop.f32.mrb[29].mxu1 }
 0x904   :  { %6268 = vst [vmem:[#allocation20 + $0x28] sm:$0xff] %v6220_v20  ;;  %v7021_v13 = vadd.f32 %v7020_v16, %v7019_v63  ;;  %v7084_v55 = vpop.f32.mrb[189].mxu0  ;;  %v7022_v23 = vpop.f32.mrb[30].mxu1 }
 0x905   :  { %v7085_v1 = vadd.f32 %v7084_v55, %v7083_v11  ;;  %v7086_v22 = vpop.f32.mrb[190].mxu0  ;;  %v7023_v56 = vpop.f32.mrb[31].mxu1 }
 0x906   :  { %v6128_v34 = vadd.f32 %v7021_v13, %v9119_v33  ;;  %v7024_v12 = vadd.f32 %v7023_v56, %v7022_v23  ;;  %v7087_v17 = vpop.f32.mrb[191].mxu0 }
 0x907   :  { %v7088_v46 = vadd.f32 %v7087_v17, %v7086_v22 }
 0x908   :  { %v6225_v5 = vadd.f32 %v7085_v1, %v6128_v34  ;;  %v6131_v0 = vadd.f32 %v7024_v12, %v9122_v7 }
 0x90a   :  { %6269 = vst [vmem:[#allocation20 + $0x30] sm:$0xff] %v6225_v5  ;;  %v6228_v40 = vadd.f32 %v7088_v46, %v6131_v0  ;;  %v7025_v19 = vpop.f32.mrb[32].mxu1 }
 0x90b   :  { %v7089_v14 = vpop.f32.mrb[192].mxu0  ;;  %v7026_v30 = vpop.f32.mrb[33].mxu1 }
 0x90c   :  { %6270 = vst [vmem:[#allocation20 + $0x38] sm:$0xff] %v6228_v40  ;;  %v7027_v39 = vadd.f32 %v7026_v30, %v7025_v19  ;;  %v7090_v8 = vpop.f32.mrb[193].mxu0  ;;  %v7028_v52 = vpop.f32.mrb[34].mxu1 }
 0x90d   :  { %v7091_v26 = vadd.f32 %v7090_v8, %v7089_v14  ;;  %v7092_v10 = vpop.f32.mrb[194].mxu0  ;;  %v7029_v18 = vpop.f32.mrb[35].mxu1 }
 0x90e   :  { %v6136_v33 = vadd.f32 %v7027_v39, %v9125_v24  ;;  %v7030_v15 = vadd.f32 %v7029_v18, %v7028_v52  ;;  %v7093_v48 = vpop.f32.mrb[195].mxu0 }
 0x90f   :  { %v7094_v28 = vadd.f32 %v7093_v48, %v7092_v10 }
 0x910   :  { %v6233_v49 = vadd.f32 %v7091_v26, %v6136_v33  ;;  %v6139_v7 = vadd.f32 %v7030_v15, %v9128_v54 }
 0x912   :  { %6271 = vst [vmem:[#allocation20 + $0x40] sm:$0xff] %v6233_v49  ;;  %v6236_v44 = vadd.f32 %v7094_v28, %v6139_v7  ;;  %v7031_v4 = vpop.f32.mrb[36].mxu1 }
 0x913   :  { %v7095_v38 = vpop.f32.mrb[196].mxu0  ;;  %v7032_v9 = vpop.f32.mrb[37].mxu1 }
 0x914   :  { %6272 = vst [vmem:[#allocation20 + $0x48] sm:$0xff] %v6236_v44  ;;  %v7033_v3 = vadd.f32 %v7032_v9, %v7031_v4  ;;  %v7096_v42 = vpop.f32.mrb[197].mxu0  ;;  %v7034_v35 = vpop.f32.mrb[38].mxu1 }
 0x915   :  { %v7097_v37 = vadd.f32 %v7096_v42, %v7095_v38  ;;  %v7098_v45 = vpop.f32.mrb[198].mxu0  ;;  %v7035_v60 = vpop.f32.mrb[39].mxu1 }
 0x916   :  { %v6144_v24 = vadd.f32 %v7033_v3, %v9131_v57  ;;  %v7036_v31 = vadd.f32 %v7035_v60, %v7034_v35  ;;  %v7099_v2 = vpop.f32.mrb[199].mxu0 }
 0x917   :  { %v7100_v29 = vadd.f32 %v7099_v2, %v7098_v45 }
 0x918   :  { %v6241_v36 = vadd.f32 %v7097_v37, %v6144_v24  ;;  %v6147_v54 = vadd.f32 %v7036_v31, %v9134_v58 }
 0x91a   :  { %6273 = vst [vmem:[#allocation20 + $0x50] sm:$0xff] %v6241_v36  ;;  %v6244_v50 = vadd.f32 %v7100_v29, %v6147_v54  ;;  %v7037_v53 = vpop.f32.mrb[40].mxu1 }
 0x91b   :  { %v7101_v62 = vpop.f32.mrb[200].mxu0  ;;  %v7038_v51 = vpop.f32.mrb[41].mxu1 }
 0x91c   :  { %6274 = vst [vmem:[#allocation20 + $0x58] sm:$0xff] %v6244_v50  ;;  %v7039_v27 = vadd.f32 %v7038_v51, %v7037_v53  ;;  %v7102_v61 = vpop.f32.mrb[201].mxu0  ;;  %v7040_v25 = vpop.f32.mrb[42].mxu1 }
 0x91d   :  { %v7103_v41 = vadd.f32 %v7102_v61, %v7101_v62  ;;  %v7104_v59 = vpop.f32.mrb[202].mxu0  ;;  %v7041_v21 = vpop.f32.mrb[43].mxu1 }
 0x91e   :  { %v6152_v57 = vadd.f32 %v7039_v27, %v9137_v6  ;;  %v7042_v20 = vadd.f32 %v7041_v21, %v7040_v25  ;;  %v7105_v63 = vpop.f32.mrb[203].mxu0 }
 0x91f   :  { %v7106_v11 = vadd.f32 %v7105_v63, %v7104_v59 }
 0x920   :  { %v6249_v16 = vadd.f32 %v7103_v41, %v6152_v57  ;;  %v6155_v58 = vadd.f32 %v7042_v20, %v9140_v43 }
 0x922   :  { %6275 = vst [vmem:[#allocation20 + $0x60] sm:$0xff] %v6249_v16  ;;  %v6252_v13 = vadd.f32 %v7106_v11, %v6155_v58  ;;  %v7043_v55 = vpop.f32.mrb[44].mxu1 }
 0x923   :  { %v7107_v23 = vpop.f32.mrb[204].mxu0  ;;  %v7044_v1 = vpop.f32.mrb[45].mxu1 }
 0x924   :  { %6276 = vst [vmem:[#allocation20 + $0x68] sm:$0xff] %v6252_v13  ;;  %v7045_v22 = vadd.f32 %v7044_v1, %v7043_v55  ;;  %v7108_v56 = vpop.f32.mrb[205].mxu0  ;;  %v7046_v34 = vpop.f32.mrb[46].mxu1 }
 0x925   :  { %v7109_v12 = vadd.f32 %v7108_v56, %v7107_v23  ;;  %v7110_v17 = vpop.f32.mrb[206].mxu0  ;;  %v7047_v46 = vpop.f32.mrb[47].mxu1 }
 0x926   :  { %v6160_v6 = vadd.f32 %v7045_v22, %v9143_v32  ;;  %v7048_v5 = vadd.f32 %v7047_v46, %v7046_v34  ;;  %v7111_v0 = vpop.f32.mrb[207].mxu0 }
 0x927   :  { %v7112_v40 = vadd.f32 %v7111_v0, %v7110_v17 }
 0x928   :  { %v6257_v43 = vadd.f32 %v7109_v12, %v6160_v6  ;;  %v6163_v19 = vadd.f32 %v7048_v5, %v9146_v47 }
 0x92a   :  { %6277 = vst [vmem:[#allocation20 + $0x70] sm:$0xff] %v6257_v43  ;;  %v6260_v14 = vadd.f32 %v7112_v40, %v6163_v19 }
 0x92c   :  { %6278 = vst [vmem:[#allocation20 + $0x78] sm:$0xff] %v6260_v14 }
 0x92d   :  { %7919 = shalt.err (!%p7916_p8)
}
 0x92e   :  { %s9216_s4 = sld [smem:[#allocation33_spill]] }
 0x934   :  { %s7920_s1 = scalar_lea.hbm %s9216_s4, 2048 }
 0x935   :  { %p7921_p9 = scmp.ne.s32.totalorder %s9216_s4, %s7920_s1  ;;  %p7924_p10 = scmp.lt.u32.totalorder %s7920_s1, %s9216_s4 }
 0x937   :  { %p7926_p11 = pnand %p7924_p10, %p7921_p9 }
 0x939   :  { %7929 = shalt.err (!%p7926_p11)
}
 0x93a   :  { %6302 = dma.vmem_to_hbm [thread:$0]  %s6297_s13, 2048, %s9216_s4, [#allocation21], %s7950_s28, %s7950_s28, %s7951_s0  }
 0x93b   :  { %7942 = dma.done.wait [#allocation4], 2048  }
 0x93c   :  { %7943 = vsyncadd [#allocation4], 4294965248 }
 0x93d   :  { %7944 = dma.done.wait [#allocation21], 2048  }
 0x93e   :  { %7945 = vsyncadd [#allocation21], 4294965248 }
 0x93f   :  { %6309 = vsyncpa [#allocation3], 1 }
 0x940   :  { %6310 = vsyncpa [#allocation6], 1 }
 0x941   :  { %6311 = vsyncpa [#allocation9], 1 }
 0x942   :  { %6312 = vsyncpa [#allocation12], 1 }
 0x943   :  { %6313 = vsyncpa [#allocation15], 1 }
 0x944   :  { %6314 = vsyncpa [#allocation18], 1 }
 0x945   :  { %6315 = vsyncpa [#allocation4], 1 }
 0x946   :  { %6316 = vsyncpa [#allocation21], 1 }

// kernel: tpu_custom_call.1
= control target key start
LH: loop header
LB: loop body
LE: loop exit
PB: predicated region body
PF: predicated region fallthrough
CT: control target
= control target key end

     0   :  { %s9179_s0 = inlined_call_operand.hbm [shape: bf16[128,128], index: 0, kind: input, shape index: {}]   ;;  %s9180_s1 = inlined_call_operand.hbm [shape: bf16[128,1024], index: 1, kind: input, shape index: {}]   ;;  %s9181_s2 = inlined_call_operand.hbm [shape: f32[1,1024], index: 2, kind: input, shape index: {}]   ;;  %s9182_s3 = inlined_call_operand.hbm [shape: bf16[1024,256], index: 3, kind: input, shape index: {}]   ;;  %s9183_s4 = inlined_call_operand.vmem [shape: f32[1,256], index: 4, kind: input, shape index: {}]   ;;  %s9184_s5 = inlined_call_operand.hbm [shape: bf16[256,128], index: 5, kind: input, shape index: {}]   ;;  %s9185_s6 = inlined_call_operand.vmem [shape: f32[1,128], index: 6, kind: input, shape index: {}]   ;;  %s9186_s7 = inlined_call_operand.hbm [shape: bf16[128,128], index: 7, kind: input, shape index: {}]   ;;  %s9187_s8 = inlined_call_operand.vmem [shape: f32[1,128], index: 8, kind: input, shape index: {}]   ;;  %s9188_s9 = inlined_call_operand.hbm [shape: bf16[128,128], index: 9, kind: input, shape index: {}]   ;;  %s9189_s10 = inlined_call_operand.vmem [shape: f32[1,128], index: 10, kind: input, shape index: {}]   ;;  %s9190_s11 = inlined_call_operand.hbm [shape: bf16[128,256], index: 11, kind: input, shape index: {}]   ;;  %s9191_s12 = inlined_call_operand.vmem [shape: f32[1,256], index: 12, kind: input, shape index: {}]   ;;  %s9192_s13 = inlined_call_operand.hbm [shape: bf16[256,1024], index: 13, kind: input, shape index: {}]   ;;  %s9193_s14 = inlined_call_operand.vmem [shape: f32[1,1024], index: 14, kind: input, shape index: {}]   ;;  %s9194_s15 = inlined_call_operand.hbm [shape: bf16[1024,128], index: 15, kind: input, shape index: {}]   ;;  %s9195_s16 = inlined_call_operand.vmem [shape: f32[1,128], index: 16, kind: input, shape index: {}]   ;;  %s9196_s17 = inlined_call_operand.hbm [shape: f32[128,128], index: 17, kind: output, shape index: {0}]   ;;  %s9197_s18 = inlined_call_operand.hbm [shape: f32[128,128], index: 18, kind: output, shape index: {1}]  }
   0x1   :  { %9206 = sst [smem:[#allocation30_spill]] %s9179_s0 }
   0x2   :  { %9207 = sst [smem:[#allocation31_spill]] %s9180_s1 }
   0x3   :  { %9208 = sst [smem:[#allocation32_spill]] %s9181_s2 }
   0x4   :  { %9209 = sst [smem:[#allocation33_spill]] %s9197_s18 }
   0x5   :  { %24 = vsyncpa [#allocation3], 0 }
   0x6   :  { %25 = vsyncpa [#allocation6], 0 }
   0x7   :  { %26 = vsyncpa [#allocation9], 0 }
   0x8   :  { %27 = vsyncpa [#allocation12], 0 }
   0x9   :  { %28 = vsyncpa [#allocation15], 0 }
   0xa   :  { %29 = vsyncpa [#allocation18], 0 }
   0xb   :  { %30 = vsyncpa [#allocation4], 0 }
   0xc   :  { %31 = vsyncpa [#allocation21], 0  ;;  %s7946_s27 = smov [#allocation5]   ;;  %s9210_s0 = sld [smem:[#allocation31_spill]] }
   0xd   :  { %s49_s28 = sshll.u32 %s7946_s27, 4  ;;  %s50_s28 = int_to_ptr.vmem [resolvable:$true] %s49_s28 }
  0x12   :  { %s7666_s19 = scalar_lea.hbm %s9210_s0, 8192 }
  0x13   :  { %p7667_p0 = scmp.ne.s32.totalorder %s9210_s0, %s7666_s19  ;;  %p7670_p1 = scmp.lt.u32.totalorder %s7666_s19, %s9210_s0 }
  0x15   :  { %p7672_p2 = pnand %p7670_p1, %p7667_p0 }
  0x17   :  { %7675 = shalt.err (!%p7672_p2)
}
  0x18   :  { %s7676_s2 = scalar_lea.vmem %s50_s28, 8192  ;;  %p7681_p4 = scmp.lt.s32.totalorder %s50_s28, %s50_s28 }
  0x19   :  { %p7677_p3 = scmp.ne.s32.totalorder %s50_s28, %s7676_s2  ;;  %p7682_p5 = scmp.lt.s32.totalorder %s7676_s2, %s7676_s2 }
  0x1b   :  { %p7683_p6 = por %p7682_p5, %p7681_p4 }
  0x1d   :  { %p7684_p7 = pnand %p7683_p6, %p7677_p3 }
  0x1f   :  { %7687 = shalt.err (!%p7684_p7)
}
  0x20   :  { %s9202_s23 = smov 512   ;;  %s9203_s24 = smov 32  }
  0x21   :  { %55 = dma.hbm_to_vmem [thread:$0]  %s9210_s0, 8192, %s50_s28, [#allocation6], %s9202_s23, %s9202_s23, %s9203_s24  }
  0x22   :  { %s7949_s27 = smov [#allocation8]   ;;  %s7688_s1 = scalar_lea.hbm %s9182_s3, 16384 }
  0x23   :  { %s71_s29 = sshll.u32 %s7949_s27, 4  ;;  %p7689_p8 = scmp.ne.s32.totalorder %s9182_s3, %s7688_s1  ;;  %s72_s29 = int_to_ptr.vmem [resolvable:$true] %s71_s29 }
  0x24   :  { %p7692_p9 = scmp.lt.u32.totalorder %s7688_s1, %s9182_s3 }
  0x26   :  { %p7694_p10 = pnand %p7692_p9, %p7689_p8 }
  0x28   :  { %7697 = shalt.err (!%p7694_p10)
}
  0x29   :  { %s7698_s18 = scalar_lea.vmem %s72_s29, 16384  ;;  %p7703_p12 = scmp.lt.s32.totalorder %s72_s29, %s72_s29 }
  0x2a   :  { %p7699_p11 = scmp.ne.s32.totalorder %s72_s29, %s7698_s18  ;;  %p7704_p13 = scmp.lt.s32.totalorder %s7698_s18, %s7698_s18 }
  0x2c   :  { %p7705_p0 = por %p7704_p13, %p7703_p12 }
  0x2e   :  { %p7706_p1 = pnand %p7705_p0, %p7699_p11 }
  0x30   :  { %7709 = shalt.err (!%p7706_p1)
}
  0x31   :  { %s7950_s28 = smov 128   ;;  %s7951_s0 = smov 8  }
  0x32   :  { %77 = dma.hbm_to_vmem [thread:$0]  %s9182_s3, 16384, %s72_s29, [#allocation9], %s7950_s28, %s7950_s28, %s7951_s0  }
  0x33   :  { %s7952_s27 = smov [#allocation11]   ;;  %s7953_s19 = smov [#allocation14]  }
  0x34   :  { %s99_s30 = sshll.u32 %s7952_s27, 4  ;;  %s127_s1 = sshll.u32 %s7953_s19, 4  ;;  %s100_s30 = int_to_ptr.vmem [resolvable:$true] %s99_s30  ;;  %s8090_s1 = int_to_ptr.vmem [resolvable:$true] %s127_s1 }
  0x35   :  { %s7710_s21 = scalar_lea.hbm %s9186_s7, 1024 }
  0x36   :  { %p7711_p2 = scmp.ne.s32.totalorder %s9186_s7, %s7710_s21  ;;  %p7714_p3 = scmp.lt.u32.totalorder %s7710_s21, %s9186_s7 }
  0x38   :  { %p7716_p4 = pnand %p7714_p3, %p7711_p2 }
  0x3a   :  { %7719 = shalt.err (!%p7716_p4)
}
  0x3b   :  { %s7720_s3 = scalar_lea.vmem %s100_s30, 1024  ;;  %p7725_p6 = scmp.lt.s32.totalorder %s100_s30, %s100_s30 }
  0x3c   :  { %p7721_p5 = scmp.ne.s32.totalorder %s100_s30, %s7720_s3  ;;  %p7726_p7 = scmp.lt.s32.totalorder %s7720_s3, %s7720_s3 }
  0x3e   :  { %p7727_p8 = por %p7726_p7, %p7725_p6 }
  0x40   :  { %p7728_p9 = pnand %p7727_p8, %p7721_p5 }
  0x42   :  { %7731 = shalt.err (!%p7728_p9)
}
  0x43   :  { %s9204_s29 = smov 64   ;;  %s7955_s25 = smov 4  }
  0x44   :  { %105 = dma.hbm_to_vmem [thread:$0]  %s9186_s7, 1024, %s100_s30, [#allocation12], %s9204_s29, %s9204_s29, %s7955_s25  }
  0x45   :  { %s7732_s19 = scalar_lea.hbm %s9190_s11, 2048 }
  0x46   :  { %p7733_p10 = scmp.ne.s32.totalorder %s9190_s11, %s7732_s19  ;;  %p7736_p11 = scmp.lt.u32.totalorder %s7732_s19, %s9190_s11 }
  0x48   :  { %p7738_p12 = pnand %p7736_p11, %p7733_p10 }
  0x4a   :  { %7741 = shalt.err (!%p7738_p12)
}
  0x4b   :  { %s7742_s2 = scalar_lea.vmem %s8090_s1, 2048  ;;  %p7747_p0 = scmp.lt.s32.totalorder %s8090_s1, %s8090_s1 }
  0x4c   :  { %p7743_p13 = scmp.ne.s32.totalorder %s8090_s1, %s7742_s2  ;;  %p7748_p1 = scmp.lt.s32.totalorder %s7742_s2, %s7742_s2 }
  0x4e   :  { %p7749_p2 = por %p7748_p1, %p7747_p0 }
  0x50   :  { %p7750_p3 = pnand %p7749_p2, %p7743_p13 }
  0x52   :  { %7753 = shalt.err (!%p7750_p3)
}
  0x53   :  { %133 = dma.hbm_to_vmem [thread:$0]  %s9190_s11, 2048, %s8090_s1, [#allocation15], %s7950_s28, %s7950_s28, %s7951_s0  }
  0x54   :  { %s7956_s3 = smov [#allocation2]   ;;  %s7957_s27 = smov [#allocation7]  }
  0x55   :  { %s37_s26 = sshll.u32 %s7956_s3, 4  ;;  %s62_s23 = sshll.u32 %s7957_s27, 4  ;;  %s38_s26 = int_to_ptr.vmem [resolvable:$true] %s37_s26  ;;  %s63_s23 = int_to_ptr.vmem [resolvable:$true] %s62_s23 }
  0x56   :  { %s9211_s18 = sld [smem:[#allocation30_spill]] }
  0x5c   :  { %s7754_s20 = scalar_lea.hbm %s9211_s18, 1024 }
  0x5d   :  { %p7755_p4 = scmp.ne.s32.totalorder %s9211_s18, %s7754_s20  ;;  %p7758_p5 = scmp.lt.u32.totalorder %s7754_s20, %s9211_s18 }
  0x5f   :  { %p7760_p6 = pnand %p7758_p5, %p7755_p4 }
  0x61   :  { %7763 = shalt.err (!%p7760_p6)
}
  0x62   :  { %s7764_s11 = scalar_lea.vmem %s38_s26, 1024  ;;  %p7769_p8 = scmp.lt.s32.totalorder %s38_s26, %s38_s26 }
  0x63   :  { %p7765_p7 = scmp.ne.s32.totalorder %s38_s26, %s7764_s11  ;;  %p7770_p9 = scmp.lt.s32.totalorder %s7764_s11, %s7764_s11 }
  0x65   :  { %p7771_p10 = por %p7770_p9, %p7769_p8 }
  0x67   :  { %p7772_p11 = pnand %p7771_p10, %p7765_p7 }
  0x69   :  { %7775 = shalt.err (!%p7772_p11)
}
  0x6a   :  { %s9212_s1 = smov 64   ;;  %s9213_s29 = sld [smem:[#allocation32_spill]] }
  0x6b   :  { %43 = dma.hbm_to_vmem [thread:$0]  %s9211_s18, 1024, %s38_s26, [#allocation3], %s9212_s1, %s9212_s1, %s7955_s25  }
  0x70   :  { %s7776_s24 = scalar_lea.hbm %s9213_s29, 128 }
  0x71   :  { %p7777_p12 = scmp.ne.s32.totalorder %s9213_s29, %s7776_s24  ;;  %p7780_p13 = scmp.lt.u32.totalorder %s7776_s24, %s9213_s29 }
  0x73   :  { %p7782_p0 = pnand %p7780_p13, %p7777_p12 }
  0x75   :  { %7785 = shalt.err (!%p7782_p0)
}
  0x76   :  { %s7786_s2 = scalar_lea.vmem %s63_s23, 128  ;;  %p7791_p2 = scmp.lt.s32.totalorder %s63_s23, %s63_s23 }
  0x77   :  { %p7787_p1 = scmp.ne.s32.totalorder %s63_s23, %s7786_s2  ;;  %p7792_p3 = scmp.lt.s32.totalorder %s7786_s2, %s7786_s2 }
  0x79   :  { %p7793_p4 = por %p7792_p3, %p7791_p2 }
  0x7b   :  { %p7794_p5 = pnand %p7793_p4, %p7787_p1 }
  0x7d   :  { %7797 = shalt.err (!%p7794_p5)
}
  0x7e   :  { %65 = dma.hbm_to_vmem [thread:$0]  %s9213_s29, 128, %s63_s23, [#allocation6]  }
  0x7f   :  { %s7958_s11 = smov [#allocation10]   ;;  %s7959_s30 = smov [#allocation13]  }
  0x80   :  { %s85_s7 = sshll.u32 %s7958_s11, 4  ;;  %s113_s3 = sshll.u32 %s7959_s30, 4  ;;  %s86_s7 = int_to_ptr.vmem [resolvable:$true] %s85_s7  ;;  %s8154_s3 = int_to_ptr.vmem [resolvable:$true] %s113_s3 }
  0x81   :  { %s7798_s19 = scalar_lea.hbm %s9184_s5, 2048 }
  0x82   :  { %p7799_p6 = scmp.ne.s32.totalorder %s9184_s5, %s7798_s19  ;;  %p7802_p7 = scmp.lt.u32.totalorder %s7798_s19, %s9184_s5 }
  0x84   :  { %p7804_p8 = pnand %p7802_p7, %p7799_p6 }
  0x86   :  { %7807 = shalt.err (!%p7804_p8)
}
  0x87   :  { %s7808_s23 = scalar_lea.vmem %s86_s7, 2048  ;;  %p7813_p10 = scmp.lt.s32.totalorder %s86_s7, %s86_s7 }
  0x88   :  { %p7809_p9 = scmp.ne.s32.totalorder %s86_s7, %s7808_s23  ;;  %p7814_p11 = scmp.lt.s32.totalorder %s7808_s23, %s7808_s23 }
  0x8a   :  { %p7815_p12 = por %p7814_p11, %p7813_p10 }
  0x8c   :  { %p7816_p13 = pnand %p7815_p12, %p7809_p9 }
  0x8e   :  { %7819 = shalt.err (!%p7816_p13)
}
  0x8f   :  { %91 = dma.hbm_to_vmem [thread:$0]  %s9184_s5, 2048, %s86_s7, [#allocation9], %s9212_s1, %s9212_s1, %s7955_s25  }
  0x90   :  { %s7820_s30 = scalar_lea.hbm %s9188_s9, 1024 }
  0x91   :  { %p7821_p0 = scmp.ne.s32.totalorder %s9188_s9, %s7820_s30  ;;  %p7824_p1 = scmp.lt.u32.totalorder %s7820_s30, %s9188_s9 }
  0x93   :  { %p7826_p2 = pnand %p7824_p1, %p7821_p0 }
  0x95   :  { %7829 = shalt.err (!%p7826_p2)
}
  0x96   :  { %s7830_s21 = scalar_lea.vmem %s8154_s3, 1024  ;;  %p7835_p4 = scmp.lt.s32.totalorder %s8154_s3, %s8154_s3 }
  0x97   :  { %p7831_p3 = scmp.ne.s32.totalorder %s8154_s3, %s7830_s21  ;;  %p7836_p5 = scmp.lt.s32.totalorder %s7830_s21, %s7830_s21 }
  0x99   :  { %p7837_p6 = por %p7836_p5, %p7835_p4 }
  0x9b   :  { %p7838_p7 = pnand %p7837_p6, %p7831_p3 }
  0x9d   :  { %7841 = shalt.err (!%p7838_p7)
}
  0x9e   :  { %119 = dma.hbm_to_vmem [thread:$0]  %s9188_s9, 1024, %s8154_s3, [#allocation12], %s9212_s1, %s9212_s1, %s7955_s25  }
  0x9f   :  { %s7960_s22 = smov [#allocation16]   ;;  %s7961_s23 = smov [#allocation17]  }
  0xa0   :  { %s141_s2 = sshll.u32 %s7960_s22, 4  ;;  %s155_s29 = sshll.u32 %s7961_s23, 4  ;;  %s142_s2 = int_to_ptr.vmem [resolvable:$true] %s141_s2  ;;  %s8191_s29 = int_to_ptr.vmem [resolvable:$true] %s155_s29 }
  0xa1   :  { %s7842_s11 = scalar_lea.hbm %s9192_s13, 16384 }
  0xa2   :  { %p7843_p8 = scmp.ne.s32.totalorder %s9192_s13, %s7842_s11  ;;  %p7846_p9 = scmp.lt.u32.totalorder %s7842_s11, %s9192_s13 }
  0xa4   :  { %p7848_p10 = pnand %p7846_p9, %p7843_p8 }
  0xa6   :  { %7851 = shalt.err (!%p7848_p10)
}
  0xa7   :  { %s7852_s9 = scalar_lea.vmem %s142_s2, 16384  ;;  %p7857_p12 = scmp.lt.s32.totalorder %s142_s2, %s142_s2 }
  0xa8   :  { %p7853_p11 = scmp.ne.s32.totalorder %s142_s2, %s7852_s9  ;;  %p7858_p13 = scmp.lt.s32.totalorder %s7852_s9, %s7852_s9 }
  0xaa   :  { %p7859_p0 = por %p7858_p13, %p7857_p12 }
  0xac   :  { %p7860_p1 = pnand %p7859_p0, %p7853_p11 }
  0xae   :  { %7863 = shalt.err (!%p7860_p1)
}
  0xaf   :  { %s9214_s3 = smov 32   ;;  %s9215_s20 = smov 512  }
  0xb0   :  { %147 = dma.hbm_to_vmem [thread:$0]  %s9192_s13, 16384, %s142_s2, [#allocation15], %s9215_s20, %s9215_s20, %s9214_s3  }
  0xb1   :  { %s7864_s23 = scalar_lea.hbm %s9194_s15, 8192 }
  0xb2   :  { %p7865_p2 = scmp.ne.s32.totalorder %s9194_s15, %s7864_s23  ;;  %p7868_p3 = scmp.lt.u32.totalorder %s7864_s23, %s9194_s15 }
  0xb4   :  { %p7870_p4 = pnand %p7868_p3, %p7865_p2 }
  0xb6   :  { %7873 = shalt.err (!%p7870_p4)
}
  0xb7   :  { %s7874_s27 = scalar_lea.vmem %s8191_s29, 8192  ;;  %p7879_p6 = scmp.lt.s32.totalorder %s8191_s29, %s8191_s29 }
  0xb8   :  { %p7875_p5 = scmp.ne.s32.totalorder %s8191_s29, %s7874_s27  ;;  %p7880_p7 = scmp.lt.s32.totalorder %s7874_s27, %s7874_s27 }
  0xba   :  { %p7881_p8 = por %p7880_p7, %p7879_p6 }
  0xbc   :  { %p7882_p9 = pnand %p7881_p8, %p7875_p5 }
  0xbe   :  { %7885 = shalt.err (!%p7882_p9)
}
  0xbf   :  { %161 = dma.hbm_to_vmem [thread:$0]  %s9194_s15, 8192, %s8191_s29, [#allocation18], %s9212_s1, %s9212_s1, %s7955_s25  }
  0xc0   :  { %7930 = dma.done.wait [#allocation3], 1024  }
  0xc1   :  { %7931 = vsyncadd [#allocation3], 4294966272 }
  0xc2   :  { %7932 = dma.done.wait [#allocation6], 8320  }
  0xc3   :  { %7933 = vsyncadd [#allocation6], 4294958976 }
  0xc4   :  { %7934 = dma.done.wait [#allocation9], 18432  }
  0xc5   :  { %7935 = vsyncadd [#allocation9], 4294948864 }
  0xc6   :  { %7936 = dma.done.wait [#allocation12], 2048  }
  0xc7   :  { %7937 = vsyncadd [#allocation12], 4294965248 }
  0xc8   :  { %7938 = dma.done.wait [#allocation15], 18432  }
  0xc9   :  { %7939 = vsyncadd [#allocation15], 4294948864 }
  0xca   :  { %7940 = dma.done.wait [#allocation18], 8192  }
  0xcb   :  { %7941 = vsyncadd [#allocation18], 4294959104  ;;  %v7962_v0 = vmov 0   ;;  %v211_v1 = vld [vmem:[#allocation5] sm:$0xff]  ;;  %v212_v32 = vld [vmem:[#allocation5 + $0x8] sm:$0xff]  ;;  %s7963_s20 = smov [#allocation19]  }
  0xcc   :  { %717 = vmatprep.mubr.bf16.mxu0 %v7962_v0  ;;  %757 = vmatprep.mubr.bf16.mxu1 %v7962_v0  ;;  %v215_v2 = vld [vmem:[#allocation5 + $0x20] sm:$0xff]  ;;  %v213_v33 = vld [vmem:[#allocation5 + $0x10] sm:$0xff]  ;;  %v216_v35 = vld [vmem:[#allocation5 + $0x28] sm:$0xff]  ;;  %s6284_s21 = sshll.u32 %s7963_s20, 4  ;;  %s6285_s21 = int_to_ptr.vmem [resolvable:$true] %s6284_s21 }
  0xcd   :  { %v219_v3 = vld [vmem:[#allocation5 + $0x40] sm:$0xff]  ;;  %v6326_v4 = vcombine.high %v211_v1, %v215_v2  ;;  %v6325_v5 = vcombine.low %v211_v1, %v215_v2  ;;  %v217_v34 = vld [vmem:[#allocation5 + $0x30] sm:$0xff]  ;;  %v6328_v40 = vcombine.high %v212_v32, %v216_v35  ;;  %v220_v41 = vld [vmem:[#allocation5 + $0x48] sm:$0xff]  ;;  %v6327_v45 = vcombine.low %v212_v32, %v216_v35  ;;  %s7886_s5 = scalar_lea.vmem %s6285_s21, 2048  ;;  %p7891_p11 = scmp.lt.s32.totalorder %s6285_s21, %s6285_s21 }
  0xce   :  { %v223_v6 = vld [vmem:[#allocation5 + $0x60] sm:$0xff]  ;;  %v6330_v38 = vcombine.high %v213_v33, %v217_v34  ;;  %v224_v42 = vld [vmem:[#allocation5 + $0x68] sm:$0xff]  ;;  %v221_v43 = vld [vmem:[#allocation5 + $0x50] sm:$0xff]  ;;  %v6329_v48 = vcombine.low %v213_v33, %v217_v34  ;;  %p7887_p10 = scmp.ne.s32.totalorder %s6285_s21, %s7886_s5  ;;  %p7892_p12 = scmp.lt.s32.totalorder %s7886_s5, %s7886_s5 }
  0xcf   :  { %v6334_v7 = vcombine.high %v219_v3, %v223_v6  ;;  %v227_v8 = vld [vmem:[#allocation5 + $0x80] sm:$0xff]  ;;  %685 = vmatprep.subr.bf16.mxu0 %v6326_v4  ;;  %7177 = vmatprep.subr.bf16.mxu1 %v6326_v4  ;;  %v6333_v10 = vcombine.low %v219_v3, %v223_v6  ;;  %v225_v44 = vld [vmem:[#allocation5 + $0x70] sm:$0xff]  ;;  %v6336_v46 = vcombine.high %v220_v41, %v224_v42  ;;  %v228_v47 = vld [vmem:[#allocation5 + $0x88] sm:$0xff] }
  0xd0   :  { %v231_v9 = vld [vmem:[#allocation5 + $0xa0] sm:$0xff]  ;;  %686 = vmatpush1.bf16.msra.mxu0 %v6325_v5  ;;  %7185 = vmatpush1.bf16.msra.mxu1 %v6325_v5  ;;  %v232_v49 = vld [vmem:[#allocation5 + $0xa8] sm:$0xff]  ;;  %v6338_v50 = vcombine.high %v221_v43, %v225_v44  ;;  %v229_v51 = vld [vmem:[#allocation5 + $0x90] sm:$0xff]  ;;  %v6335_v54 = vcombine.low %v220_v41, %v224_v42  ;;  %v6337_v58 = vcombine.low %v221_v43, %v225_v44  ;;  %p7893_p13 = por %p7892_p12, %p7891_p11 }
  0xd1   :  { %687 = vmatprep.subr.bf16.mxu0 %v6334_v7  ;;  %v6342_v11 = vcombine.high %v227_v8, %v231_v9  ;;  %v235_v12 = vld [vmem:[#allocation5 + $0xc0] sm:$0xff]  ;;  %7178 = vmatprep.subr.bf16.mxu1 %v6334_v7  ;;  %v6341_v14 = vcombine.low %v227_v8, %v231_v9  ;;  %v233_v52 = vld [vmem:[#allocation5 + $0xb0] sm:$0xff]  ;;  %v8237_v53 = vld [vmem:[#allocation2 + $0x8] sm:$0xff]   ;;  %v6344_v56 = vcombine.high %v228_v47, %v232_v49 }
  0xd2   :  { %v239_v13 = vld [vmem:[#allocation5 + $0xe0] sm:$0xff]  ;;  %v8240_v55 = vld [vmem:[#allocation2 + $0x28] sm:$0xff]   ;;  %v6346_v60 = vcombine.high %v229_v51, %v233_v52  ;;  %v237_v61 = vld [vmem:[#allocation5 + $0xd0] sm:$0xff]  ;;  %v6343_v63 = vcombine.low %v228_v47, %v232_v49  ;;  %v6345_v3 = vcombine.low %v229_v51, %v233_v52  ;;  %p7894_p0 = pnand %p7893_p13, %p7887_p10 }
  0xd3   :  { %v6350_v15 = vcombine.high %v235_v12, %v239_v13  ;;  %v243_v16 = vld [vmem:[#allocation5 + $0x100] sm:$0xff]  ;;  %v6349_v18 = vcombine.low %v235_v12, %v239_v13  ;;  %v236_v57 = vld [vmem:[#allocation5 + $0xc8] sm:$0xff]  ;;  %v241_v62 = vld [vmem:[#allocation5 + $0xf0] sm:$0xff] }
  0xd4   :  { %688 = vmatpush1.bf16.msra.mxu0 %v6333_v10  ;;  %7186 = vmatpush1.bf16.msra.mxu1 %v6333_v10  ;;  %v247_v17 = vld [vmem:[#allocation5 + $0x120] sm:$0xff]  ;;  %v240_v59 = vld [vmem:[#allocation5 + $0xe8] sm:$0xff]  ;;  %v6354_v5 = vcombine.high %v237_v61, %v241_v62  ;;  %v245_v6 = vld [vmem:[#allocation5 + $0x110] sm:$0xff] }
  0xd5   :  { %689 = vmatprep.subr.bf16.mxu0 %v6342_v11  ;;  %7179 = vmatprep.subr.bf16.mxu1 %v6342_v11  ;;  %v6358_v19 = vcombine.high %v243_v16, %v247_v17  ;;  %v251_v20 = vld [vmem:[#allocation5 + $0x140] sm:$0xff]  ;;  %v6357_v22 = vcombine.low %v243_v16, %v247_v17  ;;  %v6352_v1 = vcombine.high %v236_v57, %v240_v59  ;;  %v244_v2 = vld [vmem:[#allocation5 + $0x108] sm:$0xff]  ;;  %v249_v7 = vld [vmem:[#allocation5 + $0x130] sm:$0xff] }
  0xd6   :  { %v255_v21 = vld [vmem:[#allocation5 + $0x160] sm:$0xff]  ;;  %v248_v4 = vld [vmem:[#allocation5 + $0x128] sm:$0xff]  ;;  %v8245_v8 = vld [vmem:[#allocation2 + $0x10] sm:$0xff]   ;;  %v6351_v9 = vcombine.low %v236_v57, %v240_v59  ;;  %v6362_v17 = vcombine.high %v245_v6, %v249_v7 }
  0xd7   :  { %v6366_v23 = vcombine.high %v251_v20, %v255_v21  ;;  %v259_v24 = vld [vmem:[#allocation5 + $0x180] sm:$0xff]  ;;  %v6365_v26 = vcombine.low %v251_v20, %v255_v21  ;;  %v252_v10 = vld [vmem:[#allocation5 + $0x148] sm:$0xff]  ;;  %v8248_v11 = vld [vmem:[#allocation2 + $0x30] sm:$0xff]   ;;  %v6360_v12 = vcombine.high %v244_v2, %v248_v4 }
  0xd8   :  { %690 = vmatpush1.bf16.msra.mxu0 %v6341_v14  ;;  %7187 = vmatpush1.bf16.msra.mxu1 %v6341_v14  ;;  %v263_v25 = vld [vmem:[#allocation5 + $0x1a0] sm:$0xff]  ;;  %v256_v13 = vld [vmem:[#allocation5 + $0x168] sm:$0xff]  ;;  %v6353_v14 = vcombine.low %v237_v61, %v241_v62  ;;  %v257_v16 = vld [vmem:[#allocation5 + $0x170] sm:$0xff] }
  0xd9   :  { %691 = vmatprep.subr.bf16.mxu0 %v6350_v15  ;;  %7180 = vmatprep.subr.bf16.mxu1 %v6350_v15  ;;  %v6374_v27 = vcombine.high %v259_v24, %v263_v25  ;;  %v267_v28 = vld [vmem:[#allocation5 + $0x1c0] sm:$0xff]  ;;  %v6373_v30 = vcombine.low %v259_v24, %v263_v25  ;;  %v253_v15 = vld [vmem:[#allocation5 + $0x150] sm:$0xff]  ;;  %v264_v20 = vld [vmem:[#allocation5 + $0x1a8] sm:$0xff]  ;;  %v6368_v21 = vcombine.high %v252_v10, %v256_v13 }
  0xda   :  { %v271_v29 = vld [vmem:[#allocation5 + $0x1e0] sm:$0xff]  ;;  %v265_v24 = vld [vmem:[#allocation5 + $0x1b0] sm:$0xff]  ;;  %v6370_v25 = vcombine.high %v253_v15, %v257_v16  ;;  %v6369_v32 = vcombine.low %v253_v15, %v257_v16  ;;  %v226_v49 = vld [vmem:[#allocation5 + $0x78] sm:$0xff] }
  0xdb   :  { %v6382_v31 = vcombine.high %v267_v28, %v271_v29  ;;  %v6381_v36 = vcombine.low %v267_v28, %v271_v29  ;;  %v8230_v37 = vld [vmem:[#allocation2] sm:$0xff]   ;;  %v268_v28 = vld [vmem:[#allocation5 + $0x1c8] sm:$0xff]  ;;  %v269_v33 = vld [vmem:[#allocation5 + $0x1d0] sm:$0xff] }
  0xdc   :  { %692 = vmatpush1.bf16.msra.mxu0 %v6349_v18  ;;  %7188 = vmatpush1.bf16.msra.mxu1 %v6349_v18  ;;  %v8232_v39 = vld [vmem:[#allocation2 + $0x20] sm:$0xff]   ;;  %v6359_v18 = vcombine.low %v244_v2, %v248_v4  ;;  %v272_v29 = vld [vmem:[#allocation5 + $0x1e8] sm:$0xff]  ;;  %v273_v34 = vld [vmem:[#allocation5 + $0x1f0] sm:$0xff] }
  0xdd   :  { %693 = vmatprep.subr.bf16.mxu0 %v6358_v19  ;;  %7181 = vmatprep.subr.bf16.mxu1 %v6358_v19  ;;  %v260_v19 = vld [vmem:[#allocation5 + $0x188] sm:$0xff]  ;;  %v6384_v41 = vcombine.high %v268_v28, %v272_v29  ;;  %v6386_v43 = vcombine.high %v269_v33, %v273_v34  ;;  %v6383_v44 = vcombine.low %v268_v28, %v272_v29  ;;  %v230_v52 = vld [vmem:[#allocation5 + $0x98] sm:$0xff] }
  0xde   :  { %v242_v61 = vld [vmem:[#allocation5 + $0xf8] sm:$0xff]  ;;  %v7356_v62 = vld [vmem:[#allocation8 + $0x24] ss:$8 sps:$4 sm:$0xff]  }
  0xdf   :  { %v250_v4 = vld [vmem:[#allocation5 + $0x138] sm:$0xff] }
  0xe0   :  { %694 = vmatpush1.bf16.msra.mxu0 %v6357_v22  ;;  %7189 = vmatpush1.bf16.msra.mxu1 %v6357_v22  ;;  %v6361_v22 = vcombine.low %v245_v6, %v249_v7  ;;  %v7357_v6 = vld [vmem:[#allocation8 + $0x30] ss:$8 sps:$4 sm:$0xff]   ;;  %v7371_v28 = vld [vmem:[#allocation8 + $0x74] ss:$8 sps:$4 sm:$0xff]  }
  0xe1   :  { %695 = vmatprep.subr.bf16.mxu0 %v6366_v23  ;;  %7182 = vmatprep.subr.bf16.mxu1 %v6366_v23  ;;  %v261_v23 = vld [vmem:[#allocation5 + $0x190] sm:$0xff]  ;;  %v262_v16 = vld [vmem:[#allocation5 + $0x198] sm:$0xff] }
  0xe2   :  { %v6378_v35 = vcombine.high %v261_v23, %v265_v24  ;;  %v6377_v42 = vcombine.low %v261_v23, %v265_v24  ;;  %v7368_v23 = vld [vmem:[#allocation8 + $0x64] ss:$8 sps:$4 sm:$0xff]  }
  0xe4   :  { %696 = vmatpush1.bf16.msra.mxu0 %v6365_v26  ;;  %7190 = vmatpush1.bf16.msra.mxu1 %v6365_v26  ;;  %v8253_v26 = vld [vmem:[#allocation2 + $0x18] sm:$0xff]  }
  0xe5   :  { %697 = vmatprep.subr.bf16.mxu0 %v6374_v27  ;;  %7183 = vmatprep.subr.bf16.mxu1 %v6374_v27  ;;  %v6367_v27 = vcombine.low %v252_v10, %v256_v13  ;;  %v258_v10 = vld [vmem:[#allocation5 + $0x178] sm:$0xff] }
  0xe8   :  { %698 = vmatpush1.bf16.msra.mxu0 %v6373_v30  ;;  %7191 = vmatpush1.bf16.msra.mxu1 %v6373_v30  ;;  %v8256_v30 = vld [vmem:[#allocation2 + $0x38] sm:$0xff]  }
  0xe9   :  { %699 = vmatprep.subr.bf16.mxu0 %v6382_v31  ;;  %7184 = vmatprep.subr.bf16.mxu1 %v6382_v31  ;;  %v6376_v31 = vcombine.high %v260_v19, %v264_v20 }
  0xec   :  { %700 = vmatpush1.bf16.msra.mxu0 %v6381_v36  ;;  %7192 = vmatpush1.bf16.msra.mxu1 %v6381_v36  ;;  %v6375_v36 = vcombine.low %v260_v19, %v264_v20  ;;  %v7363_v19 = vld [vmem:[#allocation8 + $0x50] ss:$8 sps:$4 sm:$0xff]  }
  0xed   :  { %911 = vmatprep.subr.bf16.mxu0 %v6330_v38  ;;  %798 = vmatprep.subr.bf16.mxu1 %v6328_v40  ;;  %v214_v38 = vld [vmem:[#allocation5 + $0x18] sm:$0xff] }
  0xee   :  { %v218_v40 = vld [vmem:[#allocation5 + $0x38] sm:$0xff] }
  0xef   :  { %718 = vmatmul.mubr.bf16.vlgmr.msra.gmra.mrb[0].mxu0 %v8230_v37  ;;  %758 = vmatmul.mubr.bf16.vlgmr.msra.gmra.mrb[0].mxu1 %v8232_v39  ;;  %v6332_v47 = vcombine.high %v214_v38, %v218_v40  ;;  %v6331_v51 = vcombine.low %v214_v38, %v218_v40  ;;  %v7380_v38 = vld [vmem:[#allocation8 + $0xa4] ss:$8 sps:$4 sm:$0xff]   ;;  %v7378_v40 = vld [vmem:[#allocation8 + $0xa0] ss:$8 sps:$4 sm:$0xff]  }
  0xf0   :  { %727 = vmatprep.mubr.bf16.mxu0 %v7962_v0  ;;  %799 = vmatpush1.bf16.msra.mxu1 %v6327_v45  ;;  %v7350_v45 = vld [vmem:[#allocation8 + $0x4] ss:$8 sps:$4 sm:$0xff]  }
  0xf1   :  { %767 = vmatprep.mubr.bf16.mxu1 %v7962_v0  ;;  %800 = vmatprep.subr.bf16.mxu1 %v6336_v46  ;;  %v6385_v46 = vcombine.low %v269_v33, %v273_v34  ;;  %v7374_v33 = vld [vmem:[#allocation8 + $0x84] ss:$8 sps:$4 sm:$0xff]   ;;  %v7372_v34 = vld [vmem:[#allocation8 + $0x80] ss:$8 sps:$4 sm:$0xff]  }
  0xf2   :  { %912 = vmatpush1.bf16.msra.mxu0 %v6329_v48  ;;  %v222_v48 = vld [vmem:[#allocation5 + $0x58] sm:$0xff] }
  0xf3   :  { %913 = vmatprep.subr.bf16.mxu0 %v6338_v50  ;;  %v7348_v50 = vld [vmem:[#allocation8] ss:$8 sps:$4 sm:$0xff]   ;;  %v6340_v57 = vcombine.high %v222_v48, %v226_v49  ;;  %v6339_v59 = vcombine.low %v222_v48, %v226_v49  ;;  %v7393_v48 = vld [vmem:[#allocation8 + $0xf0] ss:$8 sps:$4 sm:$0xff]  }
  0xf4   :  { %801 = vmatpush1.bf16.msra.mxu1 %v6335_v54  ;;  %v234_v54 = vld [vmem:[#allocation5 + $0xb8] sm:$0xff]  ;;  %v7660_v49 = vld [vmem:[#allocation2] sm:$0xff]  }
  0xf5   :  { %802 = vmatprep.subr.bf16.mxu1 %v6344_v56  ;;  %v7353_v56 = vld [vmem:[#allocation8 + $0x14] ss:$8 sps:$4 sm:$0xff]   ;;  %v6347_v2 = vcombine.low %v230_v52, %v234_v54 }
  0xf6   :  { %914 = vmatpush1.bf16.msra.mxu0 %v6337_v58  ;;  %v7351_v58 = vld [vmem:[#allocation8 + $0x10] ss:$8 sps:$4 sm:$0xff]  }
  0xf7   :  { %728 = vmatmul.mubr.bf16.gmra.mrb[4].mxu0 %v8237_v53  ;;  %915 = vmatprep.subr.bf16.mxu0 %v6346_v60  ;;  %v238_v60 = vld [vmem:[#allocation5 + $0xd8] sm:$0xff] }
  0xf8   :  { %737 = vmatprep.mubr.bf16.mxu0 %v7962_v0  ;;  %768 = vmatmul.mubr.bf16.gmra.mrb[4].mxu1 %v8240_v55  ;;  %v6355_v7 = vcombine.low %v238_v60, %v242_v61 }
  0xf9   :  { %803 = vmatpush1.bf16.msra.mxu1 %v6343_v63  ;;  %777 = vmatprep.mubr.bf16.mxu1 %v7962_v0  ;;  %v6348_v63 = vcombine.high %v230_v52, %v234_v54  ;;  %v7663_v52 = vld [vmem:[#allocation2 + $0x28] sm:$0xff]   ;;  %v7664_v54 = vld [vmem:[#allocation2 + $0x30] sm:$0xff]  }
  0xfa   :  { %804 = vmatprep.subr.bf16.mxu1 %v6352_v1  ;;  %916 = vmatpush1.bf16.msra.mxu0 %v6345_v3  ;;  %v7354_v1 = vld [vmem:[#allocation8 + $0x20] ss:$8 sps:$4 sm:$0xff]   ;;  %v246_v3 = vld [vmem:[#allocation5 + $0x118] sm:$0xff] }
  0xfb   :  { %917 = vmatprep.subr.bf16.mxu0 %v6354_v5  ;;  %v7359_v5 = vld [vmem:[#allocation8 + $0x34] ss:$8 sps:$4 sm:$0xff]   ;;  %v6364_v13 = vcombine.high %v246_v3, %v250_v4  ;;  %v6363_v15 = vcombine.low %v246_v3, %v250_v4 }
  0xfd   :  { %805 = vmatpush1.bf16.msra.mxu1 %v6351_v9  ;;  %v254_v9 = vld [vmem:[#allocation5 + $0x158] sm:$0xff] }
  0xfe   :  { %806 = vmatprep.subr.bf16.mxu1 %v6360_v12  ;;  %918 = vmatpush1.bf16.msra.mxu0 %v6353_v14  ;;  %v7362_v12 = vld [vmem:[#allocation8 + $0x44] ss:$8 sps:$4 sm:$0xff]   ;;  %v7360_v14 = vld [vmem:[#allocation8 + $0x40] ss:$8 sps:$4 sm:$0xff]   ;;  %v6371_v20 = vcombine.low %v254_v9, %v258_v10 }
  0xff   :  { %738 = vmatmul.mubr.bf16.gmra.mrb[8].mxu0 %v8245_v8  ;;  %919 = vmatprep.subr.bf16.mxu0 %v6362_v17  ;;  %v266_v17 = vld [vmem:[#allocation5 + $0x1b8] sm:$0xff] }
 0x100   :  { %747 = vmatprep.mubr.bf16.mxu0 %v7962_v0  ;;  %778 = vmatmul.mubr.bf16.gmra.mrb[8].mxu1 %v8248_v11  ;;  %v6380_v24 = vcombine.high %v262_v16, %v266_v17 }
 0x101   :  { %807 = vmatpush1.bf16.msra.mxu1 %v6359_v18  ;;  %787 = vmatprep.mubr.bf16.mxu1 %v7962_v0  ;;  %v7365_v18 = vld [vmem:[#allocation8 + $0x54] ss:$8 sps:$4 sm:$0xff]  }
 0x102   :  { %808 = vmatprep.subr.bf16.mxu1 %v6368_v21  ;;  %920 = vmatpush1.bf16.msra.mxu0 %v6361_v22  ;;  %v270_v21 = vld [vmem:[#allocation5 + $0x1d8] sm:$0xff] }
 0x103   :  { %921 = vmatprep.subr.bf16.mxu0 %v6370_v25  ;;  %v274_v22 = vld [vmem:[#allocation5 + $0x1f8] sm:$0xff]  ;;  %v7366_v25 = vld [vmem:[#allocation8 + $0x60] ss:$8 sps:$4 sm:$0xff]  }
 0x104   :  { %v6388_v29 = vcombine.high %v270_v21, %v274_v22 }
 0x105   :  { %809 = vmatpush1.bf16.msra.mxu1 %v6367_v27  ;;  %v6379_v27 = vcombine.low %v262_v16, %v266_v17 }
 0x106   :  { %810 = vmatprep.subr.bf16.mxu1 %v6376_v31  ;;  %922 = vmatpush1.bf16.msra.mxu0 %v6369_v32  ;;  %v7369_v31 = vld [vmem:[#allocation8 + $0x70] ss:$8 sps:$4 sm:$0xff]   ;;  %v6387_v32 = vcombine.low %v270_v21, %v274_v22 }
 0x107   :  { %748 = vmatmul.mubr.bf16.gmra.mrb[12].mxu0 %v8253_v26  ;;  %923 = vmatprep.subr.bf16.mxu0 %v6378_v35  ;;  %v7377_v35 = vld [vmem:[#allocation8 + $0x94] ss:$8 sps:$4 sm:$0xff]  }
 0x108   :  { %788 = vmatmul.mubr.bf16.gmra.mrb[12].mxu1 %v8256_v30  ;;  %943 = vmatprep.mubr.bf16.mxu0 %v7962_v0 }
 0x109   :  { %811 = vmatpush1.bf16.msra.mxu1 %v6375_v36  ;;  %830 = vmatprep.mubr.bf16.mxu1 %v7962_v0  ;;  %v7375_v36 = vld [vmem:[#allocation8 + $0x90] ss:$8 sps:$4 sm:$0xff]  }
 0x10a   :  { %812 = vmatprep.subr.bf16.mxu1 %v6384_v41  ;;  %924 = vmatpush1.bf16.msra.mxu0 %v6377_v42  ;;  %v7383_v41 = vld [vmem:[#allocation8 + $0xb4] ss:$8 sps:$4 sm:$0xff]   ;;  %v7381_v42 = vld [vmem:[#allocation8 + $0xb0] ss:$8 sps:$4 sm:$0xff]  }
 0x10b   :  { %925 = vmatprep.subr.bf16.mxu0 %v6386_v43  ;;  %v7384_v43 = vld [vmem:[#allocation8 + $0xc0] ss:$8 sps:$4 sm:$0xff]  }
 0x10d   :  { %813 = vmatpush1.bf16.msra.mxu1 %v6383_v44  ;;  %v7389_v44 = vld [vmem:[#allocation8 + $0xd4] ss:$8 sps:$4 sm:$0xff]  }
 0x10e   :  { %926 = vmatpush1.bf16.msra.mxu0 %v6385_v46  ;;  %1024 = vmatprep.subr.bf16.mxu1 %v6332_v47  ;;  %v7390_v46 = vld [vmem:[#allocation8 + $0xe0] ss:$8 sps:$4 sm:$0xff]   ;;  %v7395_v47 = vld [vmem:[#allocation8 + $0xf4] ss:$8 sps:$4 sm:$0xff]  }
 0x10f   :  { %2237 = vmatprep.subr.bf16.mxu0 %v7350_v45  ;;  %v7387_v45 = vld [vmem:[#allocation8 + $0xd0] ss:$8 sps:$4 sm:$0xff]  }
 0x110   :  { %831 = vmatmul.mubr.bf16.vlgmr.msra.gmra.mrb[16].mxu1 %v8230_v37 }
 0x111   :  { %840 = vmatprep.mubr.bf16.mxu1 %v7962_v0  ;;  %944 = vmatmul.mubr.bf16.vlgmr.msra.gmra.mrb[16].mxu0 %v8230_v37  ;;  %v6356_v37 = vcombine.high %v238_v60, %v242_v61 }
 0x112   :  { %1025 = vmatpush1.bf16.msra.mxu1 %v6331_v51  ;;  %953 = vmatprep.mubr.bf16.mxu0 %v7962_v0  ;;  %v7662_v51 = vld [vmem:[#allocation2 + $0x20] sm:$0xff]  }
 0x113   :  { %1026 = vmatprep.subr.bf16.mxu1 %v6340_v57  ;;  %2238 = vmatpush1.bf16.msra.mxu0 %v7348_v50  ;;  %v7661_v50 = vld [vmem:[#allocation2 + $0x8] sm:$0xff]   ;;  %v8308_v57 = vld [vmem:[#allocation7] sm:$0xff] }
 0x114   :  { %2239 = vmatprep.subr.bf16.mxu0 %v7353_v56 }
 0x116   :  { %1027 = vmatpush1.bf16.msra.mxu1 %v6339_v59 }
 0x117   :  { %1028 = vmatprep.subr.bf16.mxu1 %v6348_v63  ;;  %2240 = vmatpush1.bf16.msra.mxu0 %v7351_v58 }
 0x118   :  { %841 = vmatmul.mubr.bf16.gmra.mrb[20].mxu1 %v8237_v53  ;;  %2241 = vmatprep.subr.bf16.mxu0 %v7356_v62 }
 0x119   :  { %850 = vmatprep.mubr.bf16.mxu1 %v7962_v0  ;;  %954 = vmatmul.mubr.bf16.gmra.mrb[20].mxu0 %v8237_v53  ;;  %v6372_v53 = vcombine.high %v254_v9, %v258_v10 }
 0x11a   :  { %963 = vmatprep.mubr.bf16.mxu0 %v7962_v0  ;;  %1029 = vmatpush1.bf16.msra.mxu1 %v6347_v2 }
 0x11b   :  { %1030 = vmatprep.subr.bf16.mxu1 %v6356_v37  ;;  %2242 = vmatpush1.bf16.msra.mxu0 %v7354_v1 }
 0x11c   :  { %2243 = vmatprep.subr.bf16.mxu0 %v7359_v5 }
 0x11e   :  { %1031 = vmatpush1.bf16.msra.mxu1 %v6355_v7 }
 0x11f   :  { %1032 = vmatprep.subr.bf16.mxu1 %v6364_v13  ;;  %2244 = vmatpush1.bf16.msra.mxu0 %v7357_v6 }
 0x120   :  { %851 = vmatmul.mubr.bf16.gmra.mrb[24].mxu1 %v8245_v8  ;;  %2245 = vmatprep.subr.bf16.mxu0 %v7362_v12 }
 0x121   :  { %860 = vmatprep.mubr.bf16.mxu1 %v7962_v0  ;;  %964 = vmatmul.mubr.bf16.gmra.mrb[24].mxu0 %v8245_v8 }
 0x122   :  { %973 = vmatprep.mubr.bf16.mxu0 %v7962_v0  ;;  %1033 = vmatpush1.bf16.msra.mxu1 %v6363_v15 }
 0x123   :  { %1034 = vmatprep.subr.bf16.mxu1 %v6372_v53  ;;  %2246 = vmatpush1.bf16.msra.mxu0 %v7360_v14 }
 0x124   :  { %2247 = vmatprep.subr.bf16.mxu0 %v7365_v18 }
 0x126   :  { %1035 = vmatpush1.bf16.msra.mxu1 %v6371_v20 }
 0x127   :  { %1036 = vmatprep.subr.bf16.mxu1 %v6380_v24  ;;  %2248 = vmatpush1.bf16.msra.mxu0 %v7363_v19 }
 0x128   :  { %861 = vmatmul.mubr.bf16.gmra.mrb[28].mxu1 %v8253_v26  ;;  %2249 = vmatprep.subr.bf16.mxu0 %v7368_v23 }
 0x129   :  { %870 = vmatprep.mubr.bf16.mxu1 %v7962_v0  ;;  %974 = vmatmul.mubr.bf16.gmra.mrb[28].mxu0 %v8253_v26 }
 0x12a   :  { %983 = vmatprep.mubr.bf16.mxu0 %v7962_v0  ;;  %1037 = vmatpush1.bf16.msra.mxu1 %v6379_v27 }
 0x12b   :  { %1038 = vmatprep.subr.bf16.mxu1 %v6388_v29  ;;  %2250 = vmatpush1.bf16.msra.mxu0 %v7366_v25 }
 0x12c   :  { %2251 = vmatprep.subr.bf16.mxu0 %v7371_v28 }
 0x12e   :  { %1039 = vmatpush1.bf16.msra.mxu1 %v6387_v32 }
 0x12f   :  { %2252 = vmatpush1.bf16.msra.mxu0 %v7369_v31 }
 0x130   :  { %871 = vmatmul.mubr.bf16.gmra.mrb[32].mxu1 %v8232_v39  ;;  %2253 = vmatprep.subr.bf16.mxu0 %v7374_v33 }
 0x131   :  { %880 = vmatprep.mubr.bf16.mxu1 %v7962_v0  ;;  %984 = vmatmul.mubr.bf16.gmra.mrb[32].mxu0 %v8232_v39  ;;  %v7386_v39 = vld [vmem:[#allocation8 + $0xc4] ss:$8 sps:$4 sm:$0xff]  }
 0x132   :  { %993 = vmatprep.mubr.bf16.mxu0 %v7962_v0 }
 0x133   :  { %2254 = vmatpush1.bf16.msra.mxu0 %v7372_v34 }
 0x134   :  { %2255 = vmatprep.subr.bf16.mxu0 %v7377_v35 }
 0x137   :  { %2256 = vmatpush1.bf16.msra.mxu0 %v7375_v36 }
 0x138   :  { %881 = vmatmul.mubr.bf16.gmra.mrb[36].mxu1 %v8240_v55  ;;  %2257 = vmatprep.subr.bf16.mxu0 %v7380_v38 }
 0x139   :  { %890 = vmatprep.mubr.bf16.mxu1 %v7962_v0  ;;  %994 = vmatmul.mubr.bf16.gmra.mrb[36].mxu0 %v8240_v55  ;;  %v7392_v55 = vld [vmem:[#allocation8 + $0xe4] ss:$8 sps:$4 sm:$0xff]  }
 0x13a   :  { %1003 = vmatprep.mubr.bf16.mxu0 %v7962_v0 }
 0x13b   :  { %2258 = vmatpush1.bf16.msra.mxu0 %v7378_v40 }
 0x13c   :  { %2259 = vmatprep.subr.bf16.mxu0 %v7383_v41  ;;  %v7396_v41 = vld [vmem:[#allocation8 + $0x100] ss:$8 sps:$4 sm:$0xff]  }
 0x13f   :  { %2260 = vmatpush1.bf16.msra.mxu0 %v7381_v42 }
 0x140   :  { %891 = vmatmul.mubr.bf16.gmra.mrb[40].mxu1 %v8248_v11  ;;  %2261 = vmatprep.subr.bf16.mxu0 %v7386_v39 }
 0x141   :  { %900 = vmatprep.mubr.bf16.mxu1 %v7962_v0  ;;  %1004 = vmatmul.mubr.bf16.gmra.mrb[40].mxu0 %v8248_v11  ;;  %v7398_v11 = vld [vmem:[#allocation8 + $0x104] ss:$8 sps:$4 sm:$0xff]  }
 0x142   :  { %1013 = vmatprep.mubr.bf16.mxu0 %v7962_v0 }
 0x143   :  { %2262 = vmatpush1.bf16.msra.mxu0 %v7384_v43 }
 0x144   :  { %2263 = vmatprep.subr.bf16.mxu0 %v7389_v44 }
 0x147   :  { %2264 = vmatpush1.bf16.msra.mxu0 %v7387_v45 }
 0x148   :  { %901 = vmatmul.mubr.bf16.gmra.mrb[44].mxu1 %v8256_v30  ;;  %2265 = vmatprep.subr.bf16.mxu0 %v7392_v55 }
 0x149   :  { %1014 = vmatmul.mubr.bf16.gmra.mrb[44].mxu0 %v8256_v30  ;;  %1056 = vmatprep.mubr.bf16.mxu1 %v7962_v0 }
 0x14b   :  { %2266 = vmatpush1.bf16.msra.mxu0 %v7390_v46  ;;  %v7401_v46 = vld [vmem:[#allocation8 + $0x114] ss:$8 sps:$4 sm:$0xff]  }
 0x14c   :  { %2267 = vmatprep.subr.bf16.mxu0 %v7395_v47 }
 0x14f   :  { %2268 = vmatpush1.bf16.msra.mxu0 %v7393_v48 }
 0x150   :  { %1057 = vmatmul.mubr.bf16.vlgmr.msra.gmra.mrb[48].mxu1 %v7660_v49  ;;  %2350 = vmatprep.subr.bf16.mxu0 %v7398_v11 }
 0x151   :  { %1066 = vmatprep.mubr.bf16.mxu1 %v7962_v0 }
 0x158   :  { %1067 = vmatmul.mubr.bf16.gmra.mrb[52].mxu1 %v7661_v50 }
 0x159   :  { %1076 = vmatprep.mubr.bf16.mxu1 %v7962_v0 }
 0x160   :  { %1077 = vmatmul.mubr.bf16.gmra.mrb[56].mxu1 %v8245_v8  ;;  %v277_v8 = vlaneseq }
 0x161   :  { %1086 = vmatprep.mubr.bf16.mxu1 %v7962_v0 }
 0x162   :  { %v8303_v56 = vshrl.u32 %v277_v8, 7 }
 0x164   :  { %v8311_v58 = vsub.s32 1, %v8303_v56 }
 0x166   :  { %v8319_v60 = vrot.slane %v8308_v57, %v8311_v58 }
 0x168   :  { %1087 = vmatmul.mubr.bf16.gmra.mrb[60].mxu1 %v8253_v26  ;;  %v8306_v26 = vsub.s32 0, %v8303_v56 }
 0x169   :  { %1096 = vmatprep.mubr.bf16.mxu1 %v7962_v0 }
 0x16a   :  { %v8315_v59 = vrot.slane %v8308_v57, %v8306_v26 }
 0x170   :  { %1097 = vmatmul.mubr.bf16.gmra.mrb[64].mxu1 %v7662_v51 }
 0x171   :  { %1106 = vmatprep.mubr.bf16.mxu1 %v7962_v0 }
 0x178   :  { %1107 = vmatmul.mubr.bf16.gmra.mrb[68].mxu1 %v7663_v52 }
 0x179   :  { %1116 = vmatprep.mubr.bf16.mxu1 %v7962_v0 }
 0x180   :  { %1117 = vmatmul.mubr.bf16.gmra.mrb[72].mxu1 %v7664_v54 }
 0x181   :  { %1126 = vmatprep.mubr.bf16.mxu1 %v7962_v0 }
 0x188   :  { %1127 = vmatmul.mubr.bf16.gmra.mrb[76].mxu1 %v8256_v30 }
 0x1c2   :  { %v719_v30 = vpop.f32.mrb[0].mxu0  ;;  %v759_v63 = vpop.f32.mrb[0].mxu1 }
 0x1c3   :  { %v720_v61 = vadd.f32 %v719_v30, %v8315_v59  ;;  %v721_v62 = vpop.f32.mrb[1].mxu0  ;;  %v760_v3 = vadd.f32 %v759_v63, %v8315_v59  ;;  %v761_v4 = vpop.f32.mrb[1].mxu1  ;;  %v7399_v63 = vld [vmem:[#allocation8 + $0x110] ss:$8 sps:$4 sm:$0xff]  }
 0x1c4   :  { %v722_v1 = vadd.f32 %v721_v62, %v8319_v60  ;;  %v723_v2 = vpop.f32.mrb[2].mxu0  ;;  %v762_v7 = vadd.f32 %v761_v4, %v8319_v60  ;;  %v763_v9 = vpop.f32.mrb[2].mxu1 }
 0x1c5   :  { %v1137_v5 = vmul.f32 0.01, %v720_v61  ;;  %v724_v37 = vadd.f32 %v723_v2, %v8315_v59  ;;  %v725_v6 = vpop.f32.mrb[3].mxu0  ;;  %v1201_v13 = vmul.f32 0.01, %v760_v3  ;;  %v764_v14 = vadd.f32 %v763_v9, %v8315_v59  ;;  %v765_v15 = vpop.f32.mrb[3].mxu1 }
 0x1c6   :  { %v1138_v10 = vmul.f32 0.01, %v722_v1  ;;  %v726_v12 = vadd.f32 %v725_v6, %v8319_v60  ;;  %v1202_v17 = vmul.f32 0.01, %v762_v7  ;;  %v766_v18 = vadd.f32 %v765_v15, %v8319_v60 }
 0x1c7   :  { %v1145_v16 = vmul.f32 0.01, %v724_v37  ;;  %v1329_v19 = vmax.f32 %v760_v3, %v1201_v13  ;;  %v1209_v20 = vmul.f32 0.01, %v764_v14  ;;  %v1265_v21 = vmax.f32 %v720_v61, %v1137_v5  ;;  %v7404_v5 = vld [vmem:[#allocation8 + $0x124] ss:$8 sps:$4 sm:$0xff]  }
 0x1c8   :  { %v1146_v53 = vmul.f32 0.01, %v726_v12  ;;  %v1330_v23 = vmax.f32 %v762_v7, %v1202_v17  ;;  %v1210_v24 = vmul.f32 0.01, %v766_v18  ;;  %v1266_v25 = vmax.f32 %v722_v1, %v1138_v10 }
 0x1c9   :  { %v1273_v22 = vmax.f32 %v724_v37, %v1145_v16  ;;  %v1337_v29 = vmax.f32 %v764_v14, %v1209_v20 }
 0x1ca   :  { %v1274_v27 = vmax.f32 %v726_v12, %v1146_v53  ;;  %v729_v28 = vpop.f32.mrb[4].mxu0  ;;  %v1338_v34 = vmax.f32 %v766_v18, %v1210_v24  ;;  %v287_v18 = vsub.s32 2, %v8303_v56 }
 0x1cb   :  { %v1393_v31 = vpack.c.bf16 %v1273_v22, %v1265_v21  ;;  %v730_v32 = vadd.f32 %v729_v28, %v8315_v59  ;;  %v731_v33 = vpop.f32.mrb[5].mxu0  ;;  %v769_v35 = vpop.f32.mrb[4].mxu1  ;;  %v8332_v43 = vpack.c.bf16 %v1337_v29, %v1329_v19  ;;  %v7402_v21 = vld [vmem:[#allocation8 + $0x120] ss:$8 sps:$4 sm:$0xff]   ;;  %v7407_v29 = vld [vmem:[#allocation8 + $0x134] ss:$8 sps:$4 sm:$0xff]  }
 0x1cc   :  { %v732_v36 = vadd.f32 %v731_v33, %v8319_v60  ;;  %v733_v38 = vpop.f32.mrb[6].mxu0  ;;  %v1394_v40 = vpack.c.bf16 %v1274_v27, %v1266_v25  ;;  %v770_v42 = vadd.f32 %v769_v35, %v8315_v59  ;;  %v771_v39 = vpop.f32.mrb[5].mxu1  ;;  %v8336_v11 = vpack.c.bf16 %v1338_v34, %v1330_v23 }
 0x1cd   :  { %v1153_v44 = vmul.f32 0.01, %v730_v32  ;;  %v734_v45 = vadd.f32 %v733_v38, %v8315_v59  ;;  %v735_v55 = vpop.f32.mrb[7].mxu0  ;;  %v772_v47 = vadd.f32 %v771_v39, %v8319_v60  ;;  %v773_v48 = vpop.f32.mrb[6].mxu1 }
 0x1ce   :  { %v1154_v49 = vmul.f32 0.01, %v732_v36  ;;  %v736_v50 = vadd.f32 %v735_v55, %v8319_v60  ;;  %2269 = vmatprep.mubr.bf16.mxu0 %v1394_v40  ;;  %v1217_v51 = vmul.f32 0.01, %v770_v42  ;;  %v774_v52 = vadd.f32 %v773_v48, %v8315_v59  ;;  %v775_v54 = vpop.f32.mrb[7].mxu1 }
 0x1cf   :  { %v1161_v8 = vmul.f32 0.01, %v734_v45  ;;  %2270 = vmatmul.mubr.bf16.vlgmr.msra.gmra.mrb[48].mxu0 %v1393_v31  ;;  %v1218_v30 = vmul.f32 0.01, %v772_v47  ;;  %v776_v61 = vadd.f32 %v775_v54, %v8319_v60  ;;  %v1281_v3 = vmax.f32 %v730_v32, %v1153_v44  ;;  %v7405_v55 = vld [vmem:[#allocation8 + $0x130] ss:$8 sps:$4 sm:$0xff]  }
 0x1d0   :  { %v1162_v62 = vmul.f32 0.01, %v736_v50  ;;  %2351 = vmatpush1.bf16.msra.mxu0 %v7396_v41  ;;  %v1345_v1 = vmax.f32 %v770_v42, %v1217_v51  ;;  %v1225_v2 = vmul.f32 0.01, %v774_v52  ;;  %v1282_v7 = vmax.f32 %v732_v36, %v1154_v49  ;;  %v7410_v51 = vld [vmem:[#allocation8 + $0x144] ss:$8 sps:$4 sm:$0xff]  }
 0x1d1   :  { %v1289_v4 = vmax.f32 %v734_v45, %v1161_v8  ;;  %2352 = vmatprep.subr.bf16.mxu0 %v7401_v46  ;;  %v1346_v37 = vmax.f32 %v772_v47, %v1218_v30  ;;  %v1226_v6 = vmul.f32 0.01, %v776_v61  ;;  %v291_v44 = vsub.s32 3, %v8303_v56 }
 0x1d2   :  { %v1290_v9 = vmax.f32 %v736_v50, %v1162_v62  ;;  %v739_v10 = vpop.f32.mrb[8].mxu0  ;;  %v1353_v12 = vmax.f32 %v774_v52, %v1225_v2  ;;  %v8358_v48 = vrot.slane %v8308_v57, %v287_v18 }
 0x1d3   :  { %v740_v13 = vadd.f32 %v739_v10, %v8315_v59  ;;  %v741_v14 = vpop.f32.mrb[9].mxu0  ;;  %v1401_v15 = vpack.c.bf16 %v1289_v4, %v1281_v3  ;;  %v1354_v16 = vmax.f32 %v776_v61, %v1226_v6  ;;  %v779_v17 = vpop.f32.mrb[8].mxu1  ;;  %v7408_v10 = vld [vmem:[#allocation8 + $0x140] ss:$8 sps:$4 sm:$0xff]  }
 0x1d4   :  { %v742_v53 = vadd.f32 %v741_v14, %v8319_v60  ;;  %2353 = vmatpush1.bf16.msra.mxu0 %v7399_v63  ;;  %v743_v19 = vpop.f32.mrb[10].mxu0  ;;  %v1402_v20 = vpack.c.bf16 %v1290_v9, %v1282_v7  ;;  %v780_v22 = vadd.f32 %v779_v17, %v8315_v59  ;;  %v781_v23 = vpop.f32.mrb[9].mxu1  ;;  %v8345_v24 = vpack.c.bf16 %v1353_v12, %v1345_v1 }
 0x1d5   :  { %v1169_v25 = vmul.f32 0.01, %v740_v13  ;;  %v744_v27 = vadd.f32 %v743_v19, %v8315_v59  ;;  %v745_v28 = vpop.f32.mrb[11].mxu0  ;;  %2354 = vmatprep.subr.bf16.mxu0 %v7404_v5  ;;  %v782_v31 = vadd.f32 %v781_v23, %v8319_v60  ;;  %v783_v32 = vpop.f32.mrb[10].mxu1  ;;  %v8349_v33 = vpack.c.bf16 %v1354_v16, %v1346_v37 }
 0x1d6   :  { %v1170_v34 = vmul.f32 0.01, %v742_v53  ;;  %v746_v35 = vadd.f32 %v745_v28, %v8319_v60  ;;  %2279 = vmatprep.mubr.bf16.mxu0 %v1402_v20  ;;  %v1233_v36 = vmul.f32 0.01, %v780_v22  ;;  %v784_v38 = vadd.f32 %v783_v32, %v8315_v59  ;;  %v785_v40 = vpop.f32.mrb[11].mxu1 }
 0x1d7   :  { %v1177_v41 = vmul.f32 0.01, %v744_v27  ;;  %2280 = vmatmul.mubr.bf16.gmra.mrb[52].mxu0 %v1401_v15  ;;  %v1234_v42 = vmul.f32 0.01, %v782_v31  ;;  %v786_v39 = vadd.f32 %v785_v40, %v8319_v60  ;;  %v1297_v49 = vmax.f32 %v740_v13, %v1169_v25 }
 0x1d8   :  { %v1178_v45 = vmul.f32 0.01, %v746_v35  ;;  %2355 = vmatpush1.bf16.msra.mxu0 %v7402_v21  ;;  %v1361_v46 = vmax.f32 %v780_v22, %v1233_v36  ;;  %v1241_v47 = vmul.f32 0.01, %v784_v38  ;;  %v1298_v8 = vmax.f32 %v742_v53, %v1170_v34  ;;  %v7413_v53 = vld [vmem:[#allocation8 + $0x154] ss:$8 sps:$4 sm:$0xff]  }
 0x1d9   :  { %v1305_v50 = vmax.f32 %v744_v27, %v1177_v41  ;;  %2356 = vmatprep.subr.bf16.mxu0 %v7407_v29  ;;  %v1362_v52 = vmax.f32 %v782_v31, %v1234_v42  ;;  %v1242_v54 = vmul.f32 0.01, %v786_v39  ;;  %v295_v63 = vsub.s32 4, %v8303_v56  ;;  %v7411_v36 = vld [vmem:[#allocation8 + $0x150] ss:$8 sps:$4 sm:$0xff]  }
 0x1da   :  { %v1306_v30 = vmax.f32 %v746_v35, %v1178_v45  ;;  %v749_v61 = vpop.f32.mrb[12].mxu0  ;;  %v1369_v62 = vmax.f32 %v784_v38, %v1241_v47  ;;  %v299_v37 = vsub.s32 5, %v8303_v56  ;;  %v8377_v34 = vrot.slane %v8308_v57, %v291_v44 }
 0x1db   :  { %v750_v1 = vadd.f32 %v749_v61, %v8315_v59  ;;  %v751_v2 = vpop.f32.mrb[13].mxu0  ;;  %v1409_v3 = vpack.c.bf16 %v1305_v50, %v1297_v49  ;;  %v1370_v4 = vmax.f32 %v786_v39, %v1242_v54  ;;  %v789_v5 = vpop.f32.mrb[12].mxu1  ;;  %v7416_v39 = vld [vmem:[#allocation8 + $0x164] ss:$8 sps:$4 sm:$0xff]  }
 0x1dc   :  { %v752_v6 = vadd.f32 %v751_v2, %v8319_v60  ;;  %2357 = vmatpush1.bf16.msra.mxu0 %v7405_v55  ;;  %v753_v7 = vpop.f32.mrb[14].mxu0  ;;  %v1410_v9 = vpack.c.bf16 %v1306_v30, %v1298_v8  ;;  %v790_v12 = vadd.f32 %v789_v5, %v8315_v59  ;;  %v791_v13 = vpop.f32.mrb[13].mxu1  ;;  %v8365_v14 = vpack.c.bf16 %v1369_v62, %v1361_v46  ;;  %v7414_v8 = vld [vmem:[#allocation8 + $0x160] ss:$8 sps:$4 sm:$0xff]   ;;  %v7419_v2 = vld [vmem:[#allocation8 + $0x174] ss:$8 sps:$4 sm:$0xff]  }
 0x1dd   :  { %v1185_v15 = vmul.f32 0.01, %v750_v1  ;;  %v754_v16 = vadd.f32 %v753_v7, %v8315_v59  ;;  %v755_v17 = vpop.f32.mrb[15].mxu0  ;;  %2358 = vmatprep.subr.bf16.mxu0 %v7410_v51  ;;  %v792_v19 = vadd.f32 %v791_v13, %v8319_v60  ;;  %v793_v20 = vpop.f32.mrb[14].mxu1  ;;  %v8369_v21 = vpack.c.bf16 %v1370_v4, %v1362_v52 }
 0x1de   :  { %v1186_v22 = vmul.f32 0.01, %v752_v6  ;;  %v756_v23 = vadd.f32 %v755_v17, %v8319_v60  ;;  %2289 = vmatprep.mubr.bf16.mxu0 %v1410_v9  ;;  %v1249_v25 = vmul.f32 0.01, %v790_v12  ;;  %v794_v27 = vadd.f32 %v793_v20, %v8315_v59  ;;  %v795_v28 = vpop.f32.mrb[15].mxu1 }
 0x1df   :  { %v1193_v29 = vmul.f32 0.01, %v754_v16  ;;  %2290 = vmatmul.mubr.bf16.gmra.mrb[56].mxu0 %v1409_v3  ;;  %v1250_v31 = vmul.f32 0.01, %v792_v19  ;;  %v796_v32 = vadd.f32 %v795_v28, %v8319_v60  ;;  %v8382_v59 = vrot.slane %v8308_v57, %v295_v63 }
 0x1e0   :  { %v1194_v35 = vmul.f32 0.01, %v756_v23  ;;  %2359 = vmatpush1.bf16.msra.mxu0 %v7408_v10  ;;  %v1377_v38 = vmax.f32 %v790_v12, %v1249_v25  ;;  %v1257_v40 = vmul.f32 0.01, %v794_v27  ;;  %v1313_v41 = vmax.f32 %v750_v1, %v1185_v15 }
 0x1e1   :  { %v1321_v42 = vmax.f32 %v754_v16, %v1193_v29  ;;  %2360 = vmatprep.subr.bf16.mxu0 %v7413_v53  ;;  %v1378_v60 = vmax.f32 %v792_v19, %v1250_v31  ;;  %v1258_v45 = vmul.f32 0.01, %v796_v32  ;;  %v1314_v55 = vmax.f32 %v752_v6, %v1186_v22  ;;  %v7417_v22 = vld [vmem:[#allocation8 + $0x170] ss:$8 sps:$4 sm:$0xff]   ;;  %v7422_v29 = vld [vmem:[#allocation8 + $0x184] ss:$8 sps:$4 sm:$0xff]  }
 0x1e2   :  { %v1322_v46 = vmax.f32 %v756_v23, %v1194_v35  ;;  %v1385_v47 = vmax.f32 %v794_v27, %v1257_v40  ;;  %v8387_v49 = vrot.slane %v8308_v57, %v299_v37 }
 0x1e3   :  { %v1417_v50 = vpack.c.bf16 %v1321_v42, %v1313_v41  ;;  %v1386_v51 = vmax.f32 %v796_v32, %v1258_v45  ;;  %v832_v52 = vpop.f32.mrb[16].mxu1 }
 0x1e4   :  { %2361 = vmatpush1.bf16.msra.mxu0 %v7411_v36  ;;  %v1418_v54 = vpack.c.bf16 %v1322_v46, %v1314_v55  ;;  %v833_v30 = vadd.f32 %v832_v52, %v8358_v48  ;;  %v834_v61 = vpop.f32.mrb[17].mxu1  ;;  %v8390_v62 = vpack.c.bf16 %v1385_v47, %v1377_v38  ;;  %v945_v1 = vpop.f32.mrb[16].mxu0 }
 0x1e5   :  { %2362 = vmatprep.subr.bf16.mxu0 %v7416_v39  ;;  %v835_v3 = vadd.f32 %v834_v61, %v8377_v34  ;;  %v836_v4 = vpop.f32.mrb[18].mxu1  ;;  %v8393_v5 = vpack.c.bf16 %v1386_v51, %v1378_v60  ;;  %v946_v6 = vadd.f32 %v945_v1, %v8382_v59  ;;  %v947_v7 = vpop.f32.mrb[17].mxu0  ;;  %v7425_v51 = vld [vmem:[#allocation8 + $0x194] ss:$8 sps:$4 sm:$0xff]  }
 0x1e6   :  { %2299 = vmatprep.mubr.bf16.mxu0 %v1418_v54  ;;  %v1139_v9 = vmul.f32 0.01, %v833_v30  ;;  %v837_v10 = vadd.f32 %v836_v4, %v8358_v48  ;;  %v838_v12 = vpop.f32.mrb[19].mxu1  ;;  %v948_v13 = vadd.f32 %v947_v7, %v8387_v49  ;;  %v949_v15 = vpop.f32.mrb[18].mxu0 }
 0x1e7   :  { %2300 = vmatmul.mubr.bf16.gmra.mrb[60].mxu0 %v1417_v50  ;;  %v1140_v16 = vmul.f32 0.01, %v835_v3  ;;  %v839_v17 = vadd.f32 %v838_v12, %v8377_v34  ;;  %v1141_v53 = vmul.f32 0.01, %v946_v6  ;;  %v950_v19 = vadd.f32 %v949_v15, %v8382_v59  ;;  %v951_v20 = vpop.f32.mrb[19].mxu0 }
 0x1e8   :  { %2363 = vmatpush1.bf16.msra.mxu0 %v7414_v8  ;;  %2309 = vmatprep.mubr.bf16.mxu0 %v8336_v11  ;;  %v1267_v23 = vmax.f32 %v833_v30, %v1139_v9  ;;  %v1147_v25 = vmul.f32 0.01, %v837_v10  ;;  %v1142_v27 = vmul.f32 0.01, %v948_v13  ;;  %v952_v28 = vadd.f32 %v951_v20, %v8387_v49  ;;  %v7420_v11 = vld [vmem:[#allocation8 + $0x180] ss:$8 sps:$4 sm:$0xff]  }
 0x1e9   :  { %2364 = vmatprep.subr.bf16.mxu0 %v7419_v2  ;;  %v1268_v31 = vmax.f32 %v835_v3, %v1140_v16  ;;  %v1148_v32 = vmul.f32 0.01, %v839_v17  ;;  %v1269_v35 = vmax.f32 %v946_v6, %v1141_v53  ;;  %v1149_v36 = vmul.f32 0.01, %v950_v19 }
 0x1ea   :  { %v1275_v38 = vmax.f32 %v837_v10, %v1147_v25  ;;  %v1270_v40 = vmax.f32 %v948_v13, %v1142_v27  ;;  %v1150_v41 = vmul.f32 0.01, %v952_v28 }
 0x1eb   :  { %v1276_v42 = vmax.f32 %v839_v17, %v1148_v32  ;;  %v842_v39 = vpop.f32.mrb[20].mxu1  ;;  %v1277_v60 = vmax.f32 %v950_v19, %v1149_v36  ;;  %v7423_v17 = vld [vmem:[#allocation8 + $0x190] ss:$8 sps:$4 sm:$0xff]  }
 0x1ec   :  { %2365 = vmatpush1.bf16.msra.mxu0 %v7417_v22  ;;  %v8402_v45 = vpack.c.bf16 %v1275_v38, %v1267_v23  ;;  %v843_v55 = vadd.f32 %v842_v39, %v8358_v48  ;;  %v844_v46 = vpop.f32.mrb[21].mxu1  ;;  %v1278_v47 = vmax.f32 %v952_v28, %v1150_v41  ;;  %v955_v50 = vpop.f32.mrb[20].mxu0  ;;  %v7428_v23 = vld [vmem:[#allocation8 + $0x1a4] ss:$8 sps:$4 sm:$0xff]  }
 0x1ed   :  { %2366 = vmatprep.subr.bf16.mxu0 %v7422_v29  ;;  %v845_v52 = vadd.f32 %v844_v46, %v8377_v34  ;;  %v846_v54 = vpop.f32.mrb[22].mxu1  ;;  %v8406_v8 = vpack.c.bf16 %v1276_v42, %v1268_v31  ;;  %v8408_v30 = vpack.c.bf16 %v1277_v60, %v1269_v35  ;;  %v956_v61 = vadd.f32 %v955_v50, %v8382_v59  ;;  %v957_v1 = vpop.f32.mrb[21].mxu0 }
 0x1ee   :  { %v1155_v2 = vmul.f32 0.01, %v843_v55  ;;  %v847_v3 = vadd.f32 %v846_v54, %v8358_v48  ;;  %v848_v4 = vpop.f32.mrb[23].mxu1  ;;  %v958_v6 = vadd.f32 %v957_v1, %v8387_v49  ;;  %v959_v7 = vpop.f32.mrb[22].mxu0  ;;  %v8413_v9 = vpack.c.bf16 %v1278_v47, %v1270_v40 }
 0x1ef   :  { %2310 = vmatmul.mubr.bf16.gmra.mrb[64].mxu0 %v8332_v43  ;;  %v1156_v10 = vmul.f32 0.01, %v845_v52  ;;  %v849_v12 = vadd.f32 %v848_v4, %v8377_v34  ;;  %v1157_v13 = vmul.f32 0.01, %v956_v61  ;;  %v960_v15 = vadd.f32 %v959_v7, %v8382_v59  ;;  %v961_v16 = vpop.f32.mrb[23].mxu0 }
 0x1f0   :  { %2367 = vmatpush1.bf16.msra.mxu0 %v7420_v11  ;;  %2319 = vmatprep.mubr.bf16.mxu0 %v8349_v33  ;;  %v1283_v53 = vmax.f32 %v843_v55, %v1155_v2  ;;  %v1163_v19 = vmul.f32 0.01, %v847_v3  ;;  %v1158_v20 = vmul.f32 0.01, %v958_v6  ;;  %v962_v22 = vadd.f32 %v961_v16, %v8387_v49  ;;  %v7426_v33 = vld [vmem:[#allocation8 + $0x1a0] ss:$8 sps:$4 sm:$0xff]  }
 0x1f1   :  { %2368 = vmatprep.subr.bf16.mxu0 %v7425_v51  ;;  %v1284_v25 = vmax.f32 %v845_v52, %v1156_v10  ;;  %v1164_v43 = vmul.f32 0.01, %v849_v12  ;;  %v1285_v27 = vmax.f32 %v956_v61, %v1157_v13  ;;  %v1165_v28 = vmul.f32 0.01, %v960_v15  ;;  %v7431_v11 = vld [vmem:[#allocation8 + $0x1b4] ss:$8 sps:$4 sm:$0xff]  }
 0x1f2   :  { %v1291_v29 = vmax.f32 %v847_v3, %v1163_v19  ;;  %v1286_v31 = vmax.f32 %v958_v6, %v1158_v20  ;;  %v1166_v32 = vmul.f32 0.01, %v962_v22  ;;  %v7434_v20 = vld [vmem:[#allocation8 + $0x1c4] ss:$8 sps:$4 sm:$0xff]  }
 0x1f3   :  { %v1292_v35 = vmax.f32 %v849_v12, %v1164_v43  ;;  %v852_v36 = vpop.f32.mrb[24].mxu1  ;;  %v1293_v38 = vmax.f32 %v960_v15, %v1165_v28  ;;  %v7429_v15 = vld [vmem:[#allocation8 + $0x1b0] ss:$8 sps:$4 sm:$0xff]  }
 0x1f4   :  { %2369 = vmatpush1.bf16.msra.mxu0 %v7423_v17  ;;  %v853_v40 = vadd.f32 %v852_v36, %v8358_v48  ;;  %v854_v41 = vpop.f32.mrb[25].mxu1  ;;  %v8421_v42 = vpack.c.bf16 %v1291_v29, %v1283_v53  ;;  %v1294_v39 = vmax.f32 %v962_v22, %v1166_v32  ;;  %v965_v60 = vpop.f32.mrb[24].mxu0 }
 0x1f5   :  { %2370 = vmatprep.subr.bf16.mxu0 %v7428_v23  ;;  %v855_v55 = vadd.f32 %v854_v41, %v8377_v34  ;;  %v856_v46 = vpop.f32.mrb[26].mxu1  ;;  %v8424_v47 = vpack.c.bf16 %v1292_v35, %v1284_v25  ;;  %v966_v50 = vadd.f32 %v965_v60, %v8382_v59  ;;  %v967_v51 = vpop.f32.mrb[25].mxu0  ;;  %v8427_v52 = vpack.c.bf16 %v1293_v38, %v1285_v27  ;;  %v7437_v41 = vld [vmem:[#allocation8 + $0x1d4] ss:$8 sps:$4 sm:$0xff]  }
 0x1f6   :  { %v1171_v54 = vmul.f32 0.01, %v853_v40  ;;  %v857_v61 = vadd.f32 %v856_v46, %v8358_v48  ;;  %v858_v1 = vpop.f32.mrb[27].mxu1  ;;  %v968_v2 = vadd.f32 %v967_v51, %v8387_v49  ;;  %v969_v3 = vpop.f32.mrb[26].mxu0  ;;  %v8431_v4 = vpack.c.bf16 %v1294_v39, %v1286_v31 }
 0x1f7   :  { %2320 = vmatmul.mubr.bf16.gmra.mrb[68].mxu0 %v8345_v24  ;;  %v1172_v6 = vmul.f32 0.01, %v855_v55  ;;  %v859_v7 = vadd.f32 %v858_v1, %v8377_v34  ;;  %v1173_v10 = vmul.f32 0.01, %v966_v50  ;;  %v970_v12 = vadd.f32 %v969_v3, %v8382_v59  ;;  %v971_v13 = vpop.f32.mrb[27].mxu0 }
 0x1f8   :  { %2371 = vmatpush1.bf16.msra.mxu0 %v7426_v33  ;;  %2329 = vmatprep.mubr.bf16.mxu0 %v8369_v21  ;;  %v1299_v16 = vmax.f32 %v853_v40, %v1171_v54  ;;  %v1179_v17 = vmul.f32 0.01, %v857_v61  ;;  %v1174_v53 = vmul.f32 0.01, %v968_v2  ;;  %v972_v19 = vadd.f32 %v971_v13, %v8387_v49  ;;  %v7432_v21 = vld [vmem:[#allocation8 + $0x1c0] ss:$8 sps:$4 sm:$0xff]  }
 0x1f9   :  { %2372 = vmatprep.subr.bf16.mxu0 %v7431_v11  ;;  %v1300_v22 = vmax.f32 %v855_v55, %v1172_v6  ;;  %v1180_v24 = vmul.f32 0.01, %v859_v7  ;;  %v1301_v23 = vmax.f32 %v966_v50, %v1173_v10  ;;  %v1181_v25 = vmul.f32 0.01, %v970_v12 }
 0x1fa   :  { %v1307_v43 = vmax.f32 %v857_v61, %v1179_v17  ;;  %v1302_v27 = vmax.f32 %v968_v2, %v1174_v53  ;;  %v1182_v28 = vmul.f32 0.01, %v972_v19 }
 0x1fb   :  { %v1308_v29 = vmax.f32 %v859_v7, %v1180_v24  ;;  %v862_v31 = vpop.f32.mrb[28].mxu1  ;;  %v1309_v32 = vmax.f32 %v970_v12, %v1181_v25 }
 0x1fc   :  { %2373 = vmatpush1.bf16.msra.mxu0 %v7429_v15  ;;  %v863_v35 = vadd.f32 %v862_v31, %v8358_v48  ;;  %v864_v36 = vpop.f32.mrb[29].mxu1  ;;  %v8439_v38 = vpack.c.bf16 %v1307_v43, %v1299_v16  ;;  %v1310_v33 = vmax.f32 %v972_v19, %v1182_v28  ;;  %v975_v40 = vpop.f32.mrb[28].mxu0  ;;  %v7435_v15 = vld [vmem:[#allocation8 + $0x1d0] ss:$8 sps:$4 sm:$0xff]  }
 0x1fd   :  { %2374 = vmatprep.subr.bf16.mxu0 %v7434_v20  ;;  %v865_v39 = vadd.f32 %v864_v36, %v8377_v34  ;;  %v866_v60 = vpop.f32.mrb[30].mxu1  ;;  %v8442_v11 = vpack.c.bf16 %v1308_v29, %v1300_v22  ;;  %v976_v55 = vadd.f32 %v975_v40, %v8382_v59  ;;  %v977_v46 = vpop.f32.mrb[29].mxu0  ;;  %v8445_v50 = vpack.c.bf16 %v1309_v32, %v1301_v23  ;;  %v7440_v20 = vld [vmem:[#allocation8 + $0x1e4] ss:$8 sps:$4 sm:$0xff]   ;;  %v7443_v40 = vld [vmem:[#allocation8 + $0x1f4] ss:$8 sps:$4 sm:$0xff]  }
 0x1fe   :  { %v1187_v51 = vmul.f32 0.01, %v863_v35  ;;  %v867_v54 = vadd.f32 %v866_v60, %v8358_v48  ;;  %v868_v61 = vpop.f32.mrb[31].mxu1  ;;  %v978_v1 = vadd.f32 %v977_v46, %v8387_v49  ;;  %v979_v2 = vpop.f32.mrb[30].mxu0  ;;  %v8449_v3 = vpack.c.bf16 %v1310_v33, %v1302_v27 }
 0x1ff   :  { %2330 = vmatmul.mubr.bf16.gmra.mrb[72].mxu0 %v8365_v14  ;;  %v1188_v6 = vmul.f32 0.01, %v865_v39  ;;  %v869_v7 = vadd.f32 %v868_v61, %v8377_v34  ;;  %v1189_v10 = vmul.f32 0.01, %v976_v55  ;;  %v980_v12 = vadd.f32 %v979_v2, %v8382_v59  ;;  %v981_v13 = vpop.f32.mrb[31].mxu0 }
 0x200   :  { %2375 = vmatpush1.bf16.msra.mxu0 %v7432_v21  ;;  %2339 = vmatprep.mubr.bf16.mxu0 %v8393_v5  ;;  %v1315_v16 = vmax.f32 %v863_v35, %v1187_v51  ;;  %v1195_v17 = vmul.f32 0.01, %v867_v54  ;;  %v1190_v53 = vmul.f32 0.01, %v978_v1  ;;  %v982_v19 = vadd.f32 %v981_v13, %v8387_v49  ;;  %v7438_v5 = vld [vmem:[#allocation8 + $0x1e0] ss:$8 sps:$4 sm:$0xff]  }
 0x201   :  { %2376 = vmatprep.subr.bf16.mxu0 %v7437_v41  ;;  %v1316_v22 = vmax.f32 %v865_v39, %v1188_v6  ;;  %v1196_v14 = vmul.f32 0.01, %v869_v7  ;;  %v1317_v24 = vmax.f32 %v976_v55, %v1189_v10  ;;  %v1197_v23 = vmul.f32 0.01, %v980_v12 }
 0x202   :  { %v1323_v25 = vmax.f32 %v867_v54, %v1195_v17  ;;  %v1318_v43 = vmax.f32 %v978_v1, %v1190_v53  ;;  %v1198_v27 = vmul.f32 0.01, %v982_v19  ;;  %v7441_v17 = vld [vmem:[#allocation8 + $0x1f0] ss:$8 sps:$4 sm:$0xff]  }
 0x203   :  { %v1324_v28 = vmax.f32 %v869_v7, %v1196_v14  ;;  %v872_v29 = vpop.f32.mrb[32].mxu1  ;;  %v1325_v31 = vmax.f32 %v980_v12, %v1197_v23  ;;  %v7446_v14 = vld [vmem:[#allocation8 + $0x204] ss:$8 sps:$4 sm:$0xff]  }
 0x204   :  { %2377 = vmatpush1.bf16.msra.mxu0 %v7435_v15  ;;  %v873_v32 = vadd.f32 %v872_v29, %v8358_v48  ;;  %v874_v21 = vpop.f32.mrb[33].mxu1  ;;  %v8457_v35 = vpack.c.bf16 %v1323_v25, %v1315_v16  ;;  %v1326_v36 = vmax.f32 %v982_v19, %v1198_v27  ;;  %v985_v33 = vpop.f32.mrb[32].mxu0 }
 0x205   :  { %2378 = vmatprep.subr.bf16.mxu0 %v7440_v20  ;;  %v875_v41 = vadd.f32 %v874_v21, %v8377_v34  ;;  %v876_v39 = vpop.f32.mrb[34].mxu1  ;;  %v8460_v60 = vpack.c.bf16 %v1324_v28, %v1316_v22  ;;  %v986_v55 = vadd.f32 %v985_v33, %v8382_v59  ;;  %v987_v46 = vpop.f32.mrb[33].mxu0  ;;  %v8463_v51 = vpack.c.bf16 %v1325_v31, %v1317_v24 }
 0x206   :  { %v1203_v54 = vmul.f32 0.01, %v873_v32  ;;  %v877_v61 = vadd.f32 %v876_v39, %v8358_v48  ;;  %v878_v1 = vpop.f32.mrb[35].mxu1  ;;  %v988_v2 = vadd.f32 %v987_v46, %v8387_v49  ;;  %v989_v6 = vpop.f32.mrb[34].mxu0  ;;  %v8467_v7 = vpack.c.bf16 %v1326_v36, %v1318_v43 }
 0x207   :  { %2340 = vmatmul.mubr.bf16.gmra.mrb[76].mxu0 %v8390_v62  ;;  %v1204_v10 = vmul.f32 0.01, %v875_v41  ;;  %v879_v12 = vadd.f32 %v878_v1, %v8377_v34  ;;  %v1205_v13 = vmul.f32 0.01, %v986_v55  ;;  %v990_v15 = vadd.f32 %v989_v6, %v8382_v59  ;;  %v991_v16 = vpop.f32.mrb[35].mxu0 }
 0x208   :  { %2379 = vmatpush1.bf16.msra.mxu0 %v7438_v5  ;;  %2382 = vmatprep.mubr.bf16.mxu0 %v8406_v8  ;;  %v1331_v53 = vmax.f32 %v873_v32, %v1203_v54  ;;  %v1211_v19 = vmul.f32 0.01, %v877_v61  ;;  %v1206_v20 = vmul.f32 0.01, %v988_v2  ;;  %v992_v22 = vadd.f32 %v991_v16, %v8387_v49  ;;  %v7444_v8 = vld [vmem:[#allocation8 + $0x200] ss:$8 sps:$4 sm:$0xff]  }
 0x209   :  { %2380 = vmatprep.subr.bf16.mxu0 %v7443_v40  ;;  %v1332_v24 = vmax.f32 %v875_v41, %v1204_v10  ;;  %v1212_v62 = vmul.f32 0.01, %v879_v12  ;;  %v1333_v23 = vmax.f32 %v986_v55, %v1205_v13  ;;  %v1213_v25 = vmul.f32 0.01, %v990_v15  ;;  %v7449_v41 = vld [vmem:[#allocation8 + $0x214] ss:$8 sps:$4 sm:$0xff]  }
 0x20a   :  { %v1339_v43 = vmax.f32 %v877_v61, %v1211_v19  ;;  %v1334_v27 = vmax.f32 %v988_v2, %v1206_v20  ;;  %v1214_v28 = vmul.f32 0.01, %v992_v22 }
 0x20b   :  { %v1340_v29 = vmax.f32 %v879_v12, %v1212_v62  ;;  %v882_v31 = vpop.f32.mrb[36].mxu1  ;;  %v1341_v5 = vmax.f32 %v990_v15, %v1213_v25  ;;  %v7452_v25 = vld [vmem:[#allocation8 + $0x224] ss:$8 sps:$4 sm:$0xff]  }
 0x20c   :  { %2381 = vmatpush1.bf16.msra.mxu0 %v7441_v17  ;;  %v883_v32 = vadd.f32 %v882_v31, %v8358_v48  ;;  %v884_v21 = vpop.f32.mrb[37].mxu1  ;;  %v8475_v36 = vpack.c.bf16 %v1339_v43, %v1331_v53  ;;  %v1342_v33 = vmax.f32 %v992_v22, %v1214_v28  ;;  %v995_v40 = vpop.f32.mrb[36].mxu0  ;;  %v7447_v22 = vld [vmem:[#allocation8 + $0x210] ss:$8 sps:$4 sm:$0xff]  }
 0x20d   :  { %2463 = vmatprep.subr.bf16.mxu0 %v7446_v14  ;;  %v885_v39 = vadd.f32 %v884_v21, %v8377_v34  ;;  %v886_v55 = vpop.f32.mrb[38].mxu1  ;;  %v8478_v46 = vpack.c.bf16 %v1340_v29, %v1332_v24  ;;  %v996_v54 = vadd.f32 %v995_v40, %v8382_v59  ;;  %v997_v61 = vpop.f32.mrb[37].mxu0  ;;  %v8481_v1 = vpack.c.bf16 %v1341_v5, %v1333_v23 }
 0x20e   :  { %v1219_v2 = vmul.f32 0.01, %v883_v32  ;;  %v887_v6 = vadd.f32 %v886_v55, %v8358_v48  ;;  %v888_v10 = vpop.f32.mrb[39].mxu1  ;;  %v998_v12 = vadd.f32 %v997_v61, %v8387_v49  ;;  %v999_v13 = vpop.f32.mrb[38].mxu0  ;;  %v8485_v15 = vpack.c.bf16 %v1342_v33, %v1334_v27 }
 0x20f   :  { %2383 = vmatmul.mubr.bf16.vlgmr.msra.gmra.mrb[48].mxu0 %v8402_v45  ;;  %v1220_v16 = vmul.f32 0.01, %v885_v39  ;;  %v889_v17 = vadd.f32 %v888_v10, %v8377_v34  ;;  %v1221_v53 = vmul.f32 0.01, %v996_v54  ;;  %v1000_v19 = vadd.f32 %v999_v13, %v8382_v59  ;;  %v1001_v20 = vpop.f32.mrb[39].mxu0 }
 0x210   :  { %2464 = vmatpush1.bf16.msra.mxu0 %v7444_v8  ;;  %2392 = vmatprep.mubr.bf16.mxu0 %v8424_v47  ;;  %v1347_v14 = vmax.f32 %v883_v32, %v1219_v2  ;;  %v1227_v24 = vmul.f32 0.01, %v887_v6  ;;  %v1222_v62 = vmul.f32 0.01, %v998_v12  ;;  %v1002_v23 = vadd.f32 %v1001_v20, %v8387_v49  ;;  %v7450_v32 = vld [vmem:[#allocation8 + $0x220] ss:$8 sps:$4 sm:$0xff]  }
 0x211   :  { %2465 = vmatprep.subr.bf16.mxu0 %v7449_v41  ;;  %v1348_v43 = vmax.f32 %v885_v39, %v1220_v16  ;;  %v1228_v45 = vmul.f32 0.01, %v889_v17  ;;  %v1349_v27 = vmax.f32 %v996_v54, %v1221_v53  ;;  %v1229_v28 = vmul.f32 0.01, %v1000_v19  ;;  %v7455_v2 = vld [vmem:[#allocation8 + $0x234] ss:$8 sps:$4 sm:$0xff]  }
 0x212   :  { %v1355_v29 = vmax.f32 %v887_v6, %v1227_v24  ;;  %v1350_v31 = vmax.f32 %v998_v12, %v1222_v62  ;;  %v1230_v5 = vmul.f32 0.01, %v1002_v23  ;;  %v303_v47 = vsub.s32 6, %v8303_v56 }
 0x213   :  { %v1356_v21 = vmax.f32 %v889_v17, %v1228_v45  ;;  %v892_v33 = vpop.f32.mrb[40].mxu1  ;;  %v1357_v8 = vmax.f32 %v1000_v19, %v1229_v28  ;;  %v307_v54 = vsub.s32 7, %v8303_v56 }
 0x214   :  { %2466 = vmatpush1.bf16.msra.mxu0 %v7447_v22  ;;  %v893_v40 = vadd.f32 %v892_v33, %v8358_v48  ;;  %v894_v55 = vpop.f32.mrb[41].mxu1  ;;  %v8494_v61 = vpack.c.bf16 %v1355_v29, %v1347_v14  ;;  %v1358_v41 = vmax.f32 %v1002_v23, %v1230_v5  ;;  %v1005_v39 = vpop.f32.mrb[40].mxu0 }
 0x215   :  { %2467 = vmatprep.subr.bf16.mxu0 %v7452_v25  ;;  %v895_v6 = vadd.f32 %v894_v55, %v8377_v34  ;;  %v896_v10 = vpop.f32.mrb[42].mxu1  ;;  %v8498_v12 = vpack.c.bf16 %v1356_v21, %v1348_v43  ;;  %v1006_v13 = vadd.f32 %v1005_v39, %v8382_v59  ;;  %v1007_v16 = vpop.f32.mrb[41].mxu0  ;;  %v8501_v17 = vpack.c.bf16 %v1357_v8, %v1349_v27  ;;  %v7453_v27 = vld [vmem:[#allocation8 + $0x230] ss:$8 sps:$4 sm:$0xff]  }
 0x216   :  { %v1235_v53 = vmul.f32 0.01, %v893_v40  ;;  %v897_v19 = vadd.f32 %v896_v10, %v8358_v48  ;;  %v898_v20 = vpop.f32.mrb[43].mxu1  ;;  %v1008_v22 = vadd.f32 %v1007_v16, %v8387_v49  ;;  %v1009_v14 = vpop.f32.mrb[42].mxu0  ;;  %v8505_v24 = vpack.c.bf16 %v1358_v41, %v1350_v31  ;;  %v7458_v31 = vld [vmem:[#allocation8 + $0x244] ss:$8 sps:$4 sm:$0xff]  }
 0x217   :  { %2393 = vmatmul.mubr.bf16.gmra.mrb[52].mxu0 %v8421_v42  ;;  %v1236_v62 = vmul.f32 0.01, %v895_v6  ;;  %v899_v23 = vadd.f32 %v898_v20, %v8377_v34  ;;  %v1237_v25 = vmul.f32 0.01, %v1006_v13  ;;  %v1010_v43 = vadd.f32 %v1009_v14, %v8382_v59  ;;  %v1011_v45 = vpop.f32.mrb[43].mxu0 }
 0x218   :  { %2468 = vmatpush1.bf16.msra.mxu0 %v7450_v32  ;;  %2402 = vmatprep.mubr.bf16.mxu0 %v8442_v11  ;;  %v1363_v28 = vmax.f32 %v893_v40, %v1235_v53  ;;  %v1243_v29 = vmul.f32 0.01, %v897_v19  ;;  %v1238_v5 = vmul.f32 0.01, %v1008_v22  ;;  %v1012_v21 = vadd.f32 %v1011_v45, %v8387_v49  ;;  %v7456_v40 = vld [vmem:[#allocation8 + $0x240] ss:$8 sps:$4 sm:$0xff]  }
 0x219   :  { %2469 = vmatprep.subr.bf16.mxu0 %v7455_v2  ;;  %v1364_v33 = vmax.f32 %v895_v6, %v1236_v62  ;;  %v1244_v42 = vmul.f32 0.01, %v899_v23  ;;  %v1365_v8 = vmax.f32 %v1006_v13, %v1237_v25  ;;  %v1245_v55 = vmul.f32 0.01, %v1010_v43  ;;  %v7461_v62 = vld [vmem:[#allocation8 + $0x254] ss:$8 sps:$4 sm:$0xff]  }
 0x21a   :  { %v1371_v41 = vmax.f32 %v897_v19, %v1243_v29  ;;  %v1366_v39 = vmax.f32 %v1008_v22, %v1238_v5  ;;  %v1246_v10 = vmul.f32 0.01, %v1012_v21  ;;  %v8515_v11 = vrot.slane %v8308_v57, %v303_v47  ;;  %v7665_v19 = vld [vmem:[#allocation7] sm:$0xff] }
 0x21b   :  { %v1372_v16 = vmax.f32 %v899_v23, %v1244_v42  ;;  %v902_v20 = vpop.f32.mrb[44].mxu1  ;;  %v1373_v32 = vmax.f32 %v1010_v43, %v1245_v55  ;;  %v8522_v22 = vrot.slane %v7665_v19, %v307_v54 }
 0x21c   :  { %2470 = vmatpush1.bf16.msra.mxu0 %v7453_v27  ;;  %v903_v2 = vadd.f32 %v902_v20, %v8358_v48  ;;  %v904_v53 = vpop.f32.mrb[45].mxu1  ;;  %v8518_v6 = vpack.c.bf16 %v1371_v41, %v1363_v28  ;;  %v1374_v13 = vmax.f32 %v1012_v21, %v1246_v10  ;;  %v1015_v14 = vpop.f32.mrb[44].mxu0 }
 0x21d   :  { %2471 = vmatprep.subr.bf16.mxu0 %v7458_v31  ;;  %v905_v23 = vadd.f32 %v904_v53, %v8377_v34  ;;  %v906_v57 = vpop.f32.mrb[46].mxu1  ;;  %v8525_v25 = vpack.c.bf16 %v1372_v16, %v1364_v33  ;;  %v1016_v43 = vadd.f32 %v1015_v14, %v8382_v59  ;;  %v1017_v45 = vpop.f32.mrb[45].mxu0  ;;  %v8528_v27 = vpack.c.bf16 %v1373_v32, %v1365_v8  ;;  %v7459_v8 = vld [vmem:[#allocation8 + $0x250] ss:$8 sps:$4 sm:$0xff]  }
 0x21e   :  { %v1251_v28 = vmul.f32 0.01, %v903_v2  ;;  %v907_v29 = vadd.f32 %v906_v57, %v8358_v48  ;;  %v908_v5 = vpop.f32.mrb[47].mxu1  ;;  %v1018_v21 = vadd.f32 %v1017_v45, %v8387_v49  ;;  %v1019_v42 = vpop.f32.mrb[46].mxu0  ;;  %v8532_v55 = vpack.c.bf16 %v1374_v13, %v1366_v39  ;;  %v7464_v39 = vld [vmem:[#allocation8 + $0x264] ss:$8 sps:$4 sm:$0xff]  }
 0x21f   :  { %2403 = vmatmul.mubr.bf16.gmra.mrb[56].mxu0 %v8439_v38  ;;  %v1252_v31 = vmul.f32 0.01, %v905_v23  ;;  %v909_v33 = vadd.f32 %v908_v5, %v8377_v34  ;;  %v1253_v41 = vmul.f32 0.01, %v1016_v43  ;;  %v1020_v10 = vadd.f32 %v1019_v42, %v8382_v59  ;;  %v1021_v16 = vpop.f32.mrb[47].mxu0 }
 0x220   :  { %2472 = vmatpush1.bf16.msra.mxu0 %v7456_v40  ;;  %2412 = vmatprep.mubr.bf16.mxu0 %v8460_v60  ;;  %v1379_v48 = vmax.f32 %v903_v2, %v1251_v28  ;;  %v1259_v20 = vmul.f32 0.01, %v907_v29  ;;  %v1254_v32 = vmul.f32 0.01, %v1018_v21  ;;  %v1022_v53 = vadd.f32 %v1021_v16, %v8387_v49  ;;  %v7462_v60 = vld [vmem:[#allocation8 + $0x260] ss:$8 sps:$4 sm:$0xff]  }
 0x221   :  { %2473 = vmatprep.subr.bf16.mxu0 %v7461_v62  ;;  %v1380_v13 = vmax.f32 %v905_v23, %v1252_v31  ;;  %v1260_v38 = vmul.f32 0.01, %v909_v33  ;;  %v1381_v14 = vmax.f32 %v1016_v43, %v1253_v41  ;;  %v1261_v19 = vmul.f32 0.01, %v1020_v10  ;;  %v7467_v62 = vld [vmem:[#allocation8 + $0x274] ss:$8 sps:$4 sm:$0xff]  }
 0x222   :  { %v1387_v34 = vmax.f32 %v907_v29, %v1259_v20  ;;  %v1382_v57 = vmax.f32 %v1018_v21, %v1254_v32  ;;  %v1262_v45 = vmul.f32 0.01, %v1022_v53 }
 0x223   :  { %v1388_v59 = vmax.f32 %v909_v33, %v1260_v38  ;;  %v1389_v5 = vmax.f32 %v1020_v10, %v1261_v19  ;;  %v1058_v40 = vpop.f32.mrb[48].mxu1 }
 0x224   :  { %2474 = vmatpush1.bf16.msra.mxu0 %v7459_v8  ;;  %v8539_v42 = vpack.c.bf16 %v1387_v34, %v1379_v48  ;;  %v1390_v2 = vmax.f32 %v1022_v53, %v1262_v45  ;;  %v1059_v28 = vadd.f32 %v1058_v40, %v8515_v11  ;;  %v1060_v49 = vpop.f32.mrb[49].mxu1  ;;  %v7465_v48 = vld [vmem:[#allocation8 + $0x270] ss:$8 sps:$4 sm:$0xff]   ;;  %v7470_v53 = vld [vmem:[#allocation8 + $0x284] ss:$8 sps:$4 sm:$0xff]  }
 0x225   :  { %2475 = vmatprep.subr.bf16.mxu0 %v7464_v39  ;;  %v8542_v23 = vpack.c.bf16 %v1388_v59, %v1380_v13  ;;  %v1061_v43 = vadd.f32 %v1060_v49, %v8522_v22  ;;  %v1062_v29 = vpop.f32.mrb[50].mxu1  ;;  %v8545_v21 = vpack.c.bf16 %v1389_v5, %v1381_v14  ;;  %v7468_v34 = vld [vmem:[#allocation8 + $0x280] ss:$8 sps:$4 sm:$0xff]   ;;  %v7473_v59 = vld [vmem:[#allocation8 + $0x294] ss:$8 sps:$4 sm:$0xff]  }
 0x226   :  { %v1143_v31 = vmul.f32 0.01, %v1059_v28  ;;  %v1063_v33 = vadd.f32 %v1062_v29, %v8515_v11  ;;  %v1064_v41 = vpop.f32.mrb[51].mxu1  ;;  %v8548_v10 = vpack.c.bf16 %v1390_v2, %v1382_v57 }
 0x227   :  { %2413 = vmatmul.mubr.bf16.gmra.mrb[60].mxu0 %v8457_v35  ;;  %v1144_v16 = vmul.f32 0.01, %v1061_v43  ;;  %v1065_v8 = vadd.f32 %v1064_v41, %v8522_v22 }
 0x228   :  { %2476 = vmatpush1.bf16.msra.mxu0 %v7462_v60  ;;  %2422 = vmatprep.mubr.bf16.mxu0 %v8478_v46  ;;  %v1271_v20 = vmax.f32 %v1059_v28, %v1143_v31  ;;  %v1151_v32 = vmul.f32 0.01, %v1063_v33 }
 0x229   :  { %2477 = vmatprep.subr.bf16.mxu0 %v7467_v62  ;;  %v1272_v39 = vmax.f32 %v1061_v43, %v1144_v16  ;;  %v1152_v13 = vmul.f32 0.01, %v1065_v8  ;;  %v7471_v43 = vld [vmem:[#allocation8 + $0x290] ss:$8 sps:$4 sm:$0xff]  }
 0x22a   :  { %v1279_v38 = vmax.f32 %v1063_v33, %v1151_v32  ;;  %v7476_v33 = vld [vmem:[#allocation8 + $0x2a4] ss:$8 sps:$4 sm:$0xff]   ;;  %v7474_v32 = vld [vmem:[#allocation8 + $0x2a0] ss:$8 sps:$4 sm:$0xff]  }
 0x22b   :  { %v1280_v14 = vmax.f32 %v1065_v8, %v1152_v13  ;;  %v1068_v19 = vpop.f32.mrb[52].mxu1  ;;  %v7479_v13 = vld [vmem:[#allocation8 + $0x2b4] ss:$8 sps:$4 sm:$0xff]  }
 0x22c   :  { %2478 = vmatpush1.bf16.msra.mxu0 %v7465_v48  ;;  %v8553_v57 = vpack.c.bf16 %v1279_v38, %v1271_v20  ;;  %v1069_v35 = vadd.f32 %v1068_v19, %v8515_v11  ;;  %v1070_v45 = vpop.f32.mrb[53].mxu1 }
 0x22d   :  { %2479 = vmatprep.subr.bf16.mxu0 %v7470_v53  ;;  %v1071_v46 = vadd.f32 %v1070_v45, %v8522_v22  ;;  %v1072_v5 = vpop.f32.mrb[54].mxu1  ;;  %v8557_v40 = vpack.c.bf16 %v1280_v14, %v1272_v39 }
 0x22e   :  { %v1159_v60 = vmul.f32 0.01, %v1069_v35  ;;  %v1073_v2 = vadd.f32 %v1072_v5, %v8515_v11  ;;  %v1074_v28 = vpop.f32.mrb[55].mxu1 }
 0x22f   :  { %2423 = vmatmul.mubr.bf16.gmra.mrb[64].mxu0 %v8475_v36  ;;  %v1160_v49 = vmul.f32 0.01, %v1071_v46  ;;  %v1075_v62 = vadd.f32 %v1074_v28, %v8522_v22 }
 0x230   :  { %2480 = vmatpush1.bf16.msra.mxu0 %v7468_v34  ;;  %2432 = vmatprep.mubr.bf16.mxu0 %v8498_v12  ;;  %v1287_v29 = vmax.f32 %v1069_v35, %v1159_v60  ;;  %v1167_v31 = vmul.f32 0.01, %v1073_v2 }
 0x231   :  { %2481 = vmatprep.subr.bf16.mxu0 %v7473_v59  ;;  %v1288_v41 = vmax.f32 %v1071_v46, %v1160_v49  ;;  %v1168_v16 = vmul.f32 0.01, %v1075_v62  ;;  %v7477_v46 = vld [vmem:[#allocation8 + $0x2b0] ss:$8 sps:$4 sm:$0xff]  }
 0x232   :  { %v1295_v8 = vmax.f32 %v1073_v2, %v1167_v31  ;;  %v7482_v2 = vld [vmem:[#allocation8 + $0x2c4] ss:$8 sps:$4 sm:$0xff]   ;;  %v7480_v31 = vld [vmem:[#allocation8 + $0x2c0] ss:$8 sps:$4 sm:$0xff]  }
 0x233   :  { %v1296_v48 = vmax.f32 %v1075_v62, %v1168_v16  ;;  %v1078_v20 = vpop.f32.mrb[56].mxu1  ;;  %v7485_v16 = vld [vmem:[#allocation8 + $0x2d4] ss:$8 sps:$4 sm:$0xff]  }
 0x234   :  { %2482 = vmatpush1.bf16.msra.mxu0 %v7471_v43  ;;  %v1079_v36 = vadd.f32 %v1078_v20, %v8515_v11  ;;  %v1080_v53 = vpop.f32.mrb[57].mxu1  ;;  %v8564_v39 = vpack.c.bf16 %v1295_v8, %v1287_v29 }
 0x235   :  { %2483 = vmatprep.subr.bf16.mxu0 %v7476_v33  ;;  %v1081_v12 = vadd.f32 %v1080_v53, %v8522_v22  ;;  %v1082_v38 = vpop.f32.mrb[58].mxu1  ;;  %v8567_v14 = vpack.c.bf16 %v1296_v48, %v1288_v41 }
 0x236   :  { %v1175_v19 = vmul.f32 0.01, %v1079_v36  ;;  %v1083_v34 = vadd.f32 %v1082_v38, %v8515_v11  ;;  %v1084_v35 = vpop.f32.mrb[59].mxu1 }
 0x237   :  { %2433 = vmatmul.mubr.bf16.gmra.mrb[68].mxu0 %v8494_v61  ;;  %v1176_v45 = vmul.f32 0.01, %v1081_v12  ;;  %v1085_v59 = vadd.f32 %v1084_v35, %v8522_v22 }
 0x238   :  { %2484 = vmatpush1.bf16.msra.mxu0 %v7474_v32  ;;  %2442 = vmatprep.mubr.bf16.mxu0 %v8525_v25  ;;  %v1303_v5 = vmax.f32 %v1079_v36, %v1175_v19  ;;  %v1183_v60 = vmul.f32 0.01, %v1083_v34 }
 0x239   :  { %2485 = vmatprep.subr.bf16.mxu0 %v7479_v13  ;;  %v1304_v28 = vmax.f32 %v1081_v12, %v1176_v45  ;;  %v1184_v49 = vmul.f32 0.01, %v1085_v59  ;;  %v7483_v12 = vld [vmem:[#allocation8 + $0x2d0] ss:$8 sps:$4 sm:$0xff]  }
 0x23a   :  { %v1311_v62 = vmax.f32 %v1083_v34, %v1183_v60  ;;  %v7488_v34 = vld [vmem:[#allocation8 + $0x2e4] ss:$8 sps:$4 sm:$0xff]   ;;  %v7486_v60 = vld [vmem:[#allocation8 + $0x2e0] ss:$8 sps:$4 sm:$0xff]  }
 0x23b   :  { %v1312_v43 = vmax.f32 %v1085_v59, %v1184_v49  ;;  %v1088_v29 = vpop.f32.mrb[60].mxu1  ;;  %v7491_v49 = vld [vmem:[#allocation8 + $0x2f4] ss:$8 sps:$4 sm:$0xff]  }
 0x23c   :  { %2486 = vmatpush1.bf16.msra.mxu0 %v7477_v46  ;;  %v1089_v61 = vadd.f32 %v1088_v29, %v8515_v11  ;;  %v1090_v33 = vpop.f32.mrb[61].mxu1  ;;  %v8574_v41 = vpack.c.bf16 %v1311_v62, %v1303_v5 }
 0x23d   :  { %2487 = vmatprep.subr.bf16.mxu0 %v7482_v2  ;;  %v1091_v25 = vadd.f32 %v1090_v33, %v8522_v22  ;;  %v1092_v8 = vpop.f32.mrb[62].mxu1  ;;  %v8577_v48 = vpack.c.bf16 %v1312_v43, %v1304_v28 }
 0x23e   :  { %v1191_v20 = vmul.f32 0.01, %v1089_v61  ;;  %v1093_v32 = vadd.f32 %v1092_v8, %v8515_v11  ;;  %v1094_v36 = vpop.f32.mrb[63].mxu1  ;;  %v7541_v8 = vld [vmem:[#allocation10] sm:$0xff]  }
 0x23f   :  { %2443 = vmatmul.mubr.bf16.gmra.mrb[72].mxu0 %v8518_v6  ;;  %v1192_v53 = vmul.f32 0.01, %v1091_v25  ;;  %v1095_v13 = vadd.f32 %v1094_v36, %v8522_v22 }
 0x240   :  { %2488 = vmatpush1.bf16.msra.mxu0 %v7480_v31  ;;  %2452 = vmatprep.mubr.bf16.mxu0 %v8542_v23  ;;  %v1319_v38 = vmax.f32 %v1089_v61, %v1191_v20  ;;  %v1199_v19 = vmul.f32 0.01, %v1093_v32  ;;  %v7542_v20 = vld [vmem:[#allocation10 + $0x48] sm:$0xff]  }
 0x241   :  { %2489 = vmatprep.subr.bf16.mxu0 %v7485_v16  ;;  %v1320_v35 = vmax.f32 %v1091_v25, %v1192_v53  ;;  %v1200_v45 = vmul.f32 0.01, %v1095_v13  ;;  %v7540_v25 = vld [vmem:[#allocation10 + $0x40] sm:$0xff]  }
 0x242   :  { %v1327_v59 = vmax.f32 %v1093_v32, %v1199_v19  ;;  %v7489_v32 = vld [vmem:[#allocation8 + $0x2f0] ss:$8 sps:$4 sm:$0xff]   ;;  %6761 = vmatprep.subr.bf16.mxu1 %v7540_v25 }
 0x243   :  { %v1328_v46 = vmax.f32 %v1095_v13, %v1200_v45  ;;  %v1098_v5 = vpop.f32.mrb[64].mxu1  ;;  %v7494_v13 = vld [vmem:[#allocation8 + $0x304] ss:$8 sps:$4 sm:$0xff]   ;;  %6762 = vmatpush3.bf16.msra.mxu1 %v7541_v8  ;;  %v7544_v45 = vld [vmem:[#allocation10 + $0x50] sm:$0xff]  }
 0x244   :  { %2490 = vmatpush1.bf16.msra.mxu0 %v7483_v12  ;;  %v1099_v6 = vadd.f32 %v1098_v5, %v8515_v11  ;;  %v1100_v2 = vpop.f32.mrb[65].mxu1  ;;  %v8584_v28 = vpack.c.bf16 %v1327_v59, %v1319_v38  ;;  %6763 = vmatprep.subr.bf16.mxu1 %v7542_v20  ;;  %v7492_v59 = vld [vmem:[#allocation8 + $0x300] ss:$8 sps:$4 sm:$0xff]   ;;  %v7495_v25 = vld [vmem:[#allocation8 + $0x310] ss:$8 sps:$4 sm:$0xff]  }
 0x245   :  { %2491 = vmatprep.subr.bf16.mxu0 %v7488_v34  ;;  %v1101_v23 = vadd.f32 %v1100_v2, %v8522_v22  ;;  %v1102_v62 = vpop.f32.mrb[66].mxu1  ;;  %v8587_v43 = vpack.c.bf16 %v1328_v46, %v1320_v35 }
 0x246   :  { %v1207_v29 = vmul.f32 0.01, %v1099_v6  ;;  %v1103_v31 = vadd.f32 %v1102_v62, %v8515_v11  ;;  %v1104_v61 = vpop.f32.mrb[67].mxu1 }
 0x247   :  { %2453 = vmatmul.mubr.bf16.gmra.mrb[76].mxu0 %v8539_v42  ;;  %v1208_v33 = vmul.f32 0.01, %v1101_v23  ;;  %v1105_v16 = vadd.f32 %v1104_v61, %v8522_v22  ;;  %v7543_v42 = vld [vmem:[#allocation10 + $0x8] sm:$0xff]  }
 0x248   :  { %2492 = vmatpush1.bf16.msra.mxu0 %v7486_v60  ;;  %2495 = vmatprep.mubr.bf16.mxu0 %v8413_v9  ;;  %v1335_v36 = vmax.f32 %v1099_v6, %v1207_v29  ;;  %v1215_v53 = vmul.f32 0.01, %v1103_v31  ;;  %v7497_v60 = vld [vmem:[#allocation8 + $0x314] ss:$8 sps:$4 sm:$0xff]  }
 0x249   :  { %2493 = vmatprep.subr.bf16.mxu0 %v7491_v49  ;;  %v1336_v12 = vmax.f32 %v1101_v23, %v1208_v33  ;;  %v1216_v38 = vmul.f32 0.01, %v1105_v16  ;;  %6764 = vmatpush3.bf16.msra.mxu1 %v7543_v42  ;;  %v7498_v42 = vld [vmem:[#allocation8 + $0x320] ss:$8 sps:$4 sm:$0xff]  }
 0x24a   :  { %v1343_v19 = vmax.f32 %v1103_v31, %v1215_v53  ;;  %v7545_v31 = vld [vmem:[#allocation10 + $0x10] sm:$0xff]   ;;  %6765 = vmatprep.subr.bf16.mxu1 %v7544_v45 }
 0x24b   :  { %v1344_v34 = vmax.f32 %v1105_v16, %v1216_v38  ;;  %v1108_v35 = vpop.f32.mrb[68].mxu1  ;;  %v7546_v16 = vld [vmem:[#allocation10 + $0x58] sm:$0xff]  }
 0x24c   :  { %2494 = vmatpush1.bf16.msra.mxu0 %v7489_v32  ;;  %v1109_v46 = vadd.f32 %v1108_v35, %v8515_v11  ;;  %v1110_v9 = vpop.f32.mrb[69].mxu1  ;;  %v8594_v5 = vpack.c.bf16 %v1343_v19, %v1335_v36  ;;  %v7500_v32 = vld [vmem:[#allocation8 + $0x324] ss:$8 sps:$4 sm:$0xff]   ;;  %v7503_v45 = vld [vmem:[#allocation8 + $0x334] ss:$8 sps:$4 sm:$0xff]  }
 0x24d   :  { %2576 = vmatprep.subr.bf16.mxu0 %v7494_v13  ;;  %v1111_v6 = vadd.f32 %v1110_v9, %v8522_v22  ;;  %v1112_v2 = vpop.f32.mrb[70].mxu1  ;;  %v8597_v49 = vpack.c.bf16 %v1344_v34, %v1336_v12  ;;  %6766 = vmatpush3.bf16.msra.mxu1 %v7545_v31  ;;  %v7547_v12 = vld [vmem:[#allocation10 + $0x18] sm:$0xff]   ;;  %v7548_v19 = vld [vmem:[#allocation10 + $0x60] sm:$0xff]   ;;  %v7550_v31 = vld [vmem:[#allocation10 + $0x68] sm:$0xff]  }
 0x24e   :  { %v1223_v23 = vmul.f32 0.01, %v1109_v46  ;;  %v1113_v62 = vadd.f32 %v1112_v2, %v8515_v11  ;;  %v1114_v29 = vpop.f32.mrb[71].mxu1  ;;  %6767 = vmatprep.subr.bf16.mxu1 %v7546_v16 }
 0x24f   :  { %2496 = vmatmul.mubr.bf16.vlgmr.msra.gmra.mrb[48].mxu0 %v8408_v30  ;;  %v1224_v61 = vmul.f32 0.01, %v1111_v6  ;;  %v1115_v33 = vadd.f32 %v1114_v29, %v8522_v22 }
 0x250   :  { %2577 = vmatpush1.bf16.msra.mxu0 %v7492_v59  ;;  %2505 = vmatprep.mubr.bf16.mxu0 %v8431_v4  ;;  %v1351_v8 = vmax.f32 %v1109_v46, %v1223_v23  ;;  %v1231_v20 = vmul.f32 0.01, %v1113_v62  ;;  %v7549_v23 = vld [vmem:[#allocation10 + $0x20] sm:$0xff]  }
 0x251   :  { %2578 = vmatprep.subr.bf16.mxu0 %v7497_v60  ;;  %v1352_v36 = vmax.f32 %v1111_v6, %v1224_v61  ;;  %v1232_v53 = vmul.f32 0.01, %v1115_v33  ;;  %6768 = vmatpush3.bf16.msra.mxu1 %v7547_v12  ;;  %v7501_v61 = vld [vmem:[#allocation8 + $0x330] ss:$8 sps:$4 sm:$0xff]   ;;  %v7504_v12 = vld [vmem:[#allocation8 + $0x340] ss:$8 sps:$4 sm:$0xff]  }
 0x252   :  { %v1359_v13 = vmax.f32 %v1113_v62, %v1231_v20  ;;  %6769 = vmatprep.subr.bf16.mxu1 %v7548_v19  ;;  %v7509_v19 = vld [vmem:[#allocation8 + $0x354] ss:$8 sps:$4 sm:$0xff]  }
 0x253   :  { %v1360_v38 = vmax.f32 %v1115_v33, %v1232_v53  ;;  %v1118_v30 = vpop.f32.mrb[72].mxu1 }
 0x254   :  { %2579 = vmatpush1.bf16.msra.mxu0 %v7495_v25  ;;  %v1119_v34 = vadd.f32 %v1118_v30, %v8515_v11  ;;  %v1120_v35 = vpop.f32.mrb[73].mxu1  ;;  %v8604_v4 = vpack.c.bf16 %v1359_v13, %v1351_v8  ;;  %v7506_v25 = vld [vmem:[#allocation8 + $0x344] ss:$8 sps:$4 sm:$0xff]   ;;  %v7552_v13 = vld [vmem:[#allocation10 + $0x70] sm:$0xff]  }
 0x255   :  { %2580 = vmatprep.subr.bf16.mxu0 %v7500_v32  ;;  %v1121_v59 = vadd.f32 %v1120_v35, %v8522_v22  ;;  %v1122_v46 = vpop.f32.mrb[74].mxu1  ;;  %v8607_v9 = vpack.c.bf16 %v1360_v38, %v1352_v36  ;;  %6770 = vmatpush3.bf16.msra.mxu1 %v7549_v23  ;;  %v7551_v36 = vld [vmem:[#allocation10 + $0x28] sm:$0xff]   ;;  %v7507_v23 = vld [vmem:[#allocation8 + $0x350] ss:$8 sps:$4 sm:$0xff]  }
 0x256   :  { %v1239_v60 = vmul.f32 0.01, %v1119_v34  ;;  %v1123_v6 = vadd.f32 %v1122_v46, %v8515_v11  ;;  %v1124_v2 = vpop.f32.mrb[75].mxu1  ;;  %6771 = vmatprep.subr.bf16.mxu1 %v7550_v31  ;;  %v7512_v31 = vld [vmem:[#allocation8 + $0x364] ss:$8 sps:$4 sm:$0xff]  }
 0x257   :  { %2506 = vmatmul.mubr.bf16.gmra.mrb[52].mxu0 %v8427_v52  ;;  %v1240_v62 = vmul.f32 0.01, %v1121_v59  ;;  %v1125_v29 = vadd.f32 %v1124_v2, %v8522_v22 }
 0x258   :  { %2581 = vmatpush1.bf16.msra.mxu0 %v7498_v42  ;;  %2515 = vmatprep.mubr.bf16.mxu0 %v8449_v3  ;;  %v1367_v33 = vmax.f32 %v1119_v34, %v1239_v60  ;;  %v1247_v16 = vmul.f32 0.01, %v1123_v6  ;;  %v7553_v60 = vld [vmem:[#allocation10 + $0x30] sm:$0xff]  }
 0x259   :  { %2582 = vmatprep.subr.bf16.mxu0 %v7503_v45  ;;  %v1368_v8 = vmax.f32 %v1121_v59, %v1240_v62  ;;  %v1248_v20 = vmul.f32 0.01, %v1125_v29  ;;  %6772 = vmatpush3.bf16.msra.mxu1 %v7551_v36  ;;  %v7521_v36 = vld [vmem:[#allocation8 + $0x394] ss:$8 sps:$4 sm:$0xff]  }
 0x25a   :  { %v1375_v32 = vmax.f32 %v1123_v6, %v1247_v16  ;;  %6773 = vmatprep.subr.bf16.mxu1 %v7552_v13  ;;  %v7527_v13 = vld [vmem:[#allocation8 + $0x3b4] ss:$8 sps:$4 sm:$0xff]  }
 0x25b   :  { %v1376_v53 = vmax.f32 %v1125_v29, %v1248_v20  ;;  %v1128_v52 = vpop.f32.mrb[76].mxu1  ;;  %v7518_v20 = vld [vmem:[#allocation8 + $0x384] ss:$8 sps:$4 sm:$0xff]  }
 0x25c   :  { %2583 = vmatpush1.bf16.msra.mxu0 %v7501_v61  ;;  %v1129_v38 = vadd.f32 %v1128_v52, %v8515_v11  ;;  %v1130_v30 = vpop.f32.mrb[77].mxu1  ;;  %v8614_v3 = vpack.c.bf16 %v1375_v32, %v1367_v33  ;;  %v7516_v32 = vld [vmem:[#allocation8 + $0x380] ss:$8 sps:$4 sm:$0xff]   ;;  %v7524_v52 = vld [vmem:[#allocation8 + $0x3a4] ss:$8 sps:$4 sm:$0xff]  }
 0x25d   :  { %2584 = vmatprep.subr.bf16.mxu0 %v7506_v25  ;;  %v1131_v42 = vadd.f32 %v1130_v30, %v8522_v22  ;;  %v1132_v34 = vpop.f32.mrb[78].mxu1  ;;  %v8617_v35 = vpack.c.bf16 %v1376_v53, %v1368_v8  ;;  %6774 = vmatpush3.bf16.msra.mxu1 %v7553_v60  ;;  %v7510_v25 = vld [vmem:[#allocation8 + $0x360] ss:$8 sps:$4 sm:$0xff]   ;;  %v7519_v53 = vld [vmem:[#allocation8 + $0x390] ss:$8 sps:$4 sm:$0xff]  }
 0x25e   :  { %v1255_v45 = vmul.f32 0.01, %v1129_v38  ;;  %v1133_v59 = vadd.f32 %v1132_v34, %v8515_v11  ;;  %v1134_v46 = vpop.f32.mrb[79].mxu1  ;;  %v7536_v30 = vld [vmem:[#allocation8 + $0x3e4] ss:$8 sps:$4 sm:$0xff]  }
 0x25f   :  { %2516 = vmatmul.mubr.bf16.gmra.mrb[56].mxu0 %v8445_v50  ;;  %v1256_v6 = vmul.f32 0.01, %v1131_v42  ;;  %v1135_v2 = vadd.f32 %v1134_v46, %v8522_v22  ;;  %v7515_v22 = vld [vmem:[#allocation8 + $0x374] ss:$8 sps:$4 sm:$0xff]  }
 0x260   :  { %2585 = vmatpush1.bf16.msra.mxu0 %v7504_v12  ;;  %2525 = vmatprep.mubr.bf16.mxu0 %v8467_v7  ;;  %v1383_v62 = vmax.f32 %v1129_v38, %v1255_v45  ;;  %v1263_v29 = vmul.f32 0.01, %v1133_v59  ;;  %v7513_v7 = vld [vmem:[#allocation8 + $0x370] ss:$8 sps:$4 sm:$0xff]   ;;  %v7530_v12 = vld [vmem:[#allocation8 + $0x3c4] ss:$8 sps:$4 sm:$0xff]  }
 0x261   :  { %2586 = vmatprep.subr.bf16.mxu0 %v7509_v19  ;;  %v1384_v61 = vmax.f32 %v1131_v42, %v1256_v6  ;;  %v1264_v33 = vmul.f32 0.01, %v1135_v2  ;;  %v7533_v38 = vld [vmem:[#allocation8 + $0x3d4] ss:$8 sps:$4 sm:$0xff]  }
 0x262   :  { %v1391_v11 = vmax.f32 %v1133_v59, %v1263_v29  ;;  %v7539_v19 = vld [vmem:[#allocation8 + $0x3f4] ss:$8 sps:$4 sm:$0xff]  }
 0x263   :  { %v1392_v16 = vmax.f32 %v1135_v2, %v1264_v33 }
 0x264   :  { %2587 = vmatpush1.bf16.msra.mxu0 %v7507_v23  ;;  %v8623_v50 = vpack.c.bf16 %v1391_v11, %v1383_v62 }
 0x265   :  { %2588 = vmatprep.subr.bf16.mxu0 %v7512_v31  ;;  %v1456_v8 = vpack.c.bf16 %v1392_v16, %v1384_v61  ;;  %v7557_v16 = vld [vmem:[#allocation11 + $0x8] sm:$0xff]  }
 0x267   :  { %2526 = vmatmul.mubr.bf16.gmra.mrb[60].mxu0 %v8463_v51  ;;  %v7522_v51 = vld [vmem:[#allocation8 + $0x3a0] ss:$8 sps:$4 sm:$0xff]  }
 0x268   :  { %2589 = vmatpush1.bf16.msra.mxu0 %v7510_v25  ;;  %2535 = vmatprep.mubr.bf16.mxu0 %v8485_v15  ;;  %v7525_v15 = vld [vmem:[#allocation8 + $0x3b0] ss:$8 sps:$4 sm:$0xff]  }
 0x269   :  { %2590 = vmatprep.subr.bf16.mxu0 %v7515_v22 }
 0x26c   :  { %2591 = vmatpush1.bf16.msra.mxu0 %v7513_v7 }
 0x26d   :  { %2592 = vmatprep.subr.bf16.mxu0 %v7518_v20 }
 0x26f   :  { %2536 = vmatmul.mubr.bf16.gmra.mrb[64].mxu0 %v8481_v1  ;;  %v7528_v1 = vld [vmem:[#allocation8 + $0x3c0] ss:$8 sps:$4 sm:$0xff]  }
 0x270   :  { %2593 = vmatpush1.bf16.msra.mxu0 %v7516_v32  ;;  %2545 = vmatprep.mubr.bf16.mxu0 %v8505_v24  ;;  %v7531_v24 = vld [vmem:[#allocation8 + $0x3d0] ss:$8 sps:$4 sm:$0xff]  }
 0x271   :  { %2594 = vmatprep.subr.bf16.mxu0 %v7521_v36  ;;  %v7558_v32 = vld [vmem:[#allocation11 + $0x10] sm:$0xff]  }
 0x274   :  { %2595 = vmatpush1.bf16.msra.mxu0 %v7519_v53 }
 0x275   :  { %2596 = vmatprep.subr.bf16.mxu0 %v7524_v52 }
 0x277   :  { %2546 = vmatmul.mubr.bf16.gmra.mrb[68].mxu0 %v8501_v17  ;;  %v7534_v17 = vld [vmem:[#allocation8 + $0x3e0] ss:$8 sps:$4 sm:$0xff]  }
 0x278   :  { %2597 = vmatpush1.bf16.msra.mxu0 %v7522_v51  ;;  %2555 = vmatprep.mubr.bf16.mxu0 %v8532_v55  ;;  %v7537_v55 = vld [vmem:[#allocation8 + $0x3f0] ss:$8 sps:$4 sm:$0xff]  }
 0x279   :  { %2598 = vmatprep.subr.bf16.mxu0 %v7527_v13 }
 0x27c   :  { %2599 = vmatpush1.bf16.msra.mxu0 %v7525_v15 }
 0x27d   :  { %2600 = vmatprep.subr.bf16.mxu0 %v7530_v12 }
 0x27f   :  { %2556 = vmatmul.mubr.bf16.gmra.mrb[72].mxu0 %v8528_v27  ;;  %v7554_v27 = vld [vmem:[#allocation10 + $0x78] sm:$0xff]  }
 0x280   :  { %2601 = vmatpush1.bf16.msra.mxu0 %v7528_v1  ;;  %2565 = vmatprep.mubr.bf16.mxu0 %v8548_v10  ;;  %v7556_v10 = vld [vmem:[#allocation11] sm:$0xff]  }
 0x281   :  { %2602 = vmatprep.subr.bf16.mxu0 %v7533_v38  ;;  %6775 = vmatprep.subr.bf16.mxu1 %v7554_v27 }
 0x284   :  { %2603 = vmatpush1.bf16.msra.mxu0 %v7531_v24 }
 0x285   :  { %2604 = vmatprep.subr.bf16.mxu0 %v7536_v30 }
 0x287   :  { %2566 = vmatmul.mubr.bf16.gmra.mrb[76].mxu0 %v8545_v21  ;;  %v7555_v21 = vld [vmem:[#allocation10 + $0x38] sm:$0xff]  }
 0x288   :  { %2605 = vmatpush1.bf16.msra.mxu0 %v7534_v17  ;;  %2608 = vmatprep.mubr.bf16.mxu0 %v8557_v40 }
 0x289   :  { %2606 = vmatprep.subr.bf16.mxu0 %v7539_v19  ;;  %6776 = vmatpush3.bf16.msra.mxu1 %v7555_v21  ;;  %v7559_v19 = vld [vmem:[#allocation11 + $0x18] sm:$0xff]  }
 0x28a   :  { %7113 = vmatprep.subr.bf16.mxu1 %v7556_v10 }
 0x28c   :  { %2607 = vmatpush1.bf16.msra.mxu0 %v7537_v55 }
 0x28f   :  { %2609 = vmatmul.mubr.bf16.vlgmr.msra.gmra.mrb[48].mxu0 %v8553_v57  ;;  %v1585_v57 = vld [vmem:[%s9183_s4] sm:$0x3] }
 0x290   :  { %2618 = vmatprep.mubr.bf16.mxu0 %v8567_v14  ;;  %v8653_v40 = vrot.slane %v1585_v57, %v8306_v26 }
 0x297   :  { %2619 = vmatmul.mubr.bf16.gmra.mrb[52].mxu0 %v8564_v39  ;;  %v8656_v39 = vrot.slane %v1585_v57, %v8311_v58 }
 0x298   :  { %2628 = vmatprep.mubr.bf16.mxu0 %v8577_v48 }
 0x29f   :  { %2629 = vmatmul.mubr.bf16.gmra.mrb[56].mxu0 %v8574_v41 }
 0x2a0   :  { %2638 = vmatprep.mubr.bf16.mxu0 %v8587_v43 }
 0x2a7   :  { %2639 = vmatmul.mubr.bf16.gmra.mrb[60].mxu0 %v8584_v28 }
 0x2a8   :  { %2648 = vmatprep.mubr.bf16.mxu0 %v8597_v49 }
 0x2af   :  { %2649 = vmatmul.mubr.bf16.gmra.mrb[64].mxu0 %v8594_v5 }
 0x2b0   :  { %2658 = vmatprep.mubr.bf16.mxu0 %v8607_v9 }
 0x2b7   :  { %2659 = vmatmul.mubr.bf16.gmra.mrb[68].mxu0 %v8604_v4 }
 0x2b8   :  { %2668 = vmatprep.mubr.bf16.mxu0 %v8617_v35 }
 0x2bf   :  { %2669 = vmatmul.mubr.bf16.gmra.mrb[72].mxu0 %v8614_v3 }
 0x2c0   :  { %2678 = vmatprep.mubr.bf16.mxu0 %v1456_v8 }
 0x2c7   :  { %2679 = vmatmul.mubr.bf16.gmra.mrb[76].mxu0 %v8623_v50 }
 0x362   :  { %v2610_v14 = vpop.f32.mrb[48].mxu0 }
 0x363   :  { %v7193_v41 = vadd.f32 %v2610_v14, %v8653_v40  ;;  %v2612_v48 = vpop.f32.mrb[49].mxu0 }
 0x364   :  { %v7194_v28 = vadd.f32 %v2612_v48, %v8656_v39  ;;  %v2614_v43 = vpop.f32.mrb[50].mxu0 }
 0x365   :  { %v2689_v5 = vmul.f32 0.01, %v7193_v41  ;;  %v7195_v49 = vadd.f32 %v2614_v43, %v8653_v40  ;;  %v2616_v4 = vpop.f32.mrb[51].mxu0 }
 0x366   :  { %v2690_v9 = vmul.f32 0.01, %v7194_v28  ;;  %v7196_v3 = vadd.f32 %v2616_v4, %v8656_v39 }
 0x367   :  { %v2691_v42 = vmul.f32 0.01, %v7195_v49  ;;  %v2721_v35 = vmax.f32 %v7193_v41, %v2689_v5  ;;  %v7560_v41 = vld [vmem:[#allocation11 + $0x20] sm:$0xff]  }
 0x368   :  { %v2692_v34 = vmul.f32 0.01, %v7196_v3  ;;  %v2722_v59 = vmax.f32 %v7194_v28, %v2690_v9 }
 0x369   :  { %v2723_v45 = vmax.f32 %v7195_v49, %v2691_v42 }
 0x36a   :  { %v2724_v46 = vmax.f32 %v7196_v3, %v2692_v34  ;;  %v2620_v60 = vpop.f32.mrb[52].mxu0 }
 0x36b   :  { %v2753_v6 = vpack.c.bf16 %v2723_v45, %v2721_v35  ;;  %v7197_v2 = vadd.f32 %v2620_v60, %v8653_v40  ;;  %v2622_v23 = vpop.f32.mrb[53].mxu0 }
 0x36c   :  { %v7198_v62 = vadd.f32 %v2622_v23, %v8656_v39  ;;  %v2624_v29 = vpop.f32.mrb[54].mxu0  ;;  %v2754_v31 = vpack.c.bf16 %v2724_v46, %v2722_v59  ;;  %v7561_v59 = vld [vmem:[#allocation11 + $0x28] sm:$0xff]  }
 0x36d   :  { %v2693_v61 = vmul.f32 0.01, %v7197_v2  ;;  %v7199_v33 = vadd.f32 %v2624_v29, %v8653_v40  ;;  %v2626_v11 = vpop.f32.mrb[55].mxu0 }
 0x36e   :  { %v2694_v25 = vmul.f32 0.01, %v7198_v62  ;;  %v7200_v50 = vadd.f32 %v2626_v11, %v8656_v39  ;;  %2936 = vmatprep.mubr.bf16.mxu1 %v2754_v31 }
 0x36f   :  { %v2695_v22 = vmul.f32 0.01, %v7199_v33  ;;  %2937 = vmatmul.mubr.bf16.vlgmr.msra.gmra.mrb[80].mxu1 %v2753_v6  ;;  %v2725_v7 = vmax.f32 %v7197_v2, %v2693_v61 }
 0x370   :  { %v2696_v8 = vmul.f32 0.01, %v7200_v50  ;;  %7114 = vmatpush3.bf16.msra.mxu1 %v7556_v10  ;;  %v2726_v36 = vmax.f32 %v7198_v62, %v2694_v25 }
 0x371   :  { %v2727_v20 = vmax.f32 %v7199_v33, %v2695_v22  ;;  %7115 = vmatprep.subr.bf16.mxu1 %v7557_v16 }
 0x372   :  { %v2728_v53 = vmax.f32 %v7200_v50, %v2696_v8  ;;  %v2630_v52 = vpop.f32.mrb[56].mxu0 }
 0x373   :  { %v7201_v51 = vadd.f32 %v2630_v52, %v8653_v40  ;;  %v2632_v13 = vpop.f32.mrb[57].mxu0  ;;  %v2755_v15 = vpack.c.bf16 %v2727_v20, %v2725_v7 }
 0x374   :  { %v7202_v12 = vadd.f32 %v2632_v13, %v8656_v39  ;;  %v2634_v1 = vpop.f32.mrb[58].mxu0  ;;  %v2756_v38 = vpack.c.bf16 %v2728_v53, %v2726_v36  ;;  %7116 = vmatpush3.bf16.msra.mxu1 %v7557_v16 }
 0x375   :  { %v2697_v24 = vmul.f32 0.01, %v7201_v51  ;;  %v7203_v30 = vadd.f32 %v2634_v1, %v8653_v40  ;;  %v2636_v17 = vpop.f32.mrb[59].mxu0  ;;  %7117 = vmatprep.subr.bf16.mxu1 %v7558_v32 }
 0x376   :  { %v2698_v55 = vmul.f32 0.01, %v7202_v12  ;;  %v7204_v27 = vadd.f32 %v2636_v17, %v8656_v39  ;;  %2944 = vmatprep.mubr.bf16.mxu1 %v2756_v38 }
 0x377   :  { %v2699_v21 = vmul.f32 0.01, %v7203_v30  ;;  %2945 = vmatmul.mubr.bf16.gmra.mrb[84].mxu1 %v2755_v15  ;;  %v2729_v57 = vmax.f32 %v7201_v51, %v2697_v24 }
 0x378   :  { %v2700_v10 = vmul.f32 0.01, %v7204_v27  ;;  %7118 = vmatpush3.bf16.msra.mxu1 %v7558_v32  ;;  %v2730_v48 = vmax.f32 %v7202_v12, %v2698_v55 }
 0x379   :  { %v2731_v14 = vmax.f32 %v7203_v30, %v2699_v21  ;;  %7119 = vmatprep.subr.bf16.mxu1 %v7559_v19 }
 0x37a   :  { %v2732_v28 = vmax.f32 %v7204_v27, %v2700_v10  ;;  %v2640_v43 = vpop.f32.mrb[60].mxu0 }
 0x37b   :  { %v7205_v5 = vadd.f32 %v2640_v43, %v8653_v40  ;;  %v2642_v49 = vpop.f32.mrb[61].mxu0  ;;  %v2757_v4 = vpack.c.bf16 %v2731_v14, %v2729_v57 }
 0x37c   :  { %v7206_v9 = vadd.f32 %v2642_v49, %v8656_v39  ;;  %v2644_v3 = vpop.f32.mrb[62].mxu0  ;;  %v2758_v42 = vpack.c.bf16 %v2732_v28, %v2730_v48  ;;  %7120 = vmatpush3.bf16.msra.mxu1 %v7559_v19 }
 0x37d   :  { %v2701_v34 = vmul.f32 0.01, %v7205_v5  ;;  %v7207_v35 = vadd.f32 %v2644_v3, %v8653_v40  ;;  %v2646_v45 = vpop.f32.mrb[63].mxu0  ;;  %7121 = vmatprep.subr.bf16.mxu1 %v7560_v41 }
 0x37e   :  { %v2702_v46 = vmul.f32 0.01, %v7206_v9  ;;  %v7208_v60 = vadd.f32 %v2646_v45, %v8656_v39  ;;  %2952 = vmatprep.mubr.bf16.mxu1 %v2758_v42 }
 0x37f   :  { %v2703_v6 = vmul.f32 0.01, %v7207_v35  ;;  %2953 = vmatmul.mubr.bf16.gmra.mrb[88].mxu1 %v2757_v4  ;;  %v2733_v23 = vmax.f32 %v7205_v5, %v2701_v34 }
 0x380   :  { %v2704_v2 = vmul.f32 0.01, %v7208_v60  ;;  %7122 = vmatpush3.bf16.msra.mxu1 %v7560_v41  ;;  %v2734_v29 = vmax.f32 %v7206_v9, %v2702_v46 }
 0x381   :  { %v2735_v62 = vmax.f32 %v7207_v35, %v2703_v6  ;;  %7123 = vmatprep.subr.bf16.mxu1 %v7561_v59 }
 0x382   :  { %v2736_v31 = vmax.f32 %v7208_v60, %v2704_v2  ;;  %v2650_v61 = vpop.f32.mrb[64].mxu0 }
 0x383   :  { %v7209_v33 = vadd.f32 %v2650_v61, %v8653_v40  ;;  %v2652_v11 = vpop.f32.mrb[65].mxu0  ;;  %v2759_v16 = vpack.c.bf16 %v2735_v62, %v2733_v23 }
 0x384   :  { %v7210_v25 = vadd.f32 %v2652_v11, %v8656_v39  ;;  %v2654_v50 = vpop.f32.mrb[66].mxu0  ;;  %v2760_v22 = vpack.c.bf16 %v2736_v31, %v2734_v29  ;;  %7124 = vmatpush3.bf16.msra.mxu1 %v7561_v59 }
 0x385   :  { %v2705_v8 = vmul.f32 0.01, %v7209_v33  ;;  %v7211_v7 = vadd.f32 %v2654_v50, %v8653_v40  ;;  %v2656_v20 = vpop.f32.mrb[67].mxu0 }
 0x386   :  { %v2706_v32 = vmul.f32 0.01, %v7210_v25  ;;  %v7212_v36 = vadd.f32 %v2656_v20, %v8656_v39  ;;  %2960 = vmatprep.mubr.bf16.mxu1 %v2760_v22 }
 0x387   :  { %v2707_v53 = vmul.f32 0.01, %v7211_v7  ;;  %2961 = vmatmul.mubr.bf16.gmra.mrb[92].mxu1 %v2759_v16  ;;  %v2737_v51 = vmax.f32 %v7209_v33, %v2705_v8 }
 0x388   :  { %v2708_v52 = vmul.f32 0.01, %v7212_v36  ;;  %v2738_v15 = vmax.f32 %v7210_v25, %v2706_v32 }
 0x389   :  { %v2739_v13 = vmax.f32 %v7211_v7, %v2707_v53 }
 0x38a   :  { %v2740_v12 = vmax.f32 %v7212_v36, %v2708_v52  ;;  %v2660_v1 = vpop.f32.mrb[68].mxu0 }
 0x38b   :  { %v7213_v38 = vadd.f32 %v2660_v1, %v8653_v40  ;;  %v2662_v24 = vpop.f32.mrb[69].mxu0  ;;  %v2761_v30 = vpack.c.bf16 %v2739_v13, %v2737_v51 }
 0x38c   :  { %v7214_v17 = vadd.f32 %v2662_v24, %v8656_v39  ;;  %v2664_v19 = vpop.f32.mrb[70].mxu0  ;;  %v2762_v55 = vpack.c.bf16 %v2740_v12, %v2738_v15 }
 0x38d   :  { %v2709_v27 = vmul.f32 0.01, %v7213_v38  ;;  %v7215_v21 = vadd.f32 %v2664_v19, %v8653_v40  ;;  %v2666_v10 = vpop.f32.mrb[71].mxu0  ;;  %v7564_v19 = vld [vmem:[#allocation13] sm:$0xff]  }
 0x38e   :  { %v2710_v57 = vmul.f32 0.01, %v7214_v17  ;;  %v7216_v14 = vadd.f32 %v2666_v10, %v8656_v39  ;;  %2968 = vmatprep.mubr.bf16.mxu1 %v2762_v55  ;;  %v8693_v55 = vld [vmem:[%s9185_s6] ss:$0 sm:$0xff] }
 0x38f   :  { %v2711_v41 = vmul.f32 0.01, %v7215_v21  ;;  %2969 = vmatmul.mubr.bf16.gmra.mrb[96].mxu1 %v2761_v30  ;;  %v2741_v28 = vmax.f32 %v7213_v38, %v2709_v27 }
 0x390   :  { %v2712_v48 = vmul.f32 0.01, %v7216_v14  ;;  %v2742_v5 = vmax.f32 %v7214_v17, %v2710_v57  ;;  %v7562_v17 = vld [vmem:[#allocation11 + $0x30] sm:$0xff]  }
 0x391   :  { %v2743_v43 = vmax.f32 %v7215_v21, %v2711_v41  ;;  %7125 = vmatprep.subr.bf16.mxu1 %v7562_v17 }
 0x392   :  { %v2744_v49 = vmax.f32 %v7216_v14, %v2712_v48  ;;  %v2670_v4 = vpop.f32.mrb[72].mxu0  ;;  %7126 = vmatpush3.bf16.msra.mxu1 %v7562_v17 }
 0x393   :  { %v7217_v9 = vadd.f32 %v2670_v4, %v8653_v40  ;;  %v2672_v3 = vpop.f32.mrb[73].mxu0  ;;  %v2763_v42 = vpack.c.bf16 %v2743_v43, %v2741_v28 }
 0x394   :  { %v7218_v34 = vadd.f32 %v2672_v3, %v8656_v39  ;;  %v2674_v35 = vpop.f32.mrb[74].mxu0  ;;  %v2764_v45 = vpack.c.bf16 %v2744_v49, %v2742_v5 }
 0x395   :  { %v2713_v59 = vmul.f32 0.01, %v7217_v9  ;;  %v7219_v46 = vadd.f32 %v2674_v35, %v8653_v40  ;;  %v2676_v60 = vpop.f32.mrb[75].mxu0 }
 0x396   :  { %v2714_v6 = vmul.f32 0.01, %v7218_v34  ;;  %v7220_v2 = vadd.f32 %v2676_v60, %v8656_v39  ;;  %2976 = vmatprep.mubr.bf16.mxu1 %v2764_v45 }
 0x397   :  { %v2715_v23 = vmul.f32 0.01, %v7219_v46  ;;  %2977 = vmatmul.mubr.bf16.gmra.mrb[100].mxu1 %v2763_v42  ;;  %v2745_v29 = vmax.f32 %v7217_v9, %v2713_v59 }
 0x398   :  { %v2716_v62 = vmul.f32 0.01, %v7220_v2  ;;  %v2746_v61 = vmax.f32 %v7218_v34, %v2714_v6 }
 0x399   :  { %v2747_v31 = vmax.f32 %v7219_v46, %v2715_v23 }
 0x39a   :  { %v2748_v33 = vmax.f32 %v7220_v2, %v2716_v62  ;;  %v2680_v11 = vpop.f32.mrb[76].mxu0 }
 0x39b   :  { %v7221_v16 = vadd.f32 %v2680_v11, %v8653_v40  ;;  %v2682_v25 = vpop.f32.mrb[77].mxu0  ;;  %v2765_v50 = vpack.c.bf16 %v2747_v31, %v2745_v29 }
 0x39c   :  { %v7222_v22 = vadd.f32 %v2682_v25, %v8656_v39  ;;  %v2684_v8 = vpop.f32.mrb[78].mxu0  ;;  %v2766_v7 = vpack.c.bf16 %v2748_v33, %v2746_v61 }
 0x39d   :  { %v2717_v20 = vmul.f32 0.01, %v7221_v16  ;;  %v7223_v32 = vadd.f32 %v2684_v8, %v8653_v40  ;;  %v2686_v36 = vpop.f32.mrb[79].mxu0  ;;  %v7563_v40 = vld [vmem:[#allocation11 + $0x38] sm:$0xff]  }
 0x39e   :  { %v2718_v53 = vmul.f32 0.01, %v7222_v22  ;;  %v7224_v52 = vadd.f32 %v2686_v36, %v8656_v39  ;;  %2984 = vmatprep.mubr.bf16.mxu1 %v2766_v7  ;;  %7127 = vmatprep.subr.bf16.mxu1 %v7563_v40 }
 0x39f   :  { %v2719_v51 = vmul.f32 0.01, %v7223_v32  ;;  %2985 = vmatmul.mubr.bf16.gmra.mrb[104].mxu1 %v2765_v50  ;;  %v2749_v15 = vmax.f32 %v7221_v16, %v2717_v20  ;;  %v7565_v50 = vld [vmem:[#allocation13 + $0x8] sm:$0xff]  }
 0x3a0   :  { %v2720_v13 = vmul.f32 0.01, %v7224_v52  ;;  %v2750_v1 = vmax.f32 %v7222_v22, %v2718_v53  ;;  %7128 = vmatpush3.bf16.msra.mxu1 %v7563_v40 }
 0x3a1   :  { %v2751_v12 = vmax.f32 %v7223_v32, %v2719_v51  ;;  %7145 = vmatprep.subr.bf16.mxu1 %v7564_v19  ;;  %v7566_v32 = vld [vmem:[#allocation13 + $0x10] sm:$0xff]  }
 0x3a2   :  { %v2752_v38 = vmax.f32 %v7224_v52, %v2720_v13 }
 0x3a3   :  { %v2767_v24 = vpack.c.bf16 %v2751_v12, %v2749_v15 }
 0x3a4   :  { %v2768_v30 = vpack.c.bf16 %v2752_v38, %v2750_v1 }
 0x3a6   :  { %2992 = vmatprep.mubr.bf16.mxu1 %v2768_v30 }
 0x3a7   :  { %2993 = vmatmul.mubr.bf16.gmra.mrb[108].mxu1 %v2767_v24  ;;  %v7567_v24 = vld [vmem:[#allocation13 + $0x18] sm:$0xff]  }
 0x442   :  { %v6777_v39 = vpop.f32.mrb[80].mxu1 }
 0x443   :  { %v6778_v27 = vpop.f32.mrb[81].mxu1 }
 0x444   :  { %v6779_v21 = vadd.f32 %v6778_v27, %v6777_v39  ;;  %v6780_v10 = vpop.f32.mrb[82].mxu1  ;;  %v7568_v39 = vld [vmem:[#allocation13 + $0x20] sm:$0xff]  }
 0x445   :  { %v6781_v57 = vpop.f32.mrb[83].mxu1 }
 0x446   :  { %v2939_v14 = vadd.f32 %v6779_v21, %v8693_v55  ;;  %v6782_v41 = vadd.f32 %v6781_v57, %v6780_v10 }
 0x448   :  { %v3001_v48 = vmul.f32 0.01, %v2939_v14  ;;  %v2942_v28 = vadd.f32 %v6782_v41, %v8693_v55 }
 0x44a   :  { %v3002_v43 = vmul.f32 0.01, %v2942_v28  ;;  %v6783_v5 = vpop.f32.mrb[84].mxu1  ;;  %v3017_v4 = vmax.f32 %v2939_v14, %v3001_v48 }
 0x44b   :  { %v6784_v49 = vpop.f32.mrb[85].mxu1 }
 0x44c   :  { %v3018_v9 = vmax.f32 %v2942_v28, %v3002_v43  ;;  %v6785_v3 = vadd.f32 %v6784_v49, %v6783_v5  ;;  %v6786_v42 = vpop.f32.mrb[86].mxu1 }
 0x44d   :  { %v6787_v34 = vpop.f32.mrb[87].mxu1 }
 0x44e   :  { %v2947_v35 = vadd.f32 %v6785_v3, %v8693_v55  ;;  %v6788_v45 = vadd.f32 %v6787_v34, %v6786_v42  ;;  %v3033_v59 = vpack.c.bf16 %v3018_v9, %v3017_v4 }
 0x450   :  { %v3003_v46 = vmul.f32 0.01, %v2947_v35  ;;  %v2950_v60 = vadd.f32 %v6788_v45, %v8693_v55  ;;  %7129 = vmatprep.mubr.bf16.mxu1 %v3033_v59 }
 0x452   :  { %v3004_v6 = vmul.f32 0.01, %v2950_v60  ;;  %v6789_v2 = vpop.f32.mrb[88].mxu1  ;;  %v3019_v62 = vmax.f32 %v2947_v35, %v3003_v46 }
 0x453   :  { %v6790_v23 = vpop.f32.mrb[89].mxu1 }
 0x454   :  { %v3020_v29 = vmax.f32 %v2950_v60, %v3004_v6  ;;  %v6791_v31 = vadd.f32 %v6790_v23, %v6789_v2  ;;  %v6792_v61 = vpop.f32.mrb[90].mxu1 }
 0x455   :  { %v6793_v33 = vpop.f32.mrb[91].mxu1 }
 0x456   :  { %v3034_v11 = vpack.c.bf16 %v3020_v29, %v3019_v62  ;;  %v2955_v16 = vadd.f32 %v6791_v31, %v8693_v55  ;;  %v6794_v25 = vadd.f32 %v6793_v33, %v6792_v61 }
 0x458   :  { %v3005_v22 = vmul.f32 0.01, %v2955_v16  ;;  %v2958_v8 = vadd.f32 %v6794_v25, %v8693_v55  ;;  %7130 = vmatmul.mubr.bf16.vlgmr.msra.gmra.mrb[112].mxu1 %v3034_v11 }
 0x459   :  { %7146 = vmatpush3.bf16.msra.mxu1 %v7564_v19 }
 0x45a   :  { %v3006_v7 = vmul.f32 0.01, %v2958_v8  ;;  %v6795_v20 = vpop.f32.mrb[92].mxu1  ;;  %7147 = vmatprep.subr.bf16.mxu1 %v7565_v50  ;;  %v3021_v53 = vmax.f32 %v2955_v16, %v3005_v22 }
 0x45b   :  { %v6796_v36 = vpop.f32.mrb[93].mxu1 }
 0x45c   :  { %v3022_v52 = vmax.f32 %v2958_v8, %v3006_v7  ;;  %v6797_v51 = vadd.f32 %v6796_v36, %v6795_v20  ;;  %v6798_v13 = vpop.f32.mrb[94].mxu1 }
 0x45d   :  { %v6799_v15 = vpop.f32.mrb[95].mxu1  ;;  %7148 = vmatpush3.bf16.msra.mxu1 %v7565_v50 }
 0x45e   :  { %v2963_v12 = vadd.f32 %v6797_v51, %v8693_v55  ;;  %v6800_v1 = vadd.f32 %v6799_v15, %v6798_v13  ;;  %v3035_v38 = vpack.c.bf16 %v3022_v52, %v3021_v53  ;;  %7149 = vmatprep.subr.bf16.mxu1 %v7566_v32 }
 0x460   :  { %v3007_v30 = vmul.f32 0.01, %v2963_v12  ;;  %v2966_v17 = vadd.f32 %v6800_v1, %v8693_v55  ;;  %7133 = vmatprep.mubr.bf16.mxu1 %v3035_v38 }
 0x461   :  { %7150 = vmatpush3.bf16.msra.mxu1 %v7566_v32 }
 0x462   :  { %v3008_v40 = vmul.f32 0.01, %v2966_v17  ;;  %v6801_v19 = vpop.f32.mrb[96].mxu1  ;;  %7151 = vmatprep.subr.bf16.mxu1 %v7567_v24  ;;  %v3023_v21 = vmax.f32 %v2963_v12, %v3007_v30 }
 0x463   :  { %v6802_v27 = vpop.f32.mrb[97].mxu1 }
 0x464   :  { %v3024_v10 = vmax.f32 %v2966_v17, %v3008_v40  ;;  %v6803_v57 = vadd.f32 %v6802_v27, %v6801_v19  ;;  %v6804_v14 = vpop.f32.mrb[98].mxu1 }
 0x465   :  { %v6805_v41 = vpop.f32.mrb[99].mxu1  ;;  %7152 = vmatpush3.bf16.msra.mxu1 %v7567_v24 }
 0x466   :  { %v2971_v48 = vadd.f32 %v6803_v57, %v8693_v55  ;;  %v6806_v28 = vadd.f32 %v6805_v41, %v6804_v14  ;;  %v3036_v43 = vpack.c.bf16 %v3024_v10, %v3023_v21  ;;  %7153 = vmatprep.subr.bf16.mxu1 %v7568_v39  ;;  %v7569_v21 = vld [vmem:[#allocation13 + $0x28] sm:$0xff]   ;;  %v7570_v10 = vld [vmem:[#allocation13 + $0x30] sm:$0xff]   ;;  %v7571_v57 = vld [vmem:[#allocation13 + $0x38] sm:$0xff]  }
 0x467   :  { %v7574_v14 = vld [vmem:[#allocation14 + $0x4] ss:$8 sps:$4 sm:$0xff]  }
 0x468   :  { %v3009_v5 = vmul.f32 0.01, %v2971_v48  ;;  %v2974_v49 = vadd.f32 %v6806_v28, %v8693_v55  ;;  %7134 = vmatmul.mubr.bf16.gmra.mrb[116].mxu1 %v3036_v43 }
 0x469   :  { %7154 = vmatpush3.bf16.msra.mxu1 %v7568_v39 }
 0x46a   :  { %v3010_v4 = vmul.f32 0.01, %v2974_v49  ;;  %v6807_v9 = vpop.f32.mrb[100].mxu1  ;;  %v3025_v42 = vmax.f32 %v2971_v48, %v3009_v5  ;;  %7155 = vmatprep.subr.bf16.mxu1 %v7569_v21 }
 0x46b   :  { %v6808_v3 = vpop.f32.mrb[101].mxu1 }
 0x46c   :  { %v3026_v34 = vmax.f32 %v2974_v49, %v3010_v4  ;;  %v6809_v35 = vadd.f32 %v6808_v3, %v6807_v9  ;;  %v6810_v45 = vpop.f32.mrb[102].mxu1 }
 0x46d   :  { %v6811_v59 = vpop.f32.mrb[103].mxu1  ;;  %7156 = vmatpush3.bf16.msra.mxu1 %v7569_v21 }
 0x46e   :  { %v2979_v46 = vadd.f32 %v6809_v35, %v8693_v55  ;;  %v6812_v60 = vadd.f32 %v6811_v59, %v6810_v45  ;;  %v3037_v6 = vpack.c.bf16 %v3026_v34, %v3025_v42  ;;  %7157 = vmatprep.subr.bf16.mxu1 %v7570_v10 }
 0x470   :  { %v3011_v2 = vmul.f32 0.01, %v2979_v46  ;;  %v2982_v23 = vadd.f32 %v6812_v60, %v8693_v55  ;;  %7137 = vmatprep.mubr.bf16.mxu1 %v3037_v6 }
 0x471   :  { %7158 = vmatpush3.bf16.msra.mxu1 %v7570_v10 }
 0x472   :  { %v3012_v62 = vmul.f32 0.01, %v2982_v23  ;;  %v6813_v29 = vpop.f32.mrb[104].mxu1  ;;  %v3027_v61 = vmax.f32 %v2979_v46, %v3011_v2  ;;  %7159 = vmatprep.subr.bf16.mxu1 %v7571_v57 }
 0x473   :  { %v6814_v31 = vpop.f32.mrb[105].mxu1 }
 0x474   :  { %v3028_v33 = vmax.f32 %v2982_v23, %v3012_v62  ;;  %v6815_v11 = vadd.f32 %v6814_v31, %v6813_v29  ;;  %v6816_v16 = vpop.f32.mrb[106].mxu1  ;;  %v7572_v23 = vld [vmem:[#allocation14] ss:$8 sps:$4 sm:$0xff]   ;;  %v7577_v62 = vld [vmem:[#allocation14 + $0x14] ss:$8 sps:$4 sm:$0xff]  }
 0x475   :  { %v6817_v25 = vpop.f32.mrb[107].mxu1  ;;  %7160 = vmatpush3.bf16.msra.mxu1 %v7571_v57  ;;  %v7575_v29 = vld [vmem:[#allocation14 + $0x10] ss:$8 sps:$4 sm:$0xff]   ;;  %v7580_v31 = vld [vmem:[#allocation14 + $0x24] ss:$8 sps:$4 sm:$0xff]  }
 0x476   :  { %v2987_v50 = vadd.f32 %v6815_v11, %v8693_v55  ;;  %v6818_v22 = vadd.f32 %v6817_v25, %v6816_v16  ;;  %v3038_v8 = vpack.c.bf16 %v3028_v33, %v3027_v61  ;;  %3581 = vmatprep.subr.bf16.mxu1 %v7574_v14 }
 0x478   :  { %v3013_v7 = vmul.f32 0.01, %v2987_v50  ;;  %v2990_v20 = vadd.f32 %v6818_v22, %v8693_v55  ;;  %7138 = vmatmul.mubr.bf16.gmra.mrb[120].mxu1 %v3038_v8 }
 0x47a   :  { %v3014_v32 = vmul.f32 0.01, %v2990_v20  ;;  %v6819_v36 = vpop.f32.mrb[108].mxu1  ;;  %v3029_v52 = vmax.f32 %v2987_v50, %v3013_v7  ;;  %v7578_v50 = vld [vmem:[#allocation14 + $0x20] ss:$8 sps:$4 sm:$0xff]  }
 0x47b   :  { %v6820_v53 = vpop.f32.mrb[109].mxu1 }
 0x47c   :  { %v3030_v51 = vmax.f32 %v2990_v20, %v3014_v32  ;;  %v6821_v13 = vadd.f32 %v6820_v53, %v6819_v36  ;;  %v6822_v15 = vpop.f32.mrb[110].mxu1  ;;  %v7583_v20 = vld [vmem:[#allocation14 + $0x34] ss:$8 sps:$4 sm:$0xff]  }
 0x47d   :  { %v6823_v12 = vpop.f32.mrb[111].mxu1 }
 0x47e   :  { %v2995_v1 = vadd.f32 %v6821_v13, %v8693_v55  ;;  %v6824_v38 = vadd.f32 %v6823_v12, %v6822_v15  ;;  %v3039_v24 = vpack.c.bf16 %v3030_v51, %v3029_v52  ;;  %v7581_v15 = vld [vmem:[#allocation14 + $0x30] ss:$8 sps:$4 sm:$0xff]  }
 0x480   :  { %v3015_v30 = vmul.f32 0.01, %v2995_v1  ;;  %v2998_v17 = vadd.f32 %v6824_v38, %v8693_v55  ;;  %7141 = vmatprep.mubr.bf16.mxu1 %v3039_v24  ;;  %v8714_v55 = vld [vmem:[%s9187_s8] ss:$0 sm:$0xff] }
 0x482   :  { %v3016_v40 = vmul.f32 0.01, %v2998_v17  ;;  %v3031_v19 = vmax.f32 %v2995_v1, %v3015_v30  ;;  %v7586_v1 = vld [vmem:[#allocation14 + $0x44] ss:$8 sps:$4 sm:$0xff]  }
 0x484   :  { %v3032_v39 = vmax.f32 %v2998_v17, %v3016_v40  ;;  %v7584_v17 = vld [vmem:[#allocation14 + $0x40] ss:$8 sps:$4 sm:$0xff]   ;;  %v7589_v40 = vld [vmem:[#allocation14 + $0x54] ss:$8 sps:$4 sm:$0xff]  }
 0x486   :  { %v3040_v27 = vpack.c.bf16 %v3032_v39, %v3031_v19  ;;  %v7587_v19 = vld [vmem:[#allocation14 + $0x50] ss:$8 sps:$4 sm:$0xff]  }
 0x488   :  { %7142 = vmatmul.mubr.bf16.gmra.mrb[124].mxu1 %v3040_v27 }
 0x52b   :  { %v7131_v41 = vpop.f32.mrb[112].mxu1 }
 0x52c   :  { %v3155_v48 = vadd.f32 %v7131_v41, %v8714_v55  ;;  %v3146_v28 = vpop.f32.mrb[113].mxu1 }
 0x52d   :  { %v3147_v43 = vadd.f32 %v8714_v55, %v3146_v28  ;;  %v7132_v5 = vpop.f32.mrb[114].mxu1 }
 0x52e   :  { %v3211_v49 = vmul.f32 0.01, %v3155_v48  ;;  %v3158_v4 = vadd.f32 %v7132_v5, %v8714_v55  ;;  %v3149_v9 = vpop.f32.mrb[115].mxu1 }
 0x52f   :  { %v3209_v3 = vmul.f32 0.01, %v3147_v43  ;;  %v3150_v42 = vadd.f32 %v8714_v55, %v3149_v9 }
 0x530   :  { %v3227_v34 = vmax.f32 %v3155_v48, %v3211_v49  ;;  %v3212_v35 = vmul.f32 0.01, %v3158_v4 }
 0x531   :  { %v3225_v45 = vmax.f32 %v3147_v43, %v3209_v3  ;;  %v3210_v59 = vmul.f32 0.01, %v3150_v42 }
 0x532   :  { %3243 = vst [vmem:[#allocation19 + $0x10] sm:$0xff] %v3227_v34  ;;  %v3228_v46 = vmax.f32 %v3158_v4, %v3212_v35 }
 0x533   :  { %3241 = vst [vmem:[#allocation19] sm:$0xff] %v3225_v45  ;;  %v3226_v60 = vmax.f32 %v3150_v42, %v3210_v59 }
 0x534   :  { %3244 = vst [vmem:[#allocation19 + $0x18] sm:$0xff] %v3228_v46  ;;  %v3258_v6 = vpack.c.bf16 %v3228_v46, %v3227_v34 }
 0x535   :  { %3242 = vst [vmem:[#allocation19 + $0x8] sm:$0xff] %v3226_v60  ;;  %v3257_v2 = vpack.c.bf16 %v3226_v60, %v3225_v45 }
 0x537   :  { %7161 = vmatprep.mubr.bf16.mxu1 %v3257_v2 }
 0x538   :  { %7162 = vmatmul.mubr.bf16.vlgmr.msra.gmra.mrb[128].mxu1 %v3258_v6 }
 0x539   :  { %3582 = vmatpush1.bf16.msra.mxu1 %v7572_v23 }
 0x53a   :  { %3583 = vmatprep.subr.bf16.mxu1 %v7577_v62 }
 0x53b   :  { %v7135_v61 = vpop.f32.mrb[116].mxu1 }
 0x53c   :  { %v3171_v33 = vadd.f32 %v7135_v61, %v8714_v55  ;;  %v3162_v11 = vpop.f32.mrb[117].mxu1 }
 0x53d   :  { %v3163_v16 = vadd.f32 %v8714_v55, %v3162_v11  ;;  %v7136_v25 = vpop.f32.mrb[118].mxu1  ;;  %3584 = vmatpush1.bf16.msra.mxu1 %v7575_v29 }
 0x53e   :  { %v3215_v22 = vmul.f32 0.01, %v3171_v33  ;;  %v3174_v8 = vadd.f32 %v7136_v25, %v8714_v55  ;;  %v3165_v7 = vpop.f32.mrb[119].mxu1  ;;  %3585 = vmatprep.subr.bf16.mxu1 %v7580_v31 }
 0x53f   :  { %v3213_v32 = vmul.f32 0.01, %v3163_v16  ;;  %v3166_v36 = vadd.f32 %v8714_v55, %v3165_v7  ;;  %v7592_v7 = vld [vmem:[#allocation14 + $0x64] ss:$8 sps:$4 sm:$0xff]  }
 0x540   :  { %v3231_v53 = vmax.f32 %v3171_v33, %v3215_v22  ;;  %v3216_v52 = vmul.f32 0.01, %v3174_v8 }
 0x541   :  { %v3229_v51 = vmax.f32 %v3163_v16, %v3213_v32  ;;  %v3214_v13 = vmul.f32 0.01, %v3166_v36  ;;  %3586 = vmatpush1.bf16.msra.mxu1 %v7578_v50  ;;  %v7593_v32 = vld [vmem:[#allocation14 + $0x70] ss:$8 sps:$4 sm:$0xff]  }
 0x542   :  { %3247 = vst [vmem:[#allocation19 + $0x30] sm:$0xff] %v3231_v53  ;;  %v3232_v12 = vmax.f32 %v3174_v8, %v3216_v52  ;;  %3587 = vmatprep.subr.bf16.mxu1 %v7583_v20  ;;  %v7590_v20 = vld [vmem:[#allocation14 + $0x60] ss:$8 sps:$4 sm:$0xff]  }
 0x543   :  { %3245 = vst [vmem:[#allocation19 + $0x20] sm:$0xff] %v3229_v51  ;;  %v3230_v38 = vmax.f32 %v3166_v36, %v3214_v13  ;;  %v8733_v36 = vld [vmem:[#allocation16] sm:$0xff]  ;;  %v3775_v52 = vld [vmem:[#allocation16 + $0x8] sm:$0xff] }
 0x544   :  { %3248 = vst [vmem:[#allocation19 + $0x38] sm:$0xff] %v3232_v12  ;;  %v3260_v24 = vpack.c.bf16 %v3232_v12, %v3231_v53  ;;  %v8735_v53 = vld [vmem:[#allocation16 + $0x20] sm:$0xff] }
 0x545   :  { %3246 = vst [vmem:[#allocation19 + $0x28] sm:$0xff] %v3230_v38  ;;  %v3259_v30 = vpack.c.bf16 %v3230_v38, %v3229_v51  ;;  %3588 = vmatpush1.bf16.msra.mxu1 %v7581_v15  ;;  %v6568_v51 = vcombine.low %v8733_v36, %v8735_v53  ;;  %v6569_v13 = vcombine.high %v8733_v36, %v8735_v53  ;;  %v3779_v15 = vld [vmem:[#allocation16 + $0x28] sm:$0xff] }
 0x546   :  { %3589 = vmatprep.subr.bf16.mxu1 %v7586_v1  ;;  %v6570_v12 = vcombine.low %v3775_v52, %v3779_v15  ;;  %v6571_v1 = vcombine.high %v3775_v52, %v3779_v15  ;;  %v3783_v38 = vld [vmem:[#allocation16 + $0x48] sm:$0xff]  ;;  %v8744_v15 = vld [vmem:[%s9189_s10] ss:$0 sm:$0xff] }
 0x547   :  { %7165 = vmatprep.mubr.bf16.mxu1 %v3259_v30 }
 0x548   :  { %7166 = vmatmul.mubr.bf16.gmra.mrb[132].mxu1 %v3260_v24  ;;  %v3787_v24 = vld [vmem:[#allocation16 + $0x68] sm:$0xff]  ;;  %4697 = vmatprep.subr.bf16.mxu0 %v6571_v1 }
 0x549   :  { %3590 = vmatpush1.bf16.msra.mxu1 %v7584_v17  ;;  %v6579_v30 = vcombine.high %v3783_v38, %v3787_v24  ;;  %v3791_v17 = vld [vmem:[#allocation16 + $0x88] sm:$0xff]  ;;  %4698 = vmatpush1.bf16.msra.mxu0 %v6570_v12 }
 0x54a   :  { %3591 = vmatprep.subr.bf16.mxu1 %v7589_v40  ;;  %v3795_v40 = vld [vmem:[#allocation16 + $0xa8] sm:$0xff] }
 0x54b   :  { %v7139_v39 = vpop.f32.mrb[120].mxu1  ;;  %4699 = vmatprep.subr.bf16.mxu0 %v6579_v30 }
 0x54c   :  { %v3187_v27 = vadd.f32 %v7139_v39, %v8714_v55  ;;  %v3178_v21 = vpop.f32.mrb[121].mxu1  ;;  %v6587_v39 = vcombine.high %v3791_v17, %v3795_v40 }
 0x54d   :  { %v3179_v10 = vadd.f32 %v8714_v55, %v3178_v21  ;;  %v7140_v57 = vpop.f32.mrb[122].mxu1  ;;  %3592 = vmatpush1.bf16.msra.mxu1 %v7587_v19  ;;  %v6578_v19 = vcombine.low %v3783_v38, %v3787_v24  ;;  %v3803_v21 = vld [vmem:[#allocation16 + $0xe8] sm:$0xff] }
 0x54e   :  { %v3219_v14 = vmul.f32 0.01, %v3187_v27  ;;  %v3190_v41 = vadd.f32 %v7140_v57, %v8714_v55  ;;  %v3181_v48 = vpop.f32.mrb[123].mxu1  ;;  %3593 = vmatprep.subr.bf16.mxu1 %v7592_v7 }
 0x54f   :  { %v3217_v28 = vmul.f32 0.01, %v3179_v10  ;;  %v3182_v43 = vadd.f32 %v8714_v55, %v3181_v48  ;;  %4700 = vmatpush1.bf16.msra.mxu0 %v6578_v19 }
 0x550   :  { %v3235_v5 = vmax.f32 %v3187_v27, %v3219_v14  ;;  %v3220_v49 = vmul.f32 0.01, %v3190_v41  ;;  %v3799_v27 = vld [vmem:[#allocation16 + $0xc8] sm:$0xff]  ;;  %4701 = vmatprep.subr.bf16.mxu0 %v6587_v39 }
 0x551   :  { %v3233_v4 = vmax.f32 %v3179_v10, %v3217_v28  ;;  %v3218_v9 = vmul.f32 0.01, %v3182_v43  ;;  %3594 = vmatpush1.bf16.msra.mxu1 %v7590_v20  ;;  %v6586_v10 = vcombine.low %v3791_v17, %v3795_v40  ;;  %v6595_v57 = vcombine.high %v3799_v27, %v3803_v21  ;;  %v3807_v14 = vld [vmem:[#allocation16 + $0x108] sm:$0xff] }
 0x552   :  { %3251 = vst [vmem:[#allocation19 + $0x50] sm:$0xff] %v3235_v5  ;;  %v3236_v3 = vmax.f32 %v3190_v41, %v3220_v49  ;;  %v3811_v41 = vld [vmem:[#allocation16 + $0x128] sm:$0xff]  ;;  %v6594_v48 = vcombine.low %v3799_v27, %v3803_v21 }
 0x553   :  { %3249 = vst [vmem:[#allocation19 + $0x40] sm:$0xff] %v3233_v4  ;;  %v3234_v42 = vmax.f32 %v3182_v43, %v3218_v9  ;;  %4702 = vmatpush1.bf16.msra.mxu0 %v6586_v10  ;;  %v6603_v28 = vcombine.high %v3807_v14, %v3811_v41  ;;  %v3815_v43 = vld [vmem:[#allocation16 + $0x148] sm:$0xff]  ;;  %v6602_v49 = vcombine.low %v3807_v14, %v3811_v41  ;;  %v3782_v41 = vld [vmem:[#allocation16 + $0x40] sm:$0xff] }
 0x554   :  { %3252 = vst [vmem:[#allocation19 + $0x58] sm:$0xff] %v3236_v3  ;;  %v3262_v34 = vpack.c.bf16 %v3236_v3, %v3235_v5  ;;  %4703 = vmatprep.subr.bf16.mxu0 %v6595_v57  ;;  %v3819_v5 = vld [vmem:[#allocation16 + $0x168] sm:$0xff] }
 0x555   :  { %3250 = vst [vmem:[#allocation19 + $0x48] sm:$0xff] %v3234_v42  ;;  %v3261_v35 = vpack.c.bf16 %v3234_v42, %v3233_v4  ;;  %v6611_v4 = vcombine.high %v3815_v43, %v3819_v5  ;;  %v3823_v9 = vld [vmem:[#allocation16 + $0x188] sm:$0xff]  ;;  %v6610_v42 = vcombine.low %v3815_v43, %v3819_v5 }
 0x556   :  { %v3827_v3 = vld [vmem:[#allocation16 + $0x1a8] sm:$0xff] }
 0x557   :  { %7169 = vmatprep.mubr.bf16.mxu1 %v3261_v35  ;;  %4704 = vmatpush1.bf16.msra.mxu0 %v6594_v48  ;;  %v3831_v35 = vld [vmem:[#allocation16 + $0x1c8] sm:$0xff]  ;;  %v3786_v48 = vld [vmem:[#allocation16 + $0x60] sm:$0xff] }
 0x558   :  { %7170 = vmatmul.mubr.bf16.gmra.mrb[136].mxu1 %v3262_v34  ;;  %4705 = vmatprep.subr.bf16.mxu0 %v6603_v28  ;;  %v6619_v34 = vcombine.high %v3823_v9, %v3827_v3  ;;  %v3871_v20 = vld [vmem:[#allocation16 + $0x308] sm:$0xff] }
 0x55b   :  { %v7143_v45 = vpop.f32.mrb[124].mxu1  ;;  %4706 = vmatpush1.bf16.msra.mxu0 %v6602_v49 }
 0x55c   :  { %v3203_v59 = vadd.f32 %v7143_v45, %v8714_v55  ;;  %v3194_v46 = vpop.f32.mrb[125].mxu1  ;;  %4707 = vmatprep.subr.bf16.mxu0 %v6611_v4  ;;  %v3835_v45 = vld [vmem:[#allocation16 + $0x1e8] sm:$0xff]  ;;  %v6577_v4 = vcombine.high %v3782_v41, %v3786_v48 }
 0x55d   :  { %v3195_v60 = vadd.f32 %v8714_v55, %v3194_v46  ;;  %v7144_v6 = vpop.f32.mrb[126].mxu1  ;;  %v6627_v46 = vcombine.high %v3831_v35, %v3835_v45 }
 0x55e   :  { %v3223_v2 = vmul.f32 0.01, %v3203_v59  ;;  %v3206_v23 = vadd.f32 %v7144_v6, %v8714_v55  ;;  %v3197_v62 = vpop.f32.mrb[127].mxu1  ;;  %v3843_v6 = vld [vmem:[#allocation16 + $0x228] sm:$0xff] }
 0x55f   :  { %v3221_v29 = vmul.f32 0.01, %v3195_v60  ;;  %v3198_v31 = vadd.f32 %v8714_v55, %v3197_v62  ;;  %v7595_v55 = vld [vmem:[#allocation14 + $0x74] ss:$8 sps:$4 sm:$0xff]   ;;  %4708 = vmatpush1.bf16.msra.mxu0 %v6610_v42  ;;  %v3847_v62 = vld [vmem:[#allocation16 + $0x248] sm:$0xff]  ;;  %v6576_v42 = vcombine.low %v3782_v41, %v3786_v48 }
 0x560   :  { %v3239_v61 = vmax.f32 %v3203_v59, %v3223_v2  ;;  %v3224_v33 = vmul.f32 0.01, %v3206_v23  ;;  %3595 = vmatprep.subr.bf16.mxu1 %v7595_v55  ;;  %v6618_v59 = vcombine.low %v3823_v9, %v3827_v3  ;;  %4709 = vmatprep.subr.bf16.mxu0 %v6619_v34  ;;  %v6626_v2 = vcombine.low %v3831_v35, %v3835_v45  ;;  %v3875_v55 = vld [vmem:[#allocation16 + $0x328] sm:$0xff]  ;;  %v3790_v9 = vld [vmem:[#allocation16 + $0x80] sm:$0xff] }
 0x561   :  { %v3237_v11 = vmax.f32 %v3195_v60, %v3221_v29  ;;  %v3222_v16 = vmul.f32 0.01, %v3198_v31  ;;  %3596 = vmatpush1.bf16.msra.mxu1 %v7593_v32  ;;  %v3839_v60 = vld [vmem:[#allocation16 + $0x208] sm:$0xff]  ;;  %v6667_v52 = vcombine.high %v3871_v20, %v3875_v55  ;;  %v3794_v3 = vld [vmem:[#allocation16 + $0xa0] sm:$0xff] }
 0x562   :  { %3255 = vst [vmem:[#allocation19 + $0x70] sm:$0xff] %v3239_v61  ;;  %v3240_v25 = vmax.f32 %v3206_v23, %v3224_v33  ;;  %4584 = vmatprep.subr.bf16.mxu1 %v6569_v13  ;;  %v6635_v23 = vcombine.high %v3839_v60, %v3843_v6  ;;  %v3851_v29 = vld [vmem:[#allocation16 + $0x268] sm:$0xff]  ;;  %v6666_v13 = vcombine.low %v3871_v20, %v3875_v55  ;;  %v3798_v35 = vld [vmem:[#allocation16 + $0xc0] sm:$0xff] }
 0x563   :  { %3253 = vst [vmem:[#allocation19 + $0x60] sm:$0xff] %v3237_v11  ;;  %v3238_v50 = vmax.f32 %v3198_v31, %v3222_v16  ;;  %4710 = vmatpush1.bf16.msra.mxu0 %v6618_v59  ;;  %v6634_v31 = vcombine.low %v3839_v60, %v3843_v6  ;;  %v3855_v33 = vld [vmem:[#allocation16 + $0x288] sm:$0xff]  ;;  %v6642_v16 = vcombine.low %v3847_v62, %v3851_v29  ;;  %v3802_v45 = vld [vmem:[#allocation16 + $0xe0] sm:$0xff] }
 0x564   :  { %3256 = vst [vmem:[#allocation19 + $0x78] sm:$0xff] %v3240_v25  ;;  %v3264_v22 = vpack.c.bf16 %v3240_v25, %v3239_v61  ;;  %4711 = vmatprep.subr.bf16.mxu0 %v6627_v46  ;;  %v6643_v61 = vcombine.high %v3847_v62, %v3851_v29  ;;  %v6585_v34 = vcombine.high %v3790_v9, %v3794_v3  ;;  %v3818_v20 = vld [vmem:[#allocation16 + $0x160] sm:$0xff] }
 0x565   :  { %3254 = vst [vmem:[#allocation19 + $0x68] sm:$0xff] %v3238_v50  ;;  %v3263_v8 = vpack.c.bf16 %v3238_v50, %v3237_v11  ;;  %v3859_v11 = vld [vmem:[#allocation16 + $0x2a8] sm:$0xff]  ;;  %v6584_v6 = vcombine.low %v3790_v9, %v3794_v3  ;;  %v6593_v62 = vcombine.high %v3798_v35, %v3802_v45 }
 0x566   :  { %v6651_v25 = vcombine.high %v3855_v33, %v3859_v11  ;;  %v3863_v50 = vld [vmem:[#allocation16 + $0x2c8] sm:$0xff] }
 0x567   :  { %7173 = vmatprep.mubr.bf16.mxu1 %v3263_v8  ;;  %4712 = vmatpush1.bf16.msra.mxu0 %v6626_v2  ;;  %v6650_v8 = vcombine.low %v3855_v33, %v3859_v11 }
 0x568   :  { %7174 = vmatmul.mubr.bf16.gmra.mrb[140].mxu1 %v3264_v22  ;;  %4713 = vmatprep.subr.bf16.mxu0 %v6635_v23  ;;  %v3867_v22 = vld [vmem:[#allocation16 + $0x2e8] sm:$0xff] }
 0x569   :  { %3613 = vmatprep.mubr.bf16.mxu1 %v7962_v0  ;;  %v6659_v7 = vcombine.high %v3863_v50, %v3867_v22  ;;  %v6658_v32 = vcombine.low %v3863_v50, %v3867_v22 }
 0x56b   :  { %4714 = vmatpush1.bf16.msra.mxu0 %v6634_v31  ;;  %v3810_v31 = vld [vmem:[#allocation16 + $0x120] sm:$0xff] }
 0x56c   :  { %4715 = vmatprep.subr.bf16.mxu0 %v6643_v61 }
 0x56f   :  { %4716 = vmatpush1.bf16.msra.mxu0 %v6642_v16  ;;  %v6592_v16 = vcombine.low %v3798_v35, %v3802_v45 }
 0x570   :  { %4717 = vmatprep.subr.bf16.mxu0 %v6651_v25 }
 0x573   :  { %4718 = vmatpush1.bf16.msra.mxu0 %v6650_v8 }
 0x574   :  { %4719 = vmatprep.subr.bf16.mxu0 %v6659_v7  ;;  %v3814_v7 = vld [vmem:[#allocation16 + $0x140] sm:$0xff] }
 0x577   :  { %4720 = vmatpush1.bf16.msra.mxu0 %v6658_v32 }
 0x578   :  { %4721 = vmatprep.subr.bf16.mxu0 %v6667_v52 }
 0x57b   :  { %4722 = vmatpush1.bf16.msra.mxu0 %v6666_v13 }
 0x60b   :  { %v7163_v12 = vpop.f32.mrb[128].mxu1 }
 0x60c   :  { %v3379_v1 = vadd.f32 %v7163_v12, %v8744_v15  ;;  %v3370_v38 = vpop.f32.mrb[129].mxu1 }
 0x60d   :  { %v3371_v24 = vadd.f32 %v8744_v15, %v3370_v38  ;;  %v7164_v30 = vpop.f32.mrb[130].mxu1  ;;  %v3822_v38 = vld [vmem:[#allocation16 + $0x180] sm:$0xff] }
 0x60e   :  { %v3435_v17 = vmul.f32 0.01, %v3379_v1  ;;  %v3382_v40 = vadd.f32 %v7164_v30, %v8744_v15  ;;  %v3373_v19 = vpop.f32.mrb[131].mxu1  ;;  %v6608_v30 = vcombine.low %v3814_v7, %v3818_v20 }
 0x60f   :  { %v3433_v39 = vmul.f32 0.01, %v3371_v24  ;;  %v3374_v27 = vadd.f32 %v8744_v15, %v3373_v19  ;;  %v3834_v19 = vld [vmem:[#allocation16 + $0x1e0] sm:$0xff] }
 0x610   :  { %v3436_v21 = vmul.f32 0.01, %v3382_v40  ;;  %v3451_v57 = vmax.f32 %v3379_v1, %v3435_v17  ;;  %v6609_v1 = vcombine.high %v3814_v7, %v3818_v20 }
 0x611   :  { %v3434_v10 = vmul.f32 0.01, %v3374_v27  ;;  %v3449_v28 = vmax.f32 %v3371_v24, %v3433_v39  ;;  %v3826_v24 = vld [vmem:[#allocation16 + $0x1a0] sm:$0xff] }
 0x612   :  { %v3452_v14 = vmax.f32 %v3382_v40, %v3436_v21  ;;  %v6617_v17 = vcombine.high %v3822_v38, %v3826_v24  ;;  %v3830_v40 = vld [vmem:[#allocation16 + $0x1c0] sm:$0xff] }
 0x613   :  { %v3450_v43 = vmax.f32 %v3374_v27, %v3434_v10  ;;  %v6616_v10 = vcombine.low %v3822_v38, %v3826_v24  ;;  %v6625_v41 = vcombine.high %v3830_v40, %v3834_v19 }
 0x614   :  { %v3466_v5 = vpack.c.bf16 %v3452_v14, %v3451_v57 }
 0x615   :  { %v3465_v49 = vpack.c.bf16 %v3450_v43, %v3449_v28 }
 0x617   :  { %3614 = vmatmul.mubr.bf16.vlgmr.msra.gmra.mrb[144].mxu1 %v3465_v49  ;;  %v3842_v49 = vld [vmem:[#allocation16 + $0x220] sm:$0xff] }
 0x618   :  { %3623 = vmatprep.mubr.bf16.mxu1 %v7962_v0  ;;  %4585 = vmatpush1.bf16.msra.mxu1 %v6568_v51  ;;  %v3806_v51 = vld [vmem:[#allocation16 + $0x100] sm:$0xff] }
 0x619   :  { %4586 = vmatprep.subr.bf16.mxu1 %v6577_v4  ;;  %v6601_v50 = vcombine.high %v3806_v51, %v3810_v31  ;;  %v6600_v13 = vcombine.low %v3806_v51, %v3810_v31  ;;  %v3858_v51 = vld [vmem:[#allocation16 + $0x2a0] sm:$0xff] }
 0x61b   :  { %v7167_v59 = vpop.f32.mrb[132].mxu1 }
 0x61c   :  { %v3395_v46 = vadd.f32 %v7167_v59, %v8744_v15  ;;  %v3386_v60 = vpop.f32.mrb[133].mxu1  ;;  %4587 = vmatpush1.bf16.msra.mxu1 %v6576_v42  ;;  %v6624_v42 = vcombine.low %v3830_v40, %v3834_v19 }
 0x61d   :  { %v3387_v2 = vadd.f32 %v8744_v15, %v3386_v60  ;;  %v7168_v23 = vpop.f32.mrb[134].mxu1  ;;  %4588 = vmatprep.subr.bf16.mxu1 %v6585_v34  ;;  %v3850_v60 = vld [vmem:[#allocation16 + $0x260] sm:$0xff] }
 0x61e   :  { %v3439_v29 = vmul.f32 0.01, %v3395_v46  ;;  %v3398_v36 = vadd.f32 %v7168_v23, %v8744_v15  ;;  %v3389_v53 = vpop.f32.mrb[135].mxu1 }
 0x61f   :  { %v3437_v61 = vmul.f32 0.01, %v3387_v2  ;;  %v3390_v33 = vadd.f32 %v8744_v15, %v3389_v53  ;;  %3624 = vmatmul.mubr.bf16.gmra.mrb[148].mxu1 %v3466_v5  ;;  %v3838_v5 = vld [vmem:[#allocation16 + $0x200] sm:$0xff] }
 0x620   :  { %v3440_v11 = vmul.f32 0.01, %v3398_v36  ;;  %3633 = vmatprep.mubr.bf16.mxu1 %v7962_v0  ;;  %4589 = vmatpush1.bf16.msra.mxu1 %v6584_v6  ;;  %v3455_v22 = vmax.f32 %v3395_v46, %v3439_v29  ;;  %v6633_v35 = vcombine.high %v3838_v5, %v3842_v49  ;;  %v3846_v46 = vld [vmem:[#allocation16 + $0x240] sm:$0xff] }
 0x621   :  { %v3438_v25 = vmul.f32 0.01, %v3390_v33  ;;  %4590 = vmatprep.subr.bf16.mxu1 %v6593_v62  ;;  %v3453_v55 = vmax.f32 %v3387_v2, %v3437_v61  ;;  %v6632_v62 = vcombine.low %v3838_v5, %v3842_v49  ;;  %v3854_v53 = vld [vmem:[#allocation16 + $0x280] sm:$0xff]  ;;  %v6640_v31 = vcombine.low %v3846_v46, %v3850_v60 }
 0x622   :  { %v3456_v8 = vmax.f32 %v3398_v36, %v3440_v11  ;;  %v6641_v36 = vcombine.high %v3846_v46, %v3850_v60  ;;  %v6649_v61 = vcombine.high %v3854_v53, %v3858_v51  ;;  %v3866_v11 = vld [vmem:[#allocation16 + $0x2e0] sm:$0xff] }
 0x623   :  { %v3454_v32 = vmax.f32 %v3390_v33, %v3438_v25  ;;  %v3862_v33 = vld [vmem:[#allocation16 + $0x2c0] sm:$0xff] }
 0x624   :  { %v3468_v52 = vpack.c.bf16 %v3456_v8, %v3455_v22  ;;  %4591 = vmatpush1.bf16.msra.mxu1 %v6592_v16  ;;  %v6648_v22 = vcombine.low %v3854_v53, %v3858_v51  ;;  %v6657_v20 = vcombine.high %v3862_v33, %v3866_v11  ;;  %v3894_v46 = vld [vmem:[#allocation16 + $0x3c0] sm:$0xff]  ;;  %v3776_v53 = vld [vmem:[#allocation16 + $0x10] sm:$0xff] }
 0x625   :  { %v3467_v12 = vpack.c.bf16 %v3454_v32, %v3453_v55  ;;  %4592 = vmatprep.subr.bf16.mxu1 %v6601_v50  ;;  %v3898_v60 = vld [vmem:[#allocation16 + $0x3e0] sm:$0xff]  ;;  %v3780_v51 = vld [vmem:[#allocation16 + $0x30] sm:$0xff] }
 0x627   :  { %3634 = vmatmul.mubr.bf16.gmra.mrb[152].mxu1 %v3467_v12  ;;  %v3874_v12 = vld [vmem:[#allocation16 + $0x320] sm:$0xff] }
 0x628   :  { %3643 = vmatprep.mubr.bf16.mxu1 %v7962_v0  ;;  %4593 = vmatpush1.bf16.msra.mxu1 %v6600_v13  ;;  %v3870_v13 = vld [vmem:[#allocation16 + $0x300] sm:$0xff] }
 0x629   :  { %4594 = vmatprep.subr.bf16.mxu1 %v6609_v1  ;;  %v6665_v40 = vcombine.high %v3870_v13, %v3874_v12 }
 0x62b   :  { %v7171_v39 = vpop.f32.mrb[136].mxu1 }
 0x62c   :  { %v3411_v27 = vadd.f32 %v7171_v39, %v8744_v15  ;;  %v3402_v21 = vpop.f32.mrb[137].mxu1  ;;  %4595 = vmatpush1.bf16.msra.mxu1 %v6608_v30  ;;  %v6656_v30 = vcombine.low %v3862_v33, %v3866_v11  ;;  %v3781_v33 = vld [vmem:[#allocation16 + $0x38] sm:$0xff]  ;;  %v6572_v11 = vcombine.low %v3776_v53, %v3780_v51 }
 0x62d   :  { %v3403_v57 = vadd.f32 %v8744_v15, %v3402_v21  ;;  %v7172_v14 = vpop.f32.mrb[138].mxu1  ;;  %4596 = vmatprep.subr.bf16.mxu1 %v6617_v17 }
 0x62e   :  { %v3443_v48 = vmul.f32 0.01, %v3411_v27  ;;  %v3414_v28 = vadd.f32 %v7172_v14, %v8744_v15  ;;  %v3405_v43 = vpop.f32.mrb[139].mxu1 }
 0x62f   :  { %v3441_v4 = vmul.f32 0.01, %v3403_v57  ;;  %v3406_v9 = vadd.f32 %v8744_v15, %v3405_v43  ;;  %3644 = vmatmul.mubr.bf16.gmra.mrb[156].mxu1 %v3468_v52  ;;  %v3883_v43 = vld [vmem:[#allocation16 + $0x368] sm:$0xff] }
 0x630   :  { %v3444_v3 = vmul.f32 0.01, %v3414_v28  ;;  %3653 = vmatprep.mubr.bf16.mxu1 %v7962_v0  ;;  %4597 = vmatpush1.bf16.msra.mxu1 %v6616_v10  ;;  %v3459_v45 = vmax.f32 %v3411_v27, %v3443_v48  ;;  %v3879_v48 = vld [vmem:[#allocation16 + $0x348] sm:$0xff] }
 0x631   :  { %v3442_v34 = vmul.f32 0.01, %v3406_v9  ;;  %4598 = vmatprep.subr.bf16.mxu1 %v6625_v41  ;;  %v3457_v6 = vmax.f32 %v3403_v57, %v3441_v4  ;;  %v6664_v57 = vcombine.low %v3870_v13, %v3874_v12  ;;  %v3882_v41 = vld [vmem:[#allocation16 + $0x360] sm:$0xff]  ;;  %v6674_v49 = vcombine.low %v3879_v48, %v3883_v43 }
 0x632   :  { %v3460_v59 = vmax.f32 %v3414_v28, %v3444_v3  ;;  %v6675_v4 = vcombine.high %v3879_v48, %v3883_v43  ;;  %v3890_v3 = vld [vmem:[#allocation16 + $0x3a0] sm:$0xff] }
 0x633   :  { %v3458_v2 = vmax.f32 %v3406_v9, %v3442_v34  ;;  %v3886_v9 = vld [vmem:[#allocation16 + $0x380] sm:$0xff] }
 0x634   :  { %v3470_v23 = vpack.c.bf16 %v3460_v59, %v3459_v45  ;;  %4599 = vmatpush1.bf16.msra.mxu1 %v6624_v42  ;;  %4723 = vmatprep.subr.bf16.mxu0 %v6675_v4  ;;  %v3887_v42 = vld [vmem:[#allocation16 + $0x388] sm:$0xff]  ;;  %v6681_v34 = vcombine.high %v3886_v9, %v3890_v3 }
 0x635   :  { %v3469_v29 = vpack.c.bf16 %v3458_v2, %v3457_v6  ;;  %4600 = vmatprep.subr.bf16.mxu1 %v6633_v35  ;;  %4724 = vmatpush1.bf16.msra.mxu0 %v6674_v49  ;;  %v3891_v35 = vld [vmem:[#allocation16 + $0x3a8] sm:$0xff]  ;;  %v6689_v2 = vcombine.high %v3894_v46, %v3898_v60 }
 0x636   :  { %v6682_v45 = vcombine.low %v3887_v42, %v3891_v35  ;;  %v6683_v59 = vcombine.high %v3887_v42, %v3891_v35  ;;  %v3895_v6 = vld [vmem:[#allocation16 + $0x3c8] sm:$0xff]  ;;  %v3792_v35 = vld [vmem:[#allocation16 + $0x90] sm:$0xff] }
 0x637   :  { %3654 = vmatmul.mubr.bf16.gmra.mrb[160].mxu1 %v3469_v29 }
 0x638   :  { %3663 = vmatprep.mubr.bf16.mxu1 %v7962_v0  ;;  %4601 = vmatpush1.bf16.msra.mxu1 %v6632_v62  ;;  %v6688_v62 = vcombine.low %v3894_v46, %v3898_v60  ;;  %v3793_v46 = vld [vmem:[#allocation16 + $0x98] sm:$0xff] }
 0x639   :  { %4602 = vmatprep.subr.bf16.mxu1 %v6641_v36  ;;  %4725 = vmatprep.subr.bf16.mxu0 %v6683_v59  ;;  %v3797_v60 = vld [vmem:[#allocation16 + $0xb8] sm:$0xff] }
 0x63a   :  { %4726 = vmatpush1.bf16.msra.mxu0 %v6682_v45 }
 0x63b   :  { %v7175_v16 = vpop.f32.mrb[140].mxu1 }
 0x63c   :  { %v3427_v25 = vadd.f32 %v7175_v16, %v8744_v15  ;;  %v3418_v50 = vpop.f32.mrb[141].mxu1  ;;  %4603 = vmatpush1.bf16.msra.mxu1 %v6640_v31  ;;  %v3777_v31 = vld [vmem:[#allocation16 + $0x18] sm:$0xff] }
 0x63d   :  { %v3419_v8 = vadd.f32 %v8744_v15, %v3418_v50  ;;  %v7176_v7 = vpop.f32.mrb[142].mxu1  ;;  %4604 = vmatprep.subr.bf16.mxu1 %v6649_v61  ;;  %v6573_v61 = vcombine.high %v3776_v53, %v3780_v51  ;;  %v6574_v16 = vcombine.low %v3777_v31, %v3781_v33  ;;  %v3489_v50 = vld [vmem:[%s9191_s12] sm:$0x3]  ;;  %v6591_v51 = vcombine.high %v3793_v46, %v3797_v60 }
 0x63e   :  { %v3447_v55 = vmul.f32 0.01, %v3427_v25  ;;  %v3430_v32 = vadd.f32 %v7176_v7, %v8744_v15  ;;  %v3421_v52 = vpop.f32.mrb[143].mxu1 }
 0x63f   :  { %v3445_v1 = vmul.f32 0.01, %v3419_v8  ;;  %v3422_v38 = vadd.f32 %v8744_v15, %v3421_v52  ;;  %3664 = vmatmul.mubr.bf16.gmra.mrb[164].mxu1 %v3470_v23  ;;  %v3878_v15 = vld [vmem:[#allocation16 + $0x340] sm:$0xff]  ;;  %v3899_v23 = vld [vmem:[#allocation16 + $0x3e8] sm:$0xff] }
 0x640   :  { %v3448_v24 = vmul.f32 0.01, %v3430_v32  ;;  %3673 = vmatprep.mubr.bf16.mxu1 %v7962_v0  ;;  %4605 = vmatpush1.bf16.msra.mxu1 %v6648_v22  ;;  %v3463_v19 = vmax.f32 %v3427_v25, %v3447_v55  ;;  %v6673_v28 = vcombine.high %v3878_v15, %v3882_v41  ;;  %v6672_v5 = vcombine.low %v3878_v15, %v3882_v41  ;;  %v3789_v15 = vld [vmem:[#allocation16 + $0x78] sm:$0xff] }
 0x641   :  { %v3446_v17 = vmul.f32 0.01, %v3422_v38  ;;  %4606 = vmatprep.subr.bf16.mxu1 %v6657_v20  ;;  %v3461_v27 = vmax.f32 %v3419_v8, %v3445_v1  ;;  %v6690_v29 = vcombine.low %v3895_v6, %v3899_v23  ;;  %v6691_v36 = vcombine.high %v3895_v6, %v3899_v23 }
 0x642   :  { %v3464_v39 = vmax.f32 %v3430_v32, %v3448_v24  ;;  %v6575_v25 = vcombine.high %v3777_v31, %v3781_v33  ;;  %v8776_v22 = vrot.slane %v3489_v50, %v8306_v26  ;;  %v8779_v8 = vrot.slane %v3489_v50, %v8311_v58  ;;  %v3800_v31 = vld [vmem:[#allocation16 + $0xd0] sm:$0xff] }
 0x643   :  { %v3462_v21 = vmax.f32 %v3422_v38, %v3446_v17  ;;  %4727 = vmatprep.subr.bf16.mxu0 %v6691_v36  ;;  %v3804_v50 = vld [vmem:[#allocation16 + $0xf0] sm:$0xff] }
 0x644   :  { %v3472_v10 = vpack.c.bf16 %v3464_v39, %v3463_v19  ;;  %4607 = vmatpush1.bf16.msra.mxu1 %v6656_v30  ;;  %4728 = vmatpush1.bf16.msra.mxu0 %v6690_v29  ;;  %v3784_v39 = vld [vmem:[#allocation16 + $0x50] sm:$0xff] }
 0x645   :  { %v3471_v14 = vpack.c.bf16 %v3462_v21, %v3461_v27  ;;  %4608 = vmatprep.subr.bf16.mxu1 %v6665_v40  ;;  %4923 = vmatprep.subr.bf16.mxu0 %v6575_v25 }
 0x647   :  { %3674 = vmatmul.mubr.bf16.gmra.mrb[168].mxu1 %v3471_v14  ;;  %v3785_v14 = vld [vmem:[#allocation16 + $0x58] sm:$0xff] }
 0x648   :  { %3683 = vmatprep.mubr.bf16.mxu1 %v7962_v0  ;;  %4609 = vmatpush1.bf16.msra.mxu1 %v6664_v57  ;;  %v6680_v0 = vcombine.low %v3886_v9, %v3890_v3  ;;  %v3788_v57 = vld [vmem:[#allocation16 + $0x70] sm:$0xff] }
 0x649   :  { %4610 = vmatprep.subr.bf16.mxu1 %v6673_v28  ;;  %v6581_v42 = vcombine.high %v3784_v39, %v3788_v57  ;;  %v6580_v23 = vcombine.low %v3784_v39, %v3788_v57  ;;  %v3812_v39 = vld [vmem:[#allocation16 + $0x130] sm:$0xff]  ;;  %v3813_v57 = vld [vmem:[#allocation16 + $0x138] sm:$0xff] }
 0x64c   :  { %4611 = vmatpush1.bf16.msra.mxu1 %v6672_v5 }
 0x64d   :  { %4612 = vmatprep.subr.bf16.mxu1 %v6681_v34  ;;  %v6583_v34 = vcombine.high %v3785_v14, %v3789_v15 }
 0x64f   :  { %3684 = vmatmul.mubr.bf16.gmra.mrb[172].mxu1 %v3472_v10 }
 0x650   :  { %4613 = vmatpush1.bf16.msra.mxu1 %v6680_v0  ;;  %v3796_v0 = vld [vmem:[#allocation16 + $0xb0] sm:$0xff] }
 0x651   :  { %4614 = vmatprep.subr.bf16.mxu1 %v6689_v2  ;;  %v6589_v29 = vcombine.high %v3792_v35, %v3796_v0 }
 0x654   :  { %4615 = vmatpush1.bf16.msra.mxu1 %v6688_v62  ;;  %v6582_v62 = vcombine.low %v3785_v14, %v3789_v15 }
 0x655   :  { %4810 = vmatprep.subr.bf16.mxu1 %v6573_v61 }
 0x6ea   :  { %v3615_v7 = vpop.f32.mrb[144].mxu1 }
 0x6eb   :  { %v3616_v20 = vadd.f32 %v3615_v7, %v8776_v22  ;;  %v3617_v55 = vpop.f32.mrb[145].mxu1  ;;  %v3801_v7 = vld [vmem:[#allocation16 + $0xd8] sm:$0xff] }
 0x6ec   :  { %v3618_v32 = vadd.f32 %v3617_v55, %v8779_v8  ;;  %v3619_v52 = vpop.f32.mrb[146].mxu1 }
 0x6ed   :  { %v3694_v13 = vmul.f32 0.01, %v3616_v20  ;;  %v3620_v12 = vadd.f32 %v3619_v52, %v8776_v22  ;;  %v3621_v1 = vpop.f32.mrb[147].mxu1 }
 0x6ee   :  { %v3695_v38 = vmul.f32 0.01, %v3618_v32  ;;  %v3622_v24 = vadd.f32 %v3621_v1, %v8779_v8  ;;  %v6590_v1 = vcombine.low %v3793_v46, %v3797_v60 }
 0x6ef   :  { %v3696_v30 = vmul.f32 0.01, %v3620_v12  ;;  %v3726_v40 = vmax.f32 %v3616_v20, %v3694_v13  ;;  %v3805_v20 = vld [vmem:[#allocation16 + $0xf8] sm:$0xff] }
 0x6f0   :  { %v3697_v17 = vmul.f32 0.01, %v3622_v24  ;;  %v3727_v27 = vmax.f32 %v3618_v32, %v3695_v38  ;;  %v6588_v32 = vcombine.low %v3792_v35, %v3796_v0  ;;  %v3820_v0 = vld [vmem:[#allocation16 + $0x170] sm:$0xff] }
 0x6f1   :  { %v3728_v19 = vmax.f32 %v3620_v12, %v3696_v30 }
 0x6f2   :  { %v3729_v21 = vmax.f32 %v3622_v24, %v3697_v17  ;;  %v3625_v10 = vpop.f32.mrb[148].mxu1  ;;  %v6597_v17 = vcombine.high %v3800_v31, %v3804_v50 }
 0x6f3   :  { %v8785_v41 = vpack.c.bf16 %v3728_v19, %v3726_v40  ;;  %v3626_v48 = vadd.f32 %v3625_v10, %v8776_v22  ;;  %v3627_v28 = vpop.f32.mrb[149].mxu1  ;;  %v6599_v40 = vcombine.high %v3801_v7, %v3805_v20  ;;  %v3808_v19 = vld [vmem:[#allocation16 + $0x110] sm:$0xff]  ;;  %v3809_v10 = vld [vmem:[#allocation16 + $0x118] sm:$0xff] }
 0x6f4   :  { %v8788_v43 = vpack.c.bf16 %v3729_v21, %v3727_v27  ;;  %v3628_v5 = vadd.f32 %v3627_v28, %v8779_v8  ;;  %v3629_v49 = vpop.f32.mrb[150].mxu1  ;;  %v6598_v28 = vcombine.low %v3801_v7, %v3805_v20 }
 0x6f5   :  { %v3698_v4 = vmul.f32 0.01, %v3626_v48  ;;  %v3630_v9 = vadd.f32 %v3629_v49, %v8776_v22  ;;  %v3631_v3 = vpop.f32.mrb[151].mxu1 }
 0x6f6   :  { %v3699_v45 = vmul.f32 0.01, %v3628_v5  ;;  %v3632_v59 = vadd.f32 %v3631_v3, %v8779_v8  ;;  %4616 = vmatprep.mubr.bf16.mxu1 %v8788_v43  ;;  %4729 = vmatprep.mubr.bf16.mxu0 %v8788_v43  ;;  %v3816_v3 = vld [vmem:[#allocation16 + $0x150] sm:$0xff] }
 0x6f7   :  { %v3700_v6 = vmul.f32 0.01, %v3630_v9  ;;  %4617 = vmatmul.mubr.bf16.vlgmr.msra.gmra.mrb[176].mxu1 %v8785_v41  ;;  %4730 = vmatmul.mubr.bf16.vlgmr.msra.gmra.mrb[80].mxu0 %v8785_v41  ;;  %v3730_v36 = vmax.f32 %v3626_v48, %v3698_v4  ;;  %v6596_v48 = vcombine.low %v3800_v31, %v3804_v50  ;;  %v3828_v50 = vld [vmem:[#allocation16 + $0x1b0] sm:$0xff] }
 0x6f8   :  { %v3701_v2 = vmul.f32 0.01, %v3632_v59  ;;  %4811 = vmatpush1.bf16.msra.mxu1 %v6572_v11  ;;  %4924 = vmatpush1.bf16.msra.mxu0 %v6574_v16  ;;  %v3731_v61 = vmax.f32 %v3628_v5, %v3699_v45  ;;  %v6605_v5 = vcombine.high %v3808_v19, %v3812_v39  ;;  %v3817_v45 = vld [vmem:[#allocation16 + $0x158] sm:$0xff] }
 0x6f9   :  { %v3732_v53 = vmax.f32 %v3630_v9, %v3700_v6  ;;  %4812 = vmatprep.subr.bf16.mxu1 %v6581_v42  ;;  %4925 = vmatprep.subr.bf16.mxu0 %v6583_v34  ;;  %v6607_v9 = vcombine.high %v3809_v10, %v3813_v57 }
 0x6fa   :  { %v3733_v33 = vmax.f32 %v3632_v59, %v3701_v2  ;;  %v3635_v25 = vpop.f32.mrb[152].mxu1  ;;  %v3821_v59 = vld [vmem:[#allocation16 + $0x178] sm:$0xff]  ;;  %v6604_v2 = vcombine.low %v3808_v19, %v3812_v39 }
 0x6fb   :  { %v8797_v55 = vpack.c.bf16 %v3732_v53, %v3730_v36  ;;  %v3636_v11 = vadd.f32 %v3635_v25, %v8776_v22  ;;  %v3637_v16 = vpop.f32.mrb[153].mxu1  ;;  %v6606_v36 = vcombine.low %v3809_v10, %v3813_v57  ;;  %v3824_v25 = vld [vmem:[#allocation16 + $0x190] sm:$0xff]  ;;  %v3833_v10 = vld [vmem:[#allocation16 + $0x1d8] sm:$0xff] }
 0x6fc   :  { %v8800_v52 = vpack.c.bf16 %v3733_v33, %v3731_v61  ;;  %v3638_v13 = vadd.f32 %v3637_v16, %v8779_v8  ;;  %4813 = vmatpush1.bf16.msra.mxu1 %v6580_v23  ;;  %v3639_v12 = vpop.f32.mrb[154].mxu1  ;;  %4926 = vmatpush1.bf16.msra.mxu0 %v6582_v62  ;;  %v6613_v61 = vcombine.high %v3816_v3, %v3820_v0  ;;  %v3829_v16 = vld [vmem:[#allocation16 + $0x1b8] sm:$0xff] }
 0x6fd   :  { %v3702_v38 = vmul.f32 0.01, %v3636_v11  ;;  %v3640_v24 = vadd.f32 %v3639_v12, %v8776_v22  ;;  %v3641_v30 = vpop.f32.mrb[155].mxu1  ;;  %4814 = vmatprep.subr.bf16.mxu1 %v6589_v29  ;;  %4927 = vmatprep.subr.bf16.mxu0 %v6591_v51  ;;  %v6615_v33 = vcombine.high %v3817_v45, %v3821_v59  ;;  %v6612_v12 = vcombine.low %v3816_v3, %v3820_v0  ;;  %v3837_v57 = vld [vmem:[#allocation16 + $0x1f8] sm:$0xff] }
 0x6fe   :  { %v3703_v27 = vmul.f32 0.01, %v3638_v13  ;;  %v3642_v21 = vadd.f32 %v3641_v30, %v8779_v8  ;;  %4626 = vmatprep.mubr.bf16.mxu1 %v8800_v52  ;;  %4739 = vmatprep.mubr.bf16.mxu0 %v8800_v52  ;;  %v6631_v0 = vcombine.high %v3833_v10, %v3837_v57 }
 0x6ff   :  { %v3704_v14 = vmul.f32 0.01, %v3640_v24  ;;  %4627 = vmatmul.mubr.bf16.gmra.mrb[180].mxu1 %v8797_v55  ;;  %4740 = vmatmul.mubr.bf16.gmra.mrb[84].mxu0 %v8797_v55  ;;  %v3734_v49 = vmax.f32 %v3636_v11, %v3702_v38  ;;  %v3825_v11 = vld [vmem:[#allocation16 + $0x198] sm:$0xff]  ;;  %v6621_v38 = vcombine.high %v3824_v25, %v3828_v50 }
 0x700   :  { %v3705_v15 = vmul.f32 0.01, %v3642_v21  ;;  %4815 = vmatpush1.bf16.msra.mxu1 %v6588_v32  ;;  %4928 = vmatpush1.bf16.msra.mxu0 %v6590_v1  ;;  %v3735_v42 = vmax.f32 %v3638_v13, %v3703_v27  ;;  %v6614_v1 = vcombine.low %v3817_v45, %v3821_v59  ;;  %v3840_v45 = vld [vmem:[#allocation16 + $0x210] sm:$0xff] }
 0x701   :  { %v3736_v4 = vmax.f32 %v3640_v24, %v3704_v14  ;;  %4816 = vmatprep.subr.bf16.mxu1 %v6597_v17  ;;  %4929 = vmatprep.subr.bf16.mxu0 %v6599_v40  ;;  %v6623_v17 = vcombine.high %v3825_v11, %v3829_v16  ;;  %v3832_v40 = vld [vmem:[#allocation16 + $0x1d0] sm:$0xff] }
 0x702   :  { %v3737_v34 = vmax.f32 %v3642_v21, %v3705_v15  ;;  %v3645_v35 = vpop.f32.mrb[156].mxu1  ;;  %v3836_v21 = vld [vmem:[#allocation16 + $0x1f0] sm:$0xff] }
 0x703   :  { %v8809_v46 = vpack.c.bf16 %v3736_v4, %v3734_v49  ;;  %v3646_v60 = vadd.f32 %v3645_v35, %v8776_v22  ;;  %v3647_v6 = vpop.f32.mrb[157].mxu1  ;;  %v6629_v35 = vcombine.high %v3832_v40, %v3836_v21  ;;  %v3844_v59 = vld [vmem:[#allocation16 + $0x230] sm:$0xff] }
 0x704   :  { %v8812_v23 = vpack.c.bf16 %v3737_v34, %v3735_v42  ;;  %v3648_v62 = vadd.f32 %v3647_v6, %v8779_v8  ;;  %4817 = vmatpush1.bf16.msra.mxu1 %v6596_v48  ;;  %v3649_v29 = vpop.f32.mrb[158].mxu1  ;;  %4930 = vmatpush1.bf16.msra.mxu0 %v6598_v28  ;;  %v6620_v28 = vcombine.low %v3824_v25, %v3828_v50  ;;  %v3848_v50 = vld [vmem:[#allocation16 + $0x250] sm:$0xff] }
 0x705   :  { %v3706_v53 = vmul.f32 0.01, %v3646_v60  ;;  %v3650_v51 = vadd.f32 %v3649_v29, %v8776_v22  ;;  %v3651_v31 = vpop.f32.mrb[159].mxu1  ;;  %4818 = vmatprep.subr.bf16.mxu1 %v6605_v5  ;;  %4931 = vmatprep.subr.bf16.mxu0 %v6607_v9  ;;  %v6622_v9 = vcombine.low %v3825_v11, %v3829_v16  ;;  %v3852_v16 = vld [vmem:[#allocation16 + $0x270] sm:$0xff] }
 0x706   :  { %v3707_v7 = vmul.f32 0.01, %v3648_v62  ;;  %v3652_v20 = vadd.f32 %v3651_v31, %v8779_v8  ;;  %4636 = vmatprep.mubr.bf16.mxu1 %v8812_v23  ;;  %4749 = vmatprep.mubr.bf16.mxu0 %v8812_v23  ;;  %v6637_v31 = vcombine.high %v3840_v45, %v3844_v59 }
 0x707   :  { %v3708_v32 = vmul.f32 0.01, %v3650_v51  ;;  %4637 = vmatmul.mubr.bf16.gmra.mrb[184].mxu1 %v8809_v46  ;;  %4750 = vmatmul.mubr.bf16.gmra.mrb[88].mxu0 %v8809_v46  ;;  %v3738_v24 = vmax.f32 %v3646_v60, %v3706_v53  ;;  %v6628_v53 = vcombine.low %v3832_v40, %v3836_v21 }
 0x708   :  { %v3709_v13 = vmul.f32 0.01, %v3652_v20  ;;  %4819 = vmatpush1.bf16.msra.mxu1 %v6604_v2  ;;  %4932 = vmatpush1.bf16.msra.mxu0 %v6606_v36  ;;  %v3739_v19 = vmax.f32 %v3648_v62, %v3707_v7  ;;  %v3841_v2 = vld [vmem:[#allocation16 + $0x218] sm:$0xff] }
 0x709   :  { %v3740_v30 = vmax.f32 %v3650_v51, %v3708_v32  ;;  %4820 = vmatprep.subr.bf16.mxu1 %v6613_v61  ;;  %4933 = vmatprep.subr.bf16.mxu0 %v6615_v33  ;;  %v3845_v62 = vld [vmem:[#allocation16 + $0x238] sm:$0xff]  ;;  %v6630_v51 = vcombine.low %v3833_v10, %v3837_v57  ;;  %v6645_v10 = vcombine.high %v3848_v50, %v3852_v16 }
 0x70a   :  { %v3741_v39 = vmax.f32 %v3652_v20, %v3709_v13  ;;  %v3655_v27 = vpop.f32.mrb[160].mxu1  ;;  %v6639_v25 = vcombine.high %v3841_v2, %v3845_v62  ;;  %v3849_v32 = vld [vmem:[#allocation16 + $0x258] sm:$0xff] }
 0x70b   :  { %v8821_v14 = vpack.c.bf16 %v3740_v30, %v3738_v24  ;;  %v3656_v15 = vadd.f32 %v3655_v27, %v8776_v22  ;;  %v3657_v48 = vpop.f32.mrb[161].mxu1  ;;  %v3853_v13 = vld [vmem:[#allocation16 + $0x278] sm:$0xff]  ;;  %v6636_v24 = vcombine.low %v3840_v45, %v3844_v59 }
 0x70c   :  { %v8824_v5 = vpack.c.bf16 %v3741_v39, %v3739_v19  ;;  %v3658_v49 = vadd.f32 %v3657_v48, %v8779_v8  ;;  %4821 = vmatpush1.bf16.msra.mxu1 %v6612_v12  ;;  %v3659_v4 = vpop.f32.mrb[162].mxu1  ;;  %4934 = vmatpush1.bf16.msra.mxu0 %v6614_v1  ;;  %v6638_v19 = vcombine.low %v3841_v2, %v3845_v62  ;;  %v3860_v48 = vld [vmem:[#allocation16 + $0x2b0] sm:$0xff] }
 0x70d   :  { %v3710_v3 = vmul.f32 0.01, %v3656_v15  ;;  %v3660_v42 = vadd.f32 %v3659_v4, %v8776_v22  ;;  %v3661_v34 = vpop.f32.mrb[163].mxu1  ;;  %4822 = vmatprep.subr.bf16.mxu1 %v6621_v38  ;;  %4935 = vmatprep.subr.bf16.mxu0 %v6623_v17  ;;  %v6647_v57 = vcombine.high %v3849_v32, %v3853_v13  ;;  %v3857_v4 = vld [vmem:[#allocation16 + $0x298] sm:$0xff] }
 0x70e   :  { %v3711_v60 = vmul.f32 0.01, %v3658_v49  ;;  %v3662_v6 = vadd.f32 %v3661_v34, %v8779_v8  ;;  %4646 = vmatprep.mubr.bf16.mxu1 %v8824_v5  ;;  %4759 = vmatprep.mubr.bf16.mxu0 %v8824_v5  ;;  %v6644_v34 = vcombine.low %v3848_v50, %v3852_v16 }
 0x70f   :  { %v3712_v29 = vmul.f32 0.01, %v3660_v42  ;;  %4647 = vmatmul.mubr.bf16.gmra.mrb[188].mxu1 %v8821_v14  ;;  %4760 = vmatmul.mubr.bf16.gmra.mrb[92].mxu0 %v8821_v14  ;;  %v3742_v61 = vmax.f32 %v3656_v15, %v3710_v3  ;;  %v3856_v15 = vld [vmem:[#allocation16 + $0x290] sm:$0xff] }
 0x710   :  { %v3713_v36 = vmul.f32 0.01, %v3662_v6  ;;  %4823 = vmatpush1.bf16.msra.mxu1 %v6620_v28  ;;  %4936 = vmatpush1.bf16.msra.mxu0 %v6622_v9  ;;  %v3743_v7 = vmax.f32 %v3658_v49, %v3711_v60  ;;  %v3861_v9 = vld [vmem:[#allocation16 + $0x2b8] sm:$0xff] }
 0x711   :  { %v3744_v33 = vmax.f32 %v3660_v42, %v3712_v29  ;;  %4824 = vmatprep.subr.bf16.mxu1 %v6629_v35  ;;  %4937 = vmatprep.subr.bf16.mxu0 %v6631_v0  ;;  %v6646_v35 = vcombine.low %v3849_v32, %v3853_v13  ;;  %v6653_v0 = vcombine.high %v3856_v15, %v3860_v48 }
 0x712   :  { %v3745_v20 = vmax.f32 %v3662_v6, %v3713_v36  ;;  %v3665_v11 = vpop.f32.mrb[164].mxu1  ;;  %v6655_v60 = vcombine.high %v3857_v4, %v3861_v9  ;;  %v3864_v6 = vld [vmem:[#allocation16 + $0x2d0] sm:$0xff] }
 0x713   :  { %v8833_v12 = vpack.c.bf16 %v3744_v33, %v3742_v61  ;;  %v3666_v1 = vadd.f32 %v3665_v11, %v8776_v22  ;;  %v3667_v38 = vpop.f32.mrb[165].mxu1  ;;  %v3868_v36 = vld [vmem:[#allocation16 + $0x2f0] sm:$0xff]  ;;  %v6654_v11 = vcombine.low %v3857_v4, %v3861_v9 }
 0x714   :  { %v8836_v30 = vpack.c.bf16 %v3745_v20, %v3743_v7  ;;  %v3668_v17 = vadd.f32 %v3667_v38, %v8779_v8  ;;  %4825 = vmatpush1.bf16.msra.mxu1 %v6628_v53  ;;  %v3669_v40 = vpop.f32.mrb[166].mxu1  ;;  %4938 = vmatpush1.bf16.msra.mxu0 %v6630_v51  ;;  %v3865_v53 = vld [vmem:[#allocation16 + $0x2d8] sm:$0xff]  ;;  %v3880_v9 = vld [vmem:[#allocation16 + $0x350] sm:$0xff] }
 0x715   :  { %v3714_v39 = vmul.f32 0.01, %v3666_v1  ;;  %v3670_v27 = vadd.f32 %v3669_v40, %v8776_v22  ;;  %v3671_v21 = vpop.f32.mrb[167].mxu1  ;;  %4826 = vmatprep.subr.bf16.mxu1 %v6637_v31  ;;  %4939 = vmatprep.subr.bf16.mxu0 %v6639_v25  ;;  %v3869_v51 = vld [vmem:[#allocation16 + $0x2f8] sm:$0xff]  ;;  %v6652_v25 = vcombine.low %v3856_v15, %v3860_v48 }
 0x716   :  { %v3715_v28 = vmul.f32 0.01, %v3668_v17  ;;  %v3672_v49 = vadd.f32 %v3671_v21, %v8779_v8  ;;  %4656 = vmatprep.mubr.bf16.mxu1 %v8836_v30  ;;  %4769 = vmatprep.mubr.bf16.mxu0 %v8836_v30  ;;  %v6663_v38 = vcombine.high %v3865_v53, %v3869_v51  ;;  %v6662_v15 = vcombine.low %v3865_v53, %v3869_v51 }
 0x717   :  { %v3716_v3 = vmul.f32 0.01, %v3670_v27  ;;  %4657 = vmatmul.mubr.bf16.gmra.mrb[192].mxu1 %v8833_v12  ;;  %4770 = vmatmul.mubr.bf16.gmra.mrb[96].mxu0 %v8833_v12  ;;  %v3746_v45 = vmax.f32 %v3666_v1, %v3714_v39  ;;  %v6661_v1 = vcombine.high %v3864_v6, %v3868_v36  ;;  %v3873_v39 = vld [vmem:[#allocation16 + $0x318] sm:$0xff] }
 0x718   :  { %v3717_v42 = vmul.f32 0.01, %v3672_v49  ;;  %4827 = vmatpush1.bf16.msra.mxu1 %v6636_v24  ;;  %4940 = vmatpush1.bf16.msra.mxu0 %v6638_v19  ;;  %v3747_v2 = vmax.f32 %v3668_v17, %v3715_v28  ;;  %v3872_v24 = vld [vmem:[#allocation16 + $0x310] sm:$0xff] }
 0x719   :  { %v3748_v59 = vmax.f32 %v3670_v27, %v3716_v3  ;;  %4828 = vmatprep.subr.bf16.mxu1 %v6645_v10  ;;  %4941 = vmatprep.subr.bf16.mxu0 %v6647_v57  ;;  %v3876_v17 = vld [vmem:[#allocation16 + $0x330] sm:$0xff]  ;;  %v3877_v27 = vld [vmem:[#allocation16 + $0x338] sm:$0xff]  ;;  %v6660_v57 = vcombine.low %v3864_v6, %v3868_v36 }
 0x71a   :  { %v3749_v62 = vmax.f32 %v3672_v49, %v3717_v42  ;;  %v3675_v29 = vpop.f32.mrb[168].mxu1  ;;  %v6669_v48 = vcombine.high %v3872_v24, %v3876_v17  ;;  %v6671_v4 = vcombine.high %v3873_v39, %v3877_v27  ;;  %v6668_v6 = vcombine.low %v3872_v24, %v3876_v17 }
 0x71b   :  { %v8845_v31 = vpack.c.bf16 %v3748_v59, %v3746_v45  ;;  %v3676_v61 = vadd.f32 %v3675_v29, %v8776_v22  ;;  %v3677_v33 = vpop.f32.mrb[169].mxu1  ;;  %v3885_v45 = vld [vmem:[#allocation16 + $0x378] sm:$0xff]  ;;  %v6670_v53 = vcombine.low %v3873_v39, %v3877_v27 }
 0x71c   :  { %v8848_v50 = vpack.c.bf16 %v3749_v62, %v3747_v2  ;;  %v3678_v7 = vadd.f32 %v3677_v33, %v8779_v8  ;;  %4829 = vmatpush1.bf16.msra.mxu1 %v6644_v34  ;;  %v3679_v20 = vpop.f32.mrb[170].mxu1  ;;  %4942 = vmatpush1.bf16.msra.mxu0 %v6646_v35  ;;  %v3884_v35 = vld [vmem:[#allocation16 + $0x370] sm:$0xff] }
 0x71d   :  { %v3718_v16 = vmul.f32 0.01, %v3676_v61  ;;  %v3680_v32 = vadd.f32 %v3679_v20, %v8776_v22  ;;  %v3681_v13 = vpop.f32.mrb[171].mxu1  ;;  %4830 = vmatprep.subr.bf16.mxu1 %v6653_v0  ;;  %4943 = vmatprep.subr.bf16.mxu0 %v6655_v60  ;;  %v3881_v0 = vld [vmem:[#allocation16 + $0x358] sm:$0xff]  ;;  %v3888_v20 = vld [vmem:[#allocation16 + $0x390] sm:$0xff]  ;;  %v6676_v24 = vcombine.low %v3880_v9, %v3884_v35 }
 0x71e   :  { %v3719_v40 = vmul.f32 0.01, %v3678_v7  ;;  %v3682_v19 = vadd.f32 %v3681_v13, %v8779_v8  ;;  %4666 = vmatprep.mubr.bf16.mxu1 %v8848_v50  ;;  %4779 = vmatprep.mubr.bf16.mxu0 %v8848_v50  ;;  %v3889_v13 = vld [vmem:[#allocation16 + $0x398] sm:$0xff]  ;;  %v6678_v17 = vcombine.low %v3881_v0, %v3885_v45 }
 0x71f   :  { %v3720_v21 = vmul.f32 0.01, %v3680_v32  ;;  %4667 = vmatmul.mubr.bf16.gmra.mrb[196].mxu1 %v8845_v31  ;;  %4780 = vmatmul.mubr.bf16.gmra.mrb[100].mxu0 %v8845_v31  ;;  %v3750_v28 = vmax.f32 %v3676_v61, %v3718_v16 }
 0x720   :  { %v3721_v10 = vmul.f32 0.01, %v3682_v19  ;;  %4831 = vmatpush1.bf16.msra.mxu1 %v6652_v25  ;;  %4944 = vmatpush1.bf16.msra.mxu0 %v6654_v11  ;;  %v3751_v3 = vmax.f32 %v3678_v7, %v3719_v40  ;;  %v6677_v25 = vcombine.high %v3880_v9, %v3884_v35  ;;  %v6679_v7 = vcombine.high %v3881_v0, %v3885_v45  ;;  %v3892_v11 = vld [vmem:[#allocation16 + $0x3b0] sm:$0xff]  ;;  %v7596_v0 = vld [vmem:[#allocation17 + $0x40] sm:$0xff]  }
 0x721   :  { %v3752_v49 = vmax.f32 %v3680_v32, %v3720_v21  ;;  %4832 = vmatprep.subr.bf16.mxu1 %v6661_v1  ;;  %4945 = vmatprep.subr.bf16.mxu0 %v6663_v38  ;;  %v3893_v1 = vld [vmem:[#allocation16 + $0x3b8] sm:$0xff]  ;;  %v6685_v40 = vcombine.high %v3888_v20, %v3892_v11  ;;  %v7598_v45 = vld [vmem:[#allocation17 + $0xc0] sm:$0xff]  }
 0x722   :  { %v3753_v42 = vmax.f32 %v3682_v19, %v3721_v10  ;;  %v3685_v34 = vpop.f32.mrb[172].mxu1  ;;  %v3896_v10 = vld [vmem:[#allocation16 + $0x3d0] sm:$0xff]  ;;  %v6686_v9 = vcombine.low %v3889_v13, %v3893_v1 }
 0x723   :  { %v8857_v59 = vpack.c.bf16 %v3752_v49, %v3750_v28  ;;  %v3686_v60 = vadd.f32 %v3685_v34, %v8776_v22  ;;  %v3687_v2 = vpop.f32.mrb[173].mxu1  ;;  %v3901_v28 = vld [vmem:[#allocation16 + $0x3f8] sm:$0xff] }
 0x724   :  { %v8860_v62 = vpack.c.bf16 %v3753_v42, %v3751_v3  ;;  %v3688_v29 = vadd.f32 %v3687_v2, %v8779_v8  ;;  %4833 = vmatpush1.bf16.msra.mxu1 %v6660_v57  ;;  %v3689_v36 = vpop.f32.mrb[174].mxu1  ;;  %4946 = vmatpush1.bf16.msra.mxu0 %v6662_v15  ;;  %v3900_v15 = vld [vmem:[#allocation16 + $0x3f0] sm:$0xff]  ;;  %v7599_v2 = vld [vmem:[#allocation17 + $0x80] sm:$0xff]  }
 0x725   :  { %v3722_v51 = vmul.f32 0.01, %v3686_v60  ;;  %v3690_v61 = vadd.f32 %v3689_v36, %v8776_v22  ;;  %v3691_v33 = vpop.f32.mrb[175].mxu1  ;;  %4834 = vmatprep.subr.bf16.mxu1 %v6669_v48  ;;  %4947 = vmatprep.subr.bf16.mxu0 %v6671_v4  ;;  %v3897_v48 = vld [vmem:[#allocation16 + $0x3d8] sm:$0xff]  ;;  %v6684_v4 = vcombine.low %v3888_v20, %v3892_v11  ;;  %v6693_v3 = vcombine.high %v3896_v10, %v3900_v15  ;;  %v7603_v36 = vld [vmem:[#allocation17 + $0x88] sm:$0xff]   ;;  %v7612_v20 = vld [vmem:[#allocation17 + $0x60] sm:$0xff]  }
 0x726   :  { %v3723_v16 = vmul.f32 0.01, %v3688_v29  ;;  %v3692_v32 = vadd.f32 %v3691_v33, %v8779_v8  ;;  %4676 = vmatprep.mubr.bf16.mxu1 %v8860_v62  ;;  %4789 = vmatprep.mubr.bf16.mxu0 %v8860_v62  ;;  %v6687_v8 = vcombine.high %v3889_v13, %v3893_v1  ;;  %v6695_v42 = vcombine.high %v3897_v48, %v3901_v28  ;;  %v7607_v33 = vld [vmem:[#allocation17 + $0x90] sm:$0xff]   ;;  %v7614_v11 = vld [vmem:[#allocation17 + $0xe0] sm:$0xff]   ;;  %v7616_v13 = vld [vmem:[#allocation17 + $0x68] sm:$0xff]  }
 0x727   :  { %v3724_v38 = vmul.f32 0.01, %v3690_v61  ;;  %4677 = vmatmul.mubr.bf16.gmra.mrb[200].mxu1 %v8857_v59  ;;  %4790 = vmatmul.mubr.bf16.gmra.mrb[104].mxu0 %v8857_v59  ;;  %v3754_v19 = vmax.f32 %v3686_v60, %v3722_v51  ;;  %v6692_v34 = vcombine.low %v3896_v10, %v3900_v15  ;;  %v6694_v35 = vcombine.low %v3897_v48, %v3901_v28  ;;  %v7597_v60 = vld [vmem:[#allocation17] sm:$0xff]   ;;  %v7606_v51 = vld [vmem:[#allocation17 + $0xd0] sm:$0xff]   ;;  %v7619_v1 = vld [vmem:[#allocation17 + $0xa8] sm:$0xff]  }
 0x728   :  { %v3725_v22 = vmul.f32 0.01, %v3692_v32  ;;  %4835 = vmatpush1.bf16.msra.mxu1 %v6668_v6  ;;  %4948 = vmatpush1.bf16.msra.mxu0 %v6670_v53  ;;  %v3755_v27 = vmax.f32 %v3688_v29, %v3723_v16  ;;  %v7600_v6 = vld [vmem:[#allocation17 + $0x48] sm:$0xff]   ;;  %v7604_v53 = vld [vmem:[#allocation17 + $0x50] sm:$0xff]   ;;  %v7613_v16 = vld [vmem:[#allocation17 + $0x20] sm:$0xff]  }
 0x729   :  { %v3756_v39 = vmax.f32 %v3690_v61, %v3724_v38  ;;  %4836 = vmatprep.subr.bf16.mxu1 %v6677_v25  ;;  %4949 = vmatprep.subr.bf16.mxu0 %v6679_v7  ;;  %v7602_v29 = vld [vmem:[#allocation17 + $0xc8] sm:$0xff]   ;;  %v7605_v61 = vld [vmem:[#allocation17 + $0x10] sm:$0xff]   ;;  %v7608_v25 = vld [vmem:[#allocation17 + $0x58] sm:$0xff]  }
 0x72a   :  { %v3757_v21 = vmax.f32 %v3692_v32, %v3725_v22  ;;  %v7611_v7 = vld [vmem:[#allocation17 + $0x98] sm:$0xff]   ;;  %v7615_v32 = vld [vmem:[#allocation17 + $0xa0] sm:$0xff]   ;;  %v7620_v38 = vld [vmem:[#allocation17 + $0x70] sm:$0xff]  }
 0x72b   :  { %v8869_v57 = vpack.c.bf16 %v3756_v39, %v3754_v19  ;;  %v7622_v22 = vld [vmem:[#allocation17 + $0xf0] sm:$0xff]   ;;  %v7627_v19 = vld [vmem:[#allocation17 + $0xb8] sm:$0xff]  }
 0x72c   :  { %v8871_v49 = vpack.c.bf16 %v3757_v21, %v3755_v27  ;;  %4837 = vmatpush1.bf16.msra.mxu1 %v6676_v24  ;;  %4950 = vmatpush1.bf16.msra.mxu0 %v6678_v17  ;;  %v7621_v24 = vld [vmem:[#allocation17 + $0x30] sm:$0xff]  }
 0x72d   :  { %4838 = vmatprep.subr.bf16.mxu1 %v6685_v40  ;;  %4951 = vmatprep.subr.bf16.mxu0 %v6687_v8  ;;  %v7623_v17 = vld [vmem:[#allocation17 + $0xb0] sm:$0xff]   ;;  %v7625_v40 = vld [vmem:[#allocation17 + $0x38] sm:$0xff]  }
 0x72e   :  { %4686 = vmatprep.mubr.bf16.mxu1 %v8871_v49  ;;  %4799 = vmatprep.mubr.bf16.mxu0 %v8871_v49 }
 0x72f   :  { %4687 = vmatmul.mubr.bf16.gmra.mrb[204].mxu1 %v8869_v57  ;;  %4800 = vmatmul.mubr.bf16.gmra.mrb[108].mxu0 %v8869_v57 }
 0x730   :  { %4839 = vmatpush1.bf16.msra.mxu1 %v6684_v4  ;;  %4842 = vmatprep.mubr.bf16.mxu1 %v8788_v43 }
 0x731   :  { %4952 = vmatpush1.bf16.msra.mxu0 %v6686_v9  ;;  %4955 = vmatprep.mubr.bf16.mxu0 %v8788_v43  ;;  %v7601_v43 = vld [vmem:[#allocation17 + $0x8] sm:$0xff]  }
 0x732   :  { %4840 = vmatprep.subr.bf16.mxu1 %v6693_v3  ;;  %4953 = vmatprep.subr.bf16.mxu0 %v6695_v42 }
 0x734   :  { %4841 = vmatpush1.bf16.msra.mxu1 %v6692_v34 }
 0x735   :  { %4954 = vmatpush1.bf16.msra.mxu0 %v6694_v35  ;;  %6857 = vmatprep.subr.bf16.mxu1 %v7596_v0 }
 0x736   :  { %6921 = vmatprep.subr.bf16.mxu0 %v7598_v45 }
 0x737   :  { %4843 = vmatmul.mubr.bf16.vlgmr.msra.gmra.mrb[208].mxu1 %v8785_v41 }
 0x738   :  { %4956 = vmatmul.mubr.bf16.vlgmr.msra.gmra.mrb[112].mxu0 %v8785_v41  ;;  %4852 = vmatprep.mubr.bf16.mxu1 %v8800_v52  ;;  %v7610_v41 = vld [vmem:[#allocation17 + $0xd8] sm:$0xff]  }
 0x739   :  { %4965 = vmatprep.mubr.bf16.mxu0 %v8800_v52  ;;  %6858 = vmatpush3.bf16.msra.mxu1 %v7597_v60  ;;  %v7609_v52 = vld [vmem:[#allocation17 + $0x18] sm:$0xff]  }
 0x73a   :  { %6922 = vmatpush3.bf16.msra.mxu0 %v7599_v2  ;;  %6859 = vmatprep.subr.bf16.mxu1 %v7600_v6 }
 0x73b   :  { %6923 = vmatprep.subr.bf16.mxu0 %v7602_v29 }
 0x73d   :  { %6860 = vmatpush3.bf16.msra.mxu1 %v7601_v43 }
 0x73e   :  { %6924 = vmatpush3.bf16.msra.mxu0 %v7603_v36  ;;  %6861 = vmatprep.subr.bf16.mxu1 %v7604_v53 }
 0x73f   :  { %4853 = vmatmul.mubr.bf16.gmra.mrb[212].mxu1 %v8797_v55  ;;  %6925 = vmatprep.subr.bf16.mxu0 %v7606_v51 }
 0x740   :  { %4966 = vmatmul.mubr.bf16.gmra.mrb[116].mxu0 %v8797_v55  ;;  %4862 = vmatprep.mubr.bf16.mxu1 %v8812_v23  ;;  %v7618_v55 = vld [vmem:[#allocation17 + $0xe8] sm:$0xff]  }
 0x741   :  { %4975 = vmatprep.mubr.bf16.mxu0 %v8812_v23  ;;  %6862 = vmatpush3.bf16.msra.mxu1 %v7605_v61  ;;  %v7617_v23 = vld [vmem:[#allocation17 + $0x28] sm:$0xff]  }
 0x742   :  { %6926 = vmatpush3.bf16.msra.mxu0 %v7607_v33  ;;  %6863 = vmatprep.subr.bf16.mxu1 %v7608_v25 }
 0x743   :  { %6927 = vmatprep.subr.bf16.mxu0 %v7610_v41 }
 0x745   :  { %6864 = vmatpush3.bf16.msra.mxu1 %v7609_v52 }
 0x746   :  { %6928 = vmatpush3.bf16.msra.mxu0 %v7611_v7  ;;  %6865 = vmatprep.subr.bf16.mxu1 %v7612_v20 }
 0x747   :  { %4863 = vmatmul.mubr.bf16.gmra.mrb[216].mxu1 %v8809_v46  ;;  %6929 = vmatprep.subr.bf16.mxu0 %v7614_v11 }
 0x748   :  { %4976 = vmatmul.mubr.bf16.gmra.mrb[120].mxu0 %v8809_v46  ;;  %4872 = vmatprep.mubr.bf16.mxu1 %v8824_v5  ;;  %v7624_v46 = vld [vmem:[#allocation17 + $0x78] sm:$0xff]  }
 0x749   :  { %4985 = vmatprep.mubr.bf16.mxu0 %v8824_v5  ;;  %6866 = vmatpush3.bf16.msra.mxu1 %v7613_v16  ;;  %v7626_v5 = vld [vmem:[#allocation17 + $0xf8] sm:$0xff]  }
 0x74a   :  { %6930 = vmatpush3.bf16.msra.mxu0 %v7615_v32  ;;  %6867 = vmatprep.subr.bf16.mxu1 %v7616_v13  ;;  %v7629_v13 = vld [vmem:[#allocation17 + $0x100] sm:$0xff]  }
 0x74b   :  { %6931 = vmatprep.subr.bf16.mxu0 %v7618_v55 }
 0x74d   :  { %6868 = vmatpush3.bf16.msra.mxu1 %v7617_v23 }
 0x74e   :  { %6932 = vmatpush3.bf16.msra.mxu0 %v7619_v1  ;;  %6869 = vmatprep.subr.bf16.mxu1 %v7620_v38 }
 0x74f   :  { %4873 = vmatmul.mubr.bf16.gmra.mrb[220].mxu1 %v8821_v14  ;;  %6933 = vmatprep.subr.bf16.mxu0 %v7622_v22 }
 0x750   :  { %4986 = vmatmul.mubr.bf16.gmra.mrb[124].mxu0 %v8821_v14  ;;  %4882 = vmatprep.mubr.bf16.mxu1 %v8836_v30  ;;  %v7628_v14 = vld [vmem:[#allocation17 + $0x140] sm:$0xff]  }
 0x751   :  { %4995 = vmatprep.mubr.bf16.mxu0 %v8836_v30  ;;  %6870 = vmatpush3.bf16.msra.mxu1 %v7621_v24  ;;  %v7630_v30 = vld [vmem:[#allocation17 + $0x1c0] sm:$0xff]  }
 0x752   :  { %6934 = vmatpush3.bf16.msra.mxu0 %v7623_v17  ;;  %6871 = vmatprep.subr.bf16.mxu1 %v7624_v46  ;;  %v7631_v17 = vld [vmem:[#allocation17 + $0x180] sm:$0xff]   ;;  %v7632_v46 = vld [vmem:[#allocation17 + $0x148] sm:$0xff]  }
 0x753   :  { %6935 = vmatprep.subr.bf16.mxu0 %v7626_v5  ;;  %v7634_v5 = vld [vmem:[#allocation17 + $0x1c8] sm:$0xff]  }
 0x755   :  { %6872 = vmatpush3.bf16.msra.mxu1 %v7625_v40 }
 0x756   :  { %6936 = vmatpush3.bf16.msra.mxu0 %v7627_v19  ;;  %6985 = vmatprep.subr.bf16.mxu1 %v7628_v14 }
 0x757   :  { %4883 = vmatmul.mubr.bf16.gmra.mrb[224].mxu1 %v8833_v12  ;;  %7049 = vmatprep.subr.bf16.mxu0 %v7630_v30 }
 0x758   :  { %4996 = vmatmul.mubr.bf16.gmra.mrb[128].mxu0 %v8833_v12  ;;  %4892 = vmatprep.mubr.bf16.mxu1 %v8848_v50  ;;  %v8912_v12 = vld [vmem:[%s9193_s14] sm:$0xff] }
 0x759   :  { %5005 = vmatprep.mubr.bf16.mxu0 %v8848_v50  ;;  %v8921_v50 = vrot.slane %v8912_v12, %v287_v18 }
 0x75f   :  { %4893 = vmatmul.mubr.bf16.gmra.mrb[228].mxu1 %v8845_v31 }
 0x760   :  { %5006 = vmatmul.mubr.bf16.gmra.mrb[132].mxu0 %v8845_v31  ;;  %4902 = vmatprep.mubr.bf16.mxu1 %v8860_v62  ;;  %v8916_v31 = vrot.slane %v8912_v12, %v8306_v26 }
 0x761   :  { %5015 = vmatprep.mubr.bf16.mxu0 %v8860_v62  ;;  %v8930_v62 = vrot.slane %v8912_v12, %v291_v44 }
 0x767   :  { %4903 = vmatmul.mubr.bf16.gmra.mrb[232].mxu1 %v8857_v59 }
 0x768   :  { %5016 = vmatmul.mubr.bf16.gmra.mrb[136].mxu0 %v8857_v59  ;;  %4912 = vmatprep.mubr.bf16.mxu1 %v8871_v49  ;;  %v8925_v59 = vrot.slane %v8912_v12, %v8311_v58 }
 0x769   :  { %5025 = vmatprep.mubr.bf16.mxu0 %v8871_v49 }
 0x76f   :  { %4913 = vmatmul.mubr.bf16.gmra.mrb[236].mxu1 %v8869_v57 }
 0x770   :  { %5026 = vmatmul.mubr.bf16.gmra.mrb[140].mxu0 %v8869_v57 }
 0x7ca   :  { %v4618_v39 = vpop.f32.mrb[176].mxu1  ;;  %v4731_v8 = vpop.f32.mrb[80].mxu0 }
 0x7cb   :  { %v4619_v27 = vadd.f32 %v4618_v39, %v8916_v31  ;;  %v4732_v26 = vadd.f32 %v4731_v8, %v8921_v50  ;;  %v4620_v21 = vpop.f32.mrb[177].mxu1  ;;  %v4733_v10 = vpop.f32.mrb[81].mxu0 }
 0x7cc   :  { %v4621_v18 = vadd.f32 %v4620_v21, %v8925_v59  ;;  %v4734_v57 = vadd.f32 %v4733_v10, %v8930_v62  ;;  %v4622_v15 = vpop.f32.mrb[178].mxu1  ;;  %v4735_v58 = vpop.f32.mrb[82].mxu0 }
 0x7cd   :  { %v5036_v48 = vmul.f32 0.01, %v4619_v27  ;;  %v5038_v28 = vmul.f32 0.01, %v4732_v26  ;;  %v4623_v49 = vadd.f32 %v4622_v15, %v8916_v31  ;;  %v4736_v44 = vadd.f32 %v4735_v58, %v8921_v50  ;;  %v4624_v4 = vpop.f32.mrb[179].mxu1  ;;  %v4737_v9 = vpop.f32.mrb[83].mxu0 }
 0x7ce   :  { %v5037_v3 = vmul.f32 0.01, %v4621_v18  ;;  %v5039_v42 = vmul.f32 0.01, %v4734_v57  ;;  %v4625_v34 = vadd.f32 %v4624_v4, %v8925_v59  ;;  %v4738_v35 = vadd.f32 %v4737_v9, %v8930_v62  ;;  %v7635_v9 = vld [vmem:[#allocation17 + $0x188] sm:$0xff]  }
 0x7cf   :  { %v5044_v0 = vmul.f32 0.01, %v4623_v49  ;;  %v5046_v45 = vmul.f32 0.01, %v4736_v44  ;;  %v5164_v6 = vmax.f32 %v4619_v27, %v5036_v48  ;;  %v5166_v29 = vmax.f32 %v4732_v26, %v5038_v28  ;;  %v7633_v28 = vld [vmem:[#allocation17 + $0x108] sm:$0xff]  }
 0x7d0   :  { %v5045_v60 = vmul.f32 0.01, %v4625_v34  ;;  %v5047_v2 = vmul.f32 0.01, %v4738_v35  ;;  %v5165_v53 = vmax.f32 %v4621_v18, %v5037_v3  ;;  %v5167_v51 = vmax.f32 %v4734_v57, %v5039_v42  ;;  %v7636_v3 = vld [vmem:[#allocation17 + $0x150] sm:$0xff]  }
 0x7d1   :  { %v5172_v43 = vmax.f32 %v4623_v49, %v5044_v0  ;;  %v5174_v36 = vmax.f32 %v4736_v44, %v5046_v45 }
 0x7d2   :  { %v5173_v61 = vmax.f32 %v4625_v34, %v5045_v60  ;;  %v5175_v33 = vmax.f32 %v4738_v35, %v5047_v2  ;;  %v4628_v25 = vpop.f32.mrb[180].mxu1  ;;  %v4741_v41 = vpop.f32.mrb[84].mxu0 }
 0x7d3   :  { %v5292_v52 = vpack.c.bf16 %v5172_v43, %v5164_v6  ;;  %v5294_v7 = vpack.c.bf16 %v5174_v36, %v5166_v29  ;;  %v4629_v20 = vadd.f32 %v4628_v25, %v8916_v31  ;;  %v4742_v11 = vadd.f32 %v4741_v41, %v8921_v50  ;;  %v4630_v16 = vpop.f32.mrb[181].mxu1  ;;  %v4743_v32 = vpop.f32.mrb[85].mxu0 }
 0x7d4   :  { %v4631_v55 = vadd.f32 %v4630_v16, %v8925_v59  ;;  %v4744_v23 = vadd.f32 %v4743_v32, %v8930_v62  ;;  %v4632_v1 = vpop.f32.mrb[182].mxu1  ;;  %v4745_v38 = vpop.f32.mrb[86].mxu0  ;;  %v5293_v22 = vpack.c.bf16 %v5173_v61, %v5165_v53  ;;  %v5295_v24 = vpack.c.bf16 %v5175_v33, %v5167_v51  ;;  %v7637_v51 = vld [vmem:[#allocation17 + $0x110] sm:$0xff]   ;;  %v7640_v16 = vld [vmem:[#allocation17 + $0x158] sm:$0xff]  }
 0x7d5   :  { %v5052_v40 = vmul.f32 0.01, %v4629_v20  ;;  %v5054_v19 = vmul.f32 0.01, %v4742_v11  ;;  %v4633_v14 = vadd.f32 %v4632_v1, %v8916_v31  ;;  %v4746_v30 = vadd.f32 %v4745_v38, %v8921_v50  ;;  %v4634_v39 = vpop.f32.mrb[183].mxu1  ;;  %v4747_v8 = vpop.f32.mrb[87].mxu0 }
 0x7d6   :  { %v5053_v27 = vmul.f32 0.01, %v4631_v55  ;;  %v5055_v26 = vmul.f32 0.01, %v4744_v23  ;;  %v4635_v21 = vadd.f32 %v4634_v39, %v8925_v59  ;;  %v4748_v10 = vadd.f32 %v4747_v8, %v8930_v62  ;;  %5907 = vmatprep.mubr.bf16.mxu1 %v5293_v22  ;;  %6004 = vmatprep.mubr.bf16.mxu0 %v5295_v24  ;;  %v7641_v8 = vld [vmem:[#allocation17 + $0x118] sm:$0xff]  }
 0x7d7   :  { %v5060_v18 = vmul.f32 0.01, %v4633_v14  ;;  %v5062_v57 = vmul.f32 0.01, %v4746_v30  ;;  %5908 = vmatmul.mubr.bf16.vlgmr.msra.gmra.mrb[240].mxu1 %v5292_v52  ;;  %6005 = vmatmul.mubr.bf16.vlgmr.msra.gmra.mrb[144].mxu0 %v5294_v7  ;;  %v5180_v15 = vmax.f32 %v4629_v20, %v5052_v40  ;;  %v5182_v49 = vmax.f32 %v4742_v11, %v5054_v19  ;;  %v7638_v20 = vld [vmem:[#allocation17 + $0x1d0] sm:$0xff]  }
 0x7d8   :  { %v5061_v58 = vmul.f32 0.01, %v4635_v21  ;;  %v5063_v48 = vmul.f32 0.01, %v4748_v10  ;;  %6986 = vmatpush3.bf16.msra.mxu1 %v7629_v13  ;;  %7050 = vmatpush3.bf16.msra.mxu0 %v7631_v17  ;;  %v5181_v42 = vmax.f32 %v4631_v55, %v5053_v27  ;;  %v5183_v34 = vmax.f32 %v4744_v23, %v5055_v26  ;;  %v7639_v11 = vld [vmem:[#allocation17 + $0x190] sm:$0xff]  }
 0x7d9   :  { %v5188_v44 = vmax.f32 %v4633_v14, %v5060_v18  ;;  %v5190_v4 = vmax.f32 %v4746_v30, %v5062_v57  ;;  %6987 = vmatprep.subr.bf16.mxu1 %v7632_v46  ;;  %7051 = vmatprep.subr.bf16.mxu0 %v7634_v5  ;;  %v7642_v5 = vld [vmem:[#allocation17 + $0x1d8] sm:$0xff]   ;;  %v7644_v18 = vld [vmem:[#allocation17 + $0x160] sm:$0xff]  }
 0x7da   :  { %v5189_v35 = vmax.f32 %v4635_v21, %v5061_v58  ;;  %v5191_v0 = vmax.f32 %v4748_v10, %v5063_v48  ;;  %v4638_v45 = vpop.f32.mrb[184].mxu1  ;;  %v4751_v60 = vpop.f32.mrb[88].mxu0  ;;  %v7643_v10 = vld [vmem:[#allocation17 + $0x198] sm:$0xff]  }
 0x7db   :  { %v4639_v2 = vadd.f32 %v4638_v45, %v8916_v31  ;;  %v4752_v6 = vadd.f32 %v4751_v60, %v8921_v50  ;;  %v4640_v29 = vpop.f32.mrb[185].mxu1  ;;  %v4753_v43 = vpop.f32.mrb[89].mxu0  ;;  %v5300_v36 = vpack.c.bf16 %v5188_v44, %v5180_v15  ;;  %v5302_v53 = vpack.c.bf16 %v5190_v4, %v5182_v49 }
 0x7dc   :  { %v4641_v61 = vadd.f32 %v4640_v29, %v8925_v59  ;;  %v4754_v33 = vadd.f32 %v4753_v43, %v8930_v62  ;;  %v4642_v25 = vpop.f32.mrb[186].mxu1  ;;  %v4755_v41 = vpop.f32.mrb[90].mxu0  ;;  %v5301_v52 = vpack.c.bf16 %v5189_v35, %v5181_v42  ;;  %v5303_v7 = vpack.c.bf16 %v5191_v0, %v5183_v34  ;;  %6988 = vmatpush3.bf16.msra.mxu1 %v7633_v28  ;;  %v7645_v35 = vld [vmem:[#allocation17 + $0x120] sm:$0xff]  }
 0x7dd   :  { %v5068_v32 = vmul.f32 0.01, %v4639_v2  ;;  %v5070_v13 = vmul.f32 0.01, %v4752_v6  ;;  %v4643_v55 = vadd.f32 %v4642_v25, %v8916_v31  ;;  %v4756_v23 = vadd.f32 %v4755_v41, %v8921_v50  ;;  %v4644_v1 = vpop.f32.mrb[187].mxu1  ;;  %v4757_v38 = vpop.f32.mrb[91].mxu0  ;;  %7052 = vmatpush3.bf16.msra.mxu0 %v7635_v9  ;;  %6989 = vmatprep.subr.bf16.mxu1 %v7636_v3 }
 0x7de   :  { %v5069_v22 = vmul.f32 0.01, %v4641_v61  ;;  %v5071_v24 = vmul.f32 0.01, %v4754_v33  ;;  %v4645_v17 = vadd.f32 %v4644_v1, %v8925_v59  ;;  %v4758_v46 = vadd.f32 %v4757_v38, %v8930_v62  ;;  %5915 = vmatprep.mubr.bf16.mxu1 %v5301_v52  ;;  %6012 = vmatprep.mubr.bf16.mxu0 %v5303_v7  ;;  %v7646_v43 = vld [vmem:[#allocation17 + $0x1e0] sm:$0xff]  }
 0x7df   :  { %v5076_v40 = vmul.f32 0.01, %v4643_v55  ;;  %v5078_v19 = vmul.f32 0.01, %v4756_v23  ;;  %5916 = vmatmul.mubr.bf16.gmra.mrb[244].mxu1 %v5300_v36  ;;  %6013 = vmatmul.mubr.bf16.gmra.mrb[148].mxu0 %v5302_v53  ;;  %v5196_v14 = vmax.f32 %v4639_v2, %v5068_v32  ;;  %v5198_v27 = vmax.f32 %v4752_v6, %v5070_v13  ;;  %v7647_v36 = vld [vmem:[#allocation17 + $0x1a0] sm:$0xff]   ;;  %v7648_v53 = vld [vmem:[#allocation17 + $0x168] sm:$0xff]  }
 0x7e0   :  { %v5077_v30 = vmul.f32 0.01, %v4645_v17  ;;  %v5079_v39 = vmul.f32 0.01, %v4758_v46  ;;  %6990 = vmatpush3.bf16.msra.mxu1 %v7637_v51  ;;  %7053 = vmatprep.subr.bf16.mxu0 %v7638_v20  ;;  %v5197_v57 = vmax.f32 %v4641_v61, %v5069_v22  ;;  %v5199_v15 = vmax.f32 %v4754_v33, %v5071_v24  ;;  %v7650_v32 = vld [vmem:[#allocation17 + $0x1e8] sm:$0xff]  }
 0x7e1   :  { %v5204_v26 = vmax.f32 %v4643_v55, %v5076_v40  ;;  %v5206_v21 = vmax.f32 %v4756_v23, %v5078_v19  ;;  %7054 = vmatpush3.bf16.msra.mxu0 %v7639_v11  ;;  %6991 = vmatprep.subr.bf16.mxu1 %v7640_v16  ;;  %v7649_v22 = vld [vmem:[#allocation17 + $0x128] sm:$0xff]   ;;  %v7652_v40 = vld [vmem:[#allocation17 + $0x170] sm:$0xff]  }
 0x7e2   :  { %v5205_v58 = vmax.f32 %v4645_v17, %v5077_v30  ;;  %v5207_v48 = vmax.f32 %v4758_v46, %v5079_v39  ;;  %v4648_v28 = vpop.f32.mrb[188].mxu1  ;;  %v4761_v49 = vpop.f32.mrb[92].mxu0  ;;  %7055 = vmatprep.subr.bf16.mxu0 %v7642_v5  ;;  %v7651_v5 = vld [vmem:[#allocation17 + $0x1a8] sm:$0xff]  }
 0x7e3   :  { %v4649_v44 = vadd.f32 %v4648_v28, %v8916_v31  ;;  %v4762_v4 = vadd.f32 %v4761_v49, %v8921_v50  ;;  %v4650_v9 = vpop.f32.mrb[189].mxu1  ;;  %v4763_v3 = vpop.f32.mrb[93].mxu0  ;;  %v5308_v42 = vpack.c.bf16 %v5204_v26, %v5196_v14  ;;  %v5310_v34 = vpack.c.bf16 %v5206_v21, %v5198_v27 }
 0x7e4   :  { %v4651_v0 = vadd.f32 %v4650_v9, %v8925_v59  ;;  %v4764_v45 = vadd.f32 %v4763_v3, %v8930_v62  ;;  %v4652_v60 = vpop.f32.mrb[190].mxu1  ;;  %v4765_v2 = vpop.f32.mrb[94].mxu0  ;;  %v5309_v6 = vpack.c.bf16 %v5205_v58, %v5197_v57  ;;  %v5311_v29 = vpack.c.bf16 %v5207_v48, %v5199_v15  ;;  %6992 = vmatpush3.bf16.msra.mxu1 %v7641_v8  ;;  %v7653_v58 = vld [vmem:[#allocation17 + $0x130] sm:$0xff]  }
 0x7e5   :  { %v5084_v51 = vmul.f32 0.01, %v4649_v44  ;;  %v5086_v61 = vmul.f32 0.01, %v4762_v4  ;;  %v4653_v33 = vadd.f32 %v4652_v60, %v8916_v31  ;;  %v4766_v25 = vadd.f32 %v4765_v2, %v8921_v50  ;;  %v4654_v41 = vpop.f32.mrb[191].mxu1  ;;  %v4767_v52 = vpop.f32.mrb[95].mxu0  ;;  %7056 = vmatpush3.bf16.msra.mxu0 %v7643_v10  ;;  %6993 = vmatprep.subr.bf16.mxu1 %v7644_v18 }
 0x7e6   :  { %v5085_v7 = vmul.f32 0.01, %v4651_v0  ;;  %v5087_v20 = vmul.f32 0.01, %v4764_v45  ;;  %v4655_v11 = vadd.f32 %v4654_v41, %v8925_v59  ;;  %v4768_v16 = vadd.f32 %v4767_v52, %v8930_v62  ;;  %5923 = vmatprep.mubr.bf16.mxu1 %v5309_v6  ;;  %6020 = vmatprep.mubr.bf16.mxu0 %v5311_v29  ;;  %v7654_v3 = vld [vmem:[#allocation17 + $0x1f0] sm:$0xff]  }
 0x7e7   :  { %v5092_v13 = vmul.f32 0.01, %v4653_v33  ;;  %v5094_v55 = vmul.f32 0.01, %v4766_v25  ;;  %5924 = vmatmul.mubr.bf16.gmra.mrb[248].mxu1 %v5308_v42  ;;  %6021 = vmatmul.mubr.bf16.gmra.mrb[152].mxu0 %v5310_v34  ;;  %v5212_v23 = vmax.f32 %v4649_v44, %v5084_v51  ;;  %v5214_v24 = vmax.f32 %v4762_v4, %v5086_v61  ;;  %v7655_v42 = vld [vmem:[#allocation17 + $0x1b0] sm:$0xff]   ;;  %v7656_v34 = vld [vmem:[#allocation17 + $0x178] sm:$0xff]  }
 0x7e8   :  { %v5093_v1 = vmul.f32 0.01, %v4655_v11  ;;  %v5095_v38 = vmul.f32 0.01, %v4768_v16  ;;  %6994 = vmatpush3.bf16.msra.mxu1 %v7645_v35  ;;  %7057 = vmatprep.subr.bf16.mxu0 %v7646_v43  ;;  %v5213_v19 = vmax.f32 %v4651_v0, %v5085_v7  ;;  %v5215_v14 = vmax.f32 %v4764_v45, %v5087_v20  ;;  %v7658_v51 = vld [vmem:[#allocation17 + $0x1f8] sm:$0xff]  }
 0x7e9   :  { %v5220_v17 = vmax.f32 %v4653_v33, %v5092_v13  ;;  %v5222_v46 = vmax.f32 %v4766_v25, %v5094_v55  ;;  %7058 = vmatpush3.bf16.msra.mxu0 %v7647_v36  ;;  %6995 = vmatprep.subr.bf16.mxu1 %v7648_v53  ;;  %v7657_v7 = vld [vmem:[#allocation17 + $0x138] sm:$0xff]  }
 0x7ea   :  { %v5221_v30 = vmax.f32 %v4655_v11, %v5093_v1  ;;  %v5223_v39 = vmax.f32 %v4768_v16, %v5095_v38  ;;  %v4658_v8 = vpop.f32.mrb[192].mxu1  ;;  %v4771_v27 = vpop.f32.mrb[96].mxu0  ;;  %7059 = vmatprep.subr.bf16.mxu0 %v7650_v32  ;;  %v7659_v32 = vld [vmem:[#allocation17 + $0x1b8] sm:$0xff]  }
 0x7eb   :  { %v4659_v26 = vadd.f32 %v4658_v8, %v8916_v31  ;;  %v4772_v21 = vadd.f32 %v4771_v27, %v8921_v50  ;;  %v4660_v10 = vpop.f32.mrb[193].mxu1  ;;  %v4773_v18 = vpop.f32.mrb[97].mxu0  ;;  %v5316_v57 = vpack.c.bf16 %v5220_v17, %v5212_v23  ;;  %v5318_v15 = vpack.c.bf16 %v5222_v46, %v5214_v24 }
 0x7ec   :  { %v4661_v48 = vadd.f32 %v4660_v10, %v8925_v59  ;;  %v4774_v28 = vadd.f32 %v4773_v18, %v8930_v62  ;;  %v4662_v49 = vpop.f32.mrb[194].mxu1  ;;  %v4775_v44 = vpop.f32.mrb[98].mxu0  ;;  %v5317_v4 = vpack.c.bf16 %v5221_v30, %v5213_v19  ;;  %v5319_v9 = vpack.c.bf16 %v5223_v39, %v5215_v14  ;;  %6996 = vmatpush3.bf16.msra.mxu1 %v7649_v22 }
 0x7ed   :  { %v5100_v35 = vmul.f32 0.01, %v4659_v26  ;;  %v5102_v0 = vmul.f32 0.01, %v4772_v21  ;;  %v4663_v45 = vadd.f32 %v4662_v49, %v8916_v31  ;;  %v4776_v60 = vadd.f32 %v4775_v44, %v8921_v50  ;;  %v4664_v2 = vpop.f32.mrb[195].mxu1  ;;  %v4777_v6 = vpop.f32.mrb[99].mxu0  ;;  %7060 = vmatpush3.bf16.msra.mxu0 %v7651_v5  ;;  %6997 = vmatprep.subr.bf16.mxu1 %v7652_v40 }
 0x7ee   :  { %v5101_v29 = vmul.f32 0.01, %v4661_v48  ;;  %v5103_v43 = vmul.f32 0.01, %v4774_v28  ;;  %v4665_v36 = vadd.f32 %v4664_v2, %v8925_v59  ;;  %v4778_v53 = vadd.f32 %v4777_v6, %v8930_v62  ;;  %5931 = vmatprep.mubr.bf16.mxu1 %v5317_v4  ;;  %6028 = vmatprep.mubr.bf16.mxu0 %v5319_v9 }
 0x7ef   :  { %v5108_v61 = vmul.f32 0.01, %v4663_v45  ;;  %v5110_v33 = vmul.f32 0.01, %v4776_v60  ;;  %5932 = vmatmul.mubr.bf16.gmra.mrb[252].mxu1 %v5316_v57  ;;  %6029 = vmatmul.mubr.bf16.gmra.mrb[156].mxu0 %v5318_v15  ;;  %v5228_v25 = vmax.f32 %v4659_v26, %v5100_v35  ;;  %v5230_v20 = vmax.f32 %v4772_v21, %v5102_v0 }
 0x7f0   :  { %v5109_v41 = vmul.f32 0.01, %v4665_v36  ;;  %v5111_v52 = vmul.f32 0.01, %v4778_v53  ;;  %6998 = vmatpush3.bf16.msra.mxu1 %v7653_v58  ;;  %7061 = vmatprep.subr.bf16.mxu0 %v7654_v3  ;;  %v5229_v13 = vmax.f32 %v4661_v48, %v5101_v29  ;;  %v5231_v55 = vmax.f32 %v4774_v28, %v5103_v43 }
 0x7f1   :  { %v5236_v11 = vmax.f32 %v4663_v45, %v5108_v61  ;;  %v5238_v16 = vmax.f32 %v4776_v60, %v5110_v33  ;;  %7062 = vmatpush3.bf16.msra.mxu0 %v7655_v42  ;;  %6999 = vmatprep.subr.bf16.mxu1 %v7656_v34 }
 0x7f2   :  { %v5237_v23 = vmax.f32 %v4665_v36, %v5109_v41  ;;  %v5239_v1 = vmax.f32 %v4778_v53, %v5111_v52  ;;  %v4668_v38 = vpop.f32.mrb[196].mxu1  ;;  %v4781_v22 = vpop.f32.mrb[100].mxu0  ;;  %7063 = vmatprep.subr.bf16.mxu0 %v7658_v51 }
 0x7f3   :  { %v5324_v24 = vpack.c.bf16 %v5236_v11, %v5228_v25  ;;  %v4669_v17 = vadd.f32 %v4668_v38, %v8916_v31  ;;  %v4782_v46 = vadd.f32 %v4781_v22, %v8921_v50  ;;  %v4670_v5 = vpop.f32.mrb[197].mxu1  ;;  %v4783_v40 = vpop.f32.mrb[101].mxu0  ;;  %v5326_v19 = vpack.c.bf16 %v5238_v16, %v5230_v20 }
 0x7f4   :  { %v4671_v14 = vadd.f32 %v4670_v5, %v8925_v59  ;;  %v4784_v30 = vadd.f32 %v4783_v40, %v8930_v62  ;;  %v4672_v39 = vpop.f32.mrb[198].mxu1  ;;  %v4785_v8 = vpop.f32.mrb[102].mxu0  ;;  %v5325_v27 = vpack.c.bf16 %v5237_v23, %v5229_v13  ;;  %v5327_v26 = vpack.c.bf16 %v5239_v1, %v5231_v55  ;;  %7000 = vmatpush3.bf16.msra.mxu1 %v7657_v7 }
 0x7f5   :  { %v5116_v21 = vmul.f32 0.01, %v4669_v17  ;;  %v5118_v10 = vmul.f32 0.01, %v4782_v46  ;;  %v4673_v18 = vadd.f32 %v4672_v39, %v8916_v31  ;;  %v4786_v57 = vadd.f32 %v4785_v8, %v8921_v50  ;;  %v4674_v15 = vpop.f32.mrb[199].mxu1  ;;  %v4787_v58 = vpop.f32.mrb[103].mxu0  ;;  %7064 = vmatpush3.bf16.msra.mxu0 %v7659_v32 }
 0x7f6   :  { %v5117_v48 = vmul.f32 0.01, %v4671_v14  ;;  %v5119_v28 = vmul.f32 0.01, %v4784_v30  ;;  %v4675_v49 = vadd.f32 %v4674_v15, %v8925_v59  ;;  %v4788_v44 = vadd.f32 %v4787_v58, %v8930_v62  ;;  %5939 = vmatprep.mubr.bf16.mxu1 %v5325_v27  ;;  %6036 = vmatprep.mubr.bf16.mxu0 %v5327_v26 }
 0x7f7   :  { %v5124_v4 = vmul.f32 0.01, %v4673_v18  ;;  %v5126_v9 = vmul.f32 0.01, %v4786_v57  ;;  %5940 = vmatmul.mubr.bf16.gmra.mrb[0].mxu1 %v5324_v24  ;;  %6037 = vmatmul.mubr.bf16.gmra.mrb[160].mxu0 %v5326_v19  ;;  %v5244_v34 = vmax.f32 %v4669_v17, %v5116_v21  ;;  %v5246_v35 = vmax.f32 %v4782_v46, %v5118_v10 }
 0x7f8   :  { %v5125_v3 = vmul.f32 0.01, %v4675_v49  ;;  %v5127_v42 = vmul.f32 0.01, %v4788_v44  ;;  %v5245_v60 = vmax.f32 %v4671_v14, %v5117_v48  ;;  %v5247_v2 = vmax.f32 %v4784_v30, %v5119_v28 }
 0x7f9   :  { %v5252_v0 = vmax.f32 %v4673_v18, %v5124_v4  ;;  %v5254_v45 = vmax.f32 %v4786_v57, %v5126_v9 }
 0x7fa   :  { %v5253_v6 = vmax.f32 %v4675_v49, %v5125_v3  ;;  %v5255_v29 = vmax.f32 %v4788_v44, %v5127_v42  ;;  %v4678_v43 = vpop.f32.mrb[200].mxu1  ;;  %v4791_v36 = vpop.f32.mrb[104].mxu0 }
 0x7fb   :  { %v5332_v53 = vpack.c.bf16 %v5252_v0, %v5244_v34  ;;  %v4679_v51 = vadd.f32 %v4678_v43, %v8916_v31  ;;  %v4792_v61 = vadd.f32 %v4791_v36, %v8921_v50  ;;  %v4680_v33 = vpop.f32.mrb[201].mxu1  ;;  %v4793_v25 = vpop.f32.mrb[105].mxu0  ;;  %v5334_v41 = vpack.c.bf16 %v5254_v45, %v5246_v35 }
 0x7fc   :  { %v4681_v52 = vadd.f32 %v4680_v33, %v8925_v59  ;;  %v4794_v7 = vadd.f32 %v4793_v25, %v8930_v62  ;;  %v4682_v20 = vpop.f32.mrb[202].mxu1  ;;  %v4795_v11 = vpop.f32.mrb[106].mxu0  ;;  %v5333_v16 = vpack.c.bf16 %v5253_v6, %v5245_v60  ;;  %v5335_v32 = vpack.c.bf16 %v5255_v29, %v5247_v2 }
 0x7fd   :  { %v5132_v13 = vmul.f32 0.01, %v4679_v51  ;;  %v5134_v55 = vmul.f32 0.01, %v4792_v61  ;;  %v4683_v23 = vadd.f32 %v4682_v20, %v8916_v31  ;;  %v4796_v1 = vadd.f32 %v4795_v11, %v8921_v50  ;;  %v4684_v38 = vpop.f32.mrb[203].mxu1  ;;  %v4797_v22 = vpop.f32.mrb[107].mxu0 }
 0x7fe   :  { %v5133_v24 = vmul.f32 0.01, %v4681_v52  ;;  %v5135_v17 = vmul.f32 0.01, %v4794_v7  ;;  %v4685_v46 = vadd.f32 %v4684_v38, %v8925_v59  ;;  %v4798_v5 = vadd.f32 %v4797_v22, %v8930_v62  ;;  %5947 = vmatprep.mubr.bf16.mxu1 %v5333_v16  ;;  %6044 = vmatprep.mubr.bf16.mxu0 %v5335_v32 }
 0x7ff   :  { %v5140_v40 = vmul.f32 0.01, %v4683_v23  ;;  %v5142_v19 = vmul.f32 0.01, %v4796_v1  ;;  %5948 = vmatmul.mubr.bf16.gmra.mrb[4].mxu1 %v5332_v53  ;;  %6045 = vmatmul.mubr.bf16.gmra.mrb[164].mxu0 %v5334_v41  ;;  %v5260_v39 = vmax.f32 %v4679_v51, %v5132_v13  ;;  %v5262_v8 = vmax.f32 %v4792_v61, %v5134_v55 }
 0x800   :  { %v5141_v14 = vmul.f32 0.01, %v4685_v46  ;;  %v5143_v30 = vmul.f32 0.01, %v4798_v5  ;;  %v5261_v21 = vmax.f32 %v4681_v52, %v5133_v24  ;;  %v5263_v10 = vmax.f32 %v4794_v7, %v5135_v17 }
 0x801   :  { %v5268_v27 = vmax.f32 %v4683_v23, %v5140_v40  ;;  %v5270_v26 = vmax.f32 %v4796_v1, %v5142_v19  ;;  %v9014_v7 = vrot.slane %v8912_v12, %v307_v54 }
 0x802   :  { %v5269_v18 = vmax.f32 %v4685_v46, %v5141_v14  ;;  %v5271_v57 = vmax.f32 %v4798_v5, %v5143_v30  ;;  %v4688_v15 = vpop.f32.mrb[204].mxu1  ;;  %v4801_v58 = vpop.f32.mrb[108].mxu0 }
 0x803   :  { %v5340_v48 = vpack.c.bf16 %v5268_v27, %v5260_v39  ;;  %v4689_v28 = vadd.f32 %v4688_v15, %v8916_v31  ;;  %v4802_v49 = vadd.f32 %v4801_v58, %v8921_v50  ;;  %v4690_v44 = vpop.f32.mrb[205].mxu1  ;;  %v4803_v4 = vpop.f32.mrb[109].mxu0  ;;  %v5342_v9 = vpack.c.bf16 %v5270_v26, %v5262_v8 }
 0x804   :  { %v4691_v3 = vadd.f32 %v4690_v44, %v8925_v59  ;;  %v4804_v42 = vadd.f32 %v4803_v4, %v8930_v62  ;;  %v4692_v34 = vpop.f32.mrb[206].mxu1  ;;  %v4805_v35 = vpop.f32.mrb[110].mxu0  ;;  %v5341_v0 = vpack.c.bf16 %v5269_v18, %v5261_v21  ;;  %v5343_v45 = vpack.c.bf16 %v5271_v57, %v5263_v10 }
 0x805   :  { %v5148_v60 = vmul.f32 0.01, %v4689_v28  ;;  %v5150_v2 = vmul.f32 0.01, %v4802_v49  ;;  %v4693_v6 = vadd.f32 %v4692_v34, %v8916_v31  ;;  %v4806_v29 = vadd.f32 %v4805_v35, %v8921_v50  ;;  %v4694_v43 = vpop.f32.mrb[207].mxu1  ;;  %v4807_v36 = vpop.f32.mrb[111].mxu0 }
 0x806   :  { %v5149_v53 = vmul.f32 0.01, %v4691_v3  ;;  %v5151_v51 = vmul.f32 0.01, %v4804_v42  ;;  %v4695_v61 = vadd.f32 %v4694_v43, %v8925_v59  ;;  %v4808_v33 = vadd.f32 %v4807_v36, %v8930_v62  ;;  %5955 = vmatprep.mubr.bf16.mxu1 %v5341_v0  ;;  %6052 = vmatprep.mubr.bf16.mxu0 %v5343_v45 }
 0x807   :  { %v5156_v25 = vmul.f32 0.01, %v4693_v6  ;;  %v5158_v41 = vmul.f32 0.01, %v4806_v29  ;;  %5956 = vmatmul.mubr.bf16.gmra.mrb[8].mxu1 %v5340_v48  ;;  %6053 = vmatmul.mubr.bf16.gmra.mrb[168].mxu0 %v5342_v9  ;;  %v8999_v31 = vrot.slane %v8912_v12, %v295_v63  ;;  %v9004_v50 = vrot.slane %v8912_v12, %v303_v47 }
 0x808   :  { %v5157_v52 = vmul.f32 0.01, %v4695_v61  ;;  %v5159_v59 = vmul.f32 0.01, %v4808_v33  ;;  %v9009_v62 = vrot.slane %v8912_v12, %v299_v37  ;;  %v5276_v20 = vmax.f32 %v4689_v28, %v5148_v60 }
 0x809   :  { %v5278_v63 = vmax.f32 %v4802_v49, %v5150_v2  ;;  %v5284_v11 = vmax.f32 %v4693_v6, %v5156_v25  ;;  %v5286_v16 = vmax.f32 %v4806_v29, %v5158_v41  ;;  %v5277_v32 = vmax.f32 %v4691_v3, %v5149_v53 }
 0x80a   :  { %v5279_v13 = vmax.f32 %v4804_v42, %v5151_v51  ;;  %v5285_v47 = vmax.f32 %v4695_v61, %v5157_v52  ;;  %v5287_v55 = vmax.f32 %v4808_v33, %v5159_v59  ;;  %v4844_v23 = vpop.f32.mrb[208].mxu1 }
 0x80b   :  { %v5348_v1 = vpack.c.bf16 %v5284_v11, %v5276_v20  ;;  %v4845_v38 = vadd.f32 %v4844_v23, %v8999_v31  ;;  %v4957_v22 = vpop.f32.mrb[112].mxu0  ;;  %v4846_v37 = vpop.f32.mrb[209].mxu1  ;;  %v5350_v24 = vpack.c.bf16 %v5286_v16, %v5278_v63 }
 0x80c   :  { %v4958_v56 = vadd.f32 %v4957_v22, %v9004_v50  ;;  %v4847_v54 = vadd.f32 %v4846_v37, %v9009_v62  ;;  %v4959_v12 = vpop.f32.mrb[113].mxu0  ;;  %v4848_v17 = vpop.f32.mrb[210].mxu1  ;;  %v5349_v46 = vpack.c.bf16 %v5285_v47, %v5277_v32  ;;  %v5351_v5 = vpack.c.bf16 %v5287_v55, %v5279_v13 }
 0x80d   :  { %v5040_v40 = vmul.f32 0.01, %v4845_v38  ;;  %v4960_v19 = vadd.f32 %v4959_v12, %v9014_v7  ;;  %v4849_v14 = vadd.f32 %v4848_v17, %v8999_v31  ;;  %v4961_v30 = vpop.f32.mrb[114].mxu0  ;;  %v4850_v39 = vpop.f32.mrb[211].mxu1 }
 0x80e   :  { %v5042_v8 = vmul.f32 0.01, %v4958_v56  ;;  %v5041_v27 = vmul.f32 0.01, %v4847_v54  ;;  %v4962_v26 = vadd.f32 %v4961_v30, %v9004_v50  ;;  %v4851_v21 = vadd.f32 %v4850_v39, %v9009_v62  ;;  %v4963_v10 = vpop.f32.mrb[115].mxu0  ;;  %5963 = vmatprep.mubr.bf16.mxu1 %v5349_v46  ;;  %6060 = vmatprep.mubr.bf16.mxu0 %v5351_v5 }
 0x80f   :  { %v5043_v18 = vmul.f32 0.01, %v4960_v19  ;;  %v5048_v57 = vmul.f32 0.01, %v4849_v14  ;;  %v4964_v15 = vadd.f32 %v4963_v10, %v9014_v7  ;;  %5964 = vmatmul.mubr.bf16.gmra.mrb[12].mxu1 %v5348_v1  ;;  %6061 = vmatmul.mubr.bf16.gmra.mrb[172].mxu0 %v5350_v24  ;;  %v5168_v28 = vmax.f32 %v4845_v38, %v5040_v40 }
 0x810   :  { %v5050_v58 = vmul.f32 0.01, %v4962_v26  ;;  %v5049_v48 = vmul.f32 0.01, %v4851_v21  ;;  %v5170_v4 = vmax.f32 %v4958_v56, %v5042_v8  ;;  %v5169_v9 = vmax.f32 %v4847_v54, %v5041_v27 }
 0x811   :  { %v5176_v49 = vmax.f32 %v4849_v14, %v5048_v57  ;;  %v5051_v44 = vmul.f32 0.01, %v4964_v15  ;;  %v5171_v35 = vmax.f32 %v4960_v19, %v5043_v18 }
 0x812   :  { %v5178_v3 = vmax.f32 %v4962_v26, %v5050_v58  ;;  %v5177_v42 = vmax.f32 %v4851_v21, %v5049_v48  ;;  %v4854_v34 = vpop.f32.mrb[212].mxu1 }
 0x813   :  { %v5296_v0 = vpack.c.bf16 %v5176_v49, %v5168_v28  ;;  %v5179_v45 = vmax.f32 %v4964_v15, %v5051_v44  ;;  %v4855_v60 = vadd.f32 %v4854_v34, %v8999_v31  ;;  %v4967_v2 = vpop.f32.mrb[116].mxu0  ;;  %v4856_v6 = vpop.f32.mrb[213].mxu1 }
 0x814   :  { %v5298_v29 = vpack.c.bf16 %v5178_v3, %v5170_v4  ;;  %v4968_v43 = vadd.f32 %v4967_v2, %v9004_v50  ;;  %v4857_v36 = vadd.f32 %v4856_v6, %v9009_v62  ;;  %v4969_v53 = vpop.f32.mrb[117].mxu0  ;;  %v4858_v51 = vpop.f32.mrb[214].mxu1  ;;  %v5297_v61 = vpack.c.bf16 %v5177_v42, %v5169_v9 }
 0x815   :  { %v5056_v33 = vmul.f32 0.01, %v4855_v60  ;;  %v4970_v25 = vadd.f32 %v4969_v53, %v9014_v7  ;;  %v4859_v41 = vadd.f32 %v4858_v51, %v8999_v31  ;;  %v4971_v52 = vpop.f32.mrb[118].mxu0  ;;  %v4860_v59 = vpop.f32.mrb[215].mxu1  ;;  %v5299_v20 = vpack.c.bf16 %v5179_v45, %v5171_v35 }
 0x816   :  { %v5058_v63 = vmul.f32 0.01, %v4968_v43  ;;  %v5057_v11 = vmul.f32 0.01, %v4857_v36  ;;  %v4972_v16 = vadd.f32 %v4971_v52, %v9004_v50  ;;  %v4861_v32 = vadd.f32 %v4860_v59, %v9009_v62  ;;  %v4973_v13 = vpop.f32.mrb[119].mxu0  ;;  %6101 = vmatprep.mubr.bf16.mxu1 %v5297_v61 }
 0x817   :  { %v5059_v47 = vmul.f32 0.01, %v4970_v25  ;;  %v5064_v55 = vmul.f32 0.01, %v4859_v41  ;;  %v4974_v23 = vadd.f32 %v4973_v13, %v9014_v7  ;;  %6198 = vmatprep.mubr.bf16.mxu0 %v5299_v20  ;;  %6102 = vmatmul.mubr.bf16.vlgmr.msra.gmra.mrb[16].mxu1 %v5296_v0  ;;  %v5184_v22 = vmax.f32 %v4855_v60, %v5056_v33 }
 0x818   :  { %v5066_v1 = vmul.f32 0.01, %v4972_v16  ;;  %v5065_v38 = vmul.f32 0.01, %v4861_v32  ;;  %6199 = vmatmul.mubr.bf16.vlgmr.msra.gmra.mrb[176].mxu0 %v5298_v29  ;;  %v5186_v56 = vmax.f32 %v4968_v43, %v5058_v63  ;;  %v5185_v54 = vmax.f32 %v4857_v36, %v5057_v11 }
 0x819   :  { %v5192_v37 = vmax.f32 %v4859_v41, %v5064_v55  ;;  %v5067_v24 = vmul.f32 0.01, %v4974_v23  ;;  %v5187_v5 = vmax.f32 %v4970_v25, %v5059_v47 }
 0x81a   :  { %v5194_v12 = vmax.f32 %v4972_v16, %v5066_v1  ;;  %v5193_v17 = vmax.f32 %v4861_v32, %v5065_v38  ;;  %v4864_v46 = vpop.f32.mrb[216].mxu1 }
 0x81b   :  { %v5304_v40 = vpack.c.bf16 %v5192_v37, %v5184_v22  ;;  %v5195_v19 = vmax.f32 %v4974_v23, %v5067_v24  ;;  %v4865_v14 = vadd.f32 %v4864_v46, %v8999_v31  ;;  %v4977_v30 = vpop.f32.mrb[120].mxu0  ;;  %v4866_v39 = vpop.f32.mrb[217].mxu1 }
 0x81c   :  { %v4978_v8 = vadd.f32 %v4977_v30, %v9004_v50  ;;  %v4867_v27 = vadd.f32 %v4866_v39, %v9009_v62  ;;  %v4979_v26 = vpop.f32.mrb[121].mxu0  ;;  %v4868_v21 = vpop.f32.mrb[218].mxu1  ;;  %v5305_v10 = vpack.c.bf16 %v5193_v17, %v5185_v54  ;;  %v5306_v18 = vpack.c.bf16 %v5194_v12, %v5186_v56 }
 0x81d   :  { %v5072_v57 = vmul.f32 0.01, %v4865_v14  ;;  %v4980_v15 = vadd.f32 %v4979_v26, %v9014_v7  ;;  %v4869_v58 = vadd.f32 %v4868_v21, %v8999_v31  ;;  %v4981_v48 = vpop.f32.mrb[122].mxu0  ;;  %v4870_v28 = vpop.f32.mrb[219].mxu1  ;;  %v5307_v49 = vpack.c.bf16 %v5195_v19, %v5187_v5 }
 0x81e   :  { %v5074_v44 = vmul.f32 0.01, %v4978_v8  ;;  %v5073_v4 = vmul.f32 0.01, %v4867_v27  ;;  %v4982_v9 = vadd.f32 %v4981_v48, %v9004_v50  ;;  %v4871_v3 = vadd.f32 %v4870_v28, %v9009_v62  ;;  %v4983_v42 = vpop.f32.mrb[123].mxu0  ;;  %6109 = vmatprep.mubr.bf16.mxu1 %v5305_v10 }
 0x81f   :  { %v5075_v34 = vmul.f32 0.01, %v4980_v15  ;;  %v5080_v35 = vmul.f32 0.01, %v4869_v58  ;;  %v4984_v0 = vadd.f32 %v4983_v42, %v9014_v7  ;;  %6206 = vmatprep.mubr.bf16.mxu0 %v5307_v49  ;;  %6110 = vmatmul.mubr.bf16.gmra.mrb[20].mxu1 %v5304_v40  ;;  %v5200_v2 = vmax.f32 %v4865_v14, %v5072_v57 }
 0x820   :  { %v5082_v45 = vmul.f32 0.01, %v4982_v9  ;;  %v5081_v60 = vmul.f32 0.01, %v4871_v3  ;;  %6207 = vmatmul.mubr.bf16.gmra.mrb[180].mxu0 %v5306_v18  ;;  %v5202_v43 = vmax.f32 %v4978_v8, %v5074_v44  ;;  %v5201_v36 = vmax.f32 %v4867_v27, %v5073_v4 }
 0x821   :  { %v5208_v6 = vmax.f32 %v4869_v58, %v5080_v35  ;;  %v5083_v29 = vmul.f32 0.01, %v4984_v0  ;;  %v5203_v33 = vmax.f32 %v4980_v15, %v5075_v34 }
 0x822   :  { %v5210_v53 = vmax.f32 %v4982_v9, %v5082_v45  ;;  %v5209_v51 = vmax.f32 %v4871_v3, %v5081_v60  ;;  %v4874_v61 = vpop.f32.mrb[220].mxu1 }
 0x823   :  { %v5312_v25 = vpack.c.bf16 %v5208_v6, %v5200_v2  ;;  %v5211_v41 = vmax.f32 %v4984_v0, %v5083_v29  ;;  %v4875_v52 = vadd.f32 %v4874_v61, %v8999_v31  ;;  %v4987_v59 = vpop.f32.mrb[124].mxu0  ;;  %v4876_v20 = vpop.f32.mrb[221].mxu1 }
 0x824   :  { %v4988_v63 = vadd.f32 %v4987_v59, %v9004_v50  ;;  %v4877_v11 = vadd.f32 %v4876_v20, %v9009_v62  ;;  %v4989_v16 = vpop.f32.mrb[125].mxu0  ;;  %v4878_v32 = vpop.f32.mrb[222].mxu1  ;;  %v5313_v13 = vpack.c.bf16 %v5209_v51, %v5201_v36  ;;  %v5314_v47 = vpack.c.bf16 %v5210_v53, %v5202_v43 }
 0x825   :  { %v5088_v55 = vmul.f32 0.01, %v4875_v52  ;;  %v4990_v23 = vadd.f32 %v4989_v16, %v9014_v7  ;;  %v4879_v1 = vadd.f32 %v4878_v32, %v8999_v31  ;;  %v4991_v38 = vpop.f32.mrb[126].mxu0  ;;  %v4880_v22 = vpop.f32.mrb[223].mxu1  ;;  %v5315_v37 = vpack.c.bf16 %v5211_v41, %v5203_v33 }
 0x826   :  { %v5090_v24 = vmul.f32 0.01, %v4988_v63  ;;  %v5089_v56 = vmul.f32 0.01, %v4877_v11  ;;  %v4992_v54 = vadd.f32 %v4991_v38, %v9004_v50  ;;  %v4881_v12 = vadd.f32 %v4880_v22, %v9009_v62  ;;  %v4993_v17 = vpop.f32.mrb[127].mxu0  ;;  %6117 = vmatprep.mubr.bf16.mxu1 %v5313_v13 }
 0x827   :  { %v5091_v46 = vmul.f32 0.01, %v4990_v23  ;;  %v5096_v5 = vmul.f32 0.01, %v4879_v1  ;;  %v4994_v40 = vadd.f32 %v4993_v17, %v9014_v7  ;;  %6214 = vmatprep.mubr.bf16.mxu0 %v5315_v37  ;;  %6118 = vmatmul.mubr.bf16.gmra.mrb[24].mxu1 %v5312_v25  ;;  %v5216_v30 = vmax.f32 %v4875_v52, %v5088_v55 }
 0x828   :  { %v5098_v19 = vmul.f32 0.01, %v4992_v54  ;;  %v5097_v14 = vmul.f32 0.01, %v4881_v12  ;;  %6215 = vmatmul.mubr.bf16.gmra.mrb[184].mxu0 %v5314_v47  ;;  %v5218_v27 = vmax.f32 %v4988_v63, %v5090_v24  ;;  %v5217_v26 = vmax.f32 %v4877_v11, %v5089_v56 }
 0x829   :  { %v5224_v39 = vmax.f32 %v4879_v1, %v5096_v5  ;;  %v5099_v8 = vmul.f32 0.01, %v4994_v40  ;;  %v5219_v57 = vmax.f32 %v4990_v23, %v5091_v46 }
 0x82a   :  { %v5226_v21 = vmax.f32 %v4992_v54, %v5098_v19  ;;  %v5225_v10 = vmax.f32 %v4881_v12, %v5097_v14  ;;  %v4884_v18 = vpop.f32.mrb[224].mxu1 }
 0x82b   :  { %v5320_v15 = vpack.c.bf16 %v5224_v39, %v5216_v30  ;;  %v5227_v58 = vmax.f32 %v4994_v40, %v5099_v8  ;;  %v4885_v48 = vadd.f32 %v4884_v18, %v8999_v31  ;;  %v4997_v28 = vpop.f32.mrb[128].mxu0  ;;  %v4886_v49 = vpop.f32.mrb[225].mxu1 }
 0x82c   :  { %v4998_v44 = vadd.f32 %v4997_v28, %v9004_v50  ;;  %v4887_v4 = vadd.f32 %v4886_v49, %v9009_v62  ;;  %v4999_v9 = vpop.f32.mrb[129].mxu0  ;;  %v4888_v3 = vpop.f32.mrb[226].mxu1  ;;  %v5321_v42 = vpack.c.bf16 %v5225_v10, %v5217_v26  ;;  %v5322_v34 = vpack.c.bf16 %v5226_v21, %v5218_v27 }
 0x82d   :  { %v5104_v35 = vmul.f32 0.01, %v4885_v48  ;;  %v5000_v0 = vadd.f32 %v4999_v9, %v9014_v7  ;;  %v4889_v45 = vadd.f32 %v4888_v3, %v8999_v31  ;;  %v5001_v60 = vpop.f32.mrb[130].mxu0  ;;  %v4890_v2 = vpop.f32.mrb[227].mxu1  ;;  %v5323_v6 = vpack.c.bf16 %v5227_v58, %v5219_v57 }
 0x82e   :  { %v5106_v29 = vmul.f32 0.01, %v4998_v44  ;;  %v5105_v43 = vmul.f32 0.01, %v4887_v4  ;;  %v5002_v36 = vadd.f32 %v5001_v60, %v9004_v50  ;;  %v4891_v53 = vadd.f32 %v4890_v2, %v9009_v62  ;;  %v5003_v51 = vpop.f32.mrb[131].mxu0  ;;  %6125 = vmatprep.mubr.bf16.mxu1 %v5321_v42 }
 0x82f   :  { %v5107_v61 = vmul.f32 0.01, %v5000_v0  ;;  %v5112_v33 = vmul.f32 0.01, %v4889_v45  ;;  %v5004_v25 = vadd.f32 %v5003_v51, %v9014_v7  ;;  %6222 = vmatprep.mubr.bf16.mxu0 %v5323_v6  ;;  %6126 = vmatmul.mubr.bf16.gmra.mrb[28].mxu1 %v5320_v15  ;;  %v5232_v59 = vmax.f32 %v4885_v48, %v5104_v35 }
 0x830   :  { %v5114_v41 = vmul.f32 0.01, %v5002_v36  ;;  %v5113_v52 = vmul.f32 0.01, %v4891_v53  ;;  %6223 = vmatmul.mubr.bf16.gmra.mrb[188].mxu0 %v5322_v34  ;;  %v5234_v11 = vmax.f32 %v4998_v44, %v5106_v29  ;;  %v5233_v16 = vmax.f32 %v4887_v4, %v5105_v43 }
 0x831   :  { %v5240_v20 = vmax.f32 %v4889_v45, %v5112_v33  ;;  %v5115_v63 = vmul.f32 0.01, %v5004_v25  ;;  %v5235_v55 = vmax.f32 %v5000_v0, %v5107_v61 }
 0x832   :  { %v5242_v32 = vmax.f32 %v5002_v36, %v5114_v41  ;;  %v5241_v13 = vmax.f32 %v4891_v53, %v5113_v52  ;;  %v4894_v47 = vpop.f32.mrb[228].mxu1 }
 0x833   :  { %v5328_v23 = vpack.c.bf16 %v5240_v20, %v5232_v59  ;;  %v5243_v1 = vmax.f32 %v5004_v25, %v5115_v63  ;;  %v4895_v38 = vadd.f32 %v4894_v47, %v8999_v31  ;;  %v5007_v22 = vpop.f32.mrb[132].mxu0  ;;  %v4896_v37 = vpop.f32.mrb[229].mxu1 }
 0x834   :  { %v5008_v24 = vadd.f32 %v5007_v22, %v9004_v50  ;;  %v4897_v56 = vadd.f32 %v4896_v37, %v9009_v62  ;;  %v5009_v54 = vpop.f32.mrb[133].mxu0  ;;  %v4898_v12 = vpop.f32.mrb[230].mxu1  ;;  %v5329_v17 = vpack.c.bf16 %v5241_v13, %v5233_v16  ;;  %v5330_v46 = vpack.c.bf16 %v5242_v32, %v5234_v11 }
 0x835   :  { %v5120_v5 = vmul.f32 0.01, %v4895_v38  ;;  %v5010_v40 = vadd.f32 %v5009_v54, %v9014_v7  ;;  %v4899_v19 = vadd.f32 %v4898_v12, %v8999_v31  ;;  %v5011_v14 = vpop.f32.mrb[134].mxu0  ;;  %v4900_v30 = vpop.f32.mrb[231].mxu1  ;;  %v5331_v39 = vpack.c.bf16 %v5243_v1, %v5235_v55 }
 0x836   :  { %v5122_v8 = vmul.f32 0.01, %v5008_v24  ;;  %v5121_v27 = vmul.f32 0.01, %v4897_v56  ;;  %v5012_v26 = vadd.f32 %v5011_v14, %v9004_v50  ;;  %v4901_v21 = vadd.f32 %v4900_v30, %v9009_v62  ;;  %v5013_v10 = vpop.f32.mrb[135].mxu0  ;;  %6133 = vmatprep.mubr.bf16.mxu1 %v5329_v17 }
 0x837   :  { %v5123_v18 = vmul.f32 0.01, %v5010_v40  ;;  %v5128_v57 = vmul.f32 0.01, %v4899_v19  ;;  %v5014_v15 = vadd.f32 %v5013_v10, %v9014_v7  ;;  %6230 = vmatprep.mubr.bf16.mxu0 %v5331_v39  ;;  %6134 = vmatmul.mubr.bf16.gmra.mrb[32].mxu1 %v5328_v23  ;;  %v5248_v28 = vmax.f32 %v4895_v38, %v5120_v5 }
 0x838   :  { %v5130_v58 = vmul.f32 0.01, %v5012_v26  ;;  %v5129_v48 = vmul.f32 0.01, %v4901_v21  ;;  %6231 = vmatmul.mubr.bf16.gmra.mrb[192].mxu0 %v5330_v46  ;;  %v5250_v4 = vmax.f32 %v5008_v24, %v5122_v8  ;;  %v5249_v9 = vmax.f32 %v4897_v56, %v5121_v27 }
 0x839   :  { %v5256_v49 = vmax.f32 %v4899_v19, %v5128_v57  ;;  %v5131_v44 = vmul.f32 0.01, %v5014_v15  ;;  %v5251_v35 = vmax.f32 %v5010_v40, %v5123_v18 }
 0x83a   :  { %v5258_v3 = vmax.f32 %v5012_v26, %v5130_v58  ;;  %v5257_v42 = vmax.f32 %v4901_v21, %v5129_v48  ;;  %v4904_v34 = vpop.f32.mrb[232].mxu1 }
 0x83b   :  { %v5336_v0 = vpack.c.bf16 %v5256_v49, %v5248_v28  ;;  %v5259_v45 = vmax.f32 %v5014_v15, %v5131_v44  ;;  %v4905_v60 = vadd.f32 %v4904_v34, %v8999_v31  ;;  %v5017_v2 = vpop.f32.mrb[136].mxu0  ;;  %v4906_v6 = vpop.f32.mrb[233].mxu1 }
 0x83c   :  { %v5018_v29 = vadd.f32 %v5017_v2, %v9004_v50  ;;  %v4907_v43 = vadd.f32 %v4906_v6, %v9009_v62  ;;  %v5019_v36 = vpop.f32.mrb[137].mxu0  ;;  %v4908_v53 = vpop.f32.mrb[234].mxu1  ;;  %v5337_v51 = vpack.c.bf16 %v5257_v42, %v5249_v9  ;;  %v5338_v61 = vpack.c.bf16 %v5258_v3, %v5250_v4 }
 0x83d   :  { %v5136_v33 = vmul.f32 0.01, %v4905_v60  ;;  %v5020_v25 = vadd.f32 %v5019_v36, %v9014_v7  ;;  %v4909_v41 = vadd.f32 %v4908_v53, %v8999_v31  ;;  %v5021_v52 = vpop.f32.mrb[138].mxu0  ;;  %v4910_v59 = vpop.f32.mrb[235].mxu1  ;;  %v5339_v20 = vpack.c.bf16 %v5259_v45, %v5251_v35 }
 0x83e   :  { %v5138_v63 = vmul.f32 0.01, %v5018_v29  ;;  %v5137_v11 = vmul.f32 0.01, %v4907_v43  ;;  %v5022_v16 = vadd.f32 %v5021_v52, %v9004_v50  ;;  %v4911_v32 = vadd.f32 %v4910_v59, %v9009_v62  ;;  %v5023_v13 = vpop.f32.mrb[139].mxu0  ;;  %6141 = vmatprep.mubr.bf16.mxu1 %v5337_v51 }
 0x83f   :  { %v5139_v47 = vmul.f32 0.01, %v5020_v25  ;;  %v5144_v55 = vmul.f32 0.01, %v4909_v41  ;;  %v5024_v23 = vadd.f32 %v5023_v13, %v9014_v7  ;;  %6238 = vmatprep.mubr.bf16.mxu0 %v5339_v20  ;;  %6142 = vmatmul.mubr.bf16.gmra.mrb[36].mxu1 %v5336_v0  ;;  %v5264_v22 = vmax.f32 %v4905_v60, %v5136_v33  ;;  %v9083_v52 = vld [vmem:[%s9195_s16] ss:$0 sm:$0xff] }
 0x840   :  { %v5146_v1 = vmul.f32 0.01, %v5022_v16  ;;  %v5145_v38 = vmul.f32 0.01, %v4911_v32  ;;  %6239 = vmatmul.mubr.bf16.gmra.mrb[196].mxu0 %v5338_v61  ;;  %v5266_v56 = vmax.f32 %v5018_v29, %v5138_v63  ;;  %v5265_v54 = vmax.f32 %v4907_v43, %v5137_v11 }
 0x841   :  { %v5272_v37 = vmax.f32 %v4909_v41, %v5144_v55  ;;  %v5147_v24 = vmul.f32 0.01, %v5024_v23  ;;  %v5267_v5 = vmax.f32 %v5020_v25, %v5139_v47 }
 0x842   :  { %v5274_v12 = vmax.f32 %v5022_v16, %v5146_v1  ;;  %v5273_v17 = vmax.f32 %v4911_v32, %v5145_v38  ;;  %v4914_v46 = vpop.f32.mrb[236].mxu1 }
 0x843   :  { %v5344_v40 = vpack.c.bf16 %v5272_v37, %v5264_v22  ;;  %v5275_v19 = vmax.f32 %v5024_v23, %v5147_v24  ;;  %v4915_v14 = vadd.f32 %v4914_v46, %v8999_v31  ;;  %v5027_v30 = vpop.f32.mrb[140].mxu0  ;;  %v4916_v39 = vpop.f32.mrb[237].mxu1 }
 0x844   :  { %v5028_v8 = vadd.f32 %v5027_v30, %v9004_v50  ;;  %v4917_v27 = vadd.f32 %v4916_v39, %v9009_v62  ;;  %v5029_v26 = vpop.f32.mrb[141].mxu0  ;;  %v4918_v21 = vpop.f32.mrb[238].mxu1  ;;  %v5345_v10 = vpack.c.bf16 %v5273_v17, %v5265_v54  ;;  %v5346_v18 = vpack.c.bf16 %v5274_v12, %v5266_v56 }
 0x845   :  { %v5152_v57 = vmul.f32 0.01, %v4915_v14  ;;  %v5030_v15 = vadd.f32 %v5029_v26, %v9014_v7  ;;  %v4919_v58 = vadd.f32 %v4918_v21, %v8999_v31  ;;  %v5031_v48 = vpop.f32.mrb[142].mxu0  ;;  %v4920_v28 = vpop.f32.mrb[239].mxu1  ;;  %v5347_v49 = vpack.c.bf16 %v5275_v19, %v5267_v5 }
 0x846   :  { %v5154_v44 = vmul.f32 0.01, %v5028_v8  ;;  %v5153_v4 = vmul.f32 0.01, %v4917_v27  ;;  %v5032_v9 = vadd.f32 %v5031_v48, %v9004_v50  ;;  %v4921_v3 = vadd.f32 %v4920_v28, %v9009_v62  ;;  %v5033_v42 = vpop.f32.mrb[143].mxu0  ;;  %6149 = vmatprep.mubr.bf16.mxu1 %v5345_v10 }
 0x847   :  { %v5155_v34 = vmul.f32 0.01, %v5030_v15  ;;  %v5160_v35 = vmul.f32 0.01, %v4919_v58  ;;  %v5034_v0 = vadd.f32 %v5033_v42, %v9014_v7  ;;  %6246 = vmatprep.mubr.bf16.mxu0 %v5347_v49  ;;  %6150 = vmatmul.mubr.bf16.gmra.mrb[40].mxu1 %v5344_v40  ;;  %v5280_v31 = vmax.f32 %v4915_v14, %v5152_v57 }
 0x848   :  { %v5162_v45 = vmul.f32 0.01, %v5032_v9  ;;  %v5161_v60 = vmul.f32 0.01, %v4921_v3  ;;  %6247 = vmatmul.mubr.bf16.gmra.mrb[200].mxu0 %v5346_v18  ;;  %v5282_v29 = vmax.f32 %v5028_v8, %v5154_v44  ;;  %v5281_v43 = vmax.f32 %v4917_v27, %v5153_v4 }
 0x849   :  { %v5288_v2 = vmax.f32 %v4919_v58, %v5160_v35  ;;  %v5163_v6 = vmul.f32 0.01, %v5034_v0  ;;  %v5283_v53 = vmax.f32 %v5030_v15, %v5155_v34 }
 0x84a   :  { %v5290_v36 = vmax.f32 %v5032_v9, %v5162_v45  ;;  %v5289_v50 = vmax.f32 %v4921_v3, %v5161_v60 }
 0x84b   :  { %v5352_v62 = vpack.c.bf16 %v5288_v2, %v5280_v31  ;;  %v5291_v51 = vmax.f32 %v5034_v0, %v5163_v6 }
 0x84c   :  { %v5353_v61 = vpack.c.bf16 %v5289_v50, %v5281_v43  ;;  %v5354_v33 = vpack.c.bf16 %v5290_v36, %v5282_v29 }
 0x84d   :  { %v5355_v25 = vpack.c.bf16 %v5291_v51, %v5283_v53 }
 0x84e   :  { %6157 = vmatprep.mubr.bf16.mxu1 %v5353_v61 }
 0x84f   :  { %6254 = vmatprep.mubr.bf16.mxu0 %v5355_v25  ;;  %6158 = vmatmul.mubr.bf16.gmra.mrb[44].mxu1 %v5352_v62 }
 0x850   :  { %6255 = vmatmul.mubr.bf16.gmra.mrb[204].mxu0 %v5354_v33 }
 0x8aa   :  { %v6873_v7 = vpop.f32.mrb[240].mxu1  ;;  %v6937_v41 = vpop.f32.mrb[144].mxu0 }
 0x8ab   :  { %v6874_v59 = vpop.f32.mrb[241].mxu1  ;;  %v6938_v20 = vpop.f32.mrb[145].mxu0 }
 0x8ac   :  { %v6875_v63 = vadd.f32 %v6874_v59, %v6873_v7  ;;  %v6939_v11 = vadd.f32 %v6938_v20, %v6937_v41  ;;  %v6876_v16 = vpop.f32.mrb[242].mxu1  ;;  %v6940_v32 = vpop.f32.mrb[146].mxu0 }
 0x8ad   :  { %v6877_v13 = vpop.f32.mrb[243].mxu1  ;;  %v6941_v47 = vpop.f32.mrb[147].mxu0 }
 0x8ae   :  { %v5910_v55 = vadd.f32 %v6875_v63, %v9083_v52  ;;  %v6878_v23 = vadd.f32 %v6877_v13, %v6876_v16  ;;  %v6942_v1 = vadd.f32 %v6941_v47, %v6940_v32 }
 0x8af   :  { %7897 = shalt.err (!%p7894_p0)
}
 0x8b0   :  { %s7898_s22 = scalar_lea.hbm %s9196_s17, 2048 }
 0x8b1   :  { %p7899_p1 = scmp.ne.s32.totalorder %s9196_s17, %s7898_s22  ;;  %p7902_p2 = scmp.lt.u32.totalorder %s7898_s22, %s9196_s17 }
 0x8b3   :  { %p7904_p3 = pnand %p7902_p2, %p7899_p1 }
 0x8b5   :  { %7907 = shalt.err (!%p7904_p3)
}
 0x8b6   :  { %6290 = dma.vmem_to_hbm [thread:$0]  %s6285_s21, 2048, %s9196_s17, [#allocation4], %s7950_s28, %s7950_s28, %s7951_s0   ;;  %v9101_v38 = vadd.f32 %v6939_v11, %v5910_v55  ;;  %v5913_v22 = vadd.f32 %v6878_v23, %v9083_v52  ;;  %v6879_v24 = vpop.f32.mrb[244].mxu1  ;;  %v6943_v56 = vpop.f32.mrb[148].mxu0 }
 0x8b7   :  { %v6880_v54 = vpop.f32.mrb[245].mxu1  ;;  %v6944_v12 = vpop.f32.mrb[149].mxu0  ;;  %s7964_s17 = smov [#allocation20]  }
 0x8b8   :  { %v9104_v37 = vadd.f32 %v6942_v1, %v5913_v22  ;;  %v6881_v17 = vadd.f32 %v6880_v54, %v6879_v24  ;;  %v6945_v46 = vadd.f32 %v6944_v12, %v6943_v56  ;;  %v6882_v5 = vpop.f32.mrb[246].mxu1  ;;  %v6946_v40 = vpop.f32.mrb[150].mxu0  ;;  %s6296_s13 = sshll.u32 %s7964_s17, 4  ;;  %s6297_s13 = int_to_ptr.vmem [resolvable:$true] %s6296_s13 }
 0x8b9   :  { %v6883_v19 = vpop.f32.mrb[247].mxu1  ;;  %v6947_v14 = vpop.f32.mrb[151].mxu0  ;;  %s7908_s2 = scalar_lea.vmem %s6297_s13, 2048  ;;  %p7913_p5 = scmp.lt.s32.totalorder %s6297_s13, %s6297_s13 }
 0x8ba   :  { %v5918_v30 = vadd.f32 %v6881_v17, %v9083_v52  ;;  %v6884_v39 = vadd.f32 %v6883_v19, %v6882_v5  ;;  %v6948_v8 = vadd.f32 %v6947_v14, %v6946_v40  ;;  %v6885_v10 = vpop.f32.mrb[248].mxu1  ;;  %v6949_v18 = vpop.f32.mrb[152].mxu0  ;;  %p7909_p4 = scmp.ne.s32.totalorder %s6297_s13, %s7908_s2  ;;  %p7914_p6 = scmp.lt.s32.totalorder %s7908_s2, %s7908_s2 }
 0x8bb   :  { %v6886_v57 = vpop.f32.mrb[249].mxu1  ;;  %v6950_v15 = vpop.f32.mrb[153].mxu0 }
 0x8bc   :  { %v9107_v27 = vadd.f32 %v6945_v46, %v5918_v30  ;;  %v5921_v26 = vadd.f32 %v6884_v39, %v9083_v52  ;;  %v6887_v58 = vadd.f32 %v6886_v57, %v6885_v10  ;;  %v6951_v48 = vadd.f32 %v6950_v15, %v6949_v18  ;;  %v6888_v28 = vpop.f32.mrb[250].mxu1  ;;  %v6952_v49 = vpop.f32.mrb[154].mxu0  ;;  %p7915_p7 = por %p7914_p6, %p7913_p5 }
 0x8bd   :  { %v6889_v44 = vpop.f32.mrb[251].mxu1  ;;  %v6953_v4 = vpop.f32.mrb[155].mxu0 }
 0x8be   :  { %v9110_v21 = vadd.f32 %v6948_v8, %v5921_v26  ;;  %v5926_v9 = vadd.f32 %v6887_v58, %v9083_v52  ;;  %v6890_v3 = vadd.f32 %v6889_v44, %v6888_v28  ;;  %v6954_v42 = vadd.f32 %v6953_v4, %v6952_v49  ;;  %p7916_p8 = pnand %p7915_p7, %p7909_p4 }
 0x8c0   :  { %v9113_v34 = vadd.f32 %v6951_v48, %v5926_v9  ;;  %v5929_v35 = vadd.f32 %v6890_v3, %v9083_v52 }
 0x8c2   :  { %v9116_v0 = vadd.f32 %v6954_v42, %v5929_v35  ;;  %v6891_v45 = vpop.f32.mrb[252].mxu1  ;;  %v6955_v60 = vpop.f32.mrb[156].mxu0 }
 0x8c3   :  { %v6892_v31 = vpop.f32.mrb[253].mxu1  ;;  %v6956_v2 = vpop.f32.mrb[157].mxu0 }
 0x8c4   :  { %v6893_v6 = vadd.f32 %v6892_v31, %v6891_v45  ;;  %v6957_v29 = vadd.f32 %v6956_v2, %v6955_v60  ;;  %v6894_v43 = vpop.f32.mrb[254].mxu1  ;;  %v6958_v36 = vpop.f32.mrb[158].mxu0 }
 0x8c5   :  { %v6895_v50 = vpop.f32.mrb[255].mxu1  ;;  %v6959_v53 = vpop.f32.mrb[159].mxu0 }
 0x8c6   :  { %v5934_v62 = vadd.f32 %v6893_v6, %v9083_v52  ;;  %v6896_v51 = vadd.f32 %v6895_v50, %v6894_v43  ;;  %v6960_v61 = vadd.f32 %v6959_v53, %v6958_v36 }
 0x8c8   :  { %v9119_v33 = vadd.f32 %v6957_v29, %v5934_v62  ;;  %v5937_v25 = vadd.f32 %v6896_v51, %v9083_v52 }
 0x8ca   :  { %v9122_v7 = vadd.f32 %v6960_v61, %v5937_v25  ;;  %v6897_v41 = vpop.f32.mrb[0].mxu1  ;;  %v6961_v59 = vpop.f32.mrb[160].mxu0 }
 0x8cb   :  { %v6898_v20 = vpop.f32.mrb[1].mxu1  ;;  %v6962_v63 = vpop.f32.mrb[161].mxu0 }
 0x8cc   :  { %v6899_v11 = vadd.f32 %v6898_v20, %v6897_v41  ;;  %v6963_v16 = vadd.f32 %v6962_v63, %v6961_v59  ;;  %v6900_v32 = vpop.f32.mrb[2].mxu1  ;;  %v6964_v13 = vpop.f32.mrb[162].mxu0 }
 0x8cd   :  { %v6901_v47 = vpop.f32.mrb[3].mxu1  ;;  %v6965_v55 = vpop.f32.mrb[163].mxu0 }
 0x8ce   :  { %v5942_v23 = vadd.f32 %v6899_v11, %v9083_v52  ;;  %v6902_v1 = vadd.f32 %v6901_v47, %v6900_v32  ;;  %v6966_v22 = vadd.f32 %v6965_v55, %v6964_v13 }
 0x8d0   :  { %v9125_v24 = vadd.f32 %v6963_v16, %v5942_v23  ;;  %v5945_v56 = vadd.f32 %v6902_v1, %v9083_v52 }
 0x8d2   :  { %v9128_v54 = vadd.f32 %v6966_v22, %v5945_v56  ;;  %v6903_v12 = vpop.f32.mrb[4].mxu1  ;;  %v6967_v17 = vpop.f32.mrb[164].mxu0 }
 0x8d3   :  { %v6904_v46 = vpop.f32.mrb[5].mxu1  ;;  %v6968_v5 = vpop.f32.mrb[165].mxu0 }
 0x8d4   :  { %v6905_v40 = vadd.f32 %v6904_v46, %v6903_v12  ;;  %v6969_v19 = vadd.f32 %v6968_v5, %v6967_v17  ;;  %v6906_v14 = vpop.f32.mrb[6].mxu1  ;;  %v6970_v30 = vpop.f32.mrb[166].mxu0 }
 0x8d5   :  { %v6907_v39 = vpop.f32.mrb[7].mxu1  ;;  %v6971_v8 = vpop.f32.mrb[167].mxu0 }
 0x8d6   :  { %v5950_v26 = vadd.f32 %v6905_v40, %v9083_v52  ;;  %v6908_v10 = vadd.f32 %v6907_v39, %v6906_v14  ;;  %v6972_v18 = vadd.f32 %v6971_v8, %v6970_v30 }
 0x8d8   :  { %v9131_v57 = vadd.f32 %v6969_v19, %v5950_v26  ;;  %v5953_v15 = vadd.f32 %v6908_v10, %v9083_v52 }
 0x8da   :  { %v9134_v58 = vadd.f32 %v6972_v18, %v5953_v15  ;;  %v6909_v48 = vpop.f32.mrb[8].mxu1  ;;  %v6973_v28 = vpop.f32.mrb[168].mxu0 }
 0x8db   :  { %v6910_v49 = vpop.f32.mrb[9].mxu1  ;;  %v6974_v44 = vpop.f32.mrb[169].mxu0 }
 0x8dc   :  { %v6911_v4 = vadd.f32 %v6910_v49, %v6909_v48  ;;  %v6975_v9 = vadd.f32 %v6974_v44, %v6973_v28  ;;  %v6912_v3 = vpop.f32.mrb[10].mxu1  ;;  %v6976_v42 = vpop.f32.mrb[170].mxu0 }
 0x8dd   :  { %v6913_v35 = vpop.f32.mrb[11].mxu1  ;;  %v6977_v45 = vpop.f32.mrb[171].mxu0 }
 0x8de   :  { %v5958_v60 = vadd.f32 %v6911_v4, %v9083_v52  ;;  %v6914_v31 = vadd.f32 %v6913_v35, %v6912_v3  ;;  %v6978_v2 = vadd.f32 %v6977_v45, %v6976_v42 }
 0x8e0   :  { %v9137_v6 = vadd.f32 %v6975_v9, %v5958_v60  ;;  %v5961_v29 = vadd.f32 %v6914_v31, %v9083_v52 }
 0x8e2   :  { %v9140_v43 = vadd.f32 %v6978_v2, %v5961_v29  ;;  %v6915_v36 = vpop.f32.mrb[12].mxu1  ;;  %v6979_v50 = vpop.f32.mrb[172].mxu0 }
 0x8e3   :  { %v6916_v53 = vpop.f32.mrb[13].mxu1  ;;  %v6980_v62 = vpop.f32.mrb[173].mxu0 }
 0x8e4   :  { %v6917_v51 = vadd.f32 %v6916_v53, %v6915_v36  ;;  %v6981_v61 = vadd.f32 %v6980_v62, %v6979_v50  ;;  %v6918_v25 = vpop.f32.mrb[14].mxu1  ;;  %v6982_v41 = vpop.f32.mrb[174].mxu0 }
 0x8e5   :  { %v6919_v59 = vpop.f32.mrb[15].mxu1  ;;  %v6983_v20 = vpop.f32.mrb[175].mxu0 }
 0x8e6   :  { %v5966_v63 = vadd.f32 %v6917_v51, %v9083_v52  ;;  %v6920_v11 = vadd.f32 %v6919_v59, %v6918_v25  ;;  %v6984_v16 = vadd.f32 %v6983_v20, %v6982_v41 }
 0x8e8   :  { %v9143_v32 = vadd.f32 %v6981_v61, %v5966_v63  ;;  %v5969_v13 = vadd.f32 %v6920_v11, %v9083_v52 }
 0x8ea   :  { %v9146_v47 = vadd.f32 %v6984_v16, %v5969_v13  ;;  %v7001_v55 = vpop.f32.mrb[16].mxu1 }
 0x8eb   :  { %v7065_v23 = vpop.f32.mrb[176].mxu0  ;;  %v7002_v1 = vpop.f32.mrb[17].mxu1 }
 0x8ec   :  { %v7003_v22 = vadd.f32 %v7002_v1, %v7001_v55  ;;  %v7066_v56 = vpop.f32.mrb[177].mxu0  ;;  %v7004_v12 = vpop.f32.mrb[18].mxu1 }
 0x8ed   :  { %v7067_v17 = vadd.f32 %v7066_v56, %v7065_v23  ;;  %v7068_v46 = vpop.f32.mrb[178].mxu0  ;;  %v7005_v5 = vpop.f32.mrb[19].mxu1 }
 0x8ee   :  { %v6104_v40 = vadd.f32 %v7003_v22, %v9101_v38  ;;  %v7006_v19 = vadd.f32 %v7005_v5, %v7004_v12  ;;  %v7069_v14 = vpop.f32.mrb[179].mxu0 }
 0x8ef   :  { %v7070_v30 = vadd.f32 %v7069_v14, %v7068_v46 }
 0x8f0   :  { %v6201_v39 = vadd.f32 %v7067_v17, %v6104_v40  ;;  %v6107_v8 = vadd.f32 %v7006_v19, %v9104_v37 }
 0x8f2   :  { %6263 = vst [vmem:[#allocation20] sm:$0xff] %v6201_v39  ;;  %v6204_v52 = vadd.f32 %v7070_v30, %v6107_v8  ;;  %v7007_v26 = vpop.f32.mrb[20].mxu1 }
 0x8f3   :  { %v7071_v10 = vpop.f32.mrb[180].mxu0  ;;  %v7008_v18 = vpop.f32.mrb[21].mxu1 }
 0x8f4   :  { %6264 = vst [vmem:[#allocation20 + $0x8] sm:$0xff] %v6204_v52  ;;  %v7009_v15 = vadd.f32 %v7008_v18, %v7007_v26  ;;  %v7072_v48 = vpop.f32.mrb[181].mxu0  ;;  %v7010_v28 = vpop.f32.mrb[22].mxu1 }
 0x8f5   :  { %v7073_v49 = vadd.f32 %v7072_v48, %v7071_v10  ;;  %v7074_v44 = vpop.f32.mrb[182].mxu0  ;;  %v7011_v4 = vpop.f32.mrb[23].mxu1 }
 0x8f6   :  { %v6112_v38 = vadd.f32 %v7009_v15, %v9107_v27  ;;  %v7012_v9 = vadd.f32 %v7011_v4, %v7010_v28  ;;  %v7075_v3 = vpop.f32.mrb[183].mxu0 }
 0x8f7   :  { %v7076_v42 = vadd.f32 %v7075_v3, %v7074_v44 }
 0x8f8   :  { %v6209_v35 = vadd.f32 %v7073_v49, %v6112_v38  ;;  %v6115_v37 = vadd.f32 %v7012_v9, %v9110_v21 }
 0x8fa   :  { %6265 = vst [vmem:[#allocation20 + $0x10] sm:$0xff] %v6209_v35  ;;  %v6212_v45 = vadd.f32 %v7076_v42, %v6115_v37  ;;  %v7013_v60 = vpop.f32.mrb[24].mxu1 }
 0x8fb   :  { %v7077_v31 = vpop.f32.mrb[184].mxu0  ;;  %v7014_v2 = vpop.f32.mrb[25].mxu1 }
 0x8fc   :  { %6266 = vst [vmem:[#allocation20 + $0x18] sm:$0xff] %v6212_v45  ;;  %v7015_v29 = vadd.f32 %v7014_v2, %v7013_v60  ;;  %v7078_v36 = vpop.f32.mrb[185].mxu0  ;;  %v7016_v50 = vpop.f32.mrb[26].mxu1 }
 0x8fd   :  { %v7079_v53 = vadd.f32 %v7078_v36, %v7077_v31  ;;  %v7080_v62 = vpop.f32.mrb[186].mxu0  ;;  %v7017_v51 = vpop.f32.mrb[27].mxu1 }
 0x8fe   :  { %v6120_v27 = vadd.f32 %v7015_v29, %v9113_v34  ;;  %v7018_v61 = vadd.f32 %v7017_v51, %v7016_v50  ;;  %v7081_v25 = vpop.f32.mrb[187].mxu0 }
 0x8ff   :  { %v7082_v41 = vadd.f32 %v7081_v25, %v7080_v62 }
 0x900   :  { %v6217_v59 = vadd.f32 %v7079_v53, %v6120_v27  ;;  %v6123_v21 = vadd.f32 %v7018_v61, %v9116_v0 }
 0x902   :  { %6267 = vst [vmem:[#allocation20 + $0x20] sm:$0xff] %v6217_v59  ;;  %v6220_v20 = vadd.f32 %v7082_v41, %v6123_v21  ;;  %v7019_v63 = vpop.f32.mrb[28].mxu1 }
 0x903   :  { %v7083_v11 = vpop.f32.mrb[188].mxu0  ;;  %v7020_v16 = vpop.f32.mrb[29].mxu1 }
 0x904   :  { %6268 = vst [vmem:[#allocation20 + $0x28] sm:$0xff] %v6220_v20  ;;  %v7021_v13 = vadd.f32 %v7020_v16, %v7019_v63  ;;  %v7084_v55 = vpop.f32.mrb[189].mxu0  ;;  %v7022_v23 = vpop.f32.mrb[30].mxu1 }
 0x905   :  { %v7085_v1 = vadd.f32 %v7084_v55, %v7083_v11  ;;  %v7086_v22 = vpop.f32.mrb[190].mxu0  ;;  %v7023_v56 = vpop.f32.mrb[31].mxu1 }
 0x906   :  { %v6128_v34 = vadd.f32 %v7021_v13, %v9119_v33  ;;  %v7024_v12 = vadd.f32 %v7023_v56, %v7022_v23  ;;  %v7087_v17 = vpop.f32.mrb[191].mxu0 }
 0x907   :  { %v7088_v46 = vadd.f32 %v7087_v17, %v7086_v22 }
 0x908   :  { %v6225_v5 = vadd.f32 %v7085_v1, %v6128_v34  ;;  %v6131_v0 = vadd.f32 %v7024_v12, %v9122_v7 }
 0x90a   :  { %6269 = vst [vmem:[#allocation20 + $0x30] sm:$0xff] %v6225_v5  ;;  %v6228_v40 = vadd.f32 %v7088_v46, %v6131_v0  ;;  %v7025_v19 = vpop.f32.mrb[32].mxu1 }
 0x90b   :  { %v7089_v14 = vpop.f32.mrb[192].mxu0  ;;  %v7026_v30 = vpop.f32.mrb[33].mxu1 }
 0x90c   :  { %6270 = vst [vmem:[#allocation20 + $0x38] sm:$0xff] %v6228_v40  ;;  %v7027_v39 = vadd.f32 %v7026_v30, %v7025_v19  ;;  %v7090_v8 = vpop.f32.mrb[193].mxu0  ;;  %v7028_v52 = vpop.f32.mrb[34].mxu1 }
 0x90d   :  { %v7091_v26 = vadd.f32 %v7090_v8, %v7089_v14  ;;  %v7092_v10 = vpop.f32.mrb[194].mxu0  ;;  %v7029_v18 = vpop.f32.mrb[35].mxu1 }
 0x90e   :  { %v6136_v33 = vadd.f32 %v7027_v39, %v9125_v24  ;;  %v7030_v15 = vadd.f32 %v7029_v18, %v7028_v52  ;;  %v7093_v48 = vpop.f32.mrb[195].mxu0 }
 0x90f   :  { %v7094_v28 = vadd.f32 %v7093_v48, %v7092_v10 }
 0x910   :  { %v6233_v49 = vadd.f32 %v7091_v26, %v6136_v33  ;;  %v6139_v7 = vadd.f32 %v7030_v15, %v9128_v54 }
 0x912   :  { %6271 = vst [vmem:[#allocation20 + $0x40] sm:$0xff] %v6233_v49  ;;  %v6236_v44 = vadd.f32 %v7094_v28, %v6139_v7  ;;  %v7031_v4 = vpop.f32.mrb[36].mxu1 }
 0x913   :  { %v7095_v38 = vpop.f32.mrb[196].mxu0  ;;  %v7032_v9 = vpop.f32.mrb[37].mxu1 }
 0x914   :  { %6272 = vst [vmem:[#allocation20 + $0x48] sm:$0xff] %v6236_v44  ;;  %v7033_v3 = vadd.f32 %v7032_v9, %v7031_v4  ;;  %v7096_v42 = vpop.f32.mrb[197].mxu0  ;;  %v7034_v35 = vpop.f32.mrb[38].mxu1 }
 0x915   :  { %v7097_v37 = vadd.f32 %v7096_v42, %v7095_v38  ;;  %v7098_v45 = vpop.f32.mrb[198].mxu0  ;;  %v7035_v60 = vpop.f32.mrb[39].mxu1 }
 0x916   :  { %v6144_v24 = vadd.f32 %v7033_v3, %v9131_v57  ;;  %v7036_v31 = vadd.f32 %v7035_v60, %v7034_v35  ;;  %v7099_v2 = vpop.f32.mrb[199].mxu0 }
 0x917   :  { %v7100_v29 = vadd.f32 %v7099_v2, %v7098_v45 }
 0x918   :  { %v6241_v36 = vadd.f32 %v7097_v37, %v6144_v24  ;;  %v6147_v54 = vadd.f32 %v7036_v31, %v9134_v58 }
 0x91a   :  { %6273 = vst [vmem:[#allocation20 + $0x50] sm:$0xff] %v6241_v36  ;;  %v6244_v50 = vadd.f32 %v7100_v29, %v6147_v54  ;;  %v7037_v53 = vpop.f32.mrb[40].mxu1 }
 0x91b   :  { %v7101_v62 = vpop.f32.mrb[200].mxu0  ;;  %v7038_v51 = vpop.f32.mrb[41].mxu1 }
 0x91c   :  { %6274 = vst [vmem:[#allocation20 + $0x58] sm:$0xff] %v6244_v50  ;;  %v7039_v27 = vadd.f32 %v7038_v51, %v7037_v53  ;;  %v7102_v61 = vpop.f32.mrb[201].mxu0  ;;  %v7040_v25 = vpop.f32.mrb[42].mxu1 }
 0x91d   :  { %v7103_v41 = vadd.f32 %v7102_v61, %v7101_v62  ;;  %v7104_v59 = vpop.f32.mrb[202].mxu0  ;;  %v7041_v21 = vpop.f32.mrb[43].mxu1 }
 0x91e   :  { %v6152_v57 = vadd.f32 %v7039_v27, %v9137_v6  ;;  %v7042_v20 = vadd.f32 %v7041_v21, %v7040_v25  ;;  %v7105_v63 = vpop.f32.mrb[203].mxu0 }
 0x91f   :  { %v7106_v11 = vadd.f32 %v7105_v63, %v7104_v59 }
 0x920   :  { %v6249_v16 = vadd.f32 %v7103_v41, %v6152_v57  ;;  %v6155_v58 = vadd.f32 %v7042_v20, %v9140_v43 }
 0x922   :  { %6275 = vst [vmem:[#allocation20 + $0x60] sm:$0xff] %v6249_v16  ;;  %v6252_v13 = vadd.f32 %v7106_v11, %v6155_v58  ;;  %v7043_v55 = vpop.f32.mrb[44].mxu1 }
 0x923   :  { %v7107_v23 = vpop.f32.mrb[204].mxu0  ;;  %v7044_v1 = vpop.f32.mrb[45].mxu1 }
 0x924   :  { %6276 = vst [vmem:[#allocation20 + $0x68] sm:$0xff] %v6252_v13  ;;  %v7045_v22 = vadd.f32 %v7044_v1, %v7043_v55  ;;  %v7108_v56 = vpop.f32.mrb[205].mxu0  ;;  %v7046_v34 = vpop.f32.mrb[46].mxu1 }
 0x925   :  { %v7109_v12 = vadd.f32 %v7108_v56, %v7107_v23  ;;  %v7110_v17 = vpop.f32.mrb[206].mxu0  ;;  %v7047_v46 = vpop.f32.mrb[47].mxu1 }
 0x926   :  { %v6160_v6 = vadd.f32 %v7045_v22, %v9143_v32  ;;  %v7048_v5 = vadd.f32 %v7047_v46, %v7046_v34  ;;  %v7111_v0 = vpop.f32.mrb[207].mxu0 }
 0x927   :  { %v7112_v40 = vadd.f32 %v7111_v0, %v7110_v17 }
 0x928   :  { %v6257_v43 = vadd.f32 %v7109_v12, %v6160_v6  ;;  %v6163_v19 = vadd.f32 %v7048_v5, %v9146_v47 }
 0x92a   :  { %6277 = vst [vmem:[#allocation20 + $0x70] sm:$0xff] %v6257_v43  ;;  %v6260_v14 = vadd.f32 %v7112_v40, %v6163_v19 }
 0x92c   :  { %6278 = vst [vmem:[#allocation20 + $0x78] sm:$0xff] %v6260_v14 }
 0x92d   :  { %7919 = shalt.err (!%p7916_p8)
}
 0x92e   :  { %s9216_s4 = sld [smem:[#allocation33_spill]] }
 0x934   :  { %s7920_s1 = scalar_lea.hbm %s9216_s4, 2048 }
 0x935   :  { %p7921_p9 = scmp.ne.s32.totalorder %s9216_s4, %s7920_s1  ;;  %p7924_p10 = scmp.lt.u32.totalorder %s7920_s1, %s9216_s4 }
 0x937   :  { %p7926_p11 = pnand %p7924_p10, %p7921_p9 }
 0x939   :  { %7929 = shalt.err (!%p7926_p11)
}
 0x93a   :  { %6302 = dma.vmem_to_hbm [thread:$0]  %s6297_s13, 2048, %s9216_s4, [#allocation21], %s7950_s28, %s7950_s28, %s7951_s0  }
 0x93b   :  { %7942 = dma.done.wait [#allocation4], 2048  }
 0x93c   :  { %7943 = vsyncadd [#allocation4], 4294965248 }
 0x93d   :  { %7944 = dma.done.wait [#allocation21], 2048  }
 0x93e   :  { %7945 = vsyncadd [#allocation21], 4294965248 }
 0x93f   :  { %6309 = vsyncpa [#allocation3], 1 }
 0x940   :  { %6310 = vsyncpa [#allocation6], 1 }
 0x941   :  { %6311 = vsyncpa [#allocation9], 1 }
 0x942   :  { %6312 = vsyncpa [#allocation12], 1 }
 0x943   :  { %6313 = vsyncpa [#allocation15], 1 }
 0x944   :  { %6314 = vsyncpa [#allocation18], 1 }
 0x945   :  { %6315 = vsyncpa [#allocation4], 1 }
 0x946   :  { %6316 = vsyncpa [#allocation21], 1 }

</bundles_post_ra>
